<compile_context>
chip_gen: v7x
topology: tpu7x:2x2x1
jax: 0.10.0
libtpu: 0.0.40
codegen_flags: <defaults>
</compile_context>

<pallas_src>
import numpy as np
import jax
import jax.numpy as jnp
from jax.experimental import pallas as pl
from jax.experimental.pallas import tpu as pltpu

# ---- model hyper-parameters (consistent with the module) ----
ACTION_SPACE = 8            # args.action_space
HIDDEN = 128                # args.hidden_state_sz
NUM_CATE = 100              # overridden to 100 in __init__
RESNET_EMB = 512
DET_FEAT = 256              # detection feature width (263 = 256+4+1+1+1 total)
SPATIAL = 49                # 7 * 7
CONV_OUT = 64
ACT_EMB = 10
LSTM_IN = CONV_OUT * SPATIAL        # 3136
IMG_PAD = 128                       # lane-dense image_embedding output width


def _sigmoid(x):
    # numerically-stable sigmoid via tanh (EUP path); same math as 1/(1+exp(-x))
    return 0.5 * (jnp.tanh(0.5 * x) + 1.0)


# --------------------------------------------------------------------------
# Fused kernel: embedding (conv1, detection_feature, embed_action, pointwise)
#               + 2-layer LSTM (seq len 1) + actor / critic heads.
# --------------------------------------------------------------------------
def basemodel_kernel(state_ref, feat_ref, extra_ref, ap_ref, h_ref, c_ref,
                     c1w_ref, c1b_ref,
                     dwf_ref, dwe_ref, db_ref,
                     aw_ref, ab_ref,
                     pwi_ref, pwd_ref, pwa_ref, pwb_ref,
                     wih0_hbm, whh0_ref, wih1_ref, whh1_ref,
                     actw_ref, cr1w_ref, cr2w_ref,
                     img_ref, packed_ref,
                     wih0_vmem, xflat_scr, dma_sem):
    f32 = jnp.float32
    bf16 = jnp.bfloat16
    H = HIDDEN

    # ---- start the big LSTM input-weight DMA first; it overlaps the embedding ----
    wih0_copy = pltpu.make_async_copy(wih0_hbm, wih0_vmem, dma_sem)
    wih0_copy.start()

    # ---- conv1 (1x1) in channel-major: (64,512) @ (512,49) ----
    img = jnp.dot(c1w_ref[...], state_ref[...],
                  preferred_element_type=f32) + c1b_ref[...]
    img = jnp.maximum(img, 0.0)                                    # (64, 49)
    # lane-dense output block (64, 128); real data in the first 49 lanes
    img_ref[:, 0:SPATIAL] = img
    img_ref[:, SPATIAL:IMG_PAD] = jnp.zeros((CONV_OUT, IMG_PAD - SPATIAL), f32)

    # ---- detection_feature Linear(263,49): features matmul + folded extras ----
    det = (jnp.dot(feat_ref[...], dwf_ref[...], preferred_element_type=f32)
           + jnp.dot(extra_ref[...], dwe_ref[...], preferred_element_type=f32)
           + db_ref[...])
    det = jnp.maximum(det, 0.0)                                    # (100, 49) channel-major

    # ---- embed_action Linear(A,10) folded into the pointwise bias column ----
    act_vec = jnp.maximum(
        jnp.dot(aw_ref[...], ap_ref[...], preferred_element_type=f32) + ab_ref[...],
        0.0)                                                       # (10, 1)
    bias_col = jnp.dot(pwa_ref[...], act_vec,
                       preferred_element_type=f32) + pwb_ref[...]  # (64, 1)

    # ---- pointwise 1x1 conv over concat([img, det, act]) channel groups ----
    x = (jnp.dot(pwi_ref[...], img, preferred_element_type=f32)
         + jnp.dot(pwd_ref[...], det, preferred_element_type=f32)
         + bias_col)                                               # (64,1) bcast over 49 lanes
    x = jnp.maximum(x, 0.0)                                        # (64, 49) channel-major

    # ---- relayout x into the torch channel-major flatten order: one (1,3136) row ----
    # flatten index is c*49 + s; 64 tiny static strided stores, every lane written.
    for c in range(CONV_OUT):
        xflat_scr[0:1, c * SPATIAL:(c + 1) * SPATIAL] = x[c:c + 1, :]

    # ---- LSTM layer 0: single GEMV (1,3136)x(3136,512) over the bf16 weight ----
    wih0_copy.wait()
    g0 = jnp.dot(xflat_scr[...].astype(bf16), wih0_vmem[...],
                 preferred_element_type=f32)                       # (1, 4H)
    g0 = g0 + jnp.dot(h_ref[0:1, :], whh0_ref[...].astype(f32),
                      preferred_element_type=f32)

    i0 = _sigmoid(g0[:, 0:H])
    f0 = _sigmoid(g0[:, H:2 * H])
    gg0 = jnp.tanh(g0[:, 2 * H:3 * H])
    o0 = _sigmoid(g0[:, 3 * H:4 * H])
    c0n = f0 * c_ref[0:1, :] + i0 * gg0
    h0n = o0 * jnp.tanh(c0n)

    # ---- LSTM layer 1 (hidden states kept in f32 for the recurrent matmuls) ----
    g1 = (jnp.dot(h0n, wih1_ref[...].astype(f32), preferred_element_type=f32)
          + jnp.dot(h_ref[1:2, :], whh1_ref[...].astype(f32),
                    preferred_element_type=f32))
    i1 = _sigmoid(g1[:, 0:H])
    f1 = _sigmoid(g1[:, H:2 * H])
    gg1 = jnp.tanh(g1[:, 2 * H:3 * H])
    o1 = _sigmoid(g1[:, 3 * H:4 * H])
    c1n = f1 * c_ref[1:2, :] + i1 * gg1
    h1n = o1 * jnp.tanh(c1n)

    # ---- actor / critic heads ----
    actor = jnp.dot(h1n, actw_ref[...], preferred_element_type=f32)       # (1, A)
    critic = jnp.dot(jnp.dot(h1n, cr1w_ref[...], preferred_element_type=f32),
                     cr2w_ref[...], preferred_element_type=f32)           # (1, 1)

    # ---- pack all small outputs into one lane-dense (8, 128) block ----
    packed_ref[...] = jnp.zeros((8, HIDDEN), f32)
    packed_ref[0:1, :] = h0n
    packed_ref[1:2, :] = h1n
    packed_ref[2:3, :] = c0n
    packed_ref[3:4, :] = c1n
    packed_ref[4:5, 0:ACTION_SPACE] = actor
    packed_ref[5:6, 0:1] = critic


# --------------------------------------------------------------------------
# Parameter init (deterministic, PyTorch weight layout) + kernel-layout prep
# --------------------------------------------------------------------------
def init_pt_params(key):
    def nrm(k, shape, scale=0.02):
        return scale * jax.random.normal(k, shape, jnp.float32)
    ks = list(jax.random.split(key, 16))
    return {
        'conv1_w': nrm(ks[0], (CONV_OUT, RESNET_EMB)),      # Conv2d(512,64,1) squeezed
        'conv1_b': nrm(ks[1], (CONV_OUT,)),
        'det_w':   nrm(ks[2], (SPATIAL, DET_FEAT + 7)),     # Linear(263,49)
        'det_b':   nrm(ks[3], (SPATIAL,)),
        'act_w':   nrm(ks[4], (ACT_EMB, ACTION_SPACE)),     # Linear(A,10)
        'act_b':   nrm(ks[5], (ACT_EMB,)),
        'pw_w':    nrm(ks[6], (CONV_OUT, CONV_OUT + NUM_CATE + ACT_EMB)),
        'pw_b':    nrm(ks[7], (CONV_OUT,)),
        'wih0':    nrm(ks[8], (4 * HIDDEN, LSTM_IN)),
        'whh0':    nrm(ks[9], (4 * HIDDEN, HIDDEN)),
        'wih1':    nrm(ks[10], (4 * HIDDEN, HIDDEN)),
        'whh1':    nrm(ks[11], (4 * HIDDEN, HIDDEN)),
        'actor_w': nrm(ks[12], (ACTION_SPACE, HIDDEN), 0.01),
        'crit1_w': nrm(ks[13], (64, HIDDEN)),
        'crit2_w': nrm(ks[14], (1, 64)),
        # lstm / actor / critic biases are explicitly zeroed in __init__
    }


def _round_bf16(a):
    return a.astype(jnp.bfloat16).astype(jnp.float32)


def quantize_big_weights(pt):
    """Round the bf16-stored weights (and the bf16 part of det_w) so the kernel
    and the f32 reference use identical values."""
    out = dict(pt)
    for k in ('conv1_w', 'wih0', 'whh0', 'wih1', 'whh1'):
        out[k] = _round_bf16(pt[k])
    out['det_w'] = pt['det_w'].at[:, :DET_FEAT].set(_round_bf16(pt['det_w'][:, :DET_FEAT]))
    return out


def prep_kernel_params(pt):
    bf16 = jnp.bfloat16
    det_wT = pt['det_w'].T                                    # (263, 49)
    # extras weight: bbox(4) + label + score + indicator, zero-padded to 8 rows
    dwe = jnp.concatenate(
        [det_wT[DET_FEAT:DET_FEAT + 7],
         jnp.zeros((1, SPATIAL), jnp.float32)], axis=0)       # (8, 49)
    pw = pt['pw_w']                                           # (64, 174)
    return {
        'conv1_w':     pt['conv1_w'].astype(bf16),            # (64, 512)
        'conv1_b':     pt['conv1_b'].reshape(CONV_OUT, 1),
        'det_w_feat':  det_wT[0:DET_FEAT].astype(bf16),       # (256, 49) bf16
        'det_w_extra': dwe,                                   # (8, 49)  f32
        'det_b':       pt['det_b'].reshape(1, SPATIAL),
        'act_w':       pt['act_w'],                           # (10, 8)
        'act_b':       pt['act_b'].reshape(ACT_EMB, 1),
        'pw_img':      pw[:, 0:CONV_OUT],                     # (64, 64)
        'pw_det':      pw[:, CONV_OUT:CONV_OUT + NUM_CATE],   # (64, 100)
        'pw_act':      pw[:, CONV_OUT + NUM_CATE:],           # (64, 10)
        'pw_b':        pt['pw_b'].reshape(CONV_OUT, 1),
        'wih0_flat':   pt['wih0'].T.astype(bf16),             # (3136, 512), row = c*49+s
        'whh0':        pt['whh0'].T.astype(bf16),              # (128, 512)
        'wih1':        pt['wih1'].T.astype(bf16),
        'whh1':        pt['whh1'].T.astype(bf16),
        'actor_w':     pt['actor_w'].T,                        # (128, 8)
        'crit1_w':     pt['crit1_w'].T,                        # (128, 64)
        'crit2_w':     pt['crit2_w'].T,                        # (64, 1)
    }


# --------------------------------------------------------------------------
# Forward wrapper — glue reshapes are free; only a tiny (100,8) concat + bf16 casts
# --------------------------------------------------------------------------
def basemodel_forward(kp, state, detection_inputs, action_probs, hx, cx):
    f32 = jnp.float32
    bf16 = jnp.bfloat16

    feats = detection_inputs['features'].astype(bf16)                     # (100, 256)
    extra = jnp.concatenate(
        [detection_inputs['bboxes'].astype(f32),
         detection_inputs['labels'].reshape(NUM_CATE, 1).astype(f32),
         detection_inputs['scores'].reshape(NUM_CATE, 1).astype(f32),
         detection_inputs['indicator'].reshape(NUM_CATE, 1).astype(f32),
         jnp.zeros((NUM_CATE, 1), f32)], axis=1)                          # (100, 8)
    state_cm = state.reshape(RESNET_EMB, SPATIAL).astype(bf16)            # (512, 49)
    ap_col = action_probs.reshape(ACTION_SPACE, 1)
    h_in = hx.reshape(2, HIDDEN)
    c_in = cx.reshape(2, HIDDEN)

    vmem = pltpu.MemorySpace.VMEM
    n_in = 24
    in_specs = [pl.BlockSpec(memory_space=vmem) for _ in range(n_in)]
    in_specs[17] = pl.BlockSpec(memory_space=pl.ANY)   # wih0 stays in HBM; DMA'd in-kernel

    img_pad, packed = pl.pallas_call(
        basemodel_kernel,
        out_shape=(jax.ShapeDtypeStruct((CONV_OUT, IMG_PAD), f32),
                   jax.ShapeDtypeStruct((8, HIDDEN), f32)),
        in_specs=in_specs,
        out_specs=(pl.BlockSpec(memory_space=vmem),
                   pl.BlockSpec(memory_space=vmem)),
        scratch_shapes=[
            pltpu.VMEM((LSTM_IN, 4 * HIDDEN), jnp.bfloat16),   # wih0 landing buffer (3.2 MB)
            pltpu.VMEM((1, LSTM_IN), jnp.float32),             # flattened embedding row
            pltpu.SemaphoreType.DMA,                           # wih0 DMA semaphore
        ],
    )(state_cm, feats, extra, ap_col, h_in, c_in,
      kp['conv1_w'], kp['conv1_b'],
      kp['det_w_feat'], kp['det_w_extra'], kp['det_b'],
      kp['act_w'], kp['act_b'],
      kp['pw_img'], kp['pw_det'], kp['pw_act'], kp['pw_b'],
      kp['wih0_flat'], kp['whh0'], kp['wih1'], kp['whh1'],
      kp['actor_w'], kp['crit1_w'], kp['crit2_w'])

    image_embedding = img_pad[:, :SPATIAL].reshape(1, CONV_OUT, 7, 7)     # free-ish slice
    h_out = packed[0:2, :]
    c_out = packed[2:4, :]
    actor = packed[4:5, 0:ACTION_SPACE]
    critic = packed[5:6, 0:1]
    return actor, critic, (h_out.reshape(2, 1, HIDDEN),
                           c_out.reshape(2, 1, HIDDEN)), image_embedding


# --------------------------------------------------------------------------
# Pure-JAX reference (mirrors the PyTorch forward exactly) for a sanity check
# --------------------------------------------------------------------------
def reference_forward(pt, state, detection_inputs, action_probs, hx, cx):
    det_input = jnp.concatenate(
        [detection_inputs['features'], detection_inputs['bboxes'],
         detection_inputs['labels'][:, None], detection_inputs['scores'][:, None],
         detection_inputs['indicator']], axis=1)
    det = jax.nn.relu(det_input @ pt['det_w'].T + pt['det_b'])
    det = det.reshape(1, NUM_CATE, 7, 7)
    act = jax.nn.relu(action_probs @ pt['act_w'].T + pt['act_b'])
    act_r = jnp.broadcast_to(act.reshape(1, ACT_EMB, 1, 1), (1, ACT_EMB, 7, 7))
    img = jax.nn.relu(jnp.einsum('nchw,oc->nohw', state, pt['conv1_w'])
                      + pt['conv1_b'].reshape(1, -1, 1, 1))
    x = jnp.concatenate([img, det, act_r], axis=1)
    x = jax.nn.relu(jnp.einsum('nchw,oc->nohw', x, pt['pw_w'])
                    + pt['pw_b'].reshape(1, -1, 1, 1))
    out = x.reshape(1, -1)
    H = HIDDEN

    def cell(xv, h, c, wih, whh):
        g = xv @ wih.T + h @ whh.T
        i = _sigmoid(g[:, :H]); f = _sigmoid(g[:, H:2 * H])
        gg = jnp.tanh(g[:, 2 * H:3 * H]); o = _sigmoid(g[:, 3 * H:])
        c2 = f * c + i * gg
        return o * jnp.tanh(c2), c2

    h0, c0 = cell(out, hx[0], cx[0], pt['wih0'], pt['whh0'])
    h1, c1 = cell(h0, hx[1], cx[1], pt['wih1'], pt['whh1'])
    actor = h1 @ pt['actor_w'].T
    critic = (h1 @ pt['crit1_w'].T) @ pt['crit2_w'].T
    return actor, critic, (jnp.stack([h0, h1]), jnp.stack([c0, c1])), img


if __name__ == "__main__":
    root = jax.random.PRNGKey(0)
    kp_key, k1, k2, k3, k4, k5, k6, k7, k8 = jax.random.split(root, 9)

    pt_params = quantize_big_weights(init_pt_params(kp_key))
    kparams = prep_kernel_params(pt_params)

    # inputs that the kernel feeds to the MXU in bf16 are pre-rounded so that the
    # f32 reference sees exactly the same values
    state = _round_bf16(jax.random.normal(k1, (1, RESNET_EMB, 7, 7), jnp.float32))
    detection_inputs = {
        'features':  _round_bf16(jax.random.normal(k2, (NUM_CATE, DET_FEAT), jnp.float32)),
        'bboxes':    jax.random.uniform(k3, (NUM_CATE, 4), jnp.float32),
        'labels':    jax.random.randint(k4, (NUM_CATE,), 0, NUM_CATE).astype(jnp.float32),
        'scores':    jax.random.uniform(k5, (NUM_CATE,), jnp.float32),
        'indicator': (jax.random.uniform(k6, (NUM_CATE, 1)) > 0.5).astype(jnp.float32),
    }
    action_probs = jax.nn.softmax(jax.random.normal(k7, (1, ACTION_SPACE), jnp.float32))
    hx = 0.1 * jax.random.normal(k8, (2, 1, HIDDEN), jnp.float32)
    cx = 0.1 * jax.random.normal(jax.random.fold_in(k8, 1), (2, 1, HIDDEN), jnp.float32)

    fwd = jax.jit(basemodel_forward)
    actor, critic, (h_new, c_new), image_embedding = fwd(
        kparams, state, detection_inputs, action_probs, hx, cx)
    jax.block_until_ready((actor, critic, h_new, c_new, image_embedding))

    # sanity check against a pure-JAX reference of the PyTorch forward
    r_actor, r_critic, (r_h, r_c), r_img = reference_forward(
        pt_params, state, detection_inputs, action_probs, hx, cx)
    tol = dict(rtol=2e-2, atol=2e-2)
    assert np.allclose(np.asarray(actor), np.asarray(r_actor), **tol)
    assert np.allclose(np.asarray(critic), np.asarray(r_critic), **tol)
    assert np.allclose(np.asarray(h_new), np.asarray(r_h), **tol)
    assert np.allclose(np.asarray(c_new), np.asarray(r_c), **tol)
    assert np.allclose(np.asarray(image_embedding), np.asarray(r_img), **tol)

    print("KERNEL_OK")
</pallas_src>

<mosaic_0001>
module attributes {stable_mosaic.version = 11 : i64} {
  func.func @basemodel_kernel(%arg0: memref<512x49xbf16, #tpu.memory_space<vmem>>, %arg1: memref<100x256xbf16, #tpu.memory_space<vmem>>, %arg2: memref<100x8xf32, #tpu.memory_space<vmem>>, %arg3: memref<8x1xf32, #tpu.memory_space<vmem>>, %arg4: memref<2x128xf32, #tpu.memory_space<vmem>>, %arg5: memref<2x128xf32, #tpu.memory_space<vmem>>, %arg6: memref<64x512xbf16, #tpu.memory_space<vmem>>, %arg7: memref<64x1xf32, #tpu.memory_space<vmem>>, %arg8: memref<256x49xbf16, #tpu.memory_space<vmem>>, %arg9: memref<8x49xf32, #tpu.memory_space<vmem>>, %arg10: memref<1x49xf32, #tpu.memory_space<vmem>>, %arg11: memref<10x8xf32, #tpu.memory_space<vmem>>, %arg12: memref<10x1xf32, #tpu.memory_space<vmem>>, %arg13: memref<64x64xf32, #tpu.memory_space<vmem>>, %arg14: memref<64x100xf32, #tpu.memory_space<vmem>>, %arg15: memref<64x10xf32, #tpu.memory_space<vmem>>, %arg16: memref<64x1xf32, #tpu.memory_space<vmem>>, %arg17: memref<3136x512xbf16, #tpu.memory_space<any>>, %arg18: memref<128x512xbf16, #tpu.memory_space<vmem>>, %arg19: memref<128x512xbf16, #tpu.memory_space<vmem>>, %arg20: memref<128x512xbf16, #tpu.memory_space<vmem>>, %arg21: memref<128x8xf32, #tpu.memory_space<vmem>>, %arg22: memref<128x64xf32, #tpu.memory_space<vmem>>, %arg23: memref<64x1xf32, #tpu.memory_space<vmem>>, %arg24: memref<64x128xf32, #tpu.memory_space<vmem>>, %arg25: memref<8x128xf32, #tpu.memory_space<vmem>>, %arg26: memref<3136x512xbf16, #tpu.memory_space<vmem>>, %arg27: memref<1x3136xf32, #tpu.memory_space<vmem>>, %arg28: memref<!tpu.dma_semaphore, #tpu.memory_space<semaphore_mem>>) attributes {dimension_semantics = [], scalar_prefetch = 0 : i64, scratch_operands = 3 : i64, tpu.core_type = #tpu.core_type<tc>} {
    tpu.enqueue_dma source(%arg17 : memref<3136x512xbf16, #tpu.memory_space<any>>) target(%arg26 : memref<3136x512xbf16, #tpu.memory_space<vmem>>) target_semaphore(%arg28 : memref<!tpu.dma_semaphore, #tpu.memory_space<semaphore_mem>>)
    %c0 = arith.constant 0 : index
    %c0_0 = arith.constant 0 : index
    %0 = vector.load %arg6[%c0, %c0_0] : memref<64x512xbf16, #tpu.memory_space<vmem>>, vector<64x512xbf16>
    %c0_1 = arith.constant 0 : index
    %c0_2 = arith.constant 0 : index
    %1 = vector.load %arg0[%c0_1, %c0_2] : memref<512x49xbf16, #tpu.memory_space<vmem>>, vector<512x49xbf16>
    %cst = arith.constant dense<0.000000e+00> : vector<64x49xf32>
    %2 = tpu.matmul %0, %1, %cst {dimension_numbers = #tpu.dot_dimension_numbers<[1], [0], [0], [1], [0, 0, 1, 1], [], []>} : vector<64x512xbf16>, vector<512x49xbf16>, vector<64x49xf32> -> vector<64x49xf32>
    %c0_3 = arith.constant 0 : index
    %c0_4 = arith.constant 0 : index
    %3 = vector.load %arg7[%c0_3, %c0_4] : memref<64x1xf32, #tpu.memory_space<vmem>>, vector<64x1xf32>
    %4 = vector.broadcast %3 : vector<64x1xf32> to vector<64x49xf32>
    %5 = arith.addf %2, %4 : vector<64x49xf32>
    %cst_5 = arith.constant 0.000000e+00 : f32
    %6 = vector.broadcast %cst_5 : f32 to vector<64x49xf32>
    %7 = arith.maximumf %5, %6 : vector<64x49xf32>
    %c0_6 = arith.constant 0 : index
    %c0_7 = arith.constant 0 : index
    %8 = vector.load %arg24[%c0_6, %c0_7] : memref<64x128xf32, #tpu.memory_space<vmem>>, vector<64x49xf32>
    tpu.vector_store %arg24[%c0_6, %c0_7], %7 {strides = array<i32>} : memref<64x128xf32, #tpu.memory_space<vmem>>, vector<64x49xf32>,
    %cst_8 = arith.constant 0.000000e+00 : f32
    %9 = vector.broadcast %cst_8 : f32 to vector<64x79xf32>
    %c0_9 = arith.constant 0 : index
    %c49 = arith.constant 49 : index
    %10 = vector.load %arg24[%c0_9, %c49] : memref<64x128xf32, #tpu.memory_space<vmem>>, vector<64x79xf32>
    tpu.vector_store %arg24[%c0_9, %c49], %9 {strides = array<i32>} : memref<64x128xf32, #tpu.memory_space<vmem>>, vector<64x79xf32>,
    %c0_10 = arith.constant 0 : index
    %c0_11 = arith.constant 0 : index
    %11 = vector.load %arg1[%c0_10, %c0_11] : memref<100x256xbf16, #tpu.memory_space<vmem>>, vector<100x256xbf16>
    %c0_12 = arith.constant 0 : index
    %c0_13 = arith.constant 0 : index
    %12 = vector.load %arg8[%c0_12, %c0_13] : memref<256x49xbf16, #tpu.memory_space<vmem>>, vector<256x49xbf16>
    %cst_14 = arith.constant dense<0.000000e+00> : vector<100x49xf32>
    %13 = tpu.matmul %11, %12, %cst_14 {dimension_numbers = #tpu.dot_dimension_numbers<[1], [0], [0], [1], [0, 0, 1, 1], [], []>} : vector<100x256xbf16>, vector<256x49xbf16>, vector<100x49xf32> -> vector<100x49xf32>
    %c0_15 = arith.constant 0 : index
    %c0_16 = arith.constant 0 : index
    %14 = vector.load %arg2[%c0_15, %c0_16] : memref<100x8xf32, #tpu.memory_space<vmem>>, vector<100x8xf32>
    %c0_17 = arith.constant 0 : index
    %c0_18 = arith.constant 0 : index
    %15 = vector.load %arg9[%c0_17, %c0_18] : memref<8x49xf32, #tpu.memory_space<vmem>>, vector<8x49xf32>
    %cst_19 = arith.constant dense<0.000000e+00> : vector<100x49xf32>
    %16 = tpu.matmul %14, %15, %cst_19 {dimension_numbers = #tpu.dot_dimension_numbers<[1], [0], [0], [1], [0, 0, 1, 1], [], []>} : vector<100x8xf32>, vector<8x49xf32>, vector<100x49xf32> -> vector<100x49xf32>
    %17 = arith.addf %13, %16 : vector<100x49xf32>
    %c0_20 = arith.constant 0 : index
    %c0_21 = arith.constant 0 : index
    %18 = vector.load %arg10[%c0_20, %c0_21] : memref<1x49xf32, #tpu.memory_space<vmem>>, vector<1x49xf32>
    %19 = vector.broadcast %18 : vector<1x49xf32> to vector<100x49xf32>
    %20 = arith.addf %17, %19 : vector<100x49xf32>
    %cst_22 = arith.constant 0.000000e+00 : f32
    %21 = vector.broadcast %cst_22 : f32 to vector<100x49xf32>
    %22 = arith.maximumf %20, %21 : vector<100x49xf32>
    %c0_23 = arith.constant 0 : index
    %c0_24 = arith.constant 0 : index
    %23 = vector.load %arg11[%c0_23, %c0_24] : memref<10x8xf32, #tpu.memory_space<vmem>>, vector<10x8xf32>
    %c0_25 = arith.constant 0 : index
    %c0_26 = arith.constant 0 : index
    %24 = vector.load %arg3[%c0_25, %c0_26] : memref<8x1xf32, #tpu.memory_space<vmem>>, vector<8x1xf32>
    %cst_27 = arith.constant dense<0.000000e+00> : vector<10x1xf32>
    %25 = tpu.matmul %23, %24, %cst_27 {dimension_numbers = #tpu.dot_dimension_numbers<[1], [0], [0], [1], [0, 0, 1, 1], [], []>} : vector<10x8xf32>, vector<8x1xf32>, vector<10x1xf32> -> vector<10x1xf32>
    %c0_28 = arith.constant 0 : index
    %c0_29 = arith.constant 0 : index
    %26 = vector.load %arg12[%c0_28, %c0_29] : memref<10x1xf32, #tpu.memory_space<vmem>>, vector<10x1xf32>
    %27 = arith.addf %25, %26 : vector<10x1xf32>
    %cst_30 = arith.constant 0.000000e+00 : f32
    %28 = vector.broadcast %cst_30 : f32 to vector<10x1xf32>
    %29 = arith.maximumf %27, %28 : vector<10x1xf32>
    %c0_31 = arith.constant 0 : index
    %c0_32 = arith.constant 0 : index
    %30 = vector.load %arg15[%c0_31, %c0_32] : memref<64x10xf32, #tpu.memory_space<vmem>>, vector<64x10xf32>
    %cst_33 = arith.constant dense<0.000000e+00> : vector<64x1xf32>
    %31 = tpu.matmul %30, %29, %cst_33 {dimension_numbers = #tpu.dot_dimension_numbers<[1], [0], [0], [1], [0, 0, 1, 1], [], []>} : vector<64x10xf32>, vector<10x1xf32>, vector<64x1xf32> -> vector<64x1xf32>
    %c0_34 = arith.constant 0 : index
    %c0_35 = arith.constant 0 : index
    %32 = vector.load %arg16[%c0_34, %c0_35] : memref<64x1xf32, #tpu.memory_space<vmem>>, vector<64x1xf32>
    %33 = arith.addf %31, %32 : vector<64x1xf32>
    %c0_36 = arith.constant 0 : index
    %c0_37 = arith.constant 0 : index
    %34 = vector.load %arg13[%c0_36, %c0_37] : memref<64x64xf32, #tpu.memory_space<vmem>>, vector<64x64xf32>
    %cst_38 = arith.constant dense<0.000000e+00> : vector<64x49xf32>
    %35 = tpu.matmul %34, %7, %cst_38 {dimension_numbers = #tpu.dot_dimension_numbers<[1], [0], [0], [1], [0, 0, 1, 1], [], []>} : vector<64x64xf32>, vector<64x49xf32>, vector<64x49xf32> -> vector<64x49xf32>
    %c0_39 = arith.constant 0 : index
    %c0_40 = arith.constant 0 : index
    %36 = vector.load %arg14[%c0_39, %c0_40] : memref<64x100xf32, #tpu.memory_space<vmem>>, vector<64x100xf32>
    %cst_41 = arith.constant dense<0.000000e+00> : vector<64x49xf32>
    %37 = tpu.matmul %36, %22, %cst_41 {dimension_numbers = #tpu.dot_dimension_numbers<[1], [0], [0], [1], [0, 0, 1, 1], [], []>} : vector<64x100xf32>, vector<100x49xf32>, vector<64x49xf32> -> vector<64x49xf32>
    %38 = arith.addf %35, %37 : vector<64x49xf32>
    %39 = vector.broadcast %33 : vector<64x1xf32> to vector<64x49xf32>
    %40 = arith.addf %38, %39 : vector<64x49xf32>
    %cst_42 = arith.constant 0.000000e+00 : f32
    %41 = vector.broadcast %cst_42 : f32 to vector<64x49xf32>
    %42 = arith.maximumf %40, %41 : vector<64x49xf32>
    %43 = vector.extract_strided_slice %42 {offsets = [0, 0], sizes = [1, 49], strides = [1, 1]} : vector<64x49xf32> to vector<1x49xf32>
    %c0_43 = arith.constant 0 : index
    %c0_44 = arith.constant 0 : index
    %44 = vector.load %arg27[%c0_43, %c0_44] : memref<1x3136xf32, #tpu.memory_space<vmem>>, vector<1x49xf32>
    tpu.vector_store %arg27[%c0_43, %c0_44], %43 {strides = array<i32>} : memref<1x3136xf32, #tpu.memory_space<vmem>>, vector<1x49xf32>,
    %45 = vector.extract_strided_slice %42 {offsets = [1, 0], sizes = [1, 49], strides = [1, 1]} : vector<64x49xf32> to vector<1x49xf32>
    %c0_45 = arith.constant 0 : index
    %c49_46 = arith.constant 49 : index
    %46 = vector.load %arg27[%c0_45, %c49_46] : memref<1x3136xf32, #tpu.memory_space<vmem>>, vector<1x49xf32>
    tpu.vector_store %arg27[%c0_45, %c49_46], %45 {strides = array<i32>} : memref<1x3136xf32, #tpu.memory_space<vmem>>, vector<1x49xf32>,
    %47 = vector.extract_strided_slice %42 {offsets = [2, 0], sizes = [1, 49], strides = [1, 1]} : vector<64x49xf32> to vector<1x49xf32>
    %c0_47 = arith.constant 0 : index
    %c98 = arith.constant 98 : index
    %48 = vector.load %arg27[%c0_47, %c98] : memref<1x3136xf32, #tpu.memory_space<vmem>>, vector<1x49xf32>
    tpu.vector_store %arg27[%c0_47, %c98], %47 {strides = array<i32>} : memref<1x3136xf32, #tpu.memory_space<vmem>>, vector<1x49xf32>,
    %49 = vector.extract_strided_slice %42 {offsets = [3, 0], sizes = [1, 49], strides = [1, 1]} : vector<64x49xf32> to vector<1x49xf32>
    %c0_48 = arith.constant 0 : index
    %c147 = arith.constant 147 : index
    %50 = vector.load %arg27[%c0_48, %c147] : memref<1x3136xf32, #tpu.memory_space<vmem>>, vector<1x49xf32>
    tpu.vector_store %arg27[%c0_48, %c147], %49 {strides = array<i32>} : memref<1x3136xf32, #tpu.memory_space<vmem>>, vector<1x49xf32>,
    %51 = vector.extract_strided_slice %42 {offsets = [4, 0], sizes = [1, 49], strides = [1, 1]} : vector<64x49xf32> to vector<1x49xf32>
    %c0_49 = arith.constant 0 : index
    %c196 = arith.constant 196 : index
    %52 = vector.load %arg27[%c0_49, %c196] : memref<1x3136xf32, #tpu.memory_space<vmem>>, vector<1x49xf32>
    tpu.vector_store %arg27[%c0_49, %c196], %51 {strides = array<i32>} : memref<1x3136xf32, #tpu.memory_space<vmem>>, vector<1x49xf32>,
    %53 = vector.extract_strided_slice %42 {offsets = [5, 0], sizes = [1, 49], strides = [1, 1]} : vector<64x49xf32> to vector<1x49xf32>
    %c0_50 = arith.constant 0 : index
    %c245 = arith.constant 245 : index
    %54 = vector.load %arg27[%c0_50, %c245] : memref<1x3136xf32, #tpu.memory_space<vmem>>, vector<1x49xf32>
    tpu.vector_store %arg27[%c0_50, %c245], %53 {strides = array<i32>} : memref<1x3136xf32, #tpu.memory_space<vmem>>, vector<1x49xf32>,
    %55 = vector.extract_strided_slice %42 {offsets = [6, 0], sizes = [1, 49], strides = [1, 1]} : vector<64x49xf32> to vector<1x49xf32>
    %c0_51 = arith.constant 0 : index
    %c294 = arith.constant 294 : index
    %56 = vector.load %arg27[%c0_51, %c294] : memref<1x3136xf32, #tpu.memory_space<vmem>>, vector<1x49xf32>
    tpu.vector_store %arg27[%c0_51, %c294], %55 {strides = array<i32>} : memref<1x3136xf32, #tpu.memory_space<vmem>>, vector<1x49xf32>,
    %57 = vector.extract_strided_slice %42 {offsets = [7, 0], sizes = [1, 49], strides = [1, 1]} : vector<64x49xf32> to vector<1x49xf32>
    %c0_52 = arith.constant 0 : index
    %c343 = arith.constant 343 : index
    %58 = vector.load %arg27[%c0_52, %c343] : memref<1x3136xf32, #tpu.memory_space<vmem>>, vector<1x49xf32>
    tpu.vector_store %arg27[%c0_52, %c343], %57 {strides = array<i32>} : memref<1x3136xf32, #tpu.memory_space<vmem>>, vector<1x49xf32>,
    %59 = vector.extract_strided_slice %42 {offsets = [8, 0], sizes = [1, 49], strides = [1, 1]} : vector<64x49xf32> to vector<1x49xf32>
    %c0_53 = arith.constant 0 : index
    %c392 = arith.constant 392 : index
    %60 = vector.load %arg27[%c0_53, %c392] : memref<1x3136xf32, #tpu.memory_space<vmem>>, vector<1x49xf32>
    tpu.vector_store %arg27[%c0_53, %c392], %59 {strides = array<i32>} : memref<1x3136xf32, #tpu.memory_space<vmem>>, vector<1x49xf32>,
    %61 = vector.extract_strided_slice %42 {offsets = [9, 0], sizes = [1, 49], strides = [1, 1]} : vector<64x49xf32> to vector<1x49xf32>
    %c0_54 = arith.constant 0 : index
    %c441 = arith.constant 441 : index
    %62 = vector.load %arg27[%c0_54, %c441] : memref<1x3136xf32, #tpu.memory_space<vmem>>, vector<1x49xf32>
    tpu.vector_store %arg27[%c0_54, %c441], %61 {strides = array<i32>} : memref<1x3136xf32, #tpu.memory_space<vmem>>, vector<1x49xf32>,
    %63 = vector.extract_strided_slice %42 {offsets = [10, 0], sizes = [1, 49], strides = [1, 1]} : vector<64x49xf32> to vector<1x49xf32>
    %c0_55 = arith.constant 0 : index
    %c490 = arith.constant 490 : index
    %64 = vector.load %arg27[%c0_55, %c490] : memref<1x3136xf32, #tpu.memory_space<vmem>>, vector<1x49xf32>
    tpu.vector_store %arg27[%c0_55, %c490], %63 {strides = array<i32>} : memref<1x3136xf32, #tpu.memory_space<vmem>>, vector<1x49xf32>,
    %65 = vector.extract_strided_slice %42 {offsets = [11, 0], sizes = [1, 49], strides = [1, 1]} : vector<64x49xf32> to vector<1x49xf32>
    %c0_56 = arith.constant 0 : index
    %c539 = arith.constant 539 : index
    %66 = vector.load %arg27[%c0_56, %c539] : memref<1x3136xf32, #tpu.memory_space<vmem>>, vector<1x49xf32>
    tpu.vector_store %arg27[%c0_56, %c539], %65 {strides = array<i32>} : memref<1x3136xf32, #tpu.memory_space<vmem>>, vector<1x49xf32>,
    %67 = vector.extract_strided_slice %42 {offsets = [12, 0], sizes = [1, 49], strides = [1, 1]} : vector<64x49xf32> to vector<1x49xf32>
    %c0_57 = arith.constant 0 : index
    %c588 = arith.constant 588 : index
    %68 = vector.load %arg27[%c0_57, %c588] : memref<1x3136xf32, #tpu.memory_space<vmem>>, vector<1x49xf32>
    tpu.vector_store %arg27[%c0_57, %c588], %67 {strides = array<i32>} : memref<1x3136xf32, #tpu.memory_space<vmem>>, vector<1x49xf32>,
    %69 = vector.extract_strided_slice %42 {offsets = [13, 0], sizes = [1, 49], strides = [1, 1]} : vector<64x49xf32> to vector<1x49xf32>
    %c0_58 = arith.constant 0 : index
    %c637 = arith.constant 637 : index
    %70 = vector.load %arg27[%c0_58, %c637] : memref<1x3136xf32, #tpu.memory_space<vmem>>, vector<1x49xf32>
    tpu.vector_store %arg27[%c0_58, %c637], %69 {strides = array<i32>} : memref<1x3136xf32, #tpu.memory_space<vmem>>, vector<1x49xf32>,
    %71 = vector.extract_strided_slice %42 {offsets = [14, 0], sizes = [1, 49], strides = [1, 1]} : vector<64x49xf32> to vector<1x49xf32>
    %c0_59 = arith.constant 0 : index
    %c686 = arith.constant 686 : index
    %72 = vector.load %arg27[%c0_59, %c686] : memref<1x3136xf32, #tpu.memory_space<vmem>>, vector<1x49xf32>
    tpu.vector_store %arg27[%c0_59, %c686], %71 {strides = array<i32>} : memref<1x3136xf32, #tpu.memory_space<vmem>>, vector<1x49xf32>,
    %73 = vector.extract_strided_slice %42 {offsets = [15, 0], sizes = [1, 49], strides = [1, 1]} : vector<64x49xf32> to vector<1x49xf32>
    %c0_60 = arith.constant 0 : index
    %c735 = arith.constant 735 : index
    %74 = vector.load %arg27[%c0_60, %c735] : memref<1x3136xf32, #tpu.memory_space<vmem>>, vector<1x49xf32>
    tpu.vector_store %arg27[%c0_60, %c735], %73 {strides = array<i32>} : memref<1x3136xf32, #tpu.memory_space<vmem>>, vector<1x49xf32>,
    %75 = vector.extract_strided_slice %42 {offsets = [16, 0], sizes = [1, 49], strides = [1, 1]} : vector<64x49xf32> to vector<1x49xf32>
    %c0_61 = arith.constant 0 : index
    %c784 = arith.constant 784 : index
    %76 = vector.load %arg27[%c0_61, %c784] : memref<1x3136xf32, #tpu.memory_space<vmem>>, vector<1x49xf32>
    tpu.vector_store %arg27[%c0_61, %c784], %75 {strides = array<i32>} : memref<1x3136xf32, #tpu.memory_space<vmem>>, vector<1x49xf32>,
    %77 = vector.extract_strided_slice %42 {offsets = [17, 0], sizes = [1, 49], strides = [1, 1]} : vector<64x49xf32> to vector<1x49xf32>
    %c0_62 = arith.constant 0 : index
    %c833 = arith.constant 833 : index
    %78 = vector.load %arg27[%c0_62, %c833] : memref<1x3136xf32, #tpu.memory_space<vmem>>, vector<1x49xf32>
    tpu.vector_store %arg27[%c0_62, %c833], %77 {strides = array<i32>} : memref<1x3136xf32, #tpu.memory_space<vmem>>, vector<1x49xf32>,
    %79 = vector.extract_strided_slice %42 {offsets = [18, 0], sizes = [1, 49], strides = [1, 1]} : vector<64x49xf32> to vector<1x49xf32>
    %c0_63 = arith.constant 0 : index
    %c882 = arith.constant 882 : index
    %80 = vector.load %arg27[%c0_63, %c882] : memref<1x3136xf32, #tpu.memory_space<vmem>>, vector<1x49xf32>
    tpu.vector_store %arg27[%c0_63, %c882], %79 {strides = array<i32>} : memref<1x3136xf32, #tpu.memory_space<vmem>>, vector<1x49xf32>,
    %81 = vector.extract_strided_slice %42 {offsets = [19, 0], sizes = [1, 49], strides = [1, 1]} : vector<64x49xf32> to vector<1x49xf32>
    %c0_64 = arith.constant 0 : index
    %c931 = arith.constant 931 : index
    %82 = vector.load %arg27[%c0_64, %c931] : memref<1x3136xf32, #tpu.memory_space<vmem>>, vector<1x49xf32>
    tpu.vector_store %arg27[%c0_64, %c931], %81 {strides = array<i32>} : memref<1x3136xf32, #tpu.memory_space<vmem>>, vector<1x49xf32>,
    %83 = vector.extract_strided_slice %42 {offsets = [20, 0], sizes = [1, 49], strides = [1, 1]} : vector<64x49xf32> to vector<1x49xf32>
    %c0_65 = arith.constant 0 : index
    %c980 = arith.constant 980 : index
    %84 = vector.load %arg27[%c0_65, %c980] : memref<1x3136xf32, #tpu.memory_space<vmem>>, vector<1x49xf32>
    tpu.vector_store %arg27[%c0_65, %c980], %83 {strides = array<i32>} : memref<1x3136xf32, #tpu.memory_space<vmem>>, vector<1x49xf32>,
    %85 = vector.extract_strided_slice %42 {offsets = [21, 0], sizes = [1, 49], strides = [1, 1]} : vector<64x49xf32> to vector<1x49xf32>
    %c0_66 = arith.constant 0 : index
    %c1029 = arith.constant 1029 : index
    %86 = vector.load %arg27[%c0_66, %c1029] : memref<1x3136xf32, #tpu.memory_space<vmem>>, vector<1x49xf32>
    tpu.vector_store %arg27[%c0_66, %c1029], %85 {strides = array<i32>} : memref<1x3136xf32, #tpu.memory_space<vmem>>, vector<1x49xf32>,
    %87 = vector.extract_strided_slice %42 {offsets = [22, 0], sizes = [1, 49], strides = [1, 1]} : vector<64x49xf32> to vector<1x49xf32>
    %c0_67 = arith.constant 0 : index
    %c1078 = arith.constant 1078 : index
    %88 = vector.load %arg27[%c0_67, %c1078] : memref<1x3136xf32, #tpu.memory_space<vmem>>, vector<1x49xf32>
    tpu.vector_store %arg27[%c0_67, %c1078], %87 {strides = array<i32>} : memref<1x3136xf32, #tpu.memory_space<vmem>>, vector<1x49xf32>,
    %89 = vector.extract_strided_slice %42 {offsets = [23, 0], sizes = [1, 49], strides = [1, 1]} : vector<64x49xf32> to vector<1x49xf32>
    %c0_68 = arith.constant 0 : index
    %c1127 = arith.constant 1127 : index
    %90 = vector.load %arg27[%c0_68, %c1127] : memref<1x3136xf32, #tpu.memory_space<vmem>>, vector<1x49xf32>
    tpu.vector_store %arg27[%c0_68, %c1127], %89 {strides = array<i32>} : memref<1x3136xf32, #tpu.memory_space<vmem>>, vector<1x49xf32>,
    %91 = vector.extract_strided_slice %42 {offsets = [24, 0], sizes = [1, 49], strides = [1, 1]} : vector<64x49xf32> to vector<1x49xf32>
    %c0_69 = arith.constant 0 : index
    %c1176 = arith.constant 1176 : index
    %92 = vector.load %arg27[%c0_69, %c1176] : memref<1x3136xf32, #tpu.memory_space<vmem>>, vector<1x49xf32>
    tpu.vector_store %arg27[%c0_69, %c1176], %91 {strides = array<i32>} : memref<1x3136xf32, #tpu.memory_space<vmem>>, vector<1x49xf32>,
    %93 = vector.extract_strided_slice %42 {offsets = [25, 0], sizes = [1, 49], strides = [1, 1]} : vector<64x49xf32> to vector<1x49xf32>
    %c0_70 = arith.constant 0 : index
    %c1225 = arith.constant 1225 : index
    %94 = vector.load %arg27[%c0_70, %c1225] : memref<1x3136xf32, #tpu.memory_space<vmem>>, vector<1x49xf32>
    tpu.vector_store %arg27[%c0_70, %c1225], %93 {strides = array<i32>} : memref<1x3136xf32, #tpu.memory_space<vmem>>, vector<1x49xf32>,
    %95 = vector.extract_strided_slice %42 {offsets = [26, 0], sizes = [1, 49], strides = [1, 1]} : vector<64x49xf32> to vector<1x49xf32>
    %c0_71 = arith.constant 0 : index
    %c1274 = arith.constant 1274 : index
    %96 = vector.load %arg27[%c0_71, %c1274] : memref<1x3136xf32, #tpu.memory_space<vmem>>, vector<1x49xf32>
    tpu.vector_store %arg27[%c0_71, %c1274], %95 {strides = array<i32>} : memref<1x3136xf32, #tpu.memory_space<vmem>>, vector<1x49xf32>,
    %97 = vector.extract_strided_slice %42 {offsets = [27, 0], sizes = [1, 49], strides = [1, 1]} : vector<64x49xf32> to vector<1x49xf32>
    %c0_72 = arith.constant 0 : index
    %c1323 = arith.constant 1323 : index
    %98 = vector.load %arg27[%c0_72, %c1323] : memref<1x3136xf32, #tpu.memory_space<vmem>>, vector<1x49xf32>
    tpu.vector_store %arg27[%c0_72, %c1323], %97 {strides = array<i32>} : memref<1x3136xf32, #tpu.memory_space<vmem>>, vector<1x49xf32>,
    %99 = vector.extract_strided_slice %42 {offsets = [28, 0], sizes = [1, 49], strides = [1, 1]} : vector<64x49xf32> to vector<1x49xf32>
    %c0_73 = arith.constant 0 : index
    %c1372 = arith.constant 1372 : index
    %100 = vector.load %arg27[%c0_73, %c1372] : memref<1x3136xf32, #tpu.memory_space<vmem>>, vector<1x49xf32>
    tpu.vector_store %arg27[%c0_73, %c1372], %99 {strides = array<i32>} : memref<1x3136xf32, #tpu.memory_space<vmem>>, vector<1x49xf32>,
    %101 = vector.extract_strided_slice %42 {offsets = [29, 0], sizes = [1, 49], strides = [1, 1]} : vector<64x49xf32> to vector<1x49xf32>
    %c0_74 = arith.constant 0 : index
    %c1421 = arith.constant 1421 : index
    %102 = vector.load %arg27[%c0_74, %c1421] : memref<1x3136xf32, #tpu.memory_space<vmem>>, vector<1x49xf32>
    tpu.vector_store %arg27[%c0_74, %c1421], %101 {strides = array<i32>} : memref<1x3136xf32, #tpu.memory_space<vmem>>, vector<1x49xf32>,
    %103 = vector.extract_strided_slice %42 {offsets = [30, 0], sizes = [1, 49], strides = [1, 1]} : vector<64x49xf32> to vector<1x49xf32>
    %c0_75 = arith.constant 0 : index
    %c1470 = arith.constant 1470 : index
    %104 = vector.load %arg27[%c0_75, %c1470] : memref<1x3136xf32, #tpu.memory_space<vmem>>, vector<1x49xf32>
    tpu.vector_store %arg27[%c0_75, %c1470], %103 {strides = array<i32>} : memref<1x3136xf32, #tpu.memory_space<vmem>>, vector<1x49xf32>,
    %105 = vector.extract_strided_slice %42 {offsets = [31, 0], sizes = [1, 49], strides = [1, 1]} : vector<64x49xf32> to vector<1x49xf32>
    %c0_76 = arith.constant 0 : index
    %c1519 = arith.constant 1519 : index
    %106 = vector.load %arg27[%c0_76, %c1519] : memref<1x3136xf32, #tpu.memory_space<vmem>>, vector<1x49xf32>
    tpu.vector_store %arg27[%c0_76, %c1519], %105 {strides = array<i32>} : memref<1x3136xf32, #tpu.memory_space<vmem>>, vector<1x49xf32>,
    %107 = vector.extract_strided_slice %42 {offsets = [32, 0], sizes = [1, 49], strides = [1, 1]} : vector<64x49xf32> to vector<1x49xf32>
    %c0_77 = arith.constant 0 : index
    %c1568 = arith.constant 1568 : index
    %108 = vector.load %arg27[%c0_77, %c1568] : memref<1x3136xf32, #tpu.memory_space<vmem>>, vector<1x49xf32>
    tpu.vector_store %arg27[%c0_77, %c1568], %107 {strides = array<i32>} : memref<1x3136xf32, #tpu.memory_space<vmem>>, vector<1x49xf32>,
    %109 = vector.extract_strided_slice %42 {offsets = [33, 0], sizes = [1, 49], strides = [1, 1]} : vector<64x49xf32> to vector<1x49xf32>
    %c0_78 = arith.constant 0 : index
    %c1617 = arith.constant 1617 : index
    %110 = vector.load %arg27[%c0_78, %c1617] : memref<1x3136xf32, #tpu.memory_space<vmem>>, vector<1x49xf32>
    tpu.vector_store %arg27[%c0_78, %c1617], %109 {strides = array<i32>} : memref<1x3136xf32, #tpu.memory_space<vmem>>, vector<1x49xf32>,
    %111 = vector.extract_strided_slice %42 {offsets = [34, 0], sizes = [1, 49], strides = [1, 1]} : vector<64x49xf32> to vector<1x49xf32>
    %c0_79 = arith.constant 0 : index
    %c1666 = arith.constant 1666 : index
    %112 = vector.load %arg27[%c0_79, %c1666] : memref<1x3136xf32, #tpu.memory_space<vmem>>, vector<1x49xf32>
    tpu.vector_store %arg27[%c0_79, %c1666], %111 {strides = array<i32>} : memref<1x3136xf32, #tpu.memory_space<vmem>>, vector<1x49xf32>,
    %113 = vector.extract_strided_slice %42 {offsets = [35, 0], sizes = [1, 49], strides = [1, 1]} : vector<64x49xf32> to vector<1x49xf32>
    %c0_80 = arith.constant 0 : index
    %c1715 = arith.constant 1715 : index
    %114 = vector.load %arg27[%c0_80, %c1715] : memref<1x3136xf32, #tpu.memory_space<vmem>>, vector<1x49xf32>
    tpu.vector_store %arg27[%c0_80, %c1715], %113 {strides = array<i32>} : memref<1x3136xf32, #tpu.memory_space<vmem>>, vector<1x49xf32>,
    %115 = vector.extract_strided_slice %42 {offsets = [36, 0], sizes = [1, 49], strides = [1, 1]} : vector<64x49xf32> to vector<1x49xf32>
    %c0_81 = arith.constant 0 : index
    %c1764 = arith.constant 1764 : index
    %116 = vector.load %arg27[%c0_81, %c1764] : memref<1x3136xf32, #tpu.memory_space<vmem>>, vector<1x49xf32>
    tpu.vector_store %arg27[%c0_81, %c1764], %115 {strides = array<i32>} : memref<1x3136xf32, #tpu.memory_space<vmem>>, vector<1x49xf32>,
    %117 = vector.extract_strided_slice %42 {offsets = [37, 0], sizes = [1, 49], strides = [1, 1]} : vector<64x49xf32> to vector<1x49xf32>
    %c0_82 = arith.constant 0 : index
    %c1813 = arith.constant 1813 : index
    %118 = vector.load %arg27[%c0_82, %c1813] : memref<1x3136xf32, #tpu.memory_space<vmem>>, vector<1x49xf32>
    tpu.vector_store %arg27[%c0_82, %c1813], %117 {strides = array<i32>} : memref<1x3136xf32, #tpu.memory_space<vmem>>, vector<1x49xf32>,
    %119 = vector.extract_strided_slice %42 {offsets = [38, 0], sizes = [1, 49], strides = [1, 1]} : vector<64x49xf32> to vector<1x49xf32>
    %c0_83 = arith.constant 0 : index
    %c1862 = arith.constant 1862 : index
    %120 = vector.load %arg27[%c0_83, %c1862] : memref<1x3136xf32, #tpu.memory_space<vmem>>, vector<1x49xf32>
    tpu.vector_store %arg27[%c0_83, %c1862], %119 {strides = array<i32>} : memref<1x3136xf32, #tpu.memory_space<vmem>>, vector<1x49xf32>,
    %121 = vector.extract_strided_slice %42 {offsets = [39, 0], sizes = [1, 49], strides = [1, 1]} : vector<64x49xf32> to vector<1x49xf32>
    %c0_84 = arith.constant 0 : index
    %c1911 = arith.constant 1911 : index
    %122 = vector.load %arg27[%c0_84, %c1911] : memref<1x3136xf32, #tpu.memory_space<vmem>>, vector<1x49xf32>
    tpu.vector_store %arg27[%c0_84, %c1911], %121 {strides = array<i32>} : memref<1x3136xf32, #tpu.memory_space<vmem>>, vector<1x49xf32>,
    %123 = vector.extract_strided_slice %42 {offsets = [40, 0], sizes = [1, 49], strides = [1, 1]} : vector<64x49xf32> to vector<1x49xf32>
    %c0_85 = arith.constant 0 : index
    %c1960 = arith.constant 1960 : index
    %124 = vector.load %arg27[%c0_85, %c1960] : memref<1x3136xf32, #tpu.memory_space<vmem>>, vector<1x49xf32>
    tpu.vector_store %arg27[%c0_85, %c1960], %123 {strides = array<i32>} : memref<1x3136xf32, #tpu.memory_space<vmem>>, vector<1x49xf32>,
    %125 = vector.extract_strided_slice %42 {offsets = [41, 0], sizes = [1, 49], strides = [1, 1]} : vector<64x49xf32> to vector<1x49xf32>
    %c0_86 = arith.constant 0 : index
    %c2009 = arith.constant 2009 : index
    %126 = vector.load %arg27[%c0_86, %c2009] : memref<1x3136xf32, #tpu.memory_space<vmem>>, vector<1x49xf32>
    tpu.vector_store %arg27[%c0_86, %c2009], %125 {strides = array<i32>} : memref<1x3136xf32, #tpu.memory_space<vmem>>, vector<1x49xf32>,
    %127 = vector.extract_strided_slice %42 {offsets = [42, 0], sizes = [1, 49], strides = [1, 1]} : vector<64x49xf32> to vector<1x49xf32>
    %c0_87 = arith.constant 0 : index
    %c2058 = arith.constant 2058 : index
    %128 = vector.load %arg27[%c0_87, %c2058] : memref<1x3136xf32, #tpu.memory_space<vmem>>, vector<1x49xf32>
    tpu.vector_store %arg27[%c0_87, %c2058], %127 {strides = array<i32>} : memref<1x3136xf32, #tpu.memory_space<vmem>>, vector<1x49xf32>,
    %129 = vector.extract_strided_slice %42 {offsets = [43, 0], sizes = [1, 49], strides = [1, 1]} : vector<64x49xf32> to vector<1x49xf32>
    %c0_88 = arith.constant 0 : index
    %c2107 = arith.constant 2107 : index
    %130 = vector.load %arg27[%c0_88, %c2107] : memref<1x3136xf32, #tpu.memory_space<vmem>>, vector<1x49xf32>
    tpu.vector_store %arg27[%c0_88, %c2107], %129 {strides = array<i32>} : memref<1x3136xf32, #tpu.memory_space<vmem>>, vector<1x49xf32>,
    %131 = vector.extract_strided_slice %42 {offsets = [44, 0], sizes = [1, 49], strides = [1, 1]} : vector<64x49xf32> to vector<1x49xf32>
    %c0_89 = arith.constant 0 : index
    %c2156 = arith.constant 2156 : index
    %132 = vector.load %arg27[%c0_89, %c2156] : memref<1x3136xf32, #tpu.memory_space<vmem>>, vector<1x49xf32>
    tpu.vector_store %arg27[%c0_89, %c2156], %131 {strides = array<i32>} : memref<1x3136xf32, #tpu.memory_space<vmem>>, vector<1x49xf32>,
    %133 = vector.extract_strided_slice %42 {offsets = [45, 0], sizes = [1, 49], strides = [1, 1]} : vector<64x49xf32> to vector<1x49xf32>
    %c0_90 = arith.constant 0 : index
    %c2205 = arith.constant 2205 : index
    %134 = vector.load %arg27[%c0_90, %c2205] : memref<1x3136xf32, #tpu.memory_space<vmem>>, vector<1x49xf32>
    tpu.vector_store %arg27[%c0_90, %c2205], %133 {strides = array<i32>} : memref<1x3136xf32, #tpu.memory_space<vmem>>, vector<1x49xf32>,
    %135 = vector.extract_strided_slice %42 {offsets = [46, 0], sizes = [1, 49], strides = [1, 1]} : vector<64x49xf32> to vector<1x49xf32>
    %c0_91 = arith.constant 0 : index
    %c2254 = arith.constant 2254 : index
    %136 = vector.load %arg27[%c0_91, %c2254] : memref<1x3136xf32, #tpu.memory_space<vmem>>, vector<1x49xf32>
    tpu.vector_store %arg27[%c0_91, %c2254], %135 {strides = array<i32>} : memref<1x3136xf32, #tpu.memory_space<vmem>>, vector<1x49xf32>,
    %137 = vector.extract_strided_slice %42 {offsets = [47, 0], sizes = [1, 49], strides = [1, 1]} : vector<64x49xf32> to vector<1x49xf32>
    %c0_92 = arith.constant 0 : index
    %c2303 = arith.constant 2303 : index
    %138 = vector.load %arg27[%c0_92, %c2303] : memref<1x3136xf32, #tpu.memory_space<vmem>>, vector<1x49xf32>
    tpu.vector_store %arg27[%c0_92, %c2303], %137 {strides = array<i32>} : memref<1x3136xf32, #tpu.memory_space<vmem>>, vector<1x49xf32>,
    %139 = vector.extract_strided_slice %42 {offsets = [48, 0], sizes = [1, 49], strides = [1, 1]} : vector<64x49xf32> to vector<1x49xf32>
    %c0_93 = arith.constant 0 : index
    %c2352 = arith.constant 2352 : index
    %140 = vector.load %arg27[%c0_93, %c2352] : memref<1x3136xf32, #tpu.memory_space<vmem>>, vector<1x49xf32>
    tpu.vector_store %arg27[%c0_93, %c2352], %139 {strides = array<i32>} : memref<1x3136xf32, #tpu.memory_space<vmem>>, vector<1x49xf32>,
    %141 = vector.extract_strided_slice %42 {offsets = [49, 0], sizes = [1, 49], strides = [1, 1]} : vector<64x49xf32> to vector<1x49xf32>
    %c0_94 = arith.constant 0 : index
    %c2401 = arith.constant 2401 : index
    %142 = vector.load %arg27[%c0_94, %c2401] : memref<1x3136xf32, #tpu.memory_space<vmem>>, vector<1x49xf32>
    tpu.vector_store %arg27[%c0_94, %c2401], %141 {strides = array<i32>} : memref<1x3136xf32, #tpu.memory_space<vmem>>, vector<1x49xf32>,
    %143 = vector.extract_strided_slice %42 {offsets = [50, 0], sizes = [1, 49], strides = [1, 1]} : vector<64x49xf32> to vector<1x49xf32>
    %c0_95 = arith.constant 0 : index
    %c2450 = arith.constant 2450 : index
    %144 = vector.load %arg27[%c0_95, %c2450] : memref<1x3136xf32, #tpu.memory_space<vmem>>, vector<1x49xf32>
    tpu.vector_store %arg27[%c0_95, %c2450], %143 {strides = array<i32>} : memref<1x3136xf32, #tpu.memory_space<vmem>>, vector<1x49xf32>,
    %145 = vector.extract_strided_slice %42 {offsets = [51, 0], sizes = [1, 49], strides = [1, 1]} : vector<64x49xf32> to vector<1x49xf32>
    %c0_96 = arith.constant 0 : index
    %c2499 = arith.constant 2499 : index
    %146 = vector.load %arg27[%c0_96, %c2499] : memref<1x3136xf32, #tpu.memory_space<vmem>>, vector<1x49xf32>
    tpu.vector_store %arg27[%c0_96, %c2499], %145 {strides = array<i32>} : memref<1x3136xf32, #tpu.memory_space<vmem>>, vector<1x49xf32>,
    %147 = vector.extract_strided_slice %42 {offsets = [52, 0], sizes = [1, 49], strides = [1, 1]} : vector<64x49xf32> to vector<1x49xf32>
    %c0_97 = arith.constant 0 : index
    %c2548 = arith.constant 2548 : index
    %148 = vector.load %arg27[%c0_97, %c2548] : memref<1x3136xf32, #tpu.memory_space<vmem>>, vector<1x49xf32>
    tpu.vector_store %arg27[%c0_97, %c2548], %147 {strides = array<i32>} : memref<1x3136xf32, #tpu.memory_space<vmem>>, vector<1x49xf32>,
    %149 = vector.extract_strided_slice %42 {offsets = [53, 0], sizes = [1, 49], strides = [1, 1]} : vector<64x49xf32> to vector<1x49xf32>
    %c0_98 = arith.constant 0 : index
    %c2597 = arith.constant 2597 : index
    %150 = vector.load %arg27[%c0_98, %c2597] : memref<1x3136xf32, #tpu.memory_space<vmem>>, vector<1x49xf32>
    tpu.vector_store %arg27[%c0_98, %c2597], %149 {strides = array<i32>} : memref<1x3136xf32, #tpu.memory_space<vmem>>, vector<1x49xf32>,
    %151 = vector.extract_strided_slice %42 {offsets = [54, 0], sizes = [1, 49], strides = [1, 1]} : vector<64x49xf32> to vector<1x49xf32>
    %c0_99 = arith.constant 0 : index
    %c2646 = arith.constant 2646 : index
    %152 = vector.load %arg27[%c0_99, %c2646] : memref<1x3136xf32, #tpu.memory_space<vmem>>, vector<1x49xf32>
    tpu.vector_store %arg27[%c0_99, %c2646], %151 {strides = array<i32>} : memref<1x3136xf32, #tpu.memory_space<vmem>>, vector<1x49xf32>,
    %153 = vector.extract_strided_slice %42 {offsets = [55, 0], sizes = [1, 49], strides = [1, 1]} : vector<64x49xf32> to vector<1x49xf32>
    %c0_100 = arith.constant 0 : index
    %c2695 = arith.constant 2695 : index
    %154 = vector.load %arg27[%c0_100, %c2695] : memref<1x3136xf32, #tpu.memory_space<vmem>>, vector<1x49xf32>
    tpu.vector_store %arg27[%c0_100, %c2695], %153 {strides = array<i32>} : memref<1x3136xf32, #tpu.memory_space<vmem>>, vector<1x49xf32>,
    %155 = vector.extract_strided_slice %42 {offsets = [56, 0], sizes = [1, 49], strides = [1, 1]} : vector<64x49xf32> to vector<1x49xf32>
    %c0_101 = arith.constant 0 : index
    %c2744 = arith.constant 2744 : index
    %156 = vector.load %arg27[%c0_101, %c2744] : memref<1x3136xf32, #tpu.memory_space<vmem>>, vector<1x49xf32>
    tpu.vector_store %arg27[%c0_101, %c2744], %155 {strides = array<i32>} : memref<1x3136xf32, #tpu.memory_space<vmem>>, vector<1x49xf32>,
    %157 = vector.extract_strided_slice %42 {offsets = [57, 0], sizes = [1, 49], strides = [1, 1]} : vector<64x49xf32> to vector<1x49xf32>
    %c0_102 = arith.constant 0 : index
    %c2793 = arith.constant 2793 : index
    %158 = vector.load %arg27[%c0_102, %c2793] : memref<1x3136xf32, #tpu.memory_space<vmem>>, vector<1x49xf32>
    tpu.vector_store %arg27[%c0_102, %c2793], %157 {strides = array<i32>} : memref<1x3136xf32, #tpu.memory_space<vmem>>, vector<1x49xf32>,
    %159 = vector.extract_strided_slice %42 {offsets = [58, 0], sizes = [1, 49], strides = [1, 1]} : vector<64x49xf32> to vector<1x49xf32>
    %c0_103 = arith.constant 0 : index
    %c2842 = arith.constant 2842 : index
    %160 = vector.load %arg27[%c0_103, %c2842] : memref<1x3136xf32, #tpu.memory_space<vmem>>, vector<1x49xf32>
    tpu.vector_store %arg27[%c0_103, %c2842], %159 {strides = array<i32>} : memref<1x3136xf32, #tpu.memory_space<vmem>>, vector<1x49xf32>,
    %161 = vector.extract_strided_slice %42 {offsets = [59, 0], sizes = [1, 49], strides = [1, 1]} : vector<64x49xf32> to vector<1x49xf32>
    %c0_104 = arith.constant 0 : index
    %c2891 = arith.constant 2891 : index
    %162 = vector.load %arg27[%c0_104, %c2891] : memref<1x3136xf32, #tpu.memory_space<vmem>>, vector<1x49xf32>
    tpu.vector_store %arg27[%c0_104, %c2891], %161 {strides = array<i32>} : memref<1x3136xf32, #tpu.memory_space<vmem>>, vector<1x49xf32>,
    %163 = vector.extract_strided_slice %42 {offsets = [60, 0], sizes = [1, 49], strides = [1, 1]} : vector<64x49xf32> to vector<1x49xf32>
    %c0_105 = arith.constant 0 : index
    %c2940 = arith.constant 2940 : index
    %164 = vector.load %arg27[%c0_105, %c2940] : memref<1x3136xf32, #tpu.memory_space<vmem>>, vector<1x49xf32>
    tpu.vector_store %arg27[%c0_105, %c2940], %163 {strides = array<i32>} : memref<1x3136xf32, #tpu.memory_space<vmem>>, vector<1x49xf32>,
    %165 = vector.extract_strided_slice %42 {offsets = [61, 0], sizes = [1, 49], strides = [1, 1]} : vector<64x49xf32> to vector<1x49xf32>
    %c0_106 = arith.constant 0 : index
    %c2989 = arith.constant 2989 : index
    %166 = vector.load %arg27[%c0_106, %c2989] : memref<1x3136xf32, #tpu.memory_space<vmem>>, vector<1x49xf32>
    tpu.vector_store %arg27[%c0_106, %c2989], %165 {strides = array<i32>} : memref<1x3136xf32, #tpu.memory_space<vmem>>, vector<1x49xf32>,
    %167 = vector.extract_strided_slice %42 {offsets = [62, 0], sizes = [1, 49], strides = [1, 1]} : vector<64x49xf32> to vector<1x49xf32>
    %c0_107 = arith.constant 0 : index
    %c3038 = arith.constant 3038 : index
    %168 = vector.load %arg27[%c0_107, %c3038] : memref<1x3136xf32, #tpu.memory_space<vmem>>, vector<1x49xf32>
    tpu.vector_store %arg27[%c0_107, %c3038], %167 {strides = array<i32>} : memref<1x3136xf32, #tpu.memory_space<vmem>>, vector<1x49xf32>,
    %169 = vector.extract_strided_slice %42 {offsets = [63, 0], sizes = [1, 49], strides = [1, 1]} : vector<64x49xf32> to vector<1x49xf32>
    %c0_108 = arith.constant 0 : index
    %c3087 = arith.constant 3087 : index
    %170 = vector.load %arg27[%c0_108, %c3087] : memref<1x3136xf32, #tpu.memory_space<vmem>>, vector<1x49xf32>
    tpu.vector_store %arg27[%c0_108, %c3087], %169 {strides = array<i32>} : memref<1x3136xf32, #tpu.memory_space<vmem>>, vector<1x49xf32>,
    tpu.wait_dma2 semaphore(%arg28 : memref<!tpu.dma_semaphore, #tpu.memory_space<semaphore_mem>>) src(%arg17 : memref<3136x512xbf16, #tpu.memory_space<any>>) dst(%arg26 : memref<3136x512xbf16, #tpu.memory_space<vmem>>)
    %c0_109 = arith.constant 0 : index
    %c0_110 = arith.constant 0 : index
    %171 = vector.load %arg27[%c0_109, %c0_110] : memref<1x3136xf32, #tpu.memory_space<vmem>>, vector<1x3136xf32>
    %172 = arith.truncf %171 : vector<1x3136xf32> to vector<1x3136xbf16>
    %c0_111 = arith.constant 0 : index
    %c0_112 = arith.constant 0 : index
    %173 = vector.load %arg26[%c0_111, %c0_112] : memref<3136x512xbf16, #tpu.memory_space<vmem>>, vector<3136x512xbf16>
    %cst_113 = arith.constant dense<0.000000e+00> : vector<1x512xf32>
    %174 = tpu.matmul %172, %173, %cst_113 {dimension_numbers = #tpu.dot_dimension_numbers<[1], [0], [0], [1], [0, 0, 1, 1], [], []>} : vector<1x3136xbf16>, vector<3136x512xbf16>, vector<1x512xf32> -> vector<1x512xf32>
    %c0_114 = arith.constant 0 : index
    %c0_115 = arith.constant 0 : index
    %175 = vector.load %arg4[%c0_114, %c0_115] : memref<2x128xf32, #tpu.memory_space<vmem>>, vector<1x128xf32>
    %c0_116 = arith.constant 0 : index
    %c0_117 = arith.constant 0 : index
    %176 = vector.load %arg18[%c0_116, %c0_117] : memref<128x512xbf16, #tpu.memory_space<vmem>>, vector<128x512xbf16>
    %177 = arith.extf %176 : vector<128x512xbf16> to vector<128x512xf32>
    %cst_118 = arith.constant dense<0.000000e+00> : vector<1x512xf32>
    %178 = tpu.matmul %175, %177, %cst_118 {dimension_numbers = #tpu.dot_dimension_numbers<[1], [0], [0], [1], [0, 0, 1, 1], [], []>} : vector<1x128xf32>, vector<128x512xf32>, vector<1x512xf32> -> vector<1x512xf32>
    %179 = arith.addf %174, %178 : vector<1x512xf32>
    %180 = vector.extract_strided_slice %179 {offsets = [0, 0], sizes = [1, 128], strides = [1, 1]} : vector<1x512xf32> to vector<1x128xf32>
    %cst_119 = arith.constant 5.000000e-01 : f32
    %181 = vector.broadcast %cst_119 : f32 to vector<1x128xf32>
    %182 = arith.mulf %181, %180 : vector<1x128xf32>
    %183 = math.tanh %182 : vector<1x128xf32>
    %cst_120 = arith.constant 1.000000e+00 : f32
    %184 = vector.broadcast %cst_120 : f32 to vector<1x128xf32>
    %185 = arith.addf %183, %184 : vector<1x128xf32>
    %cst_121 = arith.constant 5.000000e-01 : f32
    %186 = vector.broadcast %cst_121 : f32 to vector<1x128xf32>
    %187 = arith.mulf %186, %185 : vector<1x128xf32>
    %188 = vector.extract_strided_slice %179 {offsets = [0, 128], sizes = [1, 128], strides = [1, 1]} : vector<1x512xf32> to vector<1x128xf32>
    %cst_122 = arith.constant 5.000000e-01 : f32
    %189 = vector.broadcast %cst_122 : f32 to vector<1x128xf32>
    %190 = arith.mulf %189, %188 : vector<1x128xf32>
    %191 = math.tanh %190 : vector<1x128xf32>
    %cst_123 = arith.constant 1.000000e+00 : f32
    %192 = vector.broadcast %cst_123 : f32 to vector<1x128xf32>
    %193 = arith.addf %191, %192 : vector<1x128xf32>
    %cst_124 = arith.constant 5.000000e-01 : f32
    %194 = vector.broadcast %cst_124 : f32 to vector<1x128xf32>
    %195 = arith.mulf %194, %193 : vector<1x128xf32>
    %196 = vector.extract_strided_slice %179 {offsets = [0, 256], sizes = [1, 128], strides = [1, 1]} : vector<1x512xf32> to vector<1x128xf32>
    %197 = math.tanh %196 : vector<1x128xf32>
    %198 = vector.extract_strided_slice %179 {offsets = [0, 384], sizes = [1, 128], strides = [1, 1]} : vector<1x512xf32> to vector<1x128xf32>
    %cst_125 = arith.constant 5.000000e-01 : f32
    %199 = vector.broadcast %cst_125 : f32 to vector<1x128xf32>
    %200 = arith.mulf %199, %198 : vector<1x128xf32>
    %201 = math.tanh %200 : vector<1x128xf32>
    %cst_126 = arith.constant 1.000000e+00 : f32
    %202 = vector.broadcast %cst_126 : f32 to vector<1x128xf32>
    %203 = arith.addf %201, %202 : vector<1x128xf32>
    %cst_127 = arith.constant 5.000000e-01 : f32
    %204 = vector.broadcast %cst_127 : f32 to vector<1x128xf32>
    %205 = arith.mulf %204, %203 : vector<1x128xf32>
    %c0_128 = arith.constant 0 : index
    %c0_129 = arith.constant 0 : index
    %206 = vector.load %arg5[%c0_128, %c0_129] : memref<2x128xf32, #tpu.memory_space<vmem>>, vector<1x128xf32>
    %207 = arith.mulf %195, %206 : vector<1x128xf32>
    %208 = arith.mulf %187, %197 : vector<1x128xf32>
    %209 = arith.addf %207, %208 : vector<1x128xf32>
    %210 = math.tanh %209 : vector<1x128xf32>
    %211 = arith.mulf %205, %210 : vector<1x128xf32>
    %c0_130 = arith.constant 0 : index
    %c0_131 = arith.constant 0 : index
    %212 = vector.load %arg19[%c0_130, %c0_131] : memref<128x512xbf16, #tpu.memory_space<vmem>>, vector<128x512xbf16>
    %213 = arith.extf %212 : vector<128x512xbf16> to vector<128x512xf32>
    %cst_132 = arith.constant dense<0.000000e+00> : vector<1x512xf32>
    %214 = tpu.matmul %211, %213, %cst_132 {dimension_numbers = #tpu.dot_dimension_numbers<[1], [0], [0], [1], [0, 0, 1, 1], [], []>} : vector<1x128xf32>, vector<128x512xf32>, vector<1x512xf32> -> vector<1x512xf32>
    %c1 = arith.constant 1 : index
    %c0_133 = arith.constant 0 : index
    %215 = vector.load %arg4[%c1, %c0_133] : memref<2x128xf32, #tpu.memory_space<vmem>>, vector<1x128xf32>
    %c0_134 = arith.constant 0 : index
    %c0_135 = arith.constant 0 : index
    %216 = vector.load %arg20[%c0_134, %c0_135] : memref<128x512xbf16, #tpu.memory_space<vmem>>, vector<128x512xbf16>
    %217 = arith.extf %216 : vector<128x512xbf16> to vector<128x512xf32>
    %cst_136 = arith.constant dense<0.000000e+00> : vector<1x512xf32>
    %218 = tpu.matmul %215, %217, %cst_136 {dimension_numbers = #tpu.dot_dimension_numbers<[1], [0], [0], [1], [0, 0, 1, 1], [], []>} : vector<1x128xf32>, vector<128x512xf32>, vector<1x512xf32> -> vector<1x512xf32>
    %219 = arith.addf %214, %218 : vector<1x512xf32>
    %220 = vector.extract_strided_slice %219 {offsets = [0, 0], sizes = [1, 128], strides = [1, 1]} : vector<1x512xf32> to vector<1x128xf32>
    %cst_137 = arith.constant 5.000000e-01 : f32
    %221 = vector.broadcast %cst_137 : f32 to vector<1x128xf32>
    %222 = arith.mulf %221, %220 : vector<1x128xf32>
    %223 = math.tanh %222 : vector<1x128xf32>
    %cst_138 = arith.constant 1.000000e+00 : f32
    %224 = vector.broadcast %cst_138 : f32 to vector<1x128xf32>
    %225 = arith.addf %223, %224 : vector<1x128xf32>
    %cst_139 = arith.constant 5.000000e-01 : f32
    %226 = vector.broadcast %cst_139 : f32 to vector<1x128xf32>
    %227 = arith.mulf %226, %225 : vector<1x128xf32>
    %228 = vector.extract_strided_slice %219 {offsets = [0, 128], sizes = [1, 128], strides = [1, 1]} : vector<1x512xf32> to vector<1x128xf32>
    %cst_140 = arith.constant 5.000000e-01 : f32
    %229 = vector.broadcast %cst_140 : f32 to vector<1x128xf32>
    %230 = arith.mulf %229, %228 : vector<1x128xf32>
    %231 = math.tanh %230 : vector<1x128xf32>
    %cst_141 = arith.constant 1.000000e+00 : f32
    %232 = vector.broadcast %cst_141 : f32 to vector<1x128xf32>
    %233 = arith.addf %231, %232 : vector<1x128xf32>
    %cst_142 = arith.constant 5.000000e-01 : f32
    %234 = vector.broadcast %cst_142 : f32 to vector<1x128xf32>
    %235 = arith.mulf %234, %233 : vector<1x128xf32>
    %236 = vector.extract_strided_slice %219 {offsets = [0, 256], sizes = [1, 128], strides = [1, 1]} : vector<1x512xf32> to vector<1x128xf32>
    %237 = math.tanh %236 : vector<1x128xf32>
    %238 = vector.extract_strided_slice %219 {offsets = [0, 384], sizes = [1, 128], strides = [1, 1]} : vector<1x512xf32> to vector<1x128xf32>
    %cst_143 = arith.constant 5.000000e-01 : f32
    %239 = vector.broadcast %cst_143 : f32 to vector<1x128xf32>
    %240 = arith.mulf %239, %238 : vector<1x128xf32>
    %241 = math.tanh %240 : vector<1x128xf32>
    %cst_144 = arith.constant 1.000000e+00 : f32
    %242 = vector.broadcast %cst_144 : f32 to vector<1x128xf32>
    %243 = arith.addf %241, %242 : vector<1x128xf32>
    %cst_145 = arith.constant 5.000000e-01 : f32
    %244 = vector.broadcast %cst_145 : f32 to vector<1x128xf32>
    %245 = arith.mulf %244, %243 : vector<1x128xf32>
    %c1_146 = arith.constant 1 : index
    %c0_147 = arith.constant 0 : index
    %246 = vector.load %arg5[%c1_146, %c0_147] : memref<2x128xf32, #tpu.memory_space<vmem>>, vector<1x128xf32>
    %247 = arith.mulf %235, %246 : vector<1x128xf32>
    %248 = arith.mulf %227, %237 : vector<1x128xf32>
    %249 = arith.addf %247, %248 : vector<1x128xf32>
    %250 = math.tanh %249 : vector<1x128xf32>
    %251 = arith.mulf %245, %250 : vector<1x128xf32>
    %c0_148 = arith.constant 0 : index
    %c0_149 = arith.constant 0 : index
    %252 = vector.load %arg21[%c0_148, %c0_149] : memref<128x8xf32, #tpu.memory_space<vmem>>, vector<128x8xf32>
    %cst_150 = arith.constant dense<0.000000e+00> : vector<1x8xf32>
    %253 = tpu.matmul %251, %252, %cst_150 {dimension_numbers = #tpu.dot_dimension_numbers<[1], [0], [0], [1], [0, 0, 1, 1], [], []>} : vector<1x128xf32>, vector<128x8xf32>, vector<1x8xf32> -> vector<1x8xf32>
    %c0_151 = arith.constant 0 : index
    %c0_152 = arith.constant 0 : index
    %254 = vector.load %arg22[%c0_151, %c0_152] : memref<128x64xf32, #tpu.memory_space<vmem>>, vector<128x64xf32>
    %cst_153 = arith.constant dense<0.000000e+00> : vector<1x64xf32>
    %255 = tpu.matmul %251, %254, %cst_153 {dimension_numbers = #tpu.dot_dimension_numbers<[1], [0], [0], [1], [0, 0, 1, 1], [], []>} : vector<1x128xf32>, vector<128x64xf32>, vector<1x64xf32> -> vector<1x64xf32>
    %c0_154 = arith.constant 0 : index
    %c0_155 = arith.constant 0 : index
    %256 = vector.load %arg23[%c0_154, %c0_155] : memref<64x1xf32, #tpu.memory_space<vmem>>, vector<64x1xf32>
    %cst_156 = arith.constant dense<0.000000e+00> : vector<1x1xf32>
    %257 = tpu.matmul %255, %256, %cst_156 {dimension_numbers = #tpu.dot_dimension_numbers<[1], [0], [0], [1], [0, 0, 1, 1], [], []>} : vector<1x64xf32>, vector<64x1xf32>, vector<1x1xf32> -> vector<1x1xf32>
    %cst_157 = arith.constant 0.000000e+00 : f32
    %258 = vector.broadcast %cst_157 : f32 to vector<8x128xf32>
    %c0_158 = arith.constant 0 : index
    %c0_159 = arith.constant 0 : index
    %259 = vector.load %arg25[%c0_158, %c0_159] : memref<8x128xf32, #tpu.memory_space<vmem>>, vector<8x128xf32>
    tpu.vector_store %arg25[%c0_158, %c0_159], %258 {strides = array<i32>} : memref<8x128xf32, #tpu.memory_space<vmem>>, vector<8x128xf32>,
    %c0_160 = arith.constant 0 : index
    %c0_161 = arith.constant 0 : index
    %260 = vector.load %arg25[%c0_160, %c0_161] : memref<8x128xf32, #tpu.memory_space<vmem>>, vector<1x128xf32>
    tpu.vector_store %arg25[%c0_160, %c0_161], %211 {strides = array<i32>} : memref<8x128xf32, #tpu.memory_space<vmem>>, vector<1x128xf32>,
    %c1_162 = arith.constant 1 : index
    %c0_163 = arith.constant 0 : index
    %261 = vector.load %arg25[%c1_162, %c0_163] : memref<8x128xf32, #tpu.memory_space<vmem>>, vector<1x128xf32>
    tpu.vector_store %arg25[%c1_162, %c0_163], %251 {strides = array<i32>} : memref<8x128xf32, #tpu.memory_space<vmem>>, vector<1x128xf32>,
    %c2 = arith.constant 2 : index
    %c0_164 = arith.constant 0 : index
    %262 = vector.load %arg25[%c2, %c0_164] : memref<8x128xf32, #tpu.memory_space<vmem>>, vector<1x128xf32>
    tpu.vector_store %arg25[%c2, %c0_164], %209 {strides = array<i32>} : memref<8x128xf32, #tpu.memory_space<vmem>>, vector<1x128xf32>,
    %c3 = arith.constant 3 : index
    %c0_165 = arith.constant 0 : index
    %263 = vector.load %arg25[%c3, %c0_165] : memref<8x128xf32, #tpu.memory_space<vmem>>, vector<1x128xf32>
    tpu.vector_store %arg25[%c3, %c0_165], %249 {strides = array<i32>} : memref<8x128xf32, #tpu.memory_space<vmem>>, vector<1x128xf32>,
    %c4 = arith.constant 4 : index
    %c0_166 = arith.constant 0 : index
    %264 = vector.load %arg25[%c4, %c0_166] : memref<8x128xf32, #tpu.memory_space<vmem>>, vector<1x8xf32>
    tpu.vector_store %arg25[%c4, %c0_166], %253 {strides = array<i32>} : memref<8x128xf32, #tpu.memory_space<vmem>>, vector<1x8xf32>,
    %c5 = arith.constant 5 : index
    %c0_167 = arith.constant 0 : index
    %265 = vector.load %arg25[%c5, %c0_167] : memref<8x128xf32, #tpu.memory_space<vmem>>, vector<1x1xf32>
    tpu.vector_store %arg25[%c5, %c0_167], %257 {strides = array<i32>} : memref<8x128xf32, #tpu.memory_space<vmem>>, vector<1x1xf32>,
    return
  }
}

</mosaic_0001>

<bundles_post_ra>
// kernel: basemodel_forward.1
= control target key start
LH: loop header
LB: loop body
LE: loop exit
PB: predicated region body
PF: predicated region fallthrough
CT: control target
= control target key end

     0   :  { %s9923_s0 = inlined_call_operand.vmem [shape: bf16[512,49], index: 0, kind: input, shape index: {}]   ;;  %s9924_s1 = inlined_call_operand.vmem [shape: bf16[100,256], index: 1, kind: input, shape index: {}]   ;;  %s9925_s2 = inlined_call_operand.vmem [shape: f32[100,8], index: 2, kind: input, shape index: {}]   ;;  %s9926_s3 = inlined_call_operand.vmem [shape: f32[8,1], index: 3, kind: input, shape index: {}]   ;;  %s9927_s4 = inlined_call_operand.hbm [shape: f32[2,128], index: 4, kind: input, shape index: {}]   ;;  %s9928_s5 = inlined_call_operand.hbm [shape: f32[2,128], index: 5, kind: input, shape index: {}]   ;;  %s9929_s6 = inlined_call_operand.hbm [shape: bf16[64,512], index: 6, kind: input, shape index: {}]   ;;  %s9930_s7 = inlined_call_operand.vmem [shape: f32[64,1], index: 7, kind: input, shape index: {}]   ;;  %s9931_s8 = inlined_call_operand.vmem [shape: bf16[256,49], index: 8, kind: input, shape index: {}]   ;;  %s9932_s9 = inlined_call_operand.hbm [shape: f32[8,49], index: 9, kind: input, shape index: {}]   ;;  %s9933_s10 = inlined_call_operand.hbm [shape: f32[1,49], index: 10, kind: input, shape index: {}]   ;;  %s9934_s11 = inlined_call_operand.vmem [shape: f32[10,8], index: 11, kind: input, shape index: {}]   ;;  %s9935_s12 = inlined_call_operand.vmem [shape: f32[10,1], index: 12, kind: input, shape index: {}]   ;;  %s9936_s13 = inlined_call_operand.hbm [shape: f32[64,64], index: 13, kind: input, shape index: {}]   ;;  %s9937_s14 = inlined_call_operand.hbm [shape: f32[64,100], index: 14, kind: input, shape index: {}]   ;;  %s9938_s15 = inlined_call_operand.vmem [shape: f32[64,10], index: 15, kind: input, shape index: {}]   ;;  %s9939_s16 = inlined_call_operand.vmem [shape: f32[64,1], index: 16, kind: input, shape index: {}]   ;;  %s9940_s17 = inlined_call_operand.hbm [shape: bf16[3136,512], index: 17, kind: input, shape index: {}]   ;;  %s9941_s18 = inlined_call_operand.hbm [shape: bf16[128,512], index: 18, kind: input, shape index: {}]   ;;  %s9942_s19 = inlined_call_operand.hbm [shape: bf16[128,512], index: 19, kind: input, shape index: {}]   ;;  %s9943_s20 = inlined_call_operand.hbm [shape: bf16[128,512], index: 20, kind: input, shape index: {}]   ;;  %s9944_s21 = inlined_call_operand.vmem [shape: f32[128,8], index: 21, kind: input, shape index: {}]   ;;  %s9945_s22 = inlined_call_operand.vmem [shape: f32[128,64], index: 22, kind: input, shape index: {}]   ;;  %s9946_s23 = inlined_call_operand.vmem [shape: f32[64,1], index: 23, kind: input, shape index: {}]   ;;  %s9947_s24 = inlined_call_operand.vmem [shape: f32[64,128], index: 24, kind: output, shape index: {0}]   ;;  %s9948_s25 = inlined_call_operand.vmem [shape: f32[8,128], index: 25, kind: output, shape index: {1}]  }
   0x1   :  { %9974 = sst [smem:[#allocation30_spill]] %s9923_s0 }
   0x2   :  { %9975 = sst [smem:[#allocation31_spill]] %s9924_s1 }
   0x3   :  { %9976 = sst [smem:[#allocation32_spill]] %s9925_s2 }
   0x4   :  { %9977 = sst [smem:[#allocation33_spill]] %s9926_s3 }
   0x5   :  { %9978 = sst [smem:[#allocation34_spill]] %s9927_s4 }
   0x6   :  { %9979 = sst [smem:[#allocation35_spill]] %s9928_s5 }
   0x7   :  { %9980 = sst [smem:[#allocation36_spill]] %s9929_s6 }
   0x8   :  { %9981 = sst [smem:[#allocation37_spill]] %s9930_s7 }
   0x9   :  { %9982 = sst [smem:[#allocation38_spill]] %s9931_s8 }
   0xa   :  { %9983 = sst [smem:[#allocation39_spill]] %s9932_s9 }
   0xb   :  { %9984 = sst [smem:[#allocation40_spill]] %s9946_s23 }
   0xc   :  { %31 = vsyncpa [#allocation6], 0 }
   0xd   :  { %32 = vsyncpa [#allocation8], 0 }
   0xe   :  { %33 = vsyncpa [#allocation11], 0 }
   0xf   :  { %34 = vsyncpa [#allocation14], 0 }
  0x10   :  { %35 = vsyncpa [#allocation17], 0 }
  0x11   :  { %36 = vsyncpa [#allocation20], 0  ;;  %s7521_s29 = smov [#allocation7]   ;;  %s7522_s6 = smov [#allocation10]  }
  0x12   :  { %s61_s2 = sshll.u32 %s7521_s29, 4  ;;  %s87_s30 = sshll.u32 %s7522_s6, 4  ;;  %s62_s2 = int_to_ptr.vmem [resolvable:$true] %s61_s2  ;;  %s88_s30 = int_to_ptr.vmem [resolvable:$true] %s87_s30 }
  0x13   :  { %s9985_s26 = sld [smem:[#allocation35_spill]] }
  0x19   :  { %s7287_s1 = scalar_lea.hbm %s9985_s26, 32 }
  0x1a   :  { %p7288_p0 = scmp.ne.s32.totalorder %s9985_s26, %s7287_s1  ;;  %p7291_p1 = scmp.lt.u32.totalorder %s7287_s1, %s9985_s26 }
  0x1c   :  { %p7293_p2 = pnand %p7291_p1, %p7288_p0 }
  0x1e   :  { %7296 = shalt.err (!%p7293_p2)
}
  0x1f   :  { %s7297_s9 = scalar_lea.vmem %s62_s2, 32  ;;  %p7302_p4 = scmp.lt.s32.totalorder %s62_s2, %s62_s2 }
  0x20   :  { %p7298_p3 = scmp.ne.s32.totalorder %s62_s2, %s7297_s9  ;;  %p7303_p5 = scmp.lt.s32.totalorder %s7297_s9, %s7297_s9 }
  0x22   :  { %p7304_p6 = por %p7303_p5, %p7302_p4 }
  0x24   :  { %p7305_p7 = pnand %p7304_p6, %p7298_p3 }
  0x26   :  { %7308 = shalt.err (!%p7305_p7)
}
  0x27   :  { %64 = dma.hbm_to_vmem [thread:$0]  %s9985_s26, 32, %s62_s2, [#allocation8]  }
  0x28   :  { %s9986_s7 = sld [smem:[#allocation39_spill]] }
  0x2e   :  { %s7309_s3 = scalar_lea.hbm %s9986_s7, 128 }
  0x2f   :  { %p7310_p8 = scmp.ne.s32.totalorder %s9986_s7, %s7309_s3  ;;  %p7313_p9 = scmp.lt.u32.totalorder %s7309_s3, %s9986_s7 }
  0x31   :  { %p7315_p10 = pnand %p7313_p9, %p7310_p8 }
  0x33   :  { %7318 = shalt.err (!%p7315_p10)
}
  0x34   :  { %s7319_s28 = scalar_lea.vmem %s88_s30, 128  ;;  %p7324_p12 = scmp.lt.s32.totalorder %s88_s30, %s88_s30 }
  0x35   :  { %p7320_p11 = scmp.ne.s32.totalorder %s88_s30, %s7319_s28  ;;  %p7325_p13 = scmp.lt.s32.totalorder %s7319_s28, %s7319_s28 }
  0x37   :  { %p7326_p0 = por %p7325_p13, %p7324_p12 }
  0x39   :  { %p7327_p1 = pnand %p7326_p0, %p7320_p11 }
  0x3b   :  { %7330 = shalt.err (!%p7327_p1)
}
  0x3c   :  { %90 = dma.hbm_to_vmem [thread:$0]  %s9986_s7, 128, %s88_s30, [#allocation11]  }
  0x3d   :  { %s7523_s9 = smov [#allocation13]   ;;  %s7331_s6 = scalar_lea.hbm %s9936_s13, 1024 }
  0x3e   :  { %s110_s5 = sshll.u32 %s7523_s9, 4  ;;  %p7332_p2 = scmp.ne.s32.totalorder %s9936_s13, %s7331_s6  ;;  %s111_s5 = int_to_ptr.vmem [resolvable:$true] %s110_s5 }
  0x3f   :  { %p7335_p3 = scmp.lt.u32.totalorder %s7331_s6, %s9936_s13 }
  0x41   :  { %p7337_p4 = pnand %p7335_p3, %p7332_p2 }
  0x43   :  { %7340 = shalt.err (!%p7337_p4)
}
  0x44   :  { %s7341_s4 = scalar_lea.vmem %s111_s5, 1024  ;;  %p7346_p6 = scmp.lt.s32.totalorder %s111_s5, %s111_s5 }
  0x45   :  { %p7342_p5 = scmp.ne.s32.totalorder %s111_s5, %s7341_s4  ;;  %p7347_p7 = scmp.lt.s32.totalorder %s7341_s4, %s7341_s4 }
  0x47   :  { %p7348_p8 = por %p7347_p7, %p7346_p6 }
  0x49   :  { %p7349_p9 = pnand %p7348_p8, %p7342_p5 }
  0x4b   :  { %7352 = shalt.err (!%p7349_p9)
}
  0x4c   :  { %s9959_s30 = smov 128   ;;  %s9961_s7 = smov 8  }
  0x4d   :  { %116 = dma.hbm_to_vmem [thread:$0]  %s9936_s13, 1024, %s111_s5, [#allocation14], %s9959_s30, %s9959_s30, %s9961_s7  }
  0x4e   :  { %s7526_s26 = smov [#allocation16]   ;;  %s7527_s0 = smov [#allocation5]  }
  0x4f   :  { %s138_s9 = sshll.u32 %s7526_s26, 4  ;;  %s51_s29 = sshll.u32 %s7527_s0, 4  ;;  %s139_s9 = int_to_ptr.vmem [resolvable:$true] %s138_s9  ;;  %s52_s29 = int_to_ptr.vmem [resolvable:$true] %s51_s29 }
  0x50   :  { %s7353_s8 = scalar_lea.hbm %s9941_s18, 4096 }
  0x51   :  { %p7354_p10 = scmp.ne.s32.totalorder %s9941_s18, %s7353_s8  ;;  %p7357_p11 = scmp.lt.u32.totalorder %s7353_s8, %s9941_s18 }
  0x53   :  { %p7359_p12 = pnand %p7357_p11, %p7354_p10 }
  0x55   :  { %7362 = shalt.err (!%p7359_p12)
}
  0x56   :  { %s7363_s13 = scalar_lea.vmem %s139_s9, 4096  ;;  %p7368_p0 = scmp.lt.s32.totalorder %s139_s9, %s139_s9 }
  0x57   :  { %p7364_p13 = scmp.ne.s32.totalorder %s139_s9, %s7363_s13  ;;  %p7369_p1 = scmp.lt.s32.totalorder %s7363_s13, %s7363_s13 }
  0x59   :  { %p7370_p2 = por %p7369_p1, %p7368_p0 }
  0x5b   :  { %p7371_p3 = pnand %p7370_p2, %p7364_p13 }
  0x5d   :  { %7374 = shalt.err (!%p7371_p3)
}
  0x5e   :  { %s7528_s5 = smov 256   ;;  %s7529_s28 = smov 16  }
  0x5f   :  { %144 = dma.hbm_to_vmem [thread:$0]  %s9941_s18, 4096, %s139_s9, [#allocation17], %s7528_s5, %s7528_s5, %s7529_s28  }
  0x60   :  { %s9987_s6 = sld [smem:[#allocation34_spill]] }
  0x66   :  { %s7375_s3 = scalar_lea.hbm %s9987_s6, 32 }
  0x67   :  { %p7376_p4 = scmp.ne.s32.totalorder %s9987_s6, %s7375_s3  ;;  %p7379_p5 = scmp.lt.u32.totalorder %s7375_s3, %s9987_s6 }
  0x69   :  { %p7381_p6 = pnand %p7379_p5, %p7376_p4 }
  0x6b   :  { %7384 = shalt.err (!%p7381_p6)
}
  0x6c   :  { %s7385_s13 = scalar_lea.vmem %s52_s29, 32  ;;  %p7390_p8 = scmp.lt.s32.totalorder %s52_s29, %s52_s29 }
  0x6d   :  { %p7386_p7 = scmp.ne.s32.totalorder %s52_s29, %s7385_s13  ;;  %p7391_p9 = scmp.lt.s32.totalorder %s7385_s13, %s7385_s13 }
  0x6f   :  { %p7392_p10 = por %p7391_p9, %p7390_p8 }
  0x71   :  { %p7393_p11 = pnand %p7392_p10, %p7386_p7 }
  0x73   :  { %7396 = shalt.err (!%p7393_p11)
}
  0x74   :  { %54 = dma.hbm_to_vmem [thread:$0]  %s9987_s6, 32, %s52_s29, [#allocation6]  }
  0x75   :  { %s7530_s2 = smov [#allocation9]   ;;  %s7531_s23 = smov [#allocation12]  }
  0x76   :  { %s70_s26 = sshll.u32 %s7530_s2, 4  ;;  %s97_s0 = sshll.u32 %s7531_s23, 4  ;;  %s71_s26 = int_to_ptr.vmem [resolvable:$true] %s70_s26  ;;  %s98_s0 = int_to_ptr.vmem [resolvable:$true] %s97_s0 }
  0x77   :  { %s9988_s27 = sld [smem:[#allocation36_spill]] }
  0x7d   :  { %s7397_s1 = scalar_lea.hbm %s9988_s27, 2048 }
  0x7e   :  { %p7398_p12 = scmp.ne.s32.totalorder %s9988_s27, %s7397_s1  ;;  %p7401_p13 = scmp.lt.u32.totalorder %s7397_s1, %s9988_s27 }
  0x80   :  { %p7403_p0 = pnand %p7401_p13, %p7398_p12 }
  0x82   :  { %7406 = shalt.err (!%p7403_p0)
}
  0x83   :  { %s7407_s29 = scalar_lea.vmem %s71_s26, 2048  ;;  %p7412_p2 = scmp.lt.s32.totalorder %s71_s26, %s71_s26 }
  0x84   :  { %p7408_p1 = scmp.ne.s32.totalorder %s71_s26, %s7407_s29  ;;  %p7413_p3 = scmp.lt.s32.totalorder %s7407_s29, %s7407_s29 }
  0x86   :  { %p7414_p4 = por %p7413_p3, %p7412_p2 }
  0x88   :  { %p7415_p5 = pnand %p7414_p4, %p7408_p1 }
  0x8a   :  { %7418 = shalt.err (!%p7415_p5)
}
  0x8b   :  { %76 = dma.hbm_to_vmem [thread:$0]  %s9988_s27, 2048, %s71_s26, [#allocation8], %s7528_s5, %s7528_s5, %s7529_s28  }
  0x8c   :  { %s7419_s9 = scalar_lea.hbm %s9933_s10, 16 }
  0x8d   :  { %p7420_p6 = scmp.ne.s32.totalorder %s9933_s10, %s7419_s9  ;;  %p7423_p7 = scmp.lt.u32.totalorder %s7419_s9, %s9933_s10 }
  0x8f   :  { %p7425_p8 = pnand %p7423_p7, %p7420_p6 }
  0x91   :  { %7428 = shalt.err (!%p7425_p8)
}
  0x92   :  { %s7429_s1 = scalar_lea.vmem %s98_s0, 16  ;;  %s7433_s4 = scalar_lea.vmem %s98_s0, 32 }
  0x93   :  { %p7430_p9 = scmp.ne.s32.totalorder %s98_s0, %s7429_s1  ;;  %p7434_p10 = scmp.lt.s32.totalorder %s98_s0, %s98_s0 }
  0x94   :  { %p7435_p11 = scmp.lt.s32.totalorder %s7433_s4, %s7429_s1 }
  0x96   :  { %p7436_p12 = por %p7435_p11, %p7434_p10 }
  0x98   :  { %p7437_p13 = pnand %p7436_p12, %p7430_p9 }
  0x9a   :  { %7440 = shalt.err (!%p7437_p13)
}
  0x9b   :  { %100 = dma.hbm_to_vmem [thread:$0]  %s9933_s10, 16, %s98_s0, [#allocation11]  }
  0x9c   :  { %s7532_s13 = smov [#allocation15]   ;;  %s7533_s6 = smov [#allocation18]  }
  0x9d   :  { %s122_s29 = sshll.u32 %s7532_s13, 4  ;;  %s150_s18 = sshll.u32 %s7533_s6, 4  ;;  %s123_s29 = int_to_ptr.vmem [resolvable:$true] %s122_s29  ;;  %s151_s18 = int_to_ptr.vmem [resolvable:$true] %s150_s18 }
  0x9e   :  { %s7441_s9 = scalar_lea.hbm %s9937_s14, 1024 }
  0x9f   :  { %p7442_p0 = scmp.ne.s32.totalorder %s9937_s14, %s7441_s9  ;;  %p7445_p1 = scmp.lt.u32.totalorder %s7441_s9, %s9937_s14 }
  0xa1   :  { %p7447_p2 = pnand %p7445_p1, %p7442_p0 }
  0xa3   :  { %7450 = shalt.err (!%p7447_p2)
}
  0xa4   :  { %s7451_s10 = scalar_lea.vmem %s123_s29, 1024  ;;  %p7456_p4 = scmp.lt.s32.totalorder %s123_s29, %s123_s29 }
  0xa5   :  { %p7452_p3 = scmp.ne.s32.totalorder %s123_s29, %s7451_s10  ;;  %p7457_p5 = scmp.lt.s32.totalorder %s7451_s10, %s7451_s10 }
  0xa7   :  { %p7458_p6 = por %p7457_p5, %p7456_p4 }
  0xa9   :  { %p7459_p7 = pnand %p7458_p6, %p7452_p3 }
  0xab   :  { %7462 = shalt.err (!%p7459_p7)
}
  0xac   :  { %s9989_s0 = smov 8   ;;  %s9990_s1 = smov 128  }
  0xad   :  { %128 = dma.hbm_to_vmem [thread:$0]  %s9937_s14, 1024, %s123_s29, [#allocation14], %s9990_s1, %s9990_s1, %s9989_s0  }
  0xae   :  { %s7463_s6 = scalar_lea.hbm %s9942_s19, 4096 }
  0xaf   :  { %p7464_p8 = scmp.ne.s32.totalorder %s9942_s19, %s7463_s6  ;;  %p7467_p9 = scmp.lt.u32.totalorder %s7463_s6, %s9942_s19 }
  0xb1   :  { %p7469_p10 = pnand %p7467_p9, %p7464_p8 }
  0xb3   :  { %7472 = shalt.err (!%p7469_p10)
}
  0xb4   :  { %s7473_s23 = scalar_lea.vmem %s151_s18, 4096  ;;  %p7478_p12 = scmp.lt.s32.totalorder %s151_s18, %s151_s18 }
  0xb5   :  { %p7474_p11 = scmp.ne.s32.totalorder %s151_s18, %s7473_s23  ;;  %p7479_p13 = scmp.lt.s32.totalorder %s7473_s23, %s7473_s23 }
  0xb7   :  { %p7480_p0 = por %p7479_p13, %p7478_p12 }
  0xb9   :  { %p7481_p1 = pnand %p7480_p0, %p7474_p11 }
  0xbb   :  { %7484 = shalt.err (!%p7481_p1)
}
  0xbc   :  { %156 = dma.hbm_to_vmem [thread:$0]  %s9942_s19, 4096, %s151_s18, [#allocation17], %s7528_s5, %s7528_s5, %s7529_s28  }
  0xbd   :  { %s7534_s8 = smov [#allocation19]   ;;  %s7485_s26 = scalar_lea.hbm %s9943_s20, 4096 }
  0xbe   :  { %s162_s3 = sshll.u32 %s7534_s8, 4  ;;  %p7486_p2 = scmp.ne.s32.totalorder %s9943_s20, %s7485_s26  ;;  %s163_s3 = int_to_ptr.vmem [resolvable:$true] %s162_s3 }
  0xbf   :  { %p7489_p3 = scmp.lt.u32.totalorder %s7485_s26, %s9943_s20 }
  0xc1   :  { %p7491_p4 = pnand %p7489_p3, %p7486_p2 }
  0xc3   :  { %7494 = shalt.err (!%p7491_p4)
}
  0xc4   :  { %s7495_s7 = scalar_lea.vmem %s163_s3, 4096  ;;  %p7500_p6 = scmp.lt.s32.totalorder %s163_s3, %s163_s3 }
  0xc5   :  { %p7496_p5 = scmp.ne.s32.totalorder %s163_s3, %s7495_s7  ;;  %p7501_p7 = scmp.lt.s32.totalorder %s7495_s7, %s7495_s7 }
  0xc7   :  { %p7502_p8 = por %p7501_p7, %p7500_p6 }
  0xc9   :  { %p7503_p9 = pnand %p7502_p8, %p7496_p5 }
  0xcb   :  { %7506 = shalt.err (!%p7503_p9)
}
  0xcc   :  { %168 = dma.hbm_to_vmem [thread:$0]  %s9943_s20, 4096, %s163_s3, [#allocation20], %s7528_s5, %s7528_s5, %s7529_s28  }
  0xcd   :  { %7507 = dma.done.wait [#allocation6], 32  }
  0xce   :  { %7508 = vsyncadd [#allocation6], 4294967264 }
  0xcf   :  { %7509 = dma.done.wait [#allocation8], 2080  }
  0xd0   :  { %7510 = vsyncadd [#allocation8], 4294965216 }
  0xd1   :  { %7511 = dma.done.wait [#allocation11], 144  }
  0xd2   :  { %7512 = vsyncadd [#allocation11], 4294967152 }
  0xd3   :  { %7513 = dma.done.wait [#allocation14], 2048  }
  0xd4   :  { %7514 = vsyncadd [#allocation14], 4294965248 }
  0xd5   :  { %7515 = dma.done.wait [#allocation17], 8192  }
  0xd6   :  { %7516 = vsyncadd [#allocation17], 4294959104 }
  0xd7   :  { %7517 = dma.done.wait [#allocation20], 4096  }
  0xd8   :  { %7518 = vsyncadd [#allocation20], 4294963200  ;;  %s210_s9 = sld [smem:[#allocation0]]   ;;  %s7535_s2 = smov 512   ;;  %v7540_v0 = vmov 0   ;;  %v7543_v35 = vmov 0.0  }
  0xd9   :  { %222 = sst [smem:[#allocation22]] %s7535_s2  ;;  %s7536_s23 = smov 4   ;;  %7026 = vset.pattern.permute.xlu0 %v7540_v0  ;;  %7027 = vset.pattern.permute.xlu1 %v7540_v0  ;;  %vm9963_vm0 = vmmov 0   ;;  %vm856_vm1 = vcmask 64512   ;;  %vm9966_vm2 = vcmask 818176   ;;  %vm1414_vm3 = vcmask 80896  }
  0xda   :  { %224 = sst [smem:[#allocation22 + $0x1]] %s7535_s2  ;;  %s7537_s14 = smov 64   ;;  %vm779_vm4 = vcmask 400384   ;;  %vm788_vm5 = vcmask 1047944   ;;  %vm1439_vm6 = vcmask 1041408   ;;  %vm1589_vm7 = vcmask 1043456  }
  0xdb   :  { %226 = sst [smem:[#allocation22 + $0x2]] %s7536_s23  ;;  %s7538_s20 = smov [#allocation2]   ;;  %vm7545_vm8 = vmmov 1   ;;  %vm9965_vm10 = vcmask 523264  }
  0xdc   :  { %228 = sst [smem:[#allocation22 + $0x3]] %s7537_s14  ;;  %s218_s29 = sshll.u32 %s7538_s20, 4  ;;  %vm6442_vm9 = vmpackc.low %vm1439_vm6, %vm7545_vm8  ;;  %s219_s29 = int_to_ptr.vmem [resolvable:$true] %s218_s29 }
  0xdd   :  { %230 = sst [smem:[#allocation22 + $0x4]] %s9990_s1  ;;  %s7539_s8 = smov 2  }
  0xde   :  { %232 = sst [smem:[#allocation22 + $0x5]] %s7539_s8  ;;  %s5852_s3 = sshll.u32 %s210_s9, 26 }
  0xdf   :  { %234 = sst [smem:[#allocation22 + $0x6]] %s7528_s5  ;;  %s5853_s10 = sadd.s32 134217728, %s5852_s3 }
  0xe0   :  { %236 = sst [smem:[#allocation22 + $0x7]] %s7537_s14  ;;  %s7541_s4 = smov [#allocation4]  }
  0xe1   :  { %238 = sst [smem:[#allocation22 + $0x8]] %s7536_s23  ;;  %s7542_s26 = smov [#allocation21]  }
  0xe2   :  { %240 = dma.general %s9940_s17, 100352, %s219_s29, %s7541_s4, %s7542_s26, [#allocation22], %s5853_s10, 0  }
  0xe3   :  { %s9991_s30 = sld [smem:[#allocation30_spill]]  ;;  %v7060_v33 = vld [vmem:[#allocation9] ss:$16 sps:$4 sm:$0xff]   ;;  %v7062_v34 = vld [vmem:[#allocation9 + $0x4] ss:$16 sps:$4 sm:$0xff]   ;;  %s9993_s6 = sld [smem:[#allocation31_spill]] }
  0xe4   :  { %v7063_v36 = vld [vmem:[#allocation9 + $0x8] ss:$16 sps:$4 sm:$0xff]   ;;  %v7065_v37 = vld [vmem:[#allocation9 + $0xc] ss:$16 sps:$4 sm:$0xff]   ;;  %673 = vmatprep.mubr.bf16.mxu0 %v7062_v34  ;;  %s9992_s23 = sld [smem:[#allocation38_spill]]  ;;  %v855_v39 = vld [vmem:[#allocation10] sm:$0xff] }
  0xe5   :  { %738 = vmatprep.mubr.bf16.mxu1 %v7065_v37  ;;  %v7070_v43 = vld [vmem:[#allocation9 + $0x24] ss:$16 sps:$4 sm:$0xff]   ;;  %v7072_v44 = vld [vmem:[#allocation9 + $0x2c] ss:$16 sps:$4 sm:$0xff]   ;;  %v7074_v45 = vld [vmem:[#allocation9 + $0x20] ss:$16 sps:$4 sm:$0xff]  }
  0xe6   :  { %v7075_v46 = vld [vmem:[#allocation9 + $0x28] ss:$16 sps:$4 sm:$0xff]   ;;  %v7080_v51 = vld [vmem:[#allocation9 + $0x44] ss:$16 sps:$4 sm:$0xff]   ;;  %v7082_v52 = vld [vmem:[#allocation9 + $0x4c] ss:$16 sps:$4 sm:$0xff]  }
  0xe7   :  { %v7084_v53 = vld [vmem:[#allocation9 + $0x40] ss:$16 sps:$4 sm:$0xff]   ;;  %v7085_v54 = vld [vmem:[#allocation9 + $0x48] ss:$16 sps:$4 sm:$0xff]   ;;  %v7090_v58 = vld [vmem:[#allocation9 + $0x64] ss:$16 sps:$4 sm:$0xff]  }
  0xe8   :  { %v7092_v60 = vld [vmem:[#allocation9 + $0x6c] ss:$16 sps:$4 sm:$0xff]   ;;  %v7094_v62 = vld [vmem:[#allocation9 + $0x60] ss:$16 sps:$4 sm:$0xff]   ;;  %v7095_v63 = vld [vmem:[#allocation9 + $0x68] ss:$16 sps:$4 sm:$0xff]  }
  0xe9   :  { %v7028_v1 = vld [vmem:[%s9991_s30 + $0x40] sm:$0xff]   ;;  %v7032_v5 = vld [vmem:[%s9991_s30 + $0x48] sm:$0xff]   ;;  %v7036_v9 = vld [vmem:[%s9991_s30 + $0x50] sm:$0xff]   ;;  %s9994_s19 = sld [smem:[#allocation33_spill]]  ;;  %s9996_s1 = sld [smem:[#allocation37_spill]] }
  0xea   :  { %v7029_v2 = vld [vmem:[%s9991_s30 + $0xc0] sm:$0xff]   ;;  %5979 = vmatprep.subr.bf16.mxu0 %v7028_v1  ;;  %v7033_v6 = vld [vmem:[%s9991_s30 + $0xc8] sm:$0xff]   ;;  %v7037_v10 = vld [vmem:[%s9991_s30 + $0xd0] sm:$0xff]   ;;  %s7550_s9 = smov 49   ;;  %s7552_s2 = smov 125  }
  0xeb   :  { %v7030_v3 = vld [vmem:[%s9991_s30] sm:$0xff]   ;;  %6019 = vmatprep.subr.bf16.mxu1 %v7029_v2  ;;  %v7034_v7 = vld [vmem:[%s9991_s30 + $0x8] sm:$0xff]   ;;  %v7038_v11 = vld [vmem:[%s9991_s30 + $0x10] sm:$0xff]   ;;  %s7553_s17 = smov 68   ;;  %s7554_s14 = smov 46  }
  0xec   :  { %v7031_v4 = vld [vmem:[%s9991_s30 + $0x80] sm:$0xff]   ;;  %5980 = vmatpush3.bf16.msra.mxu0 %v7030_v3  ;;  %v7035_v8 = vld [vmem:[%s9991_s30 + $0x88] sm:$0xff]   ;;  %v7039_v12 = vld [vmem:[%s9991_s30 + $0x90] sm:$0xff]   ;;  %s7555_s20 = smov 27   ;;  %s7556_s29 = smov 24  }
  0xed   :  { %6020 = vmatpush3.bf16.msra.mxu1 %v7031_v4  ;;  %5981 = vmatprep.subr.bf16.mxu0 %v7032_v5  ;;  %v7040_v13 = vld [vmem:[%s9991_s30 + $0x58] sm:$0xff]   ;;  %v7044_v17 = vld [vmem:[%s9991_s30 + $0x60] sm:$0xff]   ;;  %v7048_v21 = vld [vmem:[%s9991_s30 + $0x68] sm:$0xff]   ;;  %s7558_s3 = smov 19   ;;  %s7560_s10 = smov 117  }
  0xee   :  { %6021 = vmatprep.subr.bf16.mxu1 %v7033_v6  ;;  %v7041_v14 = vld [vmem:[%s9991_s30 + $0xd8] sm:$0xff]   ;;  %v7045_v18 = vld [vmem:[%s9991_s30 + $0xe0] sm:$0xff]   ;;  %v7049_v22 = vld [vmem:[%s9991_s30 + $0xe8] sm:$0xff]   ;;  %s7562_s4 = smov 38   ;;  %s7564_s26 = smov 114  }
  0xef   :  { %v7042_v15 = vld [vmem:[%s9991_s30 + $0x18] sm:$0xff]   ;;  %v7046_v19 = vld [vmem:[%s9991_s30 + $0x20] sm:$0xff]   ;;  %v7050_v23 = vld [vmem:[%s9991_s30 + $0x28] sm:$0xff]   ;;  %s7565_s27 = smov 92   ;;  %s7566_s13 = smov 65  }
  0xf0   :  { %5982 = vmatpush3.bf16.msra.mxu0 %v7034_v7  ;;  %v7043_v16 = vld [vmem:[%s9991_s30 + $0x98] sm:$0xff]   ;;  %v7047_v20 = vld [vmem:[%s9991_s30 + $0xa0] sm:$0xff]   ;;  %v7051_v24 = vld [vmem:[%s9991_s30 + $0xa8] sm:$0xff]   ;;  %s7569_s7 = smov 62   ;;  %s7571_s5 = smov 40  }
  0xf1   :  { %6022 = vmatpush3.bf16.msra.mxu1 %v7035_v8  ;;  %5983 = vmatprep.subr.bf16.mxu0 %v7036_v9  ;;  %v7052_v25 = vld [vmem:[%s9991_s30 + $0x70] sm:$0xff]   ;;  %v7056_v29 = vld [vmem:[%s9991_s30 + $0x78] sm:$0xff]   ;;  %v7066_v38 = vld [vmem:[%s9992_s23 + $0x40] sm:$0xff]   ;;  %s7573_s18 = smov 54  }
  0xf2   :  { %6023 = vmatprep.subr.bf16.mxu1 %v7037_v10  ;;  %v7053_v26 = vld [vmem:[%s9991_s30 + $0xf0] sm:$0xff]   ;;  %v7057_v30 = vld [vmem:[%s9991_s30 + $0xf8] sm:$0xff]   ;;  %v7067_v40 = vld [vmem:[%s9992_s23] sm:$0xff]  }
  0xf3   :  { %v7054_v27 = vld [vmem:[%s9991_s30 + $0x30] sm:$0xff]   ;;  %v7058_v31 = vld [vmem:[%s9991_s30 + $0x38] sm:$0xff]   ;;  %v7068_v41 = vld [vmem:[%s9992_s23 + $0x48] sm:$0xff]  }
  0xf4   :  { %5984 = vmatpush3.bf16.msra.mxu0 %v7038_v11  ;;  %v7055_v28 = vld [vmem:[%s9991_s30 + $0xb0] sm:$0xff]   ;;  %v7059_v32 = vld [vmem:[%s9991_s30 + $0xb8] sm:$0xff]   ;;  %v7069_v42 = vld [vmem:[%s9992_s23 + $0x8] sm:$0xff]   ;;  %s9995_s30 = sld [smem:[#allocation32_spill]] }
  0xf5   :  { %6024 = vmatpush3.bf16.msra.mxu1 %v7039_v12  ;;  %5985 = vmatprep.subr.bf16.mxu0 %v7040_v13  ;;  %v7076_v47 = vld [vmem:[%s9992_s23 + $0x50] sm:$0xff]   ;;  %v7078_v49 = vld [vmem:[%s9992_s23 + $0x58] sm:$0xff]   ;;  %v7086_v55 = vld [vmem:[%s9992_s23 + $0x60] sm:$0xff]  }
  0xf6   :  { %6025 = vmatprep.subr.bf16.mxu1 %v7041_v14  ;;  %v7077_v48 = vld [vmem:[%s9992_s23 + $0x10] sm:$0xff]   ;;  %v7079_v50 = vld [vmem:[%s9992_s23 + $0x18] sm:$0xff]   ;;  %v7087_v56 = vld [vmem:[%s9992_s23 + $0x20] sm:$0xff]  }
  0xf7   :  { %v7088_v57 = vld [vmem:[%s9992_s23 + $0x68] sm:$0xff]   ;;  %v7096_v61 = vld [vmem:[%s9992_s23 + $0x70] sm:$0xff]   ;;  %v7098_v2 = vld [vmem:[%s9992_s23 + $0x78] sm:$0xff]  }
  0xf8   :  { %5986 = vmatpush3.bf16.msra.mxu0 %v7042_v15  ;;  %v7089_v59 = vld [vmem:[%s9992_s23 + $0x28] sm:$0xff]   ;;  %v7097_v1 = vld [vmem:[%s9992_s23 + $0x30] sm:$0xff]   ;;  %v1312_v4 = vld [vmem:[%s9994_s19] sm:$0xff]  ;;  %s7572_s19 = smov 35  }
  0xf9   :  { %6026 = vmatpush3.bf16.msra.mxu1 %v7043_v16  ;;  %5987 = vmatprep.subr.bf16.mxu0 %v7044_v17  ;;  %v7102_v3 = vld [vmem:[%s9993_s6 + $0x4] ss:$8 sps:$4 sm:$0xff]   ;;  %v7099_v5 = vld [vmem:[%s9992_s23 + $0x38] sm:$0xff]   ;;  %v7100_v6 = vld [vmem:[%s9993_s6] ss:$8 sps:$4 sm:$0xff]   ;;  %s7559_s23 = smov 122  }
  0xfa   :  { %6027 = vmatprep.subr.bf16.mxu1 %v7045_v18  ;;  %v842_v7 = vld [vmem:[%s9995_s30] sm:$0xff]  ;;  %v7103_v8 = vld [vmem:[%s9993_s6 + $0x14] ss:$8 sps:$4 sm:$0xff]   ;;  %v843_v9 = vld [vmem:[%s9995_s30 + $0x8] sm:$0xff] }
  0xfb   :  { %v321_v10 = vld [vmem:[%s9996_s1] sm:$0xff]  ;;  %v844_v11 = vld [vmem:[%s9995_s30 + $0x10] sm:$0xff]  ;;  %v322_v15 = vld [vmem:[%s9996_s1 + $0x8] sm:$0xff] }
  0xfc   :  { %5988 = vmatpush3.bf16.msra.mxu0 %v7046_v19  ;;  %v7105_v12 = vld [vmem:[%s9993_s6 + $0x10] ss:$8 sps:$4 sm:$0xff]   ;;  %331 = vperm.xlu0 %7026, %v321_v10   ;;  %v7106_v14 = vld [vmem:[%s9993_s6 + $0x24] ss:$8 sps:$4 sm:$0xff]  }
  0xfd   :  { %6028 = vmatpush3.bf16.msra.mxu1 %v7047_v20  ;;  %5989 = vmatprep.subr.bf16.mxu0 %v7048_v21  ;;  %v323_v13 = vld [vmem:[%s9996_s1 + $0x10] sm:$0xff]  ;;  %v324_v16 = vld [vmem:[%s9996_s1 + $0x18] sm:$0xff]  ;;  %v325_v18 = vld [vmem:[%s9996_s1 + $0x20] sm:$0xff] }
  0xfe   :  { %6029 = vmatprep.subr.bf16.mxu1 %v7049_v22  ;;  %341 = vperm.xlu1 %7027, %v323_v13   ;;  %v845_v17 = vld [vmem:[%s9995_s30 + $0x18] sm:$0xff]  ;;  %v326_v19 = vld [vmem:[%s9996_s1 + $0x28] sm:$0xff]  ;;  %v846_v20 = vld [vmem:[%s9995_s30 + $0x20] sm:$0xff] }
  0xff   :  { %v7108_v21 = vld [vmem:[%s9993_s6 + $0x20] ss:$8 sps:$4 sm:$0xff]   ;;  %v7109_v22 = vld [vmem:[%s9993_s6 + $0x34] ss:$8 sps:$4 sm:$0xff]   ;;  %v7117_v37 = vld [vmem:[%s9993_s6 + $0x50] ss:$8 sps:$4 sm:$0xff]  }
 0x100   :  { %5990 = vmatpush3.bf16.msra.mxu0 %v7050_v23  ;;  %336 = vperm.xlu0 %7026, %v322_v15   ;;  %v327_v23 = vld [vmem:[%s9996_s1 + $0x30] sm:$0xff]  ;;  %v809_v34 = vld [vmem:[%s9993_s6 + $0x60] sm:$0x33] }
 0x101   :  { %6030 = vmatpush3.bf16.msra.mxu1 %v7051_v24  ;;  %5991 = vmatprep.subr.bf16.mxu0 %v7052_v25  ;;  %v328_v24 = vld [vmem:[%s9996_s1 + $0x38] sm:$0xff]  ;;  %v847_v25 = vld [vmem:[%s9995_s30 + $0x28] sm:$0xff]  ;;  %s7561_s1 = smov 73  }
 0x102   :  { %6031 = vmatprep.subr.bf16.mxu1 %v7053_v26  ;;  %346 = vperm.xlu1 %7027, %v324_v16   ;;  %v848_v26 = vld [vmem:[%s9995_s30 + $0x30] sm:$0xff] }
 0x104   :  { %5992 = vmatpush3.bf16.msra.mxu0 %v7054_v27  ;;  %351 = vperm.xlu0 %7026, %v325_v18   ;;  %v7111_v27 = vld [vmem:[%s9993_s6 + $0x30] ss:$8 sps:$4 sm:$0xff]  }
 0x105   :  { %6032 = vmatpush3.bf16.msra.mxu1 %v7055_v28  ;;  %5993 = vmatprep.subr.bf16.mxu0 %v7056_v29  ;;  %v7112_v28 = vld [vmem:[%s9993_s6 + $0x44] ss:$8 sps:$4 sm:$0xff]   ;;  %v849_v29 = vld [vmem:[%s9995_s30 + $0x38] sm:$0xff] }
 0x106   :  { %6033 = vmatprep.subr.bf16.mxu1 %v7057_v30  ;;  %356 = vperm.xlu1 %7027, %v326_v19   ;;  %v850_v30 = vld [vmem:[%s9995_s30 + $0x40] sm:$0xff] }
 0x108   :  { %5994 = vmatpush3.bf16.msra.mxu0 %v7058_v31  ;;  %361 = vperm.xlu0 %7026, %v327_v23   ;;  %v7114_v31 = vld [vmem:[%s9993_s6 + $0x40] ss:$8 sps:$4 sm:$0xff]  }
 0x109   :  { %6034 = vmatpush3.bf16.msra.mxu1 %v7059_v32  ;;  %6224 = vmatprep.subr.mxu0 %v7543_v35  ;;  %v7115_v32 = vld [vmem:[%s9993_s6 + $0x54] ss:$8 sps:$4 sm:$0xff]   ;;  %s7570_s6 = smov 13  }
 0x10a   :  { %6073 = vmatprep.subr.bf16.mxu1 %v7066_v38  ;;  %366 = vperm.xlu1 %7027, %v328_v24   ;;  %v5928_v38 = vcombine.high %v809_v34, %v809_v34 }
 0x10b   :  { %674 = vmatmul.mubr.bf16.vlgmr.msra.gmra.mrb[0].mxu0 %v7060_v33  ;;  %v851_v33 = vld [vmem:[%s9995_s30 + $0x48] sm:$0xff] }
 0x10c   :  { %739 = vmatmul.mubr.bf16.vlgmr.msra.gmra.mrb[0].mxu1 %v7063_v36  ;;  %6225 = vmatpush3.msra.mxu0 %v855_v39  ;;  %v852_v36 = vld [vmem:[%s9995_s30 + $0x50] sm:$0xff]  ;;  %v853_v39 = vld [vmem:[%s9995_s30 + $0x58] sm:$0xff] }
 0x10d   :  { %6074 = vmatpush3.bf16.msra.mxu1 %v7067_v40  ;;  %681 = vmatprep.mubr.bf16.mxu0 %v7070_v43  ;;  %v854_v40 = vld [vmem:[%s9995_s30 + $0x60] sm:$0xf]  ;;  %v1311_v43 = vld [vmem:[%s9934_s11 + $0x8] sm:$0x3]  ;;  %s7548_s30 = smov 76  }
 0x10e   :  { %6075 = vmatprep.subr.bf16.mxu1 %v7068_v41  ;;  %746 = vmatprep.mubr.bf16.mxu1 %v7072_v44  ;;  %v5927_v41 = vcombine.low %v809_v34, %v809_v34  ;;  %v1556_v44 = vld [vmem:[#allocation15] sm:$0xff] }
 0x10f   :  { %6265 = vmatprep.subr.mxu0 %v1312_v4 }
 0x111   :  { %6076 = vmatpush3.bf16.msra.mxu1 %v7069_v42  ;;  %v1310_v42 = vld [vmem:[%s9934_s11] sm:$0xff]  ;;  %s7551_s11 = smov 98  }
 0x112   :  { %6077 = vmatprep.subr.bf16.mxu1 %v7076_v47 }
 0x113   :  { %682 = vmatmul.mubr.bf16.gmra.mrb[4].mxu0 %v7074_v45  ;;  %v1398_v45 = vld [vmem:[%s9938_s15] sm:$0xff] }
 0x114   :  { %747 = vmatmul.mubr.bf16.gmra.mrb[4].mxu1 %v7075_v46  ;;  %689 = vmatprep.mubr.bf16.mxu0 %v7080_v51 }
 0x115   :  { %6078 = vmatpush3.bf16.msra.mxu1 %v7077_v48  ;;  %754 = vmatprep.mubr.bf16.mxu1 %v7082_v52 }
 0x116   :  { %6079 = vmatprep.subr.bf16.mxu1 %v7078_v49 }
 0x119   :  { %6080 = vmatpush3.bf16.msra.mxu1 %v7079_v50 }
 0x11a   :  { %6081 = vmatprep.subr.bf16.mxu1 %v7086_v55 }
 0x11b   :  { %690 = vmatmul.mubr.bf16.gmra.mrb[8].mxu0 %v7084_v53 }
 0x11c   :  { %755 = vmatmul.mubr.bf16.gmra.mrb[8].mxu1 %v7085_v54  ;;  %697 = vmatprep.mubr.bf16.mxu0 %v7090_v58 }
 0x11d   :  { %6082 = vmatpush3.bf16.msra.mxu1 %v7087_v56  ;;  %762 = vmatprep.mubr.bf16.mxu1 %v7092_v60 }
 0x11e   :  { %6083 = vmatprep.subr.bf16.mxu1 %v7088_v57 }
 0x121   :  { %6084 = vmatpush3.bf16.msra.mxu1 %v7089_v59 }
 0x122   :  { %6085 = vmatprep.subr.bf16.mxu1 %v7096_v61 }
 0x123   :  { %698 = vmatmul.mubr.bf16.gmra.mrb[12].mxu0 %v7094_v62 }
 0x124   :  { %763 = vmatmul.mubr.bf16.gmra.mrb[12].mxu1 %v7095_v63  ;;  %6226 = vmatprep.mubr.msk.f32.mxu0 %vm9963_vm0, %v7543_v35 }
 0x125   :  { %6086 = vmatpush3.bf16.msra.mxu1 %v7097_v1  ;;  %1221 = vmatprep.mubr.bf16.mxu1 %v7102_v3 }
 0x126   :  { %6087 = vmatprep.subr.bf16.mxu1 %v7098_v2 }
 0x129   :  { %6088 = vmatpush3.bf16.msra.mxu1 %v7099_v5 }
 0x12b   :  { %6227 = vmatmul.mubr.msk.f32.vlgmr.msra.gmra.mrb[16].mxu0 %vm856_vm1, %v842_v7 }
 0x12c   :  { %1222 = vmatmul.mubr.bf16.vlgmr.msra.gmra.mrb[16].mxu1 %v7100_v6  ;;  %6266 = vmatpush3.msra.mxu0 %v1312_v4 }
 0x12d   :  { %6229 = vmatprep.mubr.msk.f32.mxu0 %vm9963_vm0, %v7543_v35  ;;  %1229 = vmatprep.mubr.bf16.mxu1 %v7103_v8 }
 0x12f   :  { %6230 = vmatmul.mubr.msk.f32.gmra.mrb[18].mxu0 %vm856_vm1, %v843_v9 }
 0x130   :  { %6232 = vmatprep.mubr.msk.f32.mxu0 %vm9963_vm0, %v7543_v35 }
 0x133   :  { %6233 = vmatmul.mubr.msk.f32.gmra.mrb[20].mxu0 %vm856_vm1, %v844_v11 }
 0x134   :  { %1230 = vmatmul.mubr.bf16.gmra.mrb[20].mxu1 %v7105_v12  ;;  %6235 = vmatprep.mubr.msk.f32.mxu0 %vm9963_vm0, %v7543_v35 }
 0x135   :  { %1237 = vmatprep.mubr.bf16.mxu1 %v7106_v14 }
 0x137   :  { %6236 = vmatmul.mubr.msk.f32.gmra.mrb[22].mxu0 %vm856_vm1, %v845_v17 }
 0x138   :  { %6238 = vmatprep.mubr.msk.f32.mxu0 %vm9963_vm0, %v7543_v35 }
 0x13b   :  { %6239 = vmatmul.mubr.msk.f32.gmra.mrb[24].mxu0 %vm856_vm1, %v846_v20 }
 0x13c   :  { %1238 = vmatmul.mubr.bf16.gmra.mrb[24].mxu1 %v7108_v21  ;;  %6241 = vmatprep.mubr.msk.f32.mxu0 %vm9963_vm0, %v7543_v35 }
 0x13d   :  { %1245 = vmatprep.mubr.bf16.mxu1 %v7109_v22 }
 0x13f   :  { %6242 = vmatmul.mubr.msk.f32.gmra.mrb[26].mxu0 %vm856_vm1, %v847_v25 }
 0x140   :  { %6244 = vmatprep.mubr.msk.f32.mxu0 %vm9963_vm0, %v7543_v35 }
 0x143   :  { %6245 = vmatmul.mubr.msk.f32.gmra.mrb[28].mxu0 %vm856_vm1, %v848_v26 }
 0x144   :  { %1246 = vmatmul.mubr.bf16.gmra.mrb[28].mxu1 %v7111_v27  ;;  %6247 = vmatprep.mubr.msk.f32.mxu0 %vm9963_vm0, %v7543_v35 }
 0x145   :  { %1253 = vmatprep.mubr.bf16.mxu1 %v7112_v28 }
 0x147   :  { %6248 = vmatmul.mubr.msk.f32.gmra.mrb[30].mxu0 %vm856_vm1, %v849_v29 }
 0x148   :  { %6250 = vmatprep.mubr.msk.f32.mxu0 %vm9963_vm0, %v7543_v35 }
 0x14b   :  { %6251 = vmatmul.mubr.msk.f32.gmra.mrb[32].mxu0 %vm856_vm1, %v850_v30 }
 0x14c   :  { %1254 = vmatmul.mubr.bf16.gmra.mrb[32].mxu1 %v7114_v31  ;;  %6253 = vmatprep.mubr.msk.f32.mxu0 %vm9963_vm0, %v7543_v35 }
 0x14d   :  { %1261 = vmatprep.mubr.bf16.mxu1 %v7115_v32 }
 0x14f   :  { %6254 = vmatmul.mubr.msk.f32.gmra.mrb[34].mxu0 %vm856_vm1, %v851_v33 }
 0x150   :  { %6256 = vmatprep.mubr.msk.f32.mxu0 %vm9963_vm0, %v7543_v35 }
 0x153   :  { %6257 = vmatmul.mubr.msk.f32.gmra.mrb[36].mxu0 %vm856_vm1, %v852_v36 }
 0x154   :  { %1262 = vmatmul.mubr.bf16.gmra.mrb[36].mxu1 %v7117_v37  ;;  %6259 = vmatprep.mubr.msk.f32.mxu0 %vm9963_vm0, %v7543_v35 }
 0x155   :  { %1269 = vmatprep.mubr.bf16.mxu1 %v5928_v38 }
 0x157   :  { %6260 = vmatmul.mubr.msk.f32.gmra.mrb[38].mxu0 %vm856_vm1, %v853_v39 }
 0x158   :  { %6262 = vmatprep.mubr.msk.f32.mxu0 %vm9963_vm0, %v7543_v35  ;;  %vm2038_vm0 = vcmask 867328  }
 0x15b   :  { %6263 = vmatmul.mubr.msk.f32.gmra.mrb[40].mxu0 %vm856_vm1, %v854_v40 }
 0x15c   :  { %1270 = vmatmul.mubr.bf16.gmra.mrb[40].mxu1 %v5927_v41  ;;  %6267 = vmatprep.mubr.msk.f32.mxu0 %vm856_vm1, %v1310_v42 }
 0x15d   :  { %6312 = vmatprep.mubr.msk.f32.mxu1 %vm9966_vm2, %v1556_v44 }
 0x15f   :  { %6268 = vmatmul.mubr.msk.f32.vlgmr.msra.gmra.mrb[42].mxu0 %vm856_vm1, %v1311_v43 }
 0x160   :  { %6274 = vmatprep.mubr.msk.f32.mxu0 %vm1414_vm3, %v1398_v45 }
 0x17b   :  { %v332_v46 = vpop.permute.xlu0 %331 }
 0x17d   :  { %v342_v47 = vpop.permute.xlu1 %341 }
 0x17f   :  { %v337_v49 = vpop.permute.xlu0 %336 }
 0x181   :  { %v347_v4 = vpop.permute.xlu1 %346 }
 0x183   :  { %v352_v21 = vpop.permute.xlu0 %351 }
 0x185   :  { %v357_v25 = vpop.permute.xlu1 %356 }
 0x187   :  { %v362_v43 = vpop.permute.xlu0 %361 }
 0x1de   :  { %v5995_v48 = vpop.f32.mrb[0].mxu0 }
 0x1df   :  { %v5996_v50 = vpop.f32.mrb[1].mxu0  ;;  %v6035_v51 = vpop.f32.mrb[0].mxu1 }
 0x1e0   :  { %v5997_v52 = vadd.f32 %v5996_v50, %v5995_v48  ;;  %v5998_v53 = vpop.f32.mrb[2].mxu0  ;;  %v6036_v54 = vpop.f32.mrb[1].mxu1 }
 0x1e1   :  { %v5999_v55 = vpop.f32.mrb[3].mxu0  ;;  %v6037_v56 = vadd.f32 %v6036_v54, %v6035_v51  ;;  %v6038_v57 = vpop.f32.mrb[2].mxu1 }
 0x1e2   :  { %v676_v58 = vadd.f32 %v5997_v52, %v332_v46  ;;  %v6000_v59 = vadd.f32 %v5999_v55, %v5998_v53  ;;  %v6039_v60 = vpop.f32.mrb[3].mxu1 }
 0x1e3   :  { %v6040_v61 = vadd.f32 %v6039_v60, %v6038_v57 }
 0x1e4   :  { %v741_v62 = vadd.f32 %v6037_v56, %v676_v58  ;;  %v679_v63 = vadd.f32 %v6000_v59, %v337_v49 }
 0x1e6   :  { %v771_v1 = vmax.f32 %v741_v62, 0.0  ;;  %v744_v2 = vadd.f32 %v6040_v61, %v679_v63  ;;  %v6001_v3 = vpop.f32.mrb[4].mxu0 }
 0x1e7   :  { %v6002_v5 = vpop.f32.mrb[5].mxu0  ;;  %v6041_v6 = vpop.f32.mrb[4].mxu1 }
 0x1e8   :  { %780 = vst.msk [vmem:[%s9947_s24] sm:$0xff] %vm779_vm4, %v771_v1  ;;  %v772_v7 = vmax.f32 %v744_v2, 0.0  ;;  %v6003_v8 = vadd.f32 %v6002_v5, %v6001_v3  ;;  %v6004_v9 = vpop.f32.mrb[6].mxu0  ;;  %v6042_v10 = vpop.f32.mrb[5].mxu1 }
 0x1e9   :  { %789 = vst.msk [vmem:[%s9947_s24] sm:$0xff] %vm788_vm5, %v7543_v35  ;;  %v6005_v11 = vpop.f32.mrb[7].mxu0  ;;  %v6043_v12 = vadd.f32 %v6042_v10, %v6041_v6  ;;  %v6044_v13 = vpop.f32.mrb[6].mxu1  ;;  %v8259_v10 = vld [vmem:[#allocation12] ss:$0 sm:$0xff] }
 0x1ea   :  { %781 = vst.msk [vmem:[%s9947_s24 + $0x8] sm:$0xff] %vm779_vm4, %v772_v7  ;;  %v684_v14 = vadd.f32 %v6003_v8, %v342_v47  ;;  %v6006_v15 = vadd.f32 %v6005_v11, %v6004_v9  ;;  %v6045_v16 = vpop.f32.mrb[7].mxu1  ;;  %v8199_v17 = vpack.c.bf16 %v772_v7, %v771_v1  ;;  %v367_v47 = vpop.permute.xlu1 %366 }
 0x1eb   :  { %790 = vst.msk [vmem:[%s9947_s24 + $0x8] sm:$0xff] %vm788_vm5, %v7543_v35  ;;  %v6046_v18 = vadd.f32 %v6045_v16, %v6044_v13 }
 0x1ec   :  { %v749_v19 = vadd.f32 %v6043_v12, %v684_v14  ;;  %v687_v20 = vadd.f32 %v6006_v15, %v347_v4 }
 0x1ee   :  { %v773_v22 = vmax.f32 %v749_v19, 0.0  ;;  %v752_v23 = vadd.f32 %v6046_v18, %v687_v20  ;;  %v6007_v24 = vpop.f32.mrb[8].mxu0 }
 0x1ef   :  { %v6008_v26 = vpop.f32.mrb[9].mxu0  ;;  %v6047_v27 = vpop.f32.mrb[8].mxu1 }
 0x1f0   :  { %782 = vst.msk [vmem:[%s9947_s24 + $0x10] sm:$0xff] %vm779_vm4, %v773_v22  ;;  %v774_v28 = vmax.f32 %v752_v23, 0.0  ;;  %v6009_v29 = vadd.f32 %v6008_v26, %v6007_v24  ;;  %v6010_v30 = vpop.f32.mrb[10].mxu0  ;;  %v6048_v31 = vpop.f32.mrb[9].mxu1 }
 0x1f1   :  { %791 = vst.msk [vmem:[%s9947_s24 + $0x10] sm:$0xff] %vm788_vm5, %v7543_v35  ;;  %v6011_v32 = vpop.f32.mrb[11].mxu0  ;;  %v6049_v33 = vadd.f32 %v6048_v31, %v6047_v27  ;;  %v6050_v34 = vpop.f32.mrb[10].mxu1 }
 0x1f2   :  { %783 = vst.msk [vmem:[%s9947_s24 + $0x18] sm:$0xff] %vm779_vm4, %v774_v28  ;;  %v692_v36 = vadd.f32 %v6009_v29, %v352_v21  ;;  %v6012_v37 = vadd.f32 %v6011_v32, %v6010_v30  ;;  %v6051_v38 = vpop.f32.mrb[11].mxu1  ;;  %v8219_v39 = vpack.c.bf16 %v774_v28, %v773_v22 }
 0x1f3   :  { %792 = vst.msk [vmem:[%s9947_s24 + $0x18] sm:$0xff] %vm788_vm5, %v7543_v35  ;;  %v6052_v40 = vadd.f32 %v6051_v38, %v6050_v34 }
 0x1f4   :  { %v757_v41 = vadd.f32 %v6049_v33, %v692_v36  ;;  %v695_v42 = vadd.f32 %v6012_v37, %v357_v25 }
 0x1f6   :  { %v775_v44 = vmax.f32 %v757_v41, 0.0  ;;  %v760_v45 = vadd.f32 %v6052_v40, %v695_v42  ;;  %v6013_v46 = vpop.f32.mrb[12].mxu0 }
 0x1f7   :  { %v6014_v48 = vpop.f32.mrb[13].mxu0  ;;  %v6053_v49 = vpop.f32.mrb[12].mxu1 }
 0x1f8   :  { %784 = vst.msk [vmem:[%s9947_s24 + $0x20] sm:$0xff] %vm779_vm4, %v775_v44  ;;  %v776_v50 = vmax.f32 %v760_v45, 0.0  ;;  %v6015_v51 = vadd.f32 %v6014_v48, %v6013_v46  ;;  %v6016_v52 = vpop.f32.mrb[14].mxu0  ;;  %v6054_v53 = vpop.f32.mrb[13].mxu1 }
 0x1f9   :  { %793 = vst.msk [vmem:[%s9947_s24 + $0x20] sm:$0xff] %vm788_vm5, %v7543_v35  ;;  %v6017_v54 = vpop.f32.mrb[15].mxu0  ;;  %v6055_v55 = vadd.f32 %v6054_v53, %v6053_v49  ;;  %v6056_v56 = vpop.f32.mrb[14].mxu1 }
 0x1fa   :  { %785 = vst.msk [vmem:[%s9947_s24 + $0x28] sm:$0xff] %vm779_vm4, %v776_v50  ;;  %v700_v57 = vadd.f32 %v6015_v51, %v362_v43  ;;  %v6018_v58 = vadd.f32 %v6017_v54, %v6016_v52  ;;  %v6057_v59 = vpop.f32.mrb[15].mxu1  ;;  %v8239_v60 = vpack.c.bf16 %v776_v50, %v775_v44 }
 0x1fb   :  { %794 = vst.msk [vmem:[%s9947_s24 + $0x28] sm:$0xff] %vm788_vm5, %v7543_v35  ;;  %v6058_v61 = vadd.f32 %v6057_v59, %v6056_v56 }
 0x1fc   :  { %v765_v62 = vadd.f32 %v6055_v55, %v700_v57  ;;  %v703_v63 = vadd.f32 %v6018_v58, %v367_v47 }
 0x1fe   :  { %v777_v1 = vmax.f32 %v765_v62, 0.0  ;;  %v768_v2 = vadd.f32 %v6058_v61, %v703_v63  ;;  %v962_v3 = vpop.f32.mrb[16].mxu0 }
 0x1ff   :  { %v6089_v4 = vpop.f32.mrb[16].mxu1  ;;  %v6228_v5 = vpop.f32.mrb[17].mxu0 }
 0x200   :  { %786 = vst.msk [vmem:[%s9947_s24 + $0x30] sm:$0xff] %vm779_vm4, %v777_v1  ;;  %v778_v6 = vmax.f32 %v768_v2, 0.0  ;;  %v6090_v7 = vpop.f32.mrb[17].mxu1 }
 0x201   :  { %795 = vst.msk [vmem:[%s9947_s24 + $0x30] sm:$0xff] %vm788_vm5, %v7543_v35  ;;  %v6091_v8 = vadd.f32 %v6090_v7, %v6089_v4  ;;  %v6092_v9 = vpop.f32.mrb[18].mxu1 }
 0x202   :  { %787 = vst.msk [vmem:[%s9947_s24 + $0x38] sm:$0xff] %vm779_vm4, %v778_v6  ;;  %v6093_v11 = vpop.f32.mrb[19].mxu1  ;;  %v967_v12 = vpop.f32.mrb[18].mxu0  ;;  %v8261_v13 = vpack.c.bf16 %v778_v6, %v777_v1 }
 0x203   :  { %796 = vst.msk [vmem:[%s9947_s24 + $0x38] sm:$0xff] %vm788_vm5, %v7543_v35  ;;  %v1224_v14 = vadd.f32 %v6091_v8, %v962_v3  ;;  %v6094_v15 = vadd.f32 %v6093_v11, %v6092_v9  ;;  %v6231_v16 = vpop.f32.mrb[19].mxu0  ;;  %s7563_s24 = smov 87  }
 0x205   :  { %v1284_v18 = vadd.f32 %v8259_v10, %v1224_v14  ;;  %v1227_v19 = vadd.f32 %v6094_v15, %v967_v12 }
 0x206   :  { %v972_v20 = vpop.f32.mrb[20].mxu0 }
 0x207   :  { %v1285_v21 = vadd.f32 %v8259_v10, %v1227_v19  ;;  %v6095_v22 = vpop.f32.mrb[20].mxu1  ;;  %v6234_v23 = vpop.f32.mrb[21].mxu0  ;;  %v1297_v25 = vmax.f32 %v1284_v18, 0.0 }
 0x208   :  { %v6096_v24 = vpop.f32.mrb[21].mxu1 }
 0x209   :  { %v1298_v26 = vmax.f32 %v1285_v21, 0.0  ;;  %v6097_v27 = vadd.f32 %v6096_v24, %v6095_v22  ;;  %v6098_v28 = vpop.f32.mrb[22].mxu1 }
 0x20a   :  { %v6099_v29 = vpop.f32.mrb[23].mxu1  ;;  %v977_v30 = vpop.f32.mrb[22].mxu0 }
 0x20b   :  { %v1232_v31 = vadd.f32 %v6097_v27, %v972_v20  ;;  %v6100_v32 = vadd.f32 %v6099_v29, %v6098_v28  ;;  %v6237_v33 = vpop.f32.mrb[23].mxu0  ;;  %v6447_v34 = vpack.c.bf16 %v1298_v26, %v1297_v25 }
 0x20d   :  { %v1286_v36 = vadd.f32 %v8259_v10, %v1232_v31  ;;  %v1235_v37 = vadd.f32 %v6100_v32, %v977_v30  ;;  %6448 = vmatprep.subr.bf16.mxu1 %v6447_v34 }
 0x20e   :  { %6450 = vmatpush3.bf16.msra.mxu1 %v6447_v34  ;;  %v982_v38 = vpop.f32.mrb[24].mxu0 }
 0x20f   :  { %v1287_v40 = vadd.f32 %v8259_v10, %v1235_v37  ;;  %v6101_v41 = vpop.f32.mrb[24].mxu1  ;;  %v6240_v42 = vpop.f32.mrb[25].mxu0  ;;  %v1299_v44 = vmax.f32 %v1286_v36, 0.0 }
 0x210   :  { %v6102_v43 = vpop.f32.mrb[25].mxu1 }
 0x211   :  { %v1300_v45 = vmax.f32 %v1287_v40, 0.0  ;;  %v6103_v46 = vadd.f32 %v6102_v43, %v6101_v41  ;;  %v6104_v47 = vpop.f32.mrb[26].mxu1 }
 0x212   :  { %v6105_v48 = vpop.f32.mrb[27].mxu1  ;;  %v987_v49 = vpop.f32.mrb[26].mxu0 }
 0x213   :  { %v1240_v50 = vadd.f32 %v6103_v46, %v982_v38  ;;  %v6106_v51 = vadd.f32 %v6105_v48, %v6104_v47  ;;  %v6243_v52 = vpop.f32.mrb[27].mxu0  ;;  %v6451_v53 = vpack.c.bf16 %v1300_v45, %v1299_v44 }
 0x215   :  { %v1288_v54 = vadd.f32 %v8259_v10, %v1240_v50  ;;  %v1243_v55 = vadd.f32 %v6106_v51, %v987_v49  ;;  %6452 = vmatprep.subr.bf16.mxu1 %v6451_v53 }
 0x216   :  { %6454 = vmatpush3.bf16.msra.mxu1 %v6451_v53  ;;  %v992_v56 = vpop.f32.mrb[28].mxu0 }
 0x217   :  { %v1289_v57 = vadd.f32 %v8259_v10, %v1243_v55  ;;  %v6107_v58 = vpop.f32.mrb[28].mxu1  ;;  %v6246_v59 = vpop.f32.mrb[29].mxu0  ;;  %v1301_v62 = vmax.f32 %v1288_v54, 0.0  ;;  %v1314_v55 = vld [vmem:[%s9935_s12 + $0x8] sm:$0x3] }
 0x218   :  { %v6108_v61 = vpop.f32.mrb[29].mxu1  ;;  %v1313_v59 = vld [vmem:[%s9935_s12] sm:$0xff]  ;;  %s7567_s12 = smov 84  }
 0x219   :  { %v1302_v63 = vmax.f32 %v1289_v57, 0.0  ;;  %v6109_v1 = vadd.f32 %v6108_v61, %v6107_v58  ;;  %v6110_v2 = vpop.f32.mrb[30].mxu1 }
 0x21a   :  { %v6111_v3 = vpop.f32.mrb[31].mxu1  ;;  %v997_v4 = vpop.f32.mrb[30].mxu0 }
 0x21b   :  { %v1248_v5 = vadd.f32 %v6109_v1, %v992_v56  ;;  %v6112_v6 = vadd.f32 %v6111_v3, %v6110_v2  ;;  %v6249_v7 = vpop.f32.mrb[31].mxu0  ;;  %v6455_v8 = vpack.c.bf16 %v1302_v63, %v1301_v62 }
 0x21d   :  { %v1290_v9 = vadd.f32 %v8259_v10, %v1248_v5  ;;  %v1251_v11 = vadd.f32 %v6112_v6, %v997_v4  ;;  %6456 = vmatprep.subr.bf16.mxu1 %v6455_v8 }
 0x21e   :  { %6458 = vmatpush3.bf16.msra.mxu1 %v6455_v8  ;;  %v1002_v12 = vpop.f32.mrb[32].mxu0 }
 0x21f   :  { %v1291_v14 = vadd.f32 %v8259_v10, %v1251_v11  ;;  %v6113_v15 = vpop.f32.mrb[32].mxu1  ;;  %v6252_v16 = vpop.f32.mrb[33].mxu0  ;;  %v1303_v19 = vmax.f32 %v1290_v9, 0.0 }
 0x220   :  { %v6114_v18 = vpop.f32.mrb[33].mxu1  ;;  %v1559_v16 = vld [vmem:[#allocation15 + $0x18] sm:$0xff] }
 0x221   :  { %v1304_v20 = vmax.f32 %v1291_v14, 0.0  ;;  %v6115_v21 = vadd.f32 %v6114_v18, %v6113_v15  ;;  %v6116_v22 = vpop.f32.mrb[34].mxu1  ;;  %v1558_v14 = vld [vmem:[#allocation15 + $0x10] sm:$0xff]  ;;  %v1560_v18 = vld [vmem:[#allocation15 + $0x20] sm:$0xff] }
 0x222   :  { %v6117_v23 = vpop.f32.mrb[35].mxu1  ;;  %v1007_v24 = vpop.f32.mrb[34].mxu0  ;;  %v1400_v15 = vld [vmem:[%s9938_s15 + $0x10] sm:$0xff] }
 0x223   :  { %v1256_v25 = vadd.f32 %v6115_v21, %v1002_v12  ;;  %v6118_v26 = vadd.f32 %v6117_v23, %v6116_v22  ;;  %v6255_v27 = vpop.f32.mrb[35].mxu0  ;;  %v6459_v28 = vpack.c.bf16 %v1304_v20, %v1303_v19  ;;  %v1557_v12 = vld [vmem:[#allocation15 + $0x8] sm:$0xff]  ;;  %v1401_v19 = vld [vmem:[%s9938_s15 + $0x18] sm:$0xff]  ;;  %v1402_v20 = vld [vmem:[%s9938_s15 + $0x20] sm:$0xff] }
 0x224   :  { %v1562_v21 = vld [vmem:[#allocation15 + $0x30] sm:$0xff]  ;;  %v1403_v22 = vld [vmem:[%s9938_s15 + $0x28] sm:$0xff]  ;;  %v1551_v27 = vld [vmem:[#allocation13 + $0x18] sm:$0xff] }
 0x225   :  { %v1292_v29 = vadd.f32 %v8259_v10, %v1256_v25  ;;  %v1259_v30 = vadd.f32 %v6118_v26, %v1007_v24  ;;  %6460 = vmatprep.subr.bf16.mxu1 %v6459_v28  ;;  %v1404_v23 = vld [vmem:[%s9938_s15 + $0x30] sm:$0xff]  ;;  %v1548_v24 = vld [vmem:[#allocation13] sm:$0xff]  ;;  %v1405_v25 = vld [vmem:[%s9938_s15 + $0x38] sm:$0xff] }
 0x226   :  { %6462 = vmatpush3.bf16.msra.mxu1 %v6459_v28  ;;  %v1012_v31 = vpop.f32.mrb[36].mxu0  ;;  %v1550_v26 = vld [vmem:[#allocation13 + $0x10] sm:$0xff]  ;;  %v1552_v28 = vld [vmem:[#allocation13 + $0x20] sm:$0xff] }
 0x227   :  { %v1293_v32 = vadd.f32 %v8259_v10, %v1259_v30  ;;  %v6119_v33 = vpop.f32.mrb[36].mxu1  ;;  %v6258_v34 = vpop.f32.mrb[37].mxu0  ;;  %v1305_v37 = vmax.f32 %v1292_v29, 0.0  ;;  %v1553_v29 = vld [vmem:[#allocation13 + $0x28] sm:$0xff]  ;;  %v1554_v30 = vld [vmem:[#allocation13 + $0x30] sm:$0xff] }
 0x228   :  { %v6120_v36 = vpop.f32.mrb[37].mxu1 }
 0x229   :  { %v1306_v38 = vmax.f32 %v1293_v32, 0.0  ;;  %v6121_v40 = vadd.f32 %v6120_v36, %v6119_v33  ;;  %v6122_v41 = vpop.f32.mrb[38].mxu1  ;;  %v1406_v32 = vld [vmem:[%s9939_s16] sm:$0xff] }
 0x22a   :  { %v6123_v42 = vpop.f32.mrb[39].mxu1  ;;  %v1017_v43 = vpop.f32.mrb[38].mxu0 }
 0x22b   :  { %v1264_v44 = vadd.f32 %v6121_v40, %v1012_v31  ;;  %v6124_v45 = vadd.f32 %v6123_v42, %v6122_v41  ;;  %v6261_v46 = vpop.f32.mrb[39].mxu0  ;;  %v6463_v47 = vpack.c.bf16 %v1306_v38, %v1305_v37  ;;  %v1407_v31 = vld [vmem:[%s9939_s16 + $0x8] sm:$0xff]  ;;  %v1409_v38 = vld [vmem:[%s9939_s16 + $0x18] sm:$0xff]  ;;  %v1408_v40 = vld [vmem:[%s9939_s16 + $0x10] sm:$0xff] }
 0x22c   :  { %v1410_v46 = vld [vmem:[%s9939_s16 + $0x20] sm:$0xff] }
 0x22d   :  { %v1294_v48 = vadd.f32 %v8259_v10, %v1264_v44  ;;  %v1267_v49 = vadd.f32 %v6124_v45, %v1017_v43  ;;  %6464 = vmatprep.subr.bf16.mxu1 %v6463_v47  ;;  %v1411_v45 = vld [vmem:[%s9939_s16 + $0x28] sm:$0xff] }
 0x22e   :  { %6466 = vmatpush3.bf16.msra.mxu1 %v6463_v47  ;;  %v1022_v50 = vpop.f32.mrb[40].mxu0 }
 0x22f   :  { %v1295_v51 = vadd.f32 %v8259_v10, %v1267_v49  ;;  %v6125_v52 = vpop.f32.mrb[40].mxu1  ;;  %v6264_v53 = vpop.f32.mrb[41].mxu0  ;;  %v1307_v56 = vmax.f32 %v1294_v48, 0.0 }
 0x230   :  { %v6126_v54 = vpop.f32.mrb[41].mxu1 }
 0x231   :  { %v1308_v57 = vmax.f32 %v1295_v51, 0.0  ;;  %v6127_v58 = vadd.f32 %v6126_v54, %v6125_v52  ;;  %v6128_v61 = vpop.f32.mrb[42].mxu1  ;;  %v1413_v51 = vld [vmem:[%s9939_s16 + $0x38] sm:$0xff]  ;;  %v1412_v52 = vld [vmem:[%s9939_s16 + $0x30] sm:$0xff]  ;;  %s7547_s16 = smov 106  }
 0x232   :  { %v6269_v62 = vpop.f32.mrb[42].mxu0  ;;  %v6129_v63 = vpop.f32.mrb[43].mxu1 }
 0x233   :  { %v1272_v1 = vadd.f32 %v6127_v58, %v1022_v50  ;;  %v1393_v2 = vadd.f32 %v6269_v62, %v1314_v55  ;;  %v1387_v3 = vpop.f32.mrb[43].mxu0  ;;  %v6467_v4 = vpack.c.bf16 %v1308_v57, %v1307_v56 }
 0x234   :  { %v1388_v5 = vadd.f32 %v1387_v3, %v1313_v59  ;;  %v1884_v3 = vlaneseq }
 0x235   :  { %v1296_v6 = vadd.f32 %v8259_v10, %v1272_v1  ;;  %v1397_v7 = vmax.f32 %v1393_v2, 0.0  ;;  %6468 = vmatprep.subr.bf16.mxu1 %v6467_v4  ;;  %v1399_v10 = vld [vmem:[%s9938_s15 + $0x8] sm:$0xff]  ;;  %s7557_s15 = smov 95  }
 0x236   :  { %v1396_v8 = vmax.f32 %v1388_v5, 0.0  ;;  %6470 = vmatpush3.bf16.msra.mxu1 %v6467_v4  ;;  %v7546_v4 = vmov 1966171168   ;;  %vm1886_vm11 = vcmp.lt.s32.totalorder %v1884_v3, 49  ;;  %vm8521_vm12 = vcmp.ge.s32.totalorder %v1884_v3, 49 }
 0x237   :  { %v1309_v9 = vmax.f32 %v1296_v6, 0.0  ;;  %v1891_v5 = vunpack.c.l.s4 %v7546_v4  ;;  %vm8526_vm13 = vcmp.lt.s32.totalorder %v1884_v3, 98  ;;  %vm1926_vm15 = vcmp.ge.s32.totalorder %v1884_v3, 98 }
 0x238   :  { %v6441_v11 = vpack.c.bf16 %v1397_v7, %v1396_v8  ;;  %v8365_v7 = vshrl.u32 %v1884_v3, 7  ;;  %vm1917_vm14 = vmand %vm8521_vm12, %vm8526_vm13  ;;  %vm1927_vm1 = vcmp.lt.s32.totalorder %v1884_v3, 147  ;;  %vm1934_vm5 = vcmp.ge.s32.totalorder %v1884_v3, 19 }
 0x239   :  { %6310 = vmatprep.subr.msk.mxu1 %vm1589_vm7, %v1309_v9  ;;  %v1892_v6 = vunpack.c.0.s8 %v1891_v5  ;;  %vm1928_vm4 = vmand %vm1926_vm15, %vm1927_vm1  ;;  %vm1935_vm6 = vcmp.lt.s32.totalorder %v1884_v3, 68  ;;  %vm1957_vm8 = vcmp.lt.s32.totalorder %v1884_v3, 117  ;;  %vm1974_vm12 = vcmp.ge.s32.totalorder %v1884_v3, 117 }
 0x23a   :  { %6311 = vmatpush3.msk.msra.mxu1 %vm1589_vm7, %v1309_v9  ;;  %6443 = vmatprep.subr.msk.bf16.mxu0 %vm6442_vm9, %v6441_v11  ;;  %vm1956_vm7 = vcmp.ge.s32.totalorder %v1884_v3, 68  ;;  %vm1975_vm13 = vcmp.lt.s32.totalorder %v1884_v3, 166  ;;  %vm1983_vm15 = vcmp.lt.s32.totalorder %v1884_v3, 87  ;;  %vm1971_vm1 = vcmask 957440  }
 0x23b   :  { %6472 = vmatprep.subr.bf16.mxu1 %v8199_v17  ;;  %6446 = vmatpush3.bf16.msk.msra.mxu0 %vm6442_vm9, %v6441_v11  ;;  %v8368_v9 = vsub.s32 %v1892_v6, %v8365_v7  ;;  %vm1936_vm9 = vmand %vm1934_vm5, %vm1935_vm6  ;;  %vm8568_vm5 = vcmp.ge.s32.totalorder %v1884_v3, 87  ;;  %vm8573_vm6 = vcmp.lt.s32.totalorder %v1884_v3, 136 }
 0x23c   :  { %6313 = vmatmul.mubr.msk.f32.vlgmr.msra.gmra.mrb[44].mxu1 %vm9966_vm2, %v1557_v12 }
 0x23d   :  { %6474 = vmatpush3.bf16.msra.mxu1 %v8199_v17  ;;  %6315 = vmatprep.mubr.msk.f32.mxu1 %vm9966_vm2, %v1558_v14  ;;  %v1561_v17 = vld [vmem:[#allocation15 + $0x28] sm:$0xff] }
 0x23e   :  { %6476 = vmatprep.subr.bf16.mxu1 %v8219_v39  ;;  %6275 = vmatmul.mubr.msk.f32.vlgmr.msra.gmra.mrb[44].mxu0 %vm1414_vm3, %v1399_v10 }
 0x23f   :  { %6277 = vmatprep.mubr.msk.f32.mxu0 %vm1414_vm3, %v1400_v15 }
 0x240   :  { %6316 = vmatmul.mubr.msk.f32.gmra.mrb[46].mxu1 %vm9966_vm2, %v1559_v16 }
 0x241   :  { %6478 = vmatpush3.bf16.msra.mxu1 %v8219_v39  ;;  %6318 = vmatprep.mubr.msk.f32.mxu1 %vm9966_vm2, %v1560_v18  ;;  %v1563_v39 = vld [vmem:[#allocation15 + $0x38] sm:$0xff] }
 0x242   :  { %6480 = vmatprep.subr.bf16.mxu1 %v8239_v60  ;;  %6278 = vmatmul.mubr.msk.f32.gmra.mrb[46].mxu0 %vm1414_vm3, %v1401_v19 }
 0x243   :  { %6280 = vmatprep.mubr.msk.f32.mxu0 %vm1414_vm3, %v1402_v20 }
 0x244   :  { %6319 = vmatmul.mubr.msk.f32.gmra.mrb[48].mxu1 %vm9966_vm2, %v1561_v17 }
 0x245   :  { %6482 = vmatpush3.bf16.msra.mxu1 %v8239_v60  ;;  %6321 = vmatprep.mubr.msk.f32.mxu1 %vm9966_vm2, %v1562_v21  ;;  %v1549_v60 = vld [vmem:[#allocation13 + $0x8] sm:$0xff] }
 0x246   :  { %6484 = vmatprep.subr.bf16.mxu1 %v8261_v13  ;;  %6281 = vmatmul.mubr.msk.f32.gmra.mrb[48].mxu0 %vm1414_vm3, %v1403_v22 }
 0x247   :  { %6283 = vmatprep.mubr.msk.f32.mxu0 %vm1414_vm3, %v1404_v23 }
 0x248   :  { %6322 = vmatmul.mubr.msk.f32.gmra.mrb[50].mxu1 %vm9966_vm2, %v1563_v39  ;;  %vm8632_vm2 = vcmp.ge.s32.totalorder %v1884_v3, 76 }
 0x249   :  { %6486 = vmatpush3.bf16.msra.mxu1 %v8261_v13  ;;  %6340 = vmatprep.mubr.msk.f32.mxu1 %vm9965_vm10, %v1548_v24  ;;  %v1555_v13 = vld [vmem:[#allocation13 + $0x38] sm:$0xff] }
 0x24a   :  { %6284 = vmatmul.mubr.msk.f32.gmra.mrb[50].mxu0 %vm1414_vm3, %v1405_v25  ;;  %vm1923_vm3 = vcmask 801792  }
 0x24c   :  { %6341 = vmatmul.mubr.msk.f32.vlgmr.msra.gmra.mrb[44].mxu1 %vm9965_vm10, %v1549_v60 }
 0x24d   :  { %6343 = vmatprep.mubr.msk.f32.mxu1 %vm9965_vm10, %v1550_v26 }
 0x250   :  { %6344 = vmatmul.mubr.msk.f32.gmra.mrb[46].mxu1 %vm9965_vm10, %v1551_v27 }
 0x251   :  { %6346 = vmatprep.mubr.msk.f32.mxu1 %vm9965_vm10, %v1552_v28 }
 0x254   :  { %6347 = vmatmul.mubr.msk.f32.gmra.mrb[48].mxu1 %vm9965_vm10, %v1553_v29 }
 0x255   :  { %6349 = vmatprep.mubr.msk.f32.mxu1 %vm9965_vm10, %v1554_v30 }
 0x258   :  { %6350 = vmatmul.mubr.msk.f32.gmra.mrb[50].mxu1 %vm9965_vm10, %v1555_v13  ;;  %vm8651_vm10 = vcmp.ge.s32.totalorder %v1884_v3, 125 }
 0x311   :  { %v6276_v33 = vpop.f32.mrb[44].mxu0 }
 0x312   :  { %v1515_v34 = vadd.f32 %v6276_v33, %v1407_v31  ;;  %v1509_v36 = vpop.f32.mrb[45].mxu0 }
 0x313   :  { %v1510_v37 = vadd.f32 %v1509_v36, %v1406_v32 }
 0x314   :  { %1835 = vperm.xlu1 %7027, %v1515_v34  }
 0x315   :  { %v6279_v41 = vpop.f32.mrb[46].mxu0  ;;  %1830 = vperm.xlu0 %7026, %v1510_v37  }
 0x316   :  { %v1525_v42 = vadd.f32 %v6279_v41, %v1409_v38  ;;  %v1519_v43 = vpop.f32.mrb[47].mxu0 }
 0x317   :  { %v1520_v44 = vadd.f32 %v1519_v43, %v1408_v40 }
 0x318   :  { %1845 = vperm.xlu1 %7027, %v1525_v42  }
 0x319   :  { %v6282_v47 = vpop.f32.mrb[48].mxu0  ;;  %1840 = vperm.xlu0 %7026, %v1520_v44  }
 0x31a   :  { %v1535_v48 = vadd.f32 %v6282_v47, %v1411_v45  ;;  %v1529_v49 = vpop.f32.mrb[49].mxu0 }
 0x31b   :  { %v1530_v50 = vadd.f32 %v1529_v49, %v1410_v46 }
 0x31c   :  { %1855 = vperm.xlu1 %7027, %v1535_v48  }
 0x31d   :  { %v6285_v53 = vpop.f32.mrb[50].mxu0  ;;  %1850 = vperm.xlu0 %7026, %v1530_v50  }
 0x31e   :  { %v1545_v54 = vadd.f32 %v6285_v53, %v1413_v51  ;;  %v1539_v55 = vpop.f32.mrb[51].mxu0 }
 0x31f   :  { %v1540_v56 = vadd.f32 %v1539_v55, %v1412_v52  ;;  %v6342_v57 = vpop.f32.mrb[44].mxu1 }
 0x320   :  { %1865 = vperm.xlu1 %7027, %v1545_v54   ;;  %v1789_v58 = vpop.f32.mrb[45].mxu1 }
 0x321   :  { %1860 = vperm.xlu0 %7026, %v1540_v56  }
 0x323   :  { %v6345_v59 = vpop.f32.mrb[46].mxu1 }
 0x324   :  { %v8362_v61 = vpop.f32.mrb[47].mxu1 }
 0x327   :  { %v6348_v62 = vpop.f32.mrb[48].mxu1 }
 0x328   :  { %v1809_v63 = vpop.f32.mrb[49].mxu1 }
 0x32b   :  { %v6351_v1 = vpop.f32.mrb[50].mxu1 }
 0x32c   :  { %v1819_v2 = vpop.f32.mrb[51].mxu1 }
 0x393   :  { %v1836_v8 = vpop.permute.xlu1 %1835 }
 0x394   :  { %v1869_v11 = vadd.f32 %v6342_v57, %v1836_v8  ;;  %v1831_v12 = vpop.permute.xlu0 %1830 }
 0x395   :  { %v1868_v14 = vadd.f32 %v1831_v12, %v1789_v58 }
 0x396   :  { %v1877_v10 = vmax.f32 %v1869_v11, 0.0 }
 0x397   :  { %v1876_v15 = vmax.f32 %v1868_v14, 0.0  ;;  %v1846_v16 = vpop.permute.xlu1 %1845 }
 0x398   :  { %v2004_v18 = vrot.slane %v1877_v10, %v8368_v9  ;;  %v2053_v19 = vcombine.high %v1877_v10, %v1877_v10  ;;  %v8372_v20 = vpop.permute.xlu0 %1840  ;;  %v1871_v38 = vadd.f32 %v6345_v59, %v1846_v16 }
 0x399   :  { %1888 = vst.msk [vmem:[#allocation3] sm:$0x1] %vm1886_vm11, %v1876_v15  ;;  %v1896_v21 = vrot.slane %v1876_v15, %v8368_v9  ;;  %v1938_v30 = vcombine.high %v1876_v15, %v1876_v15  ;;  %vm1958_vm11 = vmand %vm1956_vm7, %vm1957_vm8  ;;  %vm8578_vm7 = vcmp.ge.s32.totalorder %v1884_v3, 8  ;;  %vm8583_vm8 = vcmp.lt.s32.totalorder %v1884_v3, 57 }
 0x39a   :  { %v2060_v17 = vrot.slane %v2053_v19, %v8368_v9  ;;  %v2011_v22 = vrot.slane %v2004_v18, %v8368_v9  ;;  %v2019_v39 = vcombine.high %v2004_v18, %v2004_v18  ;;  %v8398_v56 = vmax.f32 %v1871_v38, 0.0 }
 0x39b   :  { %v1856_v23 = vpop.permute.xlu1 %1855  ;;  %v1897_v29 = vcombine.high %v1896_v21, %v1896_v21  ;;  %v1904_v37 = vrot.slane %v1896_v21, %v8368_v9  ;;  %v8387_v48 = vrot.slane %v1938_v30, %v8368_v9  ;;  %v1870_v18 = vadd.f32 %v8372_v20, %v8362_v61 }
 0x39c   :  { %v1873_v24 = vadd.f32 %v6348_v62, %v1856_v23  ;;  %v1851_v25 = vpop.permute.xlu0 %1850  ;;  %2012 = vrot.lane.b32.xlu0 %v2011_v22, %s9989_s0  ;;  %v2034_v60 = vcombine.high %v2011_v22, %v2011_v22  ;;  %v2067_v28 = vrot.slane %v2060_v17, %v8368_v9  ;;  %v2026_v36 = vrot.slane %v2019_v39, %v8368_v9  ;;  %s7549_s0 = smov 57  }
 0x39d   :  { %v1872_v26 = vadd.f32 %v1851_v25, %v1809_v63  ;;  %v8383_v44 = vrot.slane %v1897_v29, %v8368_v9  ;;  %v2075_v45 = vcombine.high %v2060_v17, %v2060_v17  ;;  %v1919_v52 = vcombine.high %v1904_v37, %v1904_v37 }
 0x39e   :  { %v1881_v27 = vmax.f32 %v1873_v24, 0.0  ;;  %2035 = vrot.lane.b32.xlu1 %v2034_v60, %s7547_s16  ;;  %v1952_v63 = vrot.slane %v8387_v48, %v8368_v9  ;;  %v2093_v4 = vcombine.high %v2067_v28, %v2067_v28  ;;  %v2045_v6 = vcombine.high %v2026_v36, %v2026_v36  ;;  %s7574_s16 = smov 5  }
 0x39f   :  { %v1880_v13 = vmax.f32 %v1872_v26, 0.0  ;;  %v1866_v31 = vpop.permute.xlu1 %1865  ;;  %v2082_v58 = vrot.slane %v2075_v45, %v8368_v9  ;;  %v1930_v25 = vcombine.high %v8383_v44, %v8383_v44  ;;  %v1960_v60 = vcombine.high %v8387_v48, %v8387_v48 }
 0x3a0   :  { %v2512_v32 = vcombine.high %v1881_v27, %v1881_v27  ;;  %v1875_v33 = vadd.f32 %v6351_v1, %v1866_v31  ;;  %v1861_v34 = vpop.permute.xlu0 %1860  ;;  %2068 = vrot.lane.b32.xlu0 %v2067_v28, %s7548_s30  ;;  %v8390_v49 = vrot.slane %v1881_v27, %v8368_v9  ;;  %v1878_v28 = vmax.f32 %v1870_v18, 0.0  ;;  %s7575_s30 = smov 32  }
 0x3a1   :  { %v2398_v40 = vcombine.high %v1880_v13, %v1880_v13  ;;  %v1874_v41 = vadd.f32 %v1861_v34, %v1819_v2  ;;  %v8395_v53 = vrot.slane %v1880_v13, %v8368_v9  ;;  %v2234_v2 = vrot.slane %v8398_v56, %v8368_v9 }
 0x3a2   :  { %v2519_v42 = vrot.slane %v2512_v32, %v8368_v9  ;;  %v1883_v43 = vmax.f32 %v1875_v33, 0.0  ;;  %2027 = vrot.lane.b32.xlu1 %v2026_v36, %s7549_s0  ;;  %v2478_v62 = vcombine.high %v8390_v49, %v8390_v49  ;;  %v2101_v19 = vcombine.high %v2082_v58, %v2082_v58  ;;  %s7576_s0 = smov 89  }
 0x3a3   :  { %v2405_v46 = vrot.slane %v2398_v40, %v8368_v9  ;;  %v1882_v47 = vmax.f32 %v1874_v41, 0.0  ;;  %v2364_v1 = vcombine.high %v8395_v53, %v8395_v53  ;;  %v2241_v15 = vrot.slane %v2234_v2, %v8368_v9 }
 0x3a4   :  { %v2693_v50 = vrot.slane %v1883_v43, %v8368_v9  ;;  %v2742_v51 = vcombine.high %v1883_v43, %v1883_v43  ;;  %1912 = vrot.lane.b32.xlu0 %v8383_v44, %s7550_s9  ;;  %v8412_v8 = vrot.slane %v2478_v62, %v8368_v9  ;;  %v8415_v11 = vrot.slane %v2519_v42, %v8368_v9  ;;  %s7577_s9 = smov 111  }
 0x3a5   :  { %v2578_v54 = vrot.slane %v1882_v47, %v8368_v9  ;;  %v2627_v55 = vcombine.high %v1882_v47, %v1882_v47  ;;  %v8418_v14 = vrot.slane %v2364_v1, %v8368_v9  ;;  %v8421_v10 = vrot.slane %v2405_v46, %v8368_v9 }
 0x3a6   :  { %v2749_v57 = vrot.slane %v2742_v51, %v8368_v9  ;;  %1920 = vrot.lane.b32.xlu1 %v1919_v52, %s7551_s11  ;;  %v2708_v12 = vcombine.high %v2693_v50, %v2693_v50  ;;  %v2537_v16 = vcombine.high %v2519_v42, %v2519_v42  ;;  %v2422_v22 = vcombine.high %v2405_v46, %v2405_v46  ;;  %s7578_s11 = smov 108  }
 0x3a7   :  { %v2634_v59 = vrot.slane %v2627_v55, %v8368_v9  ;;  %v2593_v5 = vcombine.high %v2578_v54, %v2578_v54  ;;  %v8427_v17 = vrot.slane %v2578_v54, %v8368_v9  ;;  %v8445_v20 = vrot.slane %v2693_v50, %v8368_v9 }
 0x3a8   :  { %2083 = vrot.lane.b32.xlu0 %v2082_v58, %s7552_s2  ;;  %v8430_v21 = vrot.slane %v2537_v16, %v8368_v9  ;;  %v8433_v23 = vrot.slane %v2749_v57, %v8368_v9  ;;  %v8439_v24 = vrot.slane %v2708_v12, %v8368_v9  ;;  %v8452_v26 = vrot.slane %v2422_v22, %v8368_v9  ;;  %s7579_s2 = smov 10  }
 0x3a9   :  { %v8436_v39 = vrot.slane %v2593_v5, %v8368_v9  ;;  %v8442_v61 = vrot.slane %v2634_v59, %v8368_v9  ;;  %v2652_v27 = vcombine.high %v2634_v59, %v2634_v59  ;;  %v2249_v29 = vcombine.high %v2234_v2, %v2234_v2 }
 0x3aa   :  { %1953 = vrot.lane.b32.xlu1 %v1952_v63, %s7553_s17  ;;  %v2264_v30 = vcombine.high %v2241_v15, %v2241_v15  ;;  %v2767_v31 = vcombine.high %v2749_v57, %v2749_v57  ;;  %v1967_v32 = vrot.slane %v1960_v60, %v8368_v9  ;;  %v2119_v34 = vrot.slane %v1878_v28, %v8368_v9  ;;  %s7580_s17 = smov 81  }
 0x3ab   :  { %v8455_v13 = vrot.slane %v2652_v27, %v8368_v9  ;;  %v2256_v36 = vrot.slane %v2249_v29, %v8368_v9  ;;  %v2283_v37 = vcombine.high %v8398_v56, %v8398_v56  ;;  %v1978_v38 = vcombine.high %v1952_v63, %v1952_v63 }
 0x3ac   :  { %2094 = vrot.lane.b32.xlu0 %v2093_v4, %s7554_s14  ;;  %v8459_v33 = vrot.slane %v2767_v31, %v8368_v9  ;;  %v1986_v40 = vcombine.high %v1967_v32, %v1967_v32  ;;  %v2126_v41 = vrot.slane %v2119_v34, %v8368_v9  ;;  %v2168_v43 = vcombine.high %v1878_v28, %v1878_v28  ;;  %s7581_s14 = smov 103  }
 0x3ad   :  { %v2290_v42 = vrot.slane %v2283_v37, %v8368_v9  ;;  %v2134_v44 = vcombine.high %v2119_v34, %v2119_v34  ;;  %v2275_v51 = vcombine.high %v2256_v36, %v2256_v36  ;;  %v2470_v56 = vrot.slane %v8390_v49, %v8368_v9 }
 0x3ae   :  { %2046 = vrot.lane.b32.xlu1 %v2045_v6, %s7555_s20  ;;  %v2149_v45 = vcombine.high %v2126_v41, %v2126_v41  ;;  %v2175_v46 = vrot.slane %v2168_v43, %v8368_v9  ;;  %v2356_v63 = vrot.slane %v8395_v53, %v8368_v9  ;;  %s7582_s20 = smov 100   ;;  %v2504_v53 = vcombine.high %v8412_v8, %v8412_v8 }
 0x3af   :  { %v2297_v47 = vrot.slane %v2290_v42, %v8368_v9  ;;  %v2141_v48 = vrot.slane %v2134_v44, %v8368_v9  ;;  %v2308_v52 = vcombine.high %v2290_v42, %v2290_v42  ;;  %v2496_v1 = vcombine.high %v2470_v56, %v2470_v56 }
 0x3b0   :  { %2242 = vrot.lane.b32.xlu0 %v2241_v15, %s7556_s29  ;;  %v2182_v50 = vrot.slane %v2175_v46, %v8368_v9  ;;  %v2193_v58 = vcombine.high %v2175_v46, %v2175_v46  ;;  %s7583_s29 = smov 59   ;;  %v2552_v4 = vcombine.high %v8415_v11, %v8415_v11  ;;  %v2437_v5 = vcombine.high %v8421_v10, %v8421_v10 }
 0x3b1   :  { %v2323_v54 = vcombine.high %v2297_v47, %v2297_v47  ;;  %v2315_v55 = vrot.slane %v2308_v52, %v8368_v9  ;;  %v2160_v57 = vcombine.high %v2141_v48, %v2141_v48  ;;  %v2390_v6 = vcombine.high %v8418_v14, %v8418_v14 }
 0x3b2   :  { %2102 = vrot.lane.b32.xlu1 %v2101_v19, %s7557_s15  ;;  %v2208_v59 = vcombine.high %v2182_v50, %v2182_v50  ;;  %v2200_v62 = vrot.slane %v2193_v58, %v8368_v9  ;;  %v2382_v9 = vcombine.high %v2356_v63, %v2356_v63  ;;  %s7584_s15 = smov 78   ;;  %v2619_v12 = vcombine.high %v8436_v39, %v8436_v39 }
 0x3b3   :  { %v2331_v49 = vcombine.high %v2315_v55, %v2315_v55  ;;  %v2678_v15 = vcombine.high %v8455_v13, %v8455_v13  ;;  %v2726_v18 = vcombine.high %v8445_v20, %v8445_v20  ;;  %v10021_v58 = vmov 0 }
 0x3b4   :  { %1931 = vrot.lane.b32.xlu0 %v1930_v25, %s7558_s3  ;;  %v2216_v2 = vcombine.high %v2200_v62, %v2200_v62  ;;  %s7585_s3 = smov 29   ;;  %v10022_v58 = vsel %vm8632_vm2, 4294967295, %v10021_v58  ;;  %vm8656_vm2 = vcmp.lt.s32.totalorder %v1884_v3, 174 }
 0x3b6   :  { %2265 = vrot.lane.b32.xlu1 %v2264_v30, %s7559_s23  ;;  %s7586_s23 = smov 70  }
 0x3b8   :  { %1968 = vrot.lane.b32.xlu0 %v1967_v32, %s7560_s10  ;;  %s7588_s10 = smov 48  }
 0x3ba   :  { %2257 = vrot.lane.b32.xlu1 %v2256_v36, %s7561_s1  ;;  %s7589_s1 = smov 21  }
 0x3bc   :  { %1979 = vrot.lane.b32.xlu0 %v1978_v38, %s7562_s4  ;;  %s7590_s4 = smov 127  }
 0x3be   :  { %1987 = vrot.lane.b32.xlu1 %v1986_v40, %s7563_s24  ;;  %s7591_s24 = smov 124  }
 0x3c0   :  { %2127 = vrot.lane.b32.xlu0 %v2126_v41, %s7529_s28  ;;  %s7568_s28 = smov 43  }
 0x3c2   :  { %2150 = vrot.lane.b32.xlu1 %v2149_v45, %s7564_s26  ;;  %s7592_s26 = smov 119  }
 0x3c4   :  { %2298 = vrot.lane.b32.xlu0 %v2297_v47, %s7565_s27  ;;  %s7593_s27 = smov 97  }
 0x3c6   :  { %2142 = vrot.lane.b32.xlu1 %v2141_v48, %s7566_s13  ;;  %s7594_s13 = smov 105  }
 0x3c8   :  { %2183 = vrot.lane.b32.xlu0 %v2182_v50, %s7567_s12  ;;  %s7595_s12 = smov 116  }
 0x3ca   :  { %2276 = vrot.lane.b32.xlu1 %v2275_v51, %s7568_s28  ;;  %s7596_s28 = smov 56  }
 0x3cc   :  { %2324 = vrot.lane.b32.xlu0 %v2323_v54, %s7569_s7  ;;  %s7597_s7 = smov 67  }
 0x3ce   :  { %2316 = vrot.lane.b32.xlu1 %v2315_v55, %s7570_s6  ;;  %s7598_s6 = smov 18  }
 0x3d0   :  { %2471 = vrot.lane.b32.xlu0 %v2470_v56, %s7571_s5  ;;  %s7599_s5 = smov 37  }
 0x3d2   :  { %2161 = vrot.lane.b32.xlu1 %v2160_v57, %s7572_s19  ;;  %s7600_s19 = smov 86  }
 0x3d4   :  { %2209 = vrot.lane.b32.xlu0 %v2208_v59, %s7573_s18  ;;  %s7601_s18 = smov 7  }
 0x3d6   :  { %2201 = vrot.lane.b32.xlu1 %v2200_v62, %s7574_s16  ;;  %s7602_s16 = smov 26  }
 0x3d8   :  { %2357 = vrot.lane.b32.xlu0 %v2356_v63, %s7575_s30  ;;  %s7603_s30 = smov 75  }
 0x3da   :  { %2486 = vrot.lane.b32.xlu1 %v8412_v8, %s7576_s0  ;;  %v2560_v8 = vcombine.high %v8430_v21, %v8430_v21  ;;  %s7604_s0 = smov 94  }
 0x3dc   :  { %2332 = vrot.lane.b32.xlu0 %v2331_v49, %s7577_s9  ;;  %s7605_s9 = smov 45  }
 0x3de   :  { %2527 = vrot.lane.b32.xlu1 %v8415_v11, %s7578_s11  ;;  %v2445_v11 = vcombine.high %v8452_v26, %v8452_v26  ;;  %s7606_s11 = smov 15  }
 0x3e0   :  { %2497 = vrot.lane.b32.xlu0 %v2496_v1, %s7579_s2 }
 0x3e2   :  { %2372 = vrot.lane.b32.xlu1 %v8418_v14, %s7580_s17  ;;  %v2611_v14 = vcombine.high %v8427_v17, %v8427_v17 }
 0x3e4   :  { %2217 = vrot.lane.b32.xlu0 %v2216_v2, %s7581_s14  ;;  %v10031_v2 = vmov 0 }
 0x3e6   :  { %2413 = vrot.lane.b32.xlu1 %v8421_v10, %s7582_s20  ;;  %v2667_v10 = vcombine.high %v8442_v61, %v8442_v61 }
 0x3e8   :  { %2383 = vrot.lane.b32.xlu0 %v2382_v9, %s7539_s8  ;;  %s7587_s8 = smov 51   ;;  %v10094_v9 = vmov 0 }
 0x3ea   :  { %2505 = vrot.lane.b32.xlu1 %v2504_v53, %s7583_s29 }
 0x3ec   :  { %2553 = vrot.lane.b32.xlu0 %v2552_v4, %s7584_s15 }
 0x3ee   :  { %2545 = vrot.lane.b32.xlu1 %v8430_v21, %s7585_s3 }
 0x3f0   :  { %2438 = vrot.lane.b32.xlu0 %v2437_v5, %s7586_s23 }
 0x3f2   :  { %2391 = vrot.lane.b32.xlu1 %v2390_v6, %s7587_s8 }
 0x3f4   :  { %2586 = vrot.lane.b32.xlu0 %v8427_v17, %s7588_s10  ;;  %v2734_v17 = vcombine.high %v8439_v24, %v8439_v24 }
 0x3f6   :  { %2430 = vrot.lane.b32.xlu1 %v8452_v26, %s7589_s1 }
 0x3f8   :  { %2561 = vrot.lane.b32.xlu0 %v2560_v8, %s7590_s4 }
 0x3fa   :  { %2757 = vrot.lane.b32.xlu1 %v8433_v23, %s7591_s24 }
 0x3fc   :  { %2446 = vrot.lane.b32.xlu0 %v2445_v11, %s7592_s26  ;;  %v10042_v11 = vmov 0 }
 0x3fe   :  { %2601 = vrot.lane.b32.xlu1 %v8436_v39, %s7593_s27 }
 0x400   :  { %2716 = vrot.lane.b32.xlu0 %v8439_v24, %s7594_s13 }
 0x402   :  { %2642 = vrot.lane.b32.xlu1 %v8442_v61, %s7595_s12  ;;  %v2782_v61 = vcombine.high %v8433_v23, %v8433_v23  ;;  %v2793_v23 = vcombine.high %v8459_v33, %v8459_v33 }
 0x404   :  { %2701 = vrot.lane.b32.xlu0 %v8445_v20, %s7596_s28 }
 0x406   :  { %2620 = vrot.lane.b32.xlu1 %v2619_v12, %s7597_s7 }
 0x408   :  { %2612 = vrot.lane.b32.xlu0 %v2611_v14, %s7598_s6 }
 0x40a   :  { %2660 = vrot.lane.b32.xlu1 %v8455_v13, %s7599_s5 }
 0x40c   :  { %2668 = vrot.lane.b32.xlu0 %v2667_v10, %s7600_s19 }
 0x40e   :  { %v8512_v16 = vpop.permute.xlu0 %2012  ;;  %2679 = vrot.lane.b32.xlu1 %v2678_v15, %s7601_s18 }
 0x410   :  { %v8516_v19 = vpop.permute.xlu1 %2035  ;;  %2727 = vrot.lane.b32.xlu0 %v2726_v18, %s7602_s16 }
 0x411   :  { %v2037_v52 = vrot.slane %v8516_v19, 7 }
 0x412   :  { %v8530_v39 = vpop.permute.xlu0 %2068  ;;  %2735 = vrot.lane.b32.xlu1 %v2734_v17, %s7603_s30 }
 0x413   :  { %v2039_v53 = vsel %vm2038_vm0, %v2037_v52, %v8516_v19  ;;  %vm8698_vm0 = vcmp.lt.s32.totalorder %v1884_v3, 144 }
 0x414   :  { %v8534_v20 = vpop.permute.xlu1 %2027  ;;  %2783 = vrot.lane.b32.xlu0 %v2782_v61, %s7604_s0 }
 0x416   :  { %v1913_v24 = vpop.permute.xlu0 %1912  ;;  %2775 = vrot.lane.b32.xlu1 %v8459_v33, %s7605_s9 }
 0x417   :  { %1918 = vst.msk [vmem:[#allocation3] sm:$0x1] %vm1917_vm14, %v1913_v24  ;;  %vm1982_vm14 = vcmp.ge.s32.totalorder %v1884_v3, 38 }
 0x418   :  { %v1921_v25 = vpop.permute.xlu1 %1920  ;;  %2794 = vrot.lane.b32.xlu0 %v2793_v23, %s7606_s11 }
 0x419   :  { %v1922_v60 = vrot.slane %v1921_v25, 7 }
 0x41a   :  { %v8545_v26 = vpop.permute.xlu0 %2083 }
 0x41b   :  { %v1924_v27 = vsel %vm1923_vm3, %v1922_v60, %v1921_v25  ;;  %vm1976_vm3 = vmand %vm1974_vm12, %vm1975_vm13  ;;  %vm8593_vm12 = vcmp.lt.s32.totalorder %v1884_v3, 106  ;;  %v2085_v1 = vrot.slane %v8545_v26, 7  ;;  %vm2105_vm13 = vcmask 777216  }
 0x41c   :  { %1929 = vst.msk [vmem:[#allocation3] sm:$0x3] %vm1928_vm4, %v1924_v27  ;;  %v1954_v28 = vpop.permute.xlu1 %1953  ;;  %vm1984_vm4 = vmand %vm1982_vm14, %vm1983_vm15  ;;  %vm8602_vm14 = vcmp.ge.s32.totalorder %v1884_v3, 106  ;;  %vm8607_vm15 = vcmp.lt.s32.totalorder %v1884_v3, 155 }
 0x41e   :  { %v8547_v29 = vpop.permute.xlu0 %2094 }
 0x420   :  { %v8549_v30 = vpop.permute.xlu1 %2046 }
 0x422   :  { %v8553_v13 = vpop.permute.xlu0 %2242 }
 0x424   :  { %v8557_v31 = vpop.permute.xlu1 %2102 }
 0x425   :  { %v2104_v8 = vrot.slane %v8557_v31, 7 }
 0x426   :  { %v1932_v32 = vpop.permute.xlu0 %1931 }
 0x427   :  { %1937 = vst.msk [vmem:[#allocation3 + $0x1] sm:$0x1] %vm1936_vm9, %v1932_v32  ;;  %vm1990_vm9 = vcmask 711680   ;;  %v2106_v22 = vsel %vm2105_vm13, %v2104_v8, %v8557_v31  ;;  %vm8785_vm13 = vcmp.ge.s32.totalorder %v1884_v3, 35 }
 0x428   :  { %1959 = vst.msk [vmem:[#allocation3 + $0x1] sm:$0x1] %vm1958_vm11, %v1954_v28  ;;  %v8559_v33 = vpop.permute.xlu1 %2265  ;;  %vm8588_vm11 = vcmp.ge.s32.totalorder %v1884_v3, 57 }
 0x429   :  { %v2267_v54 = vrot.slane %v8559_v33, 7 }
 0x42a   :  { %v1969_v34 = vpop.permute.xlu0 %1968 }
 0x42b   :  { %v1970_v36 = vrot.slane %v1969_v34, 7 }
 0x42c   :  { %v8565_v37 = vpop.permute.xlu1 %2257 }
 0x42d   :  { %v1972_v38 = vsel %vm1971_vm1, %v1970_v36, %v1969_v34  ;;  %vm8637_vm1 = vcmp.lt.s32.totalorder %v1884_v3, 125 }
 0x42e   :  { %1977 = vst.msk [vmem:[#allocation3 + $0x1] sm:$0x3] %vm1976_vm3, %v1972_v38  ;;  %v1980_v40 = vpop.permute.xlu0 %1979  ;;  %vm8617_vm3 = vcmp.ge.s32.totalorder %v1884_v3, 27 }
 0x42f   :  { %1985 = vst.msk [vmem:[#allocation3 + $0x2] sm:$0x1] %vm1984_vm4, %v1980_v40  ;;  %vm8622_vm4 = vcmp.lt.s32.totalorder %v1884_v3, 76 }
 0x430   :  { %v1988_v47 = vpop.permute.xlu1 %1987 }
 0x431   :  { %v1989_v51 = vrot.slane %v1988_v47, 7 }
 0x432   :  { %v2128_v56 = vpop.permute.xlu0 %2127 }
 0x433   :  { %v1991_v57 = vsel %vm1990_vm9, %v1989_v51, %v1988_v47  ;;  %vm10025_vm9 = vmand %vm8568_vm5, %vm8573_vm6  ;;  %vm8672_vm6 = vcmp.ge.s32.totalorder %v1884_v3, 46  ;;  %v10075_v47 = vmov 0 }
 0x434   :  { %1996 = vst.msk [vmem:[#allocation3 + $0x2] sm:$0x3] %vm10025_vm9, %v1991_v57  ;;  %v2151_v49 = vpop.permute.xlu1 %2150  ;;  %vm10030_vm5 = vmand %vm8578_vm7, %vm8583_vm8  ;;  %v10032_v2 = vsel %vm8672_vm6, 4294967295, %v10031_v2  ;;  %vm8677_vm9 = vcmp.lt.s32.totalorder %v1884_v3, 95  ;;  %vm10036_vm8 = vnez %v10022_v58  ;;  %vm8693_vm6 = vcmp.ge.s32.totalorder %v1884_v3, 95 }
 0x435   :  { %2018 = vst.msk [vmem:[#allocation3 + $0x3] sm:$0x1] %vm10030_vm5, %v8512_v16  ;;  %vm10035_vm7 = vmand %vm8588_vm11, %vm8593_vm12  ;;  %vm8720_vm5 = vcmp.lt.s32.totalorder %v1884_v3, 65  ;;  %v2152_v17 = vrot.slane %v2151_v49, 7 }
 0x436   :  { %2033 = vst.msk [vmem:[#allocation3 + $0x3] sm:$0x1] %vm10035_vm7, %v8534_v20  ;;  %v8702_v6 = vpop.permute.xlu0 %2298  ;;  %vm10041_vm11 = vmand %vm8602_vm14, %vm8607_vm15  ;;  %vm8715_vm7 = vcmp.ge.s32.totalorder %v1884_v3, 16  ;;  %vm8735_vm15 = vcmp.ge.s32.totalorder %v1884_v3, 65 }
 0x437   :  { %2044 = vst.msk [vmem:[#allocation3 + $0x3] sm:$0x3] %vm10041_vm11, %v2039_v53  ;;  %vm2091_vm12 = vmand %vm8651_vm10, %vm8656_vm2  ;;  %v10043_v11 = vsel %vm8715_vm7, 4294967295, %v10042_v11  ;;  %vm10047_vm2 = vnez %v10032_v2  ;;  %vm8740_vm11 = vcmp.lt.s32.totalorder %v1884_v3, 114  ;;  %vm10052_vm7 = vcmask 1022976  }
 0x438   :  { %vm10046_vm14 = vmand %vm8617_vm3, %vm8622_vm4  ;;  %v2143_v15 = vpop.permute.xlu1 %2142  ;;  %v2087_v16 = vsel %vm10052_vm7, %v2085_v1, %v8545_v26  ;;  %vm8797_vm7 = vcmp.ge.s32.totalorder %v1884_v3, 84  ;;  %v2300_v63 = vrot.slane %v8702_v6, 7  ;;  %v10167_v1 = vmov 0 }
 0x439   :  { %2052 = vst.msk [vmem:[#allocation3 + $0x4] sm:$0x1] %vm10046_vm14, %v8549_v30  ;;  %vm2099_vm10 = vmand %vm10047_vm2, %vm8677_vm9  ;;  %vm8757_vm9 = vcmp.ge.s32.totalorder %v1884_v3, 114  ;;  %vm8762_vm14 = vcmp.lt.s32.totalorder %v1884_v3, 163  ;;  %vm2190_vm2 = vcmp.lt.s32.totalorder %v1884_v3, 133 }
 0x43a   :  { %vm10053_vm3 = vmand %vm10036_vm8, %vm8637_vm1  ;;  %vm10058_vm1 = vnez %v10043_v11  ;;  %v2184_v21 = vpop.permute.xlu0 %2183 }
 0x43b   :  { %2074 = vst.msk [vmem:[#allocation3 + $0x4] sm:$0x1] %vm10053_vm3, %v8530_v39  ;;  %vm2110_vm4 = vmand %vm8693_vm6, %vm8698_vm0  ;;  %vm2153_vm6 = vcmask 932864   ;;  %v2185_v26 = vrot.slane %v2184_v21, 7  ;;  %vm2204_vm3 = vcmp.ge.s32.totalorder %v1884_v3, 5 }
 0x43c   :  { %2092 = vst.msk [vmem:[#allocation3 + $0x4] sm:$0x3] %vm2091_vm12, %v2087_v16  ;;  %vm2132_vm8 = vmand %vm10058_vm1, %vm8720_vm5  ;;  %v8776_v39 = vpop.permute.xlu1 %2276  ;;  %v2154_v61 = vsel %vm2153_vm6, %v2152_v17, %v2151_v49  ;;  %vm8790_vm12 = vcmp.lt.s32.totalorder %v1884_v3, 84  ;;  %vm8827_vm6 = vcmp.ge.s32.totalorder %v1884_v3, 103 }
 0x43d   :  { %2100 = vst.msk [vmem:[#allocation3 + $0x5] sm:$0x1] %vm2099_vm10, %v8547_v29  ;;  %vm2147_vm0 = vmand %vm8735_vm15, %vm8740_vm11  ;;  %vm2186_vm10 = vcmask 687104  }
 0x43e   :  { %2111 = vst.msk [vmem:[#allocation3 + $0x5] sm:$0x3] %vm2110_vm4, %v2106_v22  ;;  %vm2158_vm5 = vmand %vm8757_vm9, %vm8762_vm14  ;;  %v8782_v20 = vpop.permute.xlu0 %2324  ;;  %vm2205_vm4 = vcmp.lt.s32.totalorder %v1884_v3, 54  ;;  %vm2212_vm9 = vcmp.ge.s32.totalorder %v1884_v3, 54  ;;  %vm2213_vm14 = vcmp.lt.s32.totalorder %v1884_v3, 103  ;;  %v2187_v29 = vsel %vm2186_vm10, %v2185_v26, %v2184_v21 }
 0x43f   :  { %2133 = vst.msk [vmem:[#allocation3 + $0x6] sm:$0x1] %vm2132_vm8, %v2128_v56  ;;  %vm2166_vm15 = vmand %vm8785_vm13, %vm8790_vm12  ;;  %vm8842_vm13 = vcmp.lt.s32.totalorder %v1884_v3, 73  ;;  %vm2220_vm12 = vcmask 842752   ;;  %v10157_v56 = vmov 0 }
 0x440   :  { %2148 = vst.msk [vmem:[#allocation3 + $0x6] sm:$0x1] %vm2147_vm0, %v2143_v15  ;;  %v8794_v25 = vpop.permute.xlu1 %2316  ;;  %vm2191_vm11 = vmand %vm8797_vm7, %vm2190_vm2  ;;  %vm8832_vm0 = vcmp.lt.s32.totalorder %v1884_v3, 152  ;;  %vm8847_vm7 = vcmp.ge.s32.totalorder %v1884_v3, 73  ;;  %vm8852_vm2 = vcmp.lt.s32.totalorder %v1884_v3, 122 }
 0x441   :  { %2159 = vst.msk [vmem:[#allocation3 + $0x6] sm:$0x3] %vm2158_vm5, %v2154_v61  ;;  %vm2206_vm1 = vmand %vm2204_vm3, %vm2205_vm4  ;;  %vm8837_vm5 = vcmp.ge.s32.totalorder %v1884_v3, 24  ;;  %v10076_v47 = vsel %vm8852_vm2, 4294967295, %v10075_v47  ;;  %vm8876_vm4 = vcmp.ge.s32.totalorder %v1884_v3, 43  ;;  %vm8897_vm3 = vcmp.lt.s32.totalorder %v1884_v3, 141 }
 0x442   :  { %v8802_v27 = vpop.permute.xlu0 %2471  ;;  %vm2214_vm8 = vmand %vm2212_vm9, %vm2213_vm14  ;;  %vm8881_vm9 = vcmp.lt.s32.totalorder %v1884_v3, 92  ;;  %vm10098_vm2 = vcmask 998400   ;;  %vm10110_vm14 = vcmask 752640  }
 0x443   :  { %vm2225_vm10 = vmand %vm8827_vm6, %vm8832_vm0  ;;  %vm8933_vm0 = vcmp.ge.s32.totalorder %v1884_v3, 62  ;;  %v2269_v4 = vsel %vm10098_vm2, %v2267_v54, %v8559_v33  ;;  %v2302_v12 = vsel %vm10110_vm14, %v2300_v63, %v8702_v6  ;;  %vm9004_vm14 = vcmp.lt.s32.totalorder %v1884_v3, 130 }
 0x444   :  { %v2162_v28 = vpop.permute.xlu1 %2161  ;;  %vm10093_vm6 = vmand %vm8837_vm5, %vm8842_vm13  ;;  %v10095_v9 = vsel %vm8933_vm0, 4294967295, %v10094_v9  ;;  %vm10099_vm5 = vnez %v10076_v47  ;;  %vm8960_vm0 = vcmp.lt.s32.totalorder %v1884_v3, 160  ;;  %vm9026_vm2 = vcmp.lt.s32.totalorder %v1884_v3, 51 }
 0x445   :  { %2167 = vst.msk [vmem:[#allocation3 + $0x7] sm:$0x1] %vm2166_vm15, %v2162_v28  ;;  %vm8861_vm15 = vcmp.ge.s32.totalorder %v1884_v3, 122  ;;  %vm10100_vm13 = vmand %vm8847_vm7, %vm10099_vm5  ;;  %vm8977_vm5 = vcmp.ge.s32.totalorder %v1884_v3, 32 }
 0x446   :  { %v2210_v30 = vpop.permute.xlu0 %2209  ;;  %2192 = vst.msk [vmem:[#allocation3 + $0x7] sm:$0x3] %vm2191_vm11, %v2187_v29  ;;  %vm8866_vm11 = vcmp.lt.s32.totalorder %v1884_v3, 171 }
 0x447   :  { %vm10105_vm7 = vmand %vm8861_vm15, %vm8866_vm11  ;;  %vm2375_vm15 = vcmask 662528  }
 0x448   :  { %v2202_v31 = vpop.permute.xlu1 %2201  ;;  %vm10111_vm11 = vmand %vm8876_vm4, %vm8881_vm9 }
 0x449   :  { %2207 = vst.msk [vmem:[#allocation3 + $0x8] sm:$0x1] %vm2206_vm1, %v2202_v31  ;;  %vm8913_vm1 = vcmp.ge.s32.totalorder %v1884_v3, 13 }
 0x44a   :  { %2215 = vst.msk [vmem:[#allocation3 + $0x8] sm:$0x1] %vm2214_vm8, %v2210_v30  ;;  %v8814_v32 = vpop.permute.xlu0 %2357  ;;  %vm8892_vm8 = vcmp.ge.s32.totalorder %v1884_v3, 92 }
 0x44b   :  { %vm10117_vm4 = vmand %vm8892_vm8, %vm8897_vm3 }
 0x44c   :  { %v8816_v34 = vpop.permute.xlu1 %2486 }
 0x44d   :  { %v2488_v46 = vrot.slane %v8816_v34, 7 }
 0x44e   :  { %v8818_v36 = vpop.permute.xlu0 %2332 }
 0x44f   :  { %v2334_v8 = vrot.slane %v8818_v36, 7 }
 0x450   :  { %v8820_v38 = vpop.permute.xlu1 %2527 }
 0x451   :  { %v2529_v58 = vrot.slane %v8820_v38, 7 }
 0x452   :  { %v8822_v40 = vpop.permute.xlu0 %2497 }
 0x454   :  { %v8824_v41 = vpop.permute.xlu1 %2372 }
 0x455   :  { %v2374_v15 = vrot.slane %v8824_v41, 7 }
 0x456   :  { %v2218_v48 = vpop.permute.xlu0 %2217 }
 0x457   :  { %v2219_v52 = vrot.slane %v2218_v48, 7  ;;  %v2376_v23 = vsel %vm2375_vm15, %v2374_v15, %v8824_v41  ;;  %vm2441_vm15 = vcmp.ge.s32.totalorder %v1884_v3, 70 }
 0x458   :  { %v8885_v57 = vpop.permute.xlu1 %2413 }
 0x459   :  { %v2221_v62 = vsel %vm2220_vm12, %v2219_v52, %v2218_v48  ;;  %vm8918_vm12 = vcmp.lt.s32.totalorder %v1884_v3, 62  ;;  %v2415_v24 = vrot.slane %v8885_v57, 7 }
 0x45a   :  { %2226 = vst.msk [vmem:[#allocation3 + $0x8] sm:$0x3] %vm2225_vm10, %v2221_v62  ;;  %v2384_v2 = vpop.permute.xlu0 %2383  ;;  %vm8938_vm10 = vcmp.lt.s32.totalorder %v1884_v3, 111  ;;  %vm10122_vm3 = vmand %vm8913_vm1, %vm8918_vm12  ;;  %vm10128_vm1 = vcmask 908288  }
 0x45b   :  { %2248 = vst.msk [vmem:[#allocation3 + $0x9] sm:$0x1] %vm10093_vm6, %v8553_v13  ;;  %vm8955_vm6 = vcmp.ge.s32.totalorder %v1884_v3, 111  ;;  %v2336_v22 = vsel %vm10128_vm1, %v2334_v8, %v8818_v36  ;;  %vm9113_vm1 = vcmp.lt.s32.totalorder %v1884_v3, 168 }
 0x45c   :  { %2263 = vst.msk [vmem:[#allocation3 + $0x9] sm:$0x1] %vm10100_vm13, %v8565_v37  ;;  %v8964_v5 = vpop.permute.xlu1 %2505  ;;  %v10106_v37 = vmov 0  ;;  %vm8982_vm13 = vcmp.lt.s32.totalorder %v1884_v3, 81  ;;  %vm2340_vm9 = vmand %vm8955_vm6, %vm8960_vm0  ;;  %vm9043_vm6 = vcmp.ge.s32.totalorder %v1884_v3, 51 }
 0x45d   :  { %2274 = vst.msk [vmem:[#allocation3 + $0x9] sm:$0x3] %vm10105_vm7, %v2269_v4  ;;  %v10107_v37 = vsel %vm8977_vm5, 4294967295, %v10106_v37  ;;  %vm10112_vm7 = vnez %v10095_v9  ;;  %vm8999_vm5 = vcmp.ge.s32.totalorder %v1884_v3, 81 }
 0x45e   :  { %2282 = vst.msk [vmem:[#allocation3 + $0xa] sm:$0x1] %vm10111_vm11, %v8776_v39  ;;  %v9008_v10 = vpop.permute.xlu0 %2553  ;;  %vm9021_vm11 = vcmp.ge.s32.totalorder %v1884_v3, 2  ;;  %vm10123_vm8 = vnez %v10107_v37  ;;  %vm10129_vm12 = vmand %vm10112_vm7, %vm8938_vm10  ;;  %vm9086_vm7 = vcmp.ge.s32.totalorder %v1884_v3, 21 }
 0x45f   :  { %2307 = vst.msk [vmem:[#allocation3 + $0xa] sm:$0x3] %vm10117_vm4, %v2302_v12  ;;  %vm2362_vm0 = vmand %vm10123_vm8, %vm8982_vm13  ;;  %vm9048_vm4 = vcmp.lt.s32.totalorder %v1884_v3, 100  ;;  %vm9070_vm8 = vcmp.lt.s32.totalorder %v1884_v3, 149 }
 0x460   :  { %2322 = vst.msk [vmem:[#allocation3 + $0xb] sm:$0x1] %vm10122_vm3, %v8794_v25  ;;  %v9040_v19 = vpop.permute.xlu1 %2545  ;;  %vm2380_vm13 = vmand %vm8999_vm5, %vm9004_vm14  ;;  %vm9065_vm3 = vcmp.ge.s32.totalorder %v1884_v3, 100  ;;  %vm2434_vm14 = vcmp.lt.s32.totalorder %v1884_v3, 70 }
 0x461   :  { %2330 = vst.msk [vmem:[#allocation3 + $0xb] sm:$0x1] %vm10129_vm12, %v8782_v20  ;;  %vm2388_vm10 = vmand %vm9021_vm11, %vm9026_vm2  ;;  %vm10136_vm11 = vcmask 818176   ;;  %vm9118_vm12 = vcmp.ge.s32.totalorder %v1884_v3, 40 }
 0x462   :  { %2341 = vst.msk [vmem:[#allocation3 + $0xb] sm:$0x3] %vm2340_vm9, %v2336_v22  ;;  %v2439_v20 = vpop.permute.xlu0 %2438  ;;  %vm2396_vm5 = vmand %vm9043_vm6, %vm9048_vm4  ;;  %vm2442_vm9 = vcmp.lt.s32.totalorder %v1884_v3, 119  ;;  %v2416_v26 = vsel %vm10136_vm11, %v2415_v24, %v8885_v57  ;;  %vm9108_vm4 = vcmp.ge.s32.totalorder %v1884_v3, 119  ;;  %vm9162_vm11 = vcmp.lt.s32.totalorder %v1884_v3, 108 }
 0x463   :  { %2363 = vst.msk [vmem:[#allocation3 + $0xc] sm:$0x1] %vm2362_vm0, %v8814_v32  ;;  %vm2420_vm2 = vmand %vm9065_vm3, %vm9070_vm8  ;;  %vm2449_vm3 = vcmask 973824   ;;  %vm9128_vm8 = vcmp.ge.s32.totalorder %v1884_v3, 89 }
 0x464   :  { %2381 = vst.msk [vmem:[#allocation3 + $0xc] sm:$0x3] %vm2380_vm13, %v2376_v23  ;;  %v2392_v60 = vpop.permute.xlu1 %2391  ;;  %vm2435_vm0 = vmand %vm9086_vm7, %vm2434_vm14  ;;  %vm9123_vm13 = vcmp.lt.s32.totalorder %v1884_v3, 89  ;;  %vm9143_vm7 = vcmp.ge.s32.totalorder %v1884_v3, 10  ;;  %vm9148_vm14 = vcmp.lt.s32.totalorder %v1884_v3, 59 }
 0x465   :  { %2389 = vst.msk [vmem:[#allocation3 + $0xd] sm:$0x1] %vm2388_vm10, %v2384_v2  ;;  %vm2443_vm6 = vmand %vm2441_vm15, %vm2442_vm9  ;;  %vm9133_vm10 = vcmp.lt.s32.totalorder %v1884_v3, 138  ;;  %vm9157_vm9 = vcmp.ge.s32.totalorder %v1884_v3, 59  ;;  %vm9177_vm15 = vcmp.lt.s32.totalorder %v1884_v3, 157  ;;  %v10175_v2 = vmov 0 }
 0x466   :  { %2397 = vst.msk [vmem:[#allocation3 + $0xd] sm:$0x1] %vm2396_vm5, %v2392_v60  ;;  %v9099_v28 = vpop.permute.xlu0 %2586  ;;  %vm2530_vm5 = vcmask 883712  }
 0x467   :  { %2421 = vst.msk [vmem:[#allocation3 + $0xd] sm:$0x3] %vm2420_vm2, %v2416_v26  ;;  %vm2489_vm2 = vcmask 728064   ;;  %v2531_v33 = vsel %vm2530_vm5, %v2529_v58, %v8820_v38  ;;  %vm9281_vm5 = vcmp.lt.s32.totalorder %v1884_v3, 146 }
 0x468   :  { %v2431_v29 = vpop.permute.xlu1 %2430  ;;  %v2490_v49 = vsel %vm2489_vm2, %v2488_v46, %v8816_v34  ;;  %vm9220_vm2 = vcmp.lt.s32.totalorder %v1884_v3, 127 }
 0x469   :  { %2436 = vst.msk [vmem:[#allocation3 + $0xe] sm:$0x1] %vm2435_vm0, %v2431_v29  ;;  %vm9192_vm0 = vcmp.ge.s32.totalorder %v1884_v3, 29 }
 0x46a   :  { %2444 = vst.msk [vmem:[#allocation3 + $0xe] sm:$0x1] %vm2443_vm6, %v2439_v20  ;;  %v9103_v30 = vpop.permute.xlu0 %2561  ;;  %vm9172_vm6 = vcmp.ge.s32.totalorder %v1884_v3, 108 }
 0x46b   :  { %v10158_v56 = vsel %vm9172_vm6, 4294967295, %v10157_v56  ;;  %vm9197_vm6 = vcmp.lt.s32.totalorder %v1884_v3, 78  ;;  %v2563_v53 = vrot.slane %v9103_v30, 7 }
 0x46c   :  { %v9105_v31 = vpop.permute.xlu1 %2757 }
 0x46d   :  { %v2759_v51 = vrot.slane %v9105_v31, 7 }
 0x46e   :  { %v2447_v45 = vpop.permute.xlu0 %2446 }
 0x46f   :  { %v2448_v50 = vrot.slane %v2447_v45, 7 }
 0x470   :  { %v2602_v54 = vpop.permute.xlu1 %2601 }
 0x471   :  { %v2450_v55 = vsel %vm2449_vm3, %v2448_v50, %v2447_v45  ;;  %vm10161_vm3 = vmand %vm9108_vm4, %vm9113_vm1 }
 0x472   :  { %2455 = vst.msk [vmem:[#allocation3 + $0xe] sm:$0x3] %vm10161_vm3, %v2450_v55  ;;  %v9201_v63 = vpop.permute.xlu0 %2716  ;;  %vm10166_vm1 = vmand %vm9118_vm12, %vm9123_vm13  ;;  %vm9215_vm3 = vcmp.ge.s32.totalorder %v1884_v3, 78  ;;  %vm10172_vm12 = vnez %v10158_v56  ;;  %vm9260_vm13 = vcmp.lt.s32.totalorder %v1884_v3, 97 }
 0x473   :  { %2477 = vst.msk [vmem:[#allocation3 + $0xf] sm:$0x1] %vm10166_vm1, %v8802_v27  ;;  %v10168_v1 = vsel %vm9215_vm3, 4294967295, %v10167_v1  ;;  %vm10171_vm4 = vmand %vm9128_vm8, %vm9133_vm10  ;;  %vm9234_vm1 = vcmp.ge.s32.totalorder %v1884_v3, 127  ;;  %vm9239_vm3 = vcmp.lt.s32.totalorder %v1884_v3, 176  ;;  %vm9276_vm10 = vcmp.ge.s32.totalorder %v1884_v3, 97 }
 0x474   :  { %2495 = vst.msk [vmem:[#allocation3 + $0xf] sm:$0x3] %vm10171_vm4, %v2490_v49  ;;  %v10176_v2 = vsel %vm9239_vm3, 4294967295, %v10175_v2  ;;  %v2643_v9 = vpop.permute.xlu1 %2642  ;;  %vm10177_vm8 = vmand %vm9143_vm7, %vm9148_vm14  ;;  %vm9255_vm4 = vcmp.ge.s32.totalorder %v1884_v3, 48  ;;  %vm10183_vm14 = vnez %v10168_v1  ;;  %vm10199_vm3 = vcmask 1039360  }
 0x475   :  { %2503 = vst.msk [vmem:[#allocation3 + $0x10] sm:$0x1] %vm10177_vm8, %v8822_v40  ;;  %vm10182_vm7 = vmand %vm9157_vm9, %vm9162_vm11  ;;  %vm9297_vm8 = vcmp.ge.s32.totalorder %v1884_v3, 18  ;;  %v2565_v15 = vsel %vm10199_vm3, %v2563_v53, %v9103_v30  ;;  %vm9344_vm9 = vcmp.lt.s32.totalorder %v1884_v3, 165  ;;  %vm10205_vm3 = vnez %v10176_v2 }
 0x476   :  { %2511 = vst.msk [vmem:[#allocation3 + $0x10] sm:$0x1] %vm10182_vm7, %v8964_v5  ;;  %v9285_v8 = vpop.permute.xlu0 %2701  ;;  %vm10188_vm11 = vmmov %vm9177_vm15  ;;  %v2603_v5 = vrot.slane %v2602_v54, 7  ;;  %vm9302_vm15 = vcmp.lt.s32.totalorder %v1884_v3, 67  ;;  %v2718_v36 = vrot.slane %v9201_v63, 7 }
 0x477   :  { %vm10189_vm7 = vmand %vm10172_vm12, %vm10188_vm11  ;;  %vm9317_vm11 = vcmp.ge.s32.totalorder %v1884_v3, 67 }
 0x478   :  { %2536 = vst.msk [vmem:[#allocation3 + $0x10] sm:$0x3] %vm10189_vm7, %v2531_v33  ;;  %vm10194_vm12 = vmand %vm9192_vm0, %vm9197_vm6  ;;  %v2621_v12 = vpop.permute.xlu1 %2620  ;;  %vm9322_vm7 = vcmp.lt.s32.totalorder %v1884_v3, 116 }
 0x479   :  { %2551 = vst.msk [vmem:[#allocation3 + $0x11] sm:$0x1] %vm10194_vm12, %v9040_v19  ;;  %vm2609_vm0 = vmand %vm9276_vm10, %vm9281_vm5  ;;  %vm9339_vm12 = vcmp.ge.s32.totalorder %v1884_v3, 116  ;;  %v2644_v19 = vrot.slane %v2643_v9, 7  ;;  %vm9363_vm5 = vcmp.lt.s32.totalorder %v1884_v3, 86 }
 0x47a   :  { %vm10200_vm6 = vmand %vm10183_vm14, %vm9220_vm2  ;;  %vm9358_vm14 = vcmp.ge.s32.totalorder %v1884_v3, 37 }
 0x47b   :  { %2559 = vst.msk [vmem:[#allocation3 + $0x11] sm:$0x1] %vm10200_vm6, %v9008_v10  ;;  %vm10206_vm10 = vmand %vm9234_vm1, %vm10205_vm3  ;;  %v2613_v10 = vpop.permute.xlu0 %2612  ;;  %vm10212_vm6 = vcmask 793600  }
 0x47c   :  { %2570 = vst.msk [vmem:[#allocation3 + $0x11] sm:$0x3] %vm10206_vm10, %v2565_v15  ;;  %vm2617_vm2 = vmand %vm9297_vm8, %vm9302_vm15  ;;  %v2605_v22 = vsel %vm10212_vm6, %v2603_v5, %v2602_v54  ;;  %vm2645_vm15 = vcmask 949248   ;;  %v2661_v39 = vpop.permute.xlu1 %2660  ;;  %vm9383_vm10 = vcmp.ge.s32.totalorder %v1884_v3, 86  ;;  %vm9436_vm6 = vcmp.ge.s32.totalorder %v1884_v3, 26 }
 0x47d   :  { %vm10211_vm1 = vmand %vm9255_vm4, %vm9260_vm13  ;;  %vm9388_vm13 = vcmp.lt.s32.totalorder %v1884_v3, 135  ;;  %v2646_v25 = vsel %vm2645_vm15, %v2644_v19, %v2643_v9  ;;  %vm9441_vm15 = vcmp.lt.s32.totalorder %v1884_v3, 75 }
 0x47e   :  { %2592 = vst.msk [vmem:[#allocation3 + $0x12] sm:$0x1] %vm10211_vm1, %v9099_v28  ;;  %vm2625_vm8 = vmand %vm9317_vm11, %vm9322_vm7  ;;  %vm9397_vm11 = vcmp.ge.s32.totalorder %v1884_v3, 7  ;;  %vm2671_vm7 = vcmask 703488  }
 0x47f   :  { %2610 = vst.msk [vmem:[#allocation3 + $0x12] sm:$0x3] %vm2609_vm0, %v2605_v22  ;;  %vm2650_vm3 = vmand %vm9339_vm12, %vm9344_vm9  ;;  %vm9402_vm9 = vcmp.lt.s32.totalorder %v1884_v3, 56  ;;  %v2669_v60 = vpop.permute.xlu0 %2668  ;;  %vm9407_vm0 = vcmp.ge.s32.totalorder %v1884_v3, 56  ;;  %vm9412_vm12 = vcmp.lt.s32.totalorder %v1884_v3, 105 }
 0x480   :  { %2618 = vst.msk [vmem:[#allocation3 + $0x13] sm:$0x1] %vm2617_vm2, %v2613_v10  ;;  %vm2665_vm4 = vmand %vm9358_vm14, %vm9363_vm5  ;;  %v2670_v29 = vrot.slane %v2669_v60, 7  ;;  %vm9421_vm14 = vcmp.ge.s32.totalorder %v1884_v3, 105  ;;  %vm9426_vm5 = vcmp.lt.s32.totalorder %v1884_v3, 154  ;;  %v2680_v41 = vpop.permute.xlu1 %2679 }
 0x481   :  { %2626 = vst.msk [vmem:[#allocation3 + $0x13] sm:$0x1] %vm2625_vm8, %v2621_v12  ;;  %vm2676_vm2 = vmand %vm9383_vm10, %vm9388_vm13  ;;  %vm2719_vm8 = vcmask 859136   ;;  %vm9451_vm10 = vcmp.ge.s32.totalorder %v1884_v3, 75  ;;  %vm9456_vm13 = vcmp.lt.s32.totalorder %v1884_v3, 124 }
 0x482   :  { %2651 = vst.msk [vmem:[#allocation3 + $0x13] sm:$0x3] %vm2650_vm3, %v2646_v25  ;;  %vm2684_vm1 = vmand %vm9397_vm11, %vm9402_vm9  ;;  %v2672_v44 = vsel %vm2671_vm7, %v2670_v29, %v2669_v60  ;;  %vm9465_vm11 = vcmp.ge.s32.totalorder %v1884_v3, 124  ;;  %vm9470_vm9 = vcmp.lt.s32.totalorder %v1884_v3, 173  ;;  %v2720_v55 = vsel %vm2719_vm8, %v2718_v36, %v9201_v63 }
 0x483   :  { %2666 = vst.msk [vmem:[#allocation3 + $0x14] sm:$0x1] %vm2665_vm4, %v2661_v39  ;;  %vm2706_vm3 = vmand %vm9407_vm0, %vm9412_vm12  ;;  %v2728_v47 = vpop.permute.xlu0 %2727  ;;  %vm9480_vm0 = vcmp.ge.s32.totalorder %v1884_v3, 45  ;;  %vm9485_vm12 = vcmp.lt.s32.totalorder %v1884_v3, 94 }
 0x484   :  { %2677 = vst.msk [vmem:[#allocation3 + $0x14] sm:$0x3] %vm2676_vm2, %v2672_v44  ;;  %vm2724_vm4 = vmand %vm9421_vm14, %vm9426_vm5  ;;  %vm2760_vm2 = vcmask 1014784   ;;  %v2736_v56 = vpop.permute.xlu1 %2735 }
 0x485   :  { %2685 = vst.msk [vmem:[#allocation3 + $0x15] sm:$0x1] %vm2684_vm1, %v2680_v41  ;;  %vm2732_vm7 = vmand %vm9436_vm6, %vm9441_vm15  ;;  %vm9497_vm6 = vcmp.ge.s32.totalorder %v1884_v3, 94  ;;  %vm9502_vm15 = vcmp.lt.s32.totalorder %v1884_v3, 143  ;;  %v2761_v49 = vsel %vm2760_vm2, %v2759_v51, %v9105_v31 }
 0x486   :  { %2707 = vst.msk [vmem:[#allocation3 + $0x15] sm:$0x1] %vm2706_vm3, %v9285_v8  ;;  %vm2740_vm1 = vmand %vm9451_vm10, %vm9456_vm13  ;;  %vm9516_vm3 = vcmp.ge.s32.totalorder %v1884_v3, 15  ;;  %vm9521_vm10 = vcmp.lt.s32.totalorder %v1884_v3, 64  ;;  %vm2786_vm13 = vcmask 769024  }
 0x487   :  { %2725 = vst.msk [vmem:[#allocation3 + $0x15] sm:$0x3] %vm2724_vm4, %v2720_v55  ;;  %vm2765_vm8 = vmand %vm9465_vm11, %vm9470_vm9  ;;  %v2784_v63 = vpop.permute.xlu0 %2783 }
 0x488   :  { %2733 = vst.msk [vmem:[#allocation3 + $0x16] sm:$0x1] %vm2732_vm7, %v2728_v47  ;;  %vm2780_vm14 = vmand %vm9480_vm0, %vm9485_vm12  ;;  %v2785_v1 = vrot.slane %v2784_v63, 7  ;;  %v2776_v3 = vpop.permute.xlu1 %2775 }
 0x489   :  { %2741 = vst.msk [vmem:[#allocation3 + $0x16] sm:$0x1] %vm2740_vm1, %v2736_v56  ;;  %vm2791_vm5 = vmand %vm9497_vm6, %vm9502_vm15 }
 0x48a   :  { %2766 = vst.msk [vmem:[#allocation3 + $0x16] sm:$0x3] %vm2765_vm8, %v2761_v49  ;;  %vm2799_vm4 = vmand %vm9516_vm3, %vm9521_vm10  ;;  %v2787_v34 = vsel %vm2786_vm13, %v2785_v1, %v2784_v63 }
 0x48b   :  { %2781 = vst.msk [vmem:[#allocation3 + $0x17] sm:$0x1] %vm2780_vm14, %v2776_v3  ;;  %v2795_v27 = vpop.permute.xlu0 %2794 }
 0x48c   :  { %2792 = vst.msk [vmem:[#allocation3 + $0x17] sm:$0x3] %vm2791_vm5, %v2787_v34 }
 0x48d   :  { %2800 = vst.msk [vmem:[#allocation3 + $0x18] sm:$0x1] %vm2799_vm4, %v2795_v27 }
 0x48e   :  { %7519 = dma.done.wait [#allocation4], 100352 }
 0x48f   :  { %7520 = vsyncadd [#allocation4], 4294866944  ;;  %3908 = vmatprep.mubr.f32.mxu0 %v7543_v35  ;;  %3979 = vmatprep.mubr.f32.mxu1 %v7543_v35  ;;  %5823 = vst [vmem:[%s9948_s25] sm:$0xff] %v7543_v35  ;;  %v7120_v31 = vld [vmem:[#allocation16 + $0x4] ss:$16 sps:$4 sm:$0xff]   ;;  %v7122_v2 = vld [vmem:[#allocation16 + $0xc] ss:$16 sps:$4 sm:$0xff]  }
 0x490   :  { %6488 = vmatprep.subr.bf16.mxu0 %v7120_v31  ;;  %v7124_v9 = vld [vmem:[#allocation16] ss:$16 sps:$4 sm:$0xff]   ;;  %v7125_v53 = vld [vmem:[#allocation16 + $0x8] ss:$16 sps:$4 sm:$0xff]   ;;  %6520 = vmatprep.subr.bf16.mxu1 %v7122_v2  ;;  %v7126_v4 = vld [vmem:[#allocation16 + $0x24] ss:$16 sps:$4 sm:$0xff]  }
 0x491   :  { %6490 = vmatpush1.bf16.msra.mxu0 %v7124_v9  ;;  %6522 = vmatpush1.bf16.msra.mxu1 %v7125_v53  ;;  %v7128_v13 = vld [vmem:[#allocation16 + $0x2c] ss:$16 sps:$4 sm:$0xff]   ;;  %v7130_v33 = vld [vmem:[#allocation16 + $0x20] ss:$16 sps:$4 sm:$0xff]   ;;  %v7131_v40 = vld [vmem:[#allocation16 + $0x28] ss:$16 sps:$4 sm:$0xff]  }
 0x492   :  { %6492 = vmatprep.subr.bf16.mxu0 %v7126_v4  ;;  %6524 = vmatprep.subr.bf16.mxu1 %v7128_v13  ;;  %v7132_v38 = vld [vmem:[#allocation16 + $0x44] ss:$16 sps:$4 sm:$0xff]   ;;  %v7134_v8 = vld [vmem:[#allocation16 + $0x4c] ss:$16 sps:$4 sm:$0xff]   ;;  %v7136_v5 = vld [vmem:[#allocation16 + $0x40] ss:$16 sps:$4 sm:$0xff]  }
 0x493   :  { %v7137_v37 = vld [vmem:[#allocation16 + $0x48] ss:$16 sps:$4 sm:$0xff]   ;;  %v7138_v35 = vld [vmem:[#allocation16 + $0x64] ss:$16 sps:$4 sm:$0xff]   ;;  %v7140_v11 = vld [vmem:[#allocation16 + $0x6c] ss:$16 sps:$4 sm:$0xff]  }
 0x494   :  { %v7142_v12 = vld [vmem:[#allocation16 + $0x60] ss:$16 sps:$4 sm:$0xff]   ;;  %v7143_v14 = vld [vmem:[#allocation16 + $0x68] ss:$16 sps:$4 sm:$0xff]   ;;  %v7144_v6 = vld [vmem:[#allocation16 + $0x84] ss:$16 sps:$4 sm:$0xff]  }
 0x495   :  { %6494 = vmatpush1.bf16.msra.mxu0 %v7130_v33  ;;  %6526 = vmatpush1.bf16.msra.mxu1 %v7131_v40  ;;  %v7146_v15 = vld [vmem:[#allocation16 + $0x8c] ss:$16 sps:$4 sm:$0xff]   ;;  %v7148_v16 = vld [vmem:[#allocation16 + $0x80] ss:$16 sps:$4 sm:$0xff]   ;;  %v7149_v18 = vld [vmem:[#allocation16 + $0x88] ss:$16 sps:$4 sm:$0xff]  }
 0x496   :  { %6496 = vmatprep.subr.bf16.mxu0 %v7132_v38  ;;  %6528 = vmatprep.subr.bf16.mxu1 %v7134_v8  ;;  %v7150_v19 = vld [vmem:[#allocation16 + $0xa4] ss:$16 sps:$4 sm:$0xff]   ;;  %v7152_v10 = vld [vmem:[#allocation16 + $0xac] ss:$16 sps:$4 sm:$0xff]   ;;  %v7154_v17 = vld [vmem:[#allocation16 + $0xa0] ss:$16 sps:$4 sm:$0xff]  }
 0x497   :  { %v7155_v21 = vld [vmem:[#allocation16 + $0xa8] ss:$16 sps:$4 sm:$0xff]   ;;  %v7156_v22 = vld [vmem:[#allocation16 + $0xc4] ss:$16 sps:$4 sm:$0xff]   ;;  %v7158_v39 = vld [vmem:[#allocation16 + $0xcc] ss:$16 sps:$4 sm:$0xff]  }
 0x498   :  { %v7160_v61 = vld [vmem:[#allocation16 + $0xc0] ss:$16 sps:$4 sm:$0xff]   ;;  %v7161_v24 = vld [vmem:[#allocation16 + $0xc8] ss:$16 sps:$4 sm:$0xff]   ;;  %v7162_v20 = vld [vmem:[#allocation16 + $0xe4] ss:$16 sps:$4 sm:$0xff]  }
 0x499   :  { %6498 = vmatpush1.bf16.msra.mxu0 %v7136_v5  ;;  %6530 = vmatpush1.bf16.msra.mxu1 %v7137_v37  ;;  %v7164_v23 = vld [vmem:[#allocation16 + $0xec] ss:$16 sps:$4 sm:$0xff]   ;;  %v7166_v25 = vld [vmem:[#allocation16 + $0xe0] ss:$16 sps:$4 sm:$0xff]   ;;  %v7167_v60 = vld [vmem:[#allocation16 + $0xe8] ss:$16 sps:$4 sm:$0xff]  }
 0x49a   :  { %6500 = vmatprep.subr.bf16.mxu0 %v7138_v35  ;;  %6532 = vmatprep.subr.bf16.mxu1 %v7140_v11  ;;  %v2964_v26 = vld [vmem:[#allocation2 + $0x8] sm:$0xff]  ;;  %v3747_v29 = vld [vmem:[#allocation5] sm:$0x1]  ;;  %v2963_v30 = vld [vmem:[#allocation2] sm:$0xff]  ;;  %v9546_v46 = vsub.s32 1, %v8365_v7  ;;  %v9549_v47 = vsub.s32 3, %v8365_v7 }
 0x49b   :  { %v3028_v28 = vld [vmem:[#allocation2 + $0x208] sm:$0xff]  ;;  %v3027_v32 = vld [vmem:[#allocation2 + $0x200] sm:$0xff]  ;;  %vm10253_vm11 = vcmask 523264   ;;  %vm10255_vm7 = vmmov 0   ;;  %s10256_s7 = sld [smem:[#allocation40_spill]]  ;;  %vm5828_vm0 = vcmask 57344  }
 0x49c   :  { %v2968_v36 = vld [vmem:[#allocation2 + $0x28] sm:$0xff]  ;;  %v2967_v42 = vld [vmem:[#allocation2 + $0x20] sm:$0xff]  ;;  %vm10254_vm9 = vmmov %vm10253_vm11  ;;  %vm5830_vm2 = vcmask 0  }
 0x49d   :  { %6502 = vmatpush1.bf16.msra.mxu0 %v7142_v12  ;;  %6534 = vmatpush1.bf16.msra.mxu1 %v7143_v14  ;;  %v3032_v41 = vld [vmem:[#allocation2 + $0x228] sm:$0xff]  ;;  %v3031_v43 = vld [vmem:[#allocation2 + $0x220] sm:$0xff]  ;;  %vm10257_vm12 = vmmov %vm10254_vm9 }
 0x49e   :  { %6504 = vmatprep.subr.bf16.mxu0 %v7144_v6  ;;  %6536 = vmatprep.subr.bf16.mxu1 %v7146_v15  ;;  %v2972_v44 = vld [vmem:[#allocation2 + $0x48] sm:$0xff]  ;;  %v2971_v48 = vld [vmem:[#allocation2 + $0x40] sm:$0xff] }
 0x49f   :  { %v3036_v45 = vld [vmem:[#allocation2 + $0x248] sm:$0xff]  ;;  %v3035_v50 = vld [vmem:[#allocation2 + $0x240] sm:$0xff] }
 0x4a0   :  { %v2976_v51 = vld [vmem:[#allocation2 + $0x68] sm:$0xff]  ;;  %v9551_v54 = vld [vmem:[#allocation3] sm:$0xff] }
 0x4a1   :  { %6506 = vmatpush1.bf16.msra.mxu0 %v7148_v16  ;;  %6538 = vmatpush1.bf16.msra.mxu1 %v7149_v18  ;;  %v3040_v52 = vld [vmem:[#allocation2 + $0x268] sm:$0xff]  ;;  %v2820_v55 = vrot.slane %v9551_v54, %v9546_v46  ;;  %v2828_v56 = vrot.slane %v9551_v54, %v9549_v47  ;;  %v2975_v57 = vld [vmem:[#allocation2 + $0x60] sm:$0xff] }
 0x4a2   :  { %6508 = vmatprep.subr.bf16.mxu0 %v7150_v19  ;;  %6540 = vmatprep.subr.bf16.mxu1 %v7152_v10  ;;  %v3039_v58 = vld [vmem:[#allocation2 + $0x260] sm:$0xff]  ;;  %v2980_v59 = vld [vmem:[#allocation2 + $0x88] sm:$0xff] }
 0x4a3   :  { %v3044_v62 = vld [vmem:[#allocation2 + $0x288] sm:$0xff]  ;;  %v9557_v63 = vpack.c.bf16 %v2820_v55, %v2820_v55  ;;  %v9559_v49 = vpack.c.bf16 %v2828_v56, %v2828_v56  ;;  %v2979_v1 = vld [vmem:[#allocation2 + $0x80] sm:$0xff]  ;;  %v2966_v56 = vld [vmem:[#allocation2 + $0x18] sm:$0xff] }
 0x4a4   :  { %v3043_v3 = vld [vmem:[#allocation2 + $0x280] sm:$0xff]  ;;  %v2984_v34 = vld [vmem:[#allocation2 + $0xa8] sm:$0xff] }
 0x4a5   :  { %6510 = vmatpush1.bf16.msra.mxu0 %v7154_v17  ;;  %6542 = vmatpush1.bf16.msra.mxu1 %v7155_v21  ;;  %v3048_v27 = vld [vmem:[#allocation2 + $0x2a8] sm:$0xff]  ;;  %v2983_v31 = vld [vmem:[#allocation2 + $0xa0] sm:$0xff] }
 0x4a6   :  { %6512 = vmatprep.subr.bf16.mxu0 %v7156_v22  ;;  %6544 = vmatprep.subr.bf16.mxu1 %v7158_v39  ;;  %v3047_v2 = vld [vmem:[#allocation2 + $0x2a0] sm:$0xff]  ;;  %v2988_v9 = vld [vmem:[#allocation2 + $0xc8] sm:$0xff] }
 0x4a7   :  { %v3052_v53 = vld [vmem:[#allocation2 + $0x2c8] sm:$0xff]  ;;  %v2987_v4 = vld [vmem:[#allocation2 + $0xc0] sm:$0xff] }
 0x4a8   :  { %v3051_v13 = vld [vmem:[#allocation2 + $0x2c0] sm:$0xff]  ;;  %v2992_v33 = vld [vmem:[#allocation2 + $0xe8] sm:$0xff] }
 0x4a9   :  { %6514 = vmatpush1.bf16.msra.mxu0 %v7160_v61  ;;  %6546 = vmatpush1.bf16.msra.mxu1 %v7161_v24  ;;  %v3056_v40 = vld [vmem:[#allocation2 + $0x2e8] sm:$0xff]  ;;  %v2991_v38 = vld [vmem:[#allocation2 + $0xe0] sm:$0xff] }
 0x4aa   :  { %6516 = vmatprep.subr.bf16.mxu0 %v7162_v20  ;;  %6548 = vmatprep.subr.bf16.mxu1 %v7164_v23  ;;  %v3055_v8 = vld [vmem:[#allocation2 + $0x2e0] sm:$0xff]  ;;  %v2996_v5 = vld [vmem:[#allocation2 + $0x108] sm:$0xff] }
 0x4ab   :  { %v3060_v37 = vld [vmem:[#allocation2 + $0x308] sm:$0xff]  ;;  %v2995_v35 = vld [vmem:[#allocation2 + $0x100] sm:$0xff] }
 0x4ac   :  { %v3059_v11 = vld [vmem:[#allocation2 + $0x300] sm:$0xff]  ;;  %v3000_v12 = vld [vmem:[#allocation2 + $0x128] sm:$0xff] }
 0x4ad   :  { %6518 = vmatpush1.bf16.msra.mxu0 %v7166_v25  ;;  %6550 = vmatpush1.bf16.msra.mxu1 %v7167_v60  ;;  %v3064_v14 = vld [vmem:[#allocation2 + $0x328] sm:$0xff]  ;;  %v2999_v6 = vld [vmem:[#allocation2 + $0x120] sm:$0xff] }
 0x4ae   :  { %3989 = vmatprep.subr.bf16.mxu0 %v2964_v26  ;;  %4030 = vmatprep.subr.bf16.mxu1 %v3028_v28  ;;  %v3063_v15 = vld [vmem:[#allocation2 + $0x320] sm:$0xff]  ;;  %v3004_v16 = vld [vmem:[#allocation2 + $0x148] sm:$0xff] }
 0x4af   :  { %v3068_v18 = vld [vmem:[#allocation2 + $0x348] sm:$0xff]  ;;  %v3003_v19 = vld [vmem:[#allocation2 + $0x140] sm:$0xff] }
 0x4b0   :  { %3909 = vmatmul.mubr.f32.vlgmr.msra.gmra.mrb[52].mxu0 %v3747_v29  ;;  %3980 = vmatmul.mubr.f32.vlgmr.msra.gmra.mrb[52].mxu1 %v3747_v29  ;;  %v3067_v10 = vld [vmem:[#allocation2 + $0x340] sm:$0xff]  ;;  %v3008_v17 = vld [vmem:[#allocation2 + $0x168] sm:$0xff] }
 0x4b1   :  { %3990 = vmatpush1.bf16.msra.mxu0 %v2963_v30  ;;  %4031 = vmatpush1.bf16.msra.mxu1 %v3027_v32  ;;  %v3072_v21 = vld [vmem:[#allocation2 + $0x368] sm:$0xff]  ;;  %v3007_v22 = vld [vmem:[#allocation2 + $0x160] sm:$0xff] }
 0x4b2   :  { %3991 = vmatprep.subr.bf16.mxu0 %v2968_v36  ;;  %4032 = vmatprep.subr.bf16.mxu1 %v3032_v41  ;;  %v3071_v39 = vld [vmem:[#allocation2 + $0x360] sm:$0xff]  ;;  %v3012_v61 = vld [vmem:[#allocation2 + $0x188] sm:$0xff]  ;;  %v9564_v36 = vsub.s32 0, %v8365_v7  ;;  %v9567_v41 = vsub.s32 2, %v8365_v7 }
 0x4b3   :  { %4021 = vmatprep.mubr.bf16.mxu0 %v9557_v63  ;;  %4062 = vmatprep.mubr.bf16.mxu1 %v9559_v49  ;;  %v3076_v24 = vld [vmem:[#allocation2 + $0x388] sm:$0xff]  ;;  %v3011_v20 = vld [vmem:[#allocation2 + $0x180] sm:$0xff] }
 0x4b4   :  { %v3075_v23 = vld [vmem:[#allocation2 + $0x380] sm:$0xff]  ;;  %v3016_v25 = vld [vmem:[#allocation2 + $0x1a8] sm:$0xff] }
 0x4b5   :  { %3992 = vmatpush1.bf16.msra.mxu0 %v2967_v42  ;;  %4033 = vmatpush1.bf16.msra.mxu1 %v3031_v43  ;;  %v3080_v60 = vld [vmem:[#allocation2 + $0x3a8] sm:$0xff]  ;;  %v3015_v26 = vld [vmem:[#allocation2 + $0x1a0] sm:$0xff] }
 0x4b6   :  { %3993 = vmatprep.subr.bf16.mxu0 %v2972_v44  ;;  %4034 = vmatprep.subr.bf16.mxu1 %v3036_v45  ;;  %v3079_v28 = vld [vmem:[#allocation2 + $0x3a0] sm:$0xff]  ;;  %v3020_v29 = vld [vmem:[#allocation2 + $0x1c8] sm:$0xff]  ;;  %v9570_v45 = vsub.s32 5, %v8365_v7 }
 0x4b7   :  { %v3084_v30 = vld [vmem:[#allocation2 + $0x3c8] sm:$0xff]  ;;  %v3019_v32 = vld [vmem:[#allocation2 + $0x1c0] sm:$0xff] }
 0x4b8   :  { %v3083_v42 = vld [vmem:[#allocation2 + $0x3c0] sm:$0xff]  ;;  %v3024_v43 = vld [vmem:[#allocation2 + $0x1e8] sm:$0xff] }
 0x4b9   :  { %3994 = vmatpush1.bf16.msra.mxu0 %v2971_v48  ;;  %4035 = vmatpush1.bf16.msra.mxu1 %v3035_v50  ;;  %v3088_v44 = vld [vmem:[#allocation2 + $0x3e8] sm:$0xff]  ;;  %v3023_v48 = vld [vmem:[#allocation2 + $0x1e0] sm:$0xff]  ;;  %v2816_v50 = vrot.slane %v9551_v54, %v9564_v36 }
 0x4ba   :  { %3995 = vmatprep.subr.bf16.mxu0 %v2976_v51  ;;  %4036 = vmatprep.subr.bf16.mxu1 %v3040_v52  ;;  %v2824_v51 = vrot.slane %v9551_v54, %v9567_v41  ;;  %v3087_v52 = vld [vmem:[#allocation2 + $0x3e0] sm:$0xff]  ;;  %v3092_v55 = vld [vmem:[#allocation2 + $0x408] sm:$0xff] }
 0x4bd   :  { %3996 = vmatpush1.bf16.msra.mxu0 %v2975_v57  ;;  %4037 = vmatpush1.bf16.msra.mxu1 %v3039_v58  ;;  %v2836_v57 = vrot.slane %v9551_v54, %v9570_v45  ;;  %v9578_v58 = vpack.c.bf16 %v2816_v50, %v2816_v50  ;;  %v3140_v50 = vld [vmem:[#allocation2 + $0x588] sm:$0xff] }
 0x4be   :  { %3997 = vmatprep.subr.bf16.mxu0 %v2980_v59  ;;  %4038 = vmatprep.subr.bf16.mxu1 %v3044_v62  ;;  %v9580_v59 = vpack.c.bf16 %v2824_v51, %v2824_v51  ;;  %v3091_v62 = vld [vmem:[#allocation2 + $0x400] sm:$0xff]  ;;  %v3014_v51 = vld [vmem:[#allocation2 + $0x198] sm:$0xff] }
 0x4c1   :  { %3998 = vmatpush1.bf16.msra.mxu0 %v2979_v1  ;;  %4039 = vmatpush1.bf16.msra.mxu1 %v3043_v3  ;;  %v2965_v1 = vld [vmem:[#allocation2 + $0x10] sm:$0xff]  ;;  %v3096_v3 = vld [vmem:[#allocation2 + $0x428] sm:$0xff] }
 0x4c2   :  { %3999 = vmatprep.subr.bf16.mxu0 %v2984_v34  ;;  %4040 = vmatprep.subr.bf16.mxu1 %v3048_v27  ;;  %v2970_v34 = vld [vmem:[#allocation2 + $0x38] sm:$0xff]  ;;  %v9582_v27 = vpack.c.bf16 %v2836_v57, %v2836_v57 }
 0x4c3   :  { %v3018_v57 = vld [vmem:[#allocation2 + $0x1b8] sm:$0xff] }
 0x4c5   :  { %4000 = vmatpush1.bf16.msra.mxu0 %v2983_v31  ;;  %4041 = vmatpush1.bf16.msra.mxu1 %v3047_v2  ;;  %v3095_v31 = vld [vmem:[#allocation2 + $0x420] sm:$0xff]  ;;  %v2969_v2 = vld [vmem:[#allocation2 + $0x30] sm:$0xff] }
 0x4c6   :  { %4001 = vmatprep.subr.bf16.mxu0 %v2988_v9  ;;  %4042 = vmatprep.subr.bf16.mxu1 %v3052_v53  ;;  %v3100_v9 = vld [vmem:[#allocation2 + $0x448] sm:$0xff]  ;;  %v2974_v53 = vld [vmem:[#allocation2 + $0x58] sm:$0xff] }
 0x4c9   :  { %4002 = vmatpush1.bf16.msra.mxu0 %v2987_v4  ;;  %4043 = vmatpush1.bf16.msra.mxu1 %v3051_v13  ;;  %v3099_v4 = vld [vmem:[#allocation2 + $0x440] sm:$0xff]  ;;  %v2973_v13 = vld [vmem:[#allocation2 + $0x50] sm:$0xff] }
 0x4ca   :  { %4003 = vmatprep.subr.bf16.mxu0 %v2992_v33  ;;  %4044 = vmatprep.subr.bf16.mxu1 %v3056_v40  ;;  %v3104_v33 = vld [vmem:[#allocation2 + $0x468] sm:$0xff]  ;;  %v2978_v40 = vld [vmem:[#allocation2 + $0x78] sm:$0xff] }
 0x4cd   :  { %4004 = vmatpush1.bf16.msra.mxu0 %v2991_v38  ;;  %4045 = vmatpush1.bf16.msra.mxu1 %v3055_v8  ;;  %v3103_v38 = vld [vmem:[#allocation2 + $0x460] sm:$0xff]  ;;  %v2977_v8 = vld [vmem:[#allocation2 + $0x70] sm:$0xff] }
 0x4ce   :  { %4005 = vmatprep.subr.bf16.mxu0 %v2996_v5  ;;  %4046 = vmatprep.subr.bf16.mxu1 %v3060_v37  ;;  %v3108_v5 = vld [vmem:[#allocation2 + $0x488] sm:$0xff]  ;;  %v2982_v37 = vld [vmem:[#allocation2 + $0x98] sm:$0xff] }
 0x4d1   :  { %4006 = vmatpush1.bf16.msra.mxu0 %v2995_v35  ;;  %4047 = vmatpush1.bf16.msra.mxu1 %v3059_v11  ;;  %v2981_v35 = vld [vmem:[#allocation2 + $0x90] sm:$0xff]  ;;  %v3112_v11 = vld [vmem:[#allocation2 + $0x4a8] sm:$0xff] }
 0x4d2   :  { %4007 = vmatprep.subr.bf16.mxu0 %v3000_v12  ;;  %4048 = vmatprep.subr.bf16.mxu1 %v3064_v14  ;;  %v2986_v12 = vld [vmem:[#allocation2 + $0xb8] sm:$0xff]  ;;  %v3111_v14 = vld [vmem:[#allocation2 + $0x4a0] sm:$0xff] }
 0x4d5   :  { %4008 = vmatpush1.bf16.msra.mxu0 %v2999_v6  ;;  %4049 = vmatpush1.bf16.msra.mxu1 %v3063_v15  ;;  %v2985_v6 = vld [vmem:[#allocation2 + $0xb0] sm:$0xff]  ;;  %v3116_v15 = vld [vmem:[#allocation2 + $0x4c8] sm:$0xff] }
 0x4d6   :  { %4009 = vmatprep.subr.bf16.mxu0 %v3004_v16  ;;  %4050 = vmatprep.subr.bf16.mxu1 %v3068_v18  ;;  %v2990_v16 = vld [vmem:[#allocation2 + $0xd8] sm:$0xff]  ;;  %v3115_v18 = vld [vmem:[#allocation2 + $0x4c0] sm:$0xff] }
 0x4d9   :  { %4010 = vmatpush1.bf16.msra.mxu0 %v3003_v19  ;;  %4051 = vmatpush1.bf16.msra.mxu1 %v3067_v10  ;;  %v2989_v19 = vld [vmem:[#allocation2 + $0xd0] sm:$0xff]  ;;  %v3120_v10 = vld [vmem:[#allocation2 + $0x4e8] sm:$0xff] }
 0x4da   :  { %4011 = vmatprep.subr.bf16.mxu0 %v3008_v17  ;;  %4052 = vmatprep.subr.bf16.mxu1 %v3072_v21  ;;  %v2994_v17 = vld [vmem:[#allocation2 + $0xf8] sm:$0xff]  ;;  %v3119_v21 = vld [vmem:[#allocation2 + $0x4e0] sm:$0xff] }
 0x4dd   :  { %4012 = vmatpush1.bf16.msra.mxu0 %v3007_v22  ;;  %4053 = vmatpush1.bf16.msra.mxu1 %v3071_v39  ;;  %v2993_v22 = vld [vmem:[#allocation2 + $0xf0] sm:$0xff]  ;;  %v3124_v39 = vld [vmem:[#allocation2 + $0x508] sm:$0xff] }
 0x4de   :  { %4013 = vmatprep.subr.bf16.mxu0 %v3012_v61  ;;  %4054 = vmatprep.subr.bf16.mxu1 %v3076_v24  ;;  %v2998_v61 = vld [vmem:[#allocation2 + $0x118] sm:$0xff]  ;;  %v3123_v24 = vld [vmem:[#allocation2 + $0x500] sm:$0xff] }
 0x4e1   :  { %4014 = vmatpush1.bf16.msra.mxu0 %v3011_v20  ;;  %4055 = vmatpush1.bf16.msra.mxu1 %v3075_v23  ;;  %v2997_v20 = vld [vmem:[#allocation2 + $0x110] sm:$0xff]  ;;  %v3128_v23 = vld [vmem:[#allocation2 + $0x528] sm:$0xff] }
 0x4e2   :  { %4015 = vmatprep.subr.bf16.mxu0 %v3016_v25  ;;  %4056 = vmatprep.subr.bf16.mxu1 %v3080_v60  ;;  %v3002_v25 = vld [vmem:[#allocation2 + $0x138] sm:$0xff]  ;;  %v3127_v60 = vld [vmem:[#allocation2 + $0x520] sm:$0xff] }
 0x4e5   :  { %4016 = vmatpush1.bf16.msra.mxu0 %v3015_v26  ;;  %4057 = vmatpush1.bf16.msra.mxu1 %v3079_v28  ;;  %v3001_v26 = vld [vmem:[#allocation2 + $0x130] sm:$0xff]  ;;  %v3132_v28 = vld [vmem:[#allocation2 + $0x548] sm:$0xff] }
 0x4e6   :  { %4017 = vmatprep.subr.bf16.mxu0 %v3020_v29  ;;  %4058 = vmatprep.subr.bf16.mxu1 %v3084_v30  ;;  %v3006_v29 = vld [vmem:[#allocation2 + $0x158] sm:$0xff]  ;;  %v3131_v30 = vld [vmem:[#allocation2 + $0x540] sm:$0xff] }
 0x4e9   :  { %4018 = vmatpush1.bf16.msra.mxu0 %v3019_v32  ;;  %4059 = vmatpush1.bf16.msra.mxu1 %v3083_v42  ;;  %v3005_v32 = vld [vmem:[#allocation2 + $0x150] sm:$0xff]  ;;  %v3136_v42 = vld [vmem:[#allocation2 + $0x568] sm:$0xff] }
 0x4ea   :  { %4019 = vmatprep.subr.bf16.mxu0 %v3024_v43  ;;  %4060 = vmatprep.subr.bf16.mxu1 %v3088_v44  ;;  %v3010_v43 = vld [vmem:[#allocation2 + $0x178] sm:$0xff]  ;;  %v3135_v44 = vld [vmem:[#allocation2 + $0x560] sm:$0xff] }
 0x4ed   :  { %4020 = vmatpush1.bf16.msra.mxu0 %v3023_v48  ;;  %4061 = vmatpush1.bf16.msra.mxu1 %v3087_v52  ;;  %v3009_v48 = vld [vmem:[#allocation2 + $0x170] sm:$0xff]  ;;  %v3139_v52 = vld [vmem:[#allocation2 + $0x580] sm:$0xff] }
 0x4ee   :  { %4071 = vmatprep.subr.bf16.mxu1 %v3092_v55  ;;  %4522 = vmatprep.subr.bf16.mxu0 %v2966_v56  ;;  %v3013_v55 = vld [vmem:[#allocation2 + $0x190] sm:$0xff]  ;;  %v3144_v56 = vld [vmem:[#allocation2 + $0x5a8] sm:$0xff] }
 0x4f0   :  { %4022 = vmatmul.mubr.bf16.vlgmr.msra.gmra.mrb[56].mxu0 %v9578_v58  ;;  %4063 = vmatmul.mubr.bf16.vlgmr.msra.gmra.mrb[56].mxu1 %v9580_v59 }
 0x4f1   :  { %4072 = vmatpush1.bf16.msra.mxu1 %v3091_v62  ;;  %4523 = vmatpush1.bf16.msra.mxu0 %v2965_v1  ;;  %v3143_v62 = vld [vmem:[#allocation2 + $0x5a0] sm:$0xff]  ;;  %v3017_v1 = vld [vmem:[#allocation2 + $0x1b0] sm:$0xff] }
 0x4f2   :  { %4073 = vmatprep.subr.bf16.mxu1 %v3096_v3  ;;  %4524 = vmatprep.subr.bf16.mxu0 %v2970_v34  ;;  %v3148_v3 = vld [vmem:[#allocation2 + $0x5c8] sm:$0xff]  ;;  %v3022_v34 = vld [vmem:[#allocation2 + $0x1d8] sm:$0xff] }
 0x4f3   :  { %4554 = vmatprep.mubr.bf16.mxu0 %v9557_v63  ;;  %4103 = vmatprep.mubr.bf16.mxu1 %v9582_v27  ;;  %v3107_v63 = vld [vmem:[#allocation2 + $0x480] sm:$0xff] }
 0x4f5   :  { %4074 = vmatpush1.bf16.msra.mxu1 %v3095_v31  ;;  %4525 = vmatpush1.bf16.msra.mxu0 %v2969_v2  ;;  %v9589_v31 = vsub.s32 4, %v8365_v7  ;;  %v3147_v2 = vld [vmem:[#allocation2 + $0x5c0] sm:$0xff] }
 0x4f6   :  { %4075 = vmatprep.subr.bf16.mxu1 %v3100_v9  ;;  %4526 = vmatprep.subr.bf16.mxu0 %v2974_v53  ;;  %v3021_v9 = vld [vmem:[#allocation2 + $0x1d0] sm:$0xff]  ;;  %v3152_v53 = vld [vmem:[#allocation2 + $0x5e8] sm:$0xff] }
 0x4f9   :  { %4076 = vmatpush1.bf16.msra.mxu1 %v3099_v4  ;;  %4527 = vmatpush1.bf16.msra.mxu0 %v2973_v13  ;;  %v3026_v4 = vld [vmem:[#allocation2 + $0x1f8] sm:$0xff]  ;;  %v9592_v13 = vsub.s32 7, %v8365_v7 }
 0x4fa   :  { %4077 = vmatprep.subr.bf16.mxu1 %v3104_v33  ;;  %4528 = vmatprep.subr.bf16.mxu0 %v2978_v40  ;;  %v2832_v33 = vrot.slane %v9551_v54, %v9589_v31  ;;  %v3151_v40 = vld [vmem:[#allocation2 + $0x5e0] sm:$0xff] }
 0x4fd   :  { %4078 = vmatpush1.bf16.msra.mxu1 %v3103_v38  ;;  %4529 = vmatpush1.bf16.msra.mxu0 %v2977_v8  ;;  %v3025_v38 = vld [vmem:[#allocation2 + $0x1f0] sm:$0xff]  ;;  %v3156_v8 = vld [vmem:[#allocation2 + $0x608] sm:$0xff] }
 0x4fe   :  { %4079 = vmatprep.subr.bf16.mxu1 %v3108_v5  ;;  %4530 = vmatprep.subr.bf16.mxu0 %v2982_v37  ;;  %v3030_v5 = vld [vmem:[#allocation2 + $0x218] sm:$0xff]  ;;  %v2844_v37 = vrot.slane %v9551_v54, %v9592_v13 }
 0x501   :  { %4080 = vmatpush1.bf16.msra.mxu1 %v3107_v63  ;;  %4531 = vmatpush1.bf16.msra.mxu0 %v2981_v35  ;;  %v9598_v63 = vpack.c.bf16 %v2832_v33, %v2832_v33  ;;  %v3155_v35 = vld [vmem:[#allocation2 + $0x600] sm:$0xff] }
 0x502   :  { %4081 = vmatprep.subr.bf16.mxu1 %v3112_v11  ;;  %4532 = vmatprep.subr.bf16.mxu0 %v2986_v12  ;;  %v3029_v11 = vld [vmem:[#allocation2 + $0x210] sm:$0xff]  ;;  %v3160_v12 = vld [vmem:[#allocation2 + $0x628] sm:$0xff]  ;;  %v3199_v33 = vld [vmem:[#allocation2 + $0x760] sm:$0xff] }
 0x505   :  { %4082 = vmatpush1.bf16.msra.mxu1 %v3111_v14  ;;  %4533 = vmatpush1.bf16.msra.mxu0 %v2985_v6  ;;  %v3034_v14 = vld [vmem:[#allocation2 + $0x238] sm:$0xff]  ;;  %v9600_v6 = vpack.c.bf16 %v2844_v37, %v2844_v37  ;;  %v3077_v37 = vld [vmem:[#allocation2 + $0x390] sm:$0xff] }
 0x506   :  { %4083 = vmatprep.subr.bf16.mxu1 %v3116_v15  ;;  %4534 = vmatprep.subr.bf16.mxu0 %v2990_v16  ;;  %v3159_v15 = vld [vmem:[#allocation2 + $0x620] sm:$0xff]  ;;  %v3033_v16 = vld [vmem:[#allocation2 + $0x230] sm:$0xff] }
 0x509   :  { %4084 = vmatpush1.bf16.msra.mxu1 %v3115_v18  ;;  %4535 = vmatpush1.bf16.msra.mxu0 %v2989_v19  ;;  %v3164_v18 = vld [vmem:[#allocation2 + $0x648] sm:$0xff]  ;;  %v3038_v19 = vld [vmem:[#allocation2 + $0x258] sm:$0xff] }
 0x50a   :  { %4085 = vmatprep.subr.bf16.mxu1 %v3120_v10  ;;  %4536 = vmatprep.subr.bf16.mxu0 %v2994_v17  ;;  %v3163_v10 = vld [vmem:[#allocation2 + $0x640] sm:$0xff]  ;;  %v3168_v17 = vld [vmem:[#allocation2 + $0x668] sm:$0xff] }
 0x50d   :  { %4086 = vmatpush1.bf16.msra.mxu1 %v3119_v21  ;;  %4537 = vmatpush1.bf16.msra.mxu0 %v2993_v22  ;;  %v3042_v21 = vld [vmem:[#allocation2 + $0x278] sm:$0xff]  ;;  %v3167_v22 = vld [vmem:[#allocation2 + $0x660] sm:$0xff] }
 0x50e   :  { %4087 = vmatprep.subr.bf16.mxu1 %v3124_v39  ;;  %4538 = vmatprep.subr.bf16.mxu0 %v2998_v61  ;;  %v3041_v39 = vld [vmem:[#allocation2 + $0x270] sm:$0xff]  ;;  %v3172_v61 = vld [vmem:[#allocation2 + $0x688] sm:$0xff] }
 0x511   :  { %4088 = vmatpush1.bf16.msra.mxu1 %v3123_v24  ;;  %4539 = vmatpush1.bf16.msra.mxu0 %v2997_v20  ;;  %v3046_v24 = vld [vmem:[#allocation2 + $0x298] sm:$0xff]  ;;  %v3045_v20 = vld [vmem:[#allocation2 + $0x290] sm:$0xff] }
 0x512   :  { %4089 = vmatprep.subr.bf16.mxu1 %v3128_v23  ;;  %4540 = vmatprep.subr.bf16.mxu0 %v3002_v25  ;;  %v3176_v23 = vld [vmem:[#allocation2 + $0x6a8] sm:$0xff]  ;;  %v3050_v25 = vld [vmem:[#allocation2 + $0x2b8] sm:$0xff] }
 0x515   :  { %4090 = vmatpush1.bf16.msra.mxu1 %v3127_v60  ;;  %4541 = vmatpush1.bf16.msra.mxu0 %v3001_v26  ;;  %v3175_v60 = vld [vmem:[#allocation2 + $0x6a0] sm:$0xff]  ;;  %v3049_v26 = vld [vmem:[#allocation2 + $0x2b0] sm:$0xff] }
 0x516   :  { %4091 = vmatprep.subr.bf16.mxu1 %v3132_v28  ;;  %4542 = vmatprep.subr.bf16.mxu0 %v3006_v29  ;;  %v3180_v28 = vld [vmem:[#allocation2 + $0x6c8] sm:$0xff]  ;;  %v3054_v29 = vld [vmem:[#allocation2 + $0x2d8] sm:$0xff] }
 0x519   :  { %4092 = vmatpush1.bf16.msra.mxu1 %v3131_v30  ;;  %4543 = vmatpush1.bf16.msra.mxu0 %v3005_v32  ;;  %v3179_v30 = vld [vmem:[#allocation2 + $0x6c0] sm:$0xff]  ;;  %v3053_v32 = vld [vmem:[#allocation2 + $0x2d0] sm:$0xff] }
 0x51a   :  { %4093 = vmatprep.subr.bf16.mxu1 %v3136_v42  ;;  %4544 = vmatprep.subr.bf16.mxu0 %v3010_v43  ;;  %v3184_v42 = vld [vmem:[#allocation2 + $0x6e8] sm:$0xff]  ;;  %v3058_v43 = vld [vmem:[#allocation2 + $0x2f8] sm:$0xff] }
 0x51d   :  { %4094 = vmatpush1.bf16.msra.mxu1 %v3135_v44  ;;  %4545 = vmatpush1.bf16.msra.mxu0 %v3009_v48  ;;  %v3183_v44 = vld [vmem:[#allocation2 + $0x6e0] sm:$0xff]  ;;  %v3057_v48 = vld [vmem:[#allocation2 + $0x2f0] sm:$0xff] }
 0x51e   :  { %4095 = vmatprep.subr.bf16.mxu1 %v3140_v50  ;;  %4546 = vmatprep.subr.bf16.mxu0 %v3014_v51  ;;  %v3188_v50 = vld [vmem:[#allocation2 + $0x708] sm:$0xff]  ;;  %v3062_v51 = vld [vmem:[#allocation2 + $0x318] sm:$0xff] }
 0x521   :  { %4096 = vmatpush1.bf16.msra.mxu1 %v3139_v52  ;;  %4547 = vmatpush1.bf16.msra.mxu0 %v3013_v55  ;;  %v3187_v52 = vld [vmem:[#allocation2 + $0x700] sm:$0xff]  ;;  %v3061_v55 = vld [vmem:[#allocation2 + $0x310] sm:$0xff] }
 0x522   :  { %4097 = vmatprep.subr.bf16.mxu1 %v3144_v56  ;;  %4548 = vmatprep.subr.bf16.mxu0 %v3018_v57  ;;  %v3192_v56 = vld [vmem:[#allocation2 + $0x728] sm:$0xff]  ;;  %v3066_v57 = vld [vmem:[#allocation2 + $0x338] sm:$0xff] }
 0x525   :  { %4098 = vmatpush1.bf16.msra.mxu1 %v3143_v62  ;;  %4549 = vmatpush1.bf16.msra.mxu0 %v3017_v1  ;;  %v3191_v62 = vld [vmem:[#allocation2 + $0x720] sm:$0xff]  ;;  %v3065_v1 = vld [vmem:[#allocation2 + $0x330] sm:$0xff] }
 0x526   :  { %4099 = vmatprep.subr.bf16.mxu1 %v3148_v3  ;;  %4550 = vmatprep.subr.bf16.mxu0 %v3022_v34  ;;  %v3196_v3 = vld [vmem:[#allocation2 + $0x748] sm:$0xff]  ;;  %v3070_v34 = vld [vmem:[#allocation2 + $0x358] sm:$0xff] }
 0x529   :  { %4100 = vmatpush1.bf16.msra.mxu1 %v3147_v2  ;;  %4551 = vmatpush1.bf16.msra.mxu0 %v3021_v9  ;;  %v3195_v2 = vld [vmem:[#allocation2 + $0x740] sm:$0xff]  ;;  %v3069_v9 = vld [vmem:[#allocation2 + $0x350] sm:$0xff] }
 0x52a   :  { %4101 = vmatprep.subr.bf16.mxu1 %v3152_v53  ;;  %4552 = vmatprep.subr.bf16.mxu0 %v3026_v4  ;;  %v3200_v53 = vld [vmem:[#allocation2 + $0x768] sm:$0xff]  ;;  %v3074_v4 = vld [vmem:[#allocation2 + $0x378] sm:$0xff] }
 0x52d   :  { %4102 = vmatpush1.bf16.msra.mxu1 %v3151_v40  ;;  %4553 = vmatpush1.bf16.msra.mxu0 %v3025_v38  ;;  %v3073_v40 = vld [vmem:[#allocation2 + $0x370] sm:$0xff]  ;;  %v3204_v38 = vld [vmem:[#allocation2 + $0x788] sm:$0xff] }
 0x52e   :  { %4112 = vmatprep.subr.bf16.mxu1 %v3156_v8  ;;  %4563 = vmatprep.subr.bf16.mxu0 %v3030_v5  ;;  %v3078_v8 = vld [vmem:[#allocation2 + $0x398] sm:$0xff]  ;;  %v3203_v5 = vld [vmem:[#allocation2 + $0x780] sm:$0xff] }
 0x530   :  { %4555 = vmatmul.mubr.bf16.vlgmr.msra.gmra.mrb[60].mxu0 %v9578_v58  ;;  %4104 = vmatmul.mubr.bf16.vlgmr.msra.gmra.mrb[56].mxu1 %v9598_v63  ;;  %v3037_v58 = vld [vmem:[#allocation2 + $0x250] sm:$0xff] }
 0x531   :  { %4113 = vmatpush1.bf16.msra.mxu1 %v3155_v35  ;;  %4564 = vmatpush1.bf16.msra.mxu0 %v3029_v11  ;;  %v3208_v35 = vld [vmem:[#allocation2 + $0x7a8] sm:$0xff]  ;;  %v3082_v11 = vld [vmem:[#allocation2 + $0x3b8] sm:$0xff] }
 0x532   :  { %4114 = vmatprep.subr.bf16.mxu1 %v3160_v12  ;;  %4565 = vmatprep.subr.bf16.mxu0 %v3034_v14  ;;  %v3207_v12 = vld [vmem:[#allocation2 + $0x7a0] sm:$0xff]  ;;  %v3081_v14 = vld [vmem:[#allocation2 + $0x3b0] sm:$0xff] }
 0x533   :  { %4144 = vmatprep.mubr.bf16.mxu1 %v9600_v6  ;;  %4595 = vmatprep.mubr.bf16.mxu0 %v9559_v49  ;;  %v3171_v49 = vld [vmem:[#allocation2 + $0x680] sm:$0xff] }
 0x535   :  { %4115 = vmatpush1.bf16.msra.mxu1 %v3159_v15  ;;  %4566 = vmatpush1.bf16.msra.mxu0 %v3033_v16  ;;  %v3212_v15 = vld [vmem:[#allocation2 + $0x7c8] sm:$0xff]  ;;  %v3086_v16 = vld [vmem:[#allocation2 + $0x3d8] sm:$0xff] }
 0x536   :  { %4116 = vmatprep.subr.bf16.mxu1 %v3164_v18  ;;  %4567 = vmatprep.subr.bf16.mxu0 %v3038_v19  ;;  %v9607_v18 = vsub.s32 6, %v8365_v7  ;;  %v3211_v19 = vld [vmem:[#allocation2 + $0x7c0] sm:$0xff]  ;;  %v3089_v7 = vld [vmem:[#allocation2 + $0x3f0] sm:$0xff] }
 0x539   :  { %4117 = vmatpush1.bf16.msra.mxu1 %v3163_v10  ;;  %4568 = vmatpush1.bf16.msra.mxu0 %v3037_v58  ;;  %v3085_v10 = vld [vmem:[#allocation2 + $0x3d0] sm:$0xff]  ;;  %v3216_v58 = vld [vmem:[#allocation2 + $0x7e8] sm:$0xff] }
 0x53a   :  { %4118 = vmatprep.subr.bf16.mxu1 %v3168_v17  ;;  %4569 = vmatprep.subr.bf16.mxu0 %v3042_v21  ;;  %v3090_v17 = vld [vmem:[#allocation2 + $0x3f8] sm:$0xff]  ;;  %v2840_v21 = vrot.slane %v9551_v54, %v9607_v18  ;;  %v3219_v54 = vld [vmem:[#allocation2 + $0x800] sm:$0xff] }
 0x53d   :  { %4119 = vmatpush1.bf16.msra.mxu1 %v3167_v22  ;;  %4570 = vmatpush1.bf16.msra.mxu0 %v3041_v39  ;;  %v9611_v22 = vld [vmem:[#allocation3 + $0x8] sm:$0xff]  ;;  %v3215_v39 = vld [vmem:[#allocation2 + $0x7e0] sm:$0xff] }
 0x53e   :  { %4120 = vmatprep.subr.bf16.mxu1 %v3172_v61  ;;  %4571 = vmatprep.subr.bf16.mxu0 %v3046_v24  ;;  %v3220_v61 = vld [vmem:[#allocation2 + $0x808] sm:$0xff]  ;;  %v3094_v24 = vld [vmem:[#allocation2 + $0x418] sm:$0xff] }
 0x541   :  { %4121 = vmatpush1.bf16.msra.mxu1 %v3171_v49  ;;  %4572 = vmatpush1.bf16.msra.mxu0 %v3045_v20  ;;  %v2852_v49 = vrot.slane %v9611_v22, %v9546_v46  ;;  %v9615_v20 = vpack.c.bf16 %v2840_v21, %v2840_v21  ;;  %v3259_v21 = vld [vmem:[#allocation2 + $0x940] sm:$0xff] }
 0x542   :  { %4122 = vmatprep.subr.bf16.mxu1 %v3176_v23  ;;  %4573 = vmatprep.subr.bf16.mxu0 %v3050_v25  ;;  %v3093_v23 = vld [vmem:[#allocation2 + $0x410] sm:$0xff]  ;;  %v3224_v25 = vld [vmem:[#allocation2 + $0x828] sm:$0xff] }
 0x545   :  { %4123 = vmatpush1.bf16.msra.mxu1 %v3175_v60  ;;  %4574 = vmatpush1.bf16.msra.mxu0 %v3049_v26  ;;  %v3098_v60 = vld [vmem:[#allocation2 + $0x438] sm:$0xff]  ;;  %v9617_v26 = vpack.c.bf16 %v2852_v49, %v2852_v49  ;;  %v3137_v49 = vld [vmem:[#allocation2 + $0x570] sm:$0xff] }
 0x546   :  { %4124 = vmatprep.subr.bf16.mxu1 %v3180_v28  ;;  %4575 = vmatprep.subr.bf16.mxu0 %v3054_v29  ;;  %v3223_v28 = vld [vmem:[#allocation2 + $0x820] sm:$0xff]  ;;  %v3097_v29 = vld [vmem:[#allocation2 + $0x430] sm:$0xff] }
 0x549   :  { %4125 = vmatpush1.bf16.msra.mxu1 %v3179_v30  ;;  %4576 = vmatpush1.bf16.msra.mxu0 %v3053_v32  ;;  %v3228_v30 = vld [vmem:[#allocation2 + $0x848] sm:$0xff]  ;;  %v3102_v32 = vld [vmem:[#allocation2 + $0x458] sm:$0xff] }
 0x54a   :  { %4126 = vmatprep.subr.bf16.mxu1 %v3184_v42  ;;  %4577 = vmatprep.subr.bf16.mxu0 %v3058_v43  ;;  %v3227_v42 = vld [vmem:[#allocation2 + $0x840] sm:$0xff]  ;;  %v3101_v43 = vld [vmem:[#allocation2 + $0x450] sm:$0xff] }
 0x54d   :  { %4127 = vmatpush1.bf16.msra.mxu1 %v3183_v44  ;;  %4578 = vmatpush1.bf16.msra.mxu0 %v3057_v48  ;;  %v3232_v44 = vld [vmem:[#allocation2 + $0x868] sm:$0xff]  ;;  %v3231_v48 = vld [vmem:[#allocation2 + $0x860] sm:$0xff] }
 0x54e   :  { %4128 = vmatprep.subr.bf16.mxu1 %v3188_v50  ;;  %4579 = vmatprep.subr.bf16.mxu0 %v3062_v51  ;;  %v3105_v50 = vld [vmem:[#allocation2 + $0x470] sm:$0xff]  ;;  %v3236_v51 = vld [vmem:[#allocation2 + $0x888] sm:$0xff] }
 0x551   :  { %4129 = vmatpush1.bf16.msra.mxu1 %v3187_v52  ;;  %4580 = vmatpush1.bf16.msra.mxu0 %v3061_v55  ;;  %v3110_v52 = vld [vmem:[#allocation2 + $0x498] sm:$0xff]  ;;  %v3109_v55 = vld [vmem:[#allocation2 + $0x490] sm:$0xff] }
 0x552   :  { %4130 = vmatprep.subr.bf16.mxu1 %v3192_v56  ;;  %4581 = vmatprep.subr.bf16.mxu0 %v3066_v57  ;;  %v3240_v56 = vld [vmem:[#allocation2 + $0x8a8] sm:$0xff]  ;;  %v3114_v57 = vld [vmem:[#allocation2 + $0x4b8] sm:$0xff] }
 0x555   :  { %4131 = vmatpush1.bf16.msra.mxu1 %v3191_v62  ;;  %4582 = vmatpush1.bf16.msra.mxu0 %v3065_v1  ;;  %v3239_v62 = vld [vmem:[#allocation2 + $0x8a0] sm:$0xff]  ;;  %v3113_v1 = vld [vmem:[#allocation2 + $0x4b0] sm:$0xff] }
 0x556   :  { %4132 = vmatprep.subr.bf16.mxu1 %v3196_v3  ;;  %4583 = vmatprep.subr.bf16.mxu0 %v3070_v34  ;;  %v3244_v34 = vld [vmem:[#allocation2 + $0x8c8] sm:$0xff] }
 0x559   :  { %4133 = vmatpush1.bf16.msra.mxu1 %v3195_v2  ;;  %4584 = vmatpush1.bf16.msra.mxu0 %v3069_v9  ;;  %v3118_v2 = vld [vmem:[#allocation2 + $0x4d8] sm:$0xff] }
 0x55a   :  { %4134 = vmatprep.subr.bf16.mxu1 %v3200_v53  ;;  %4585 = vmatprep.subr.bf16.mxu0 %v3074_v4 }
 0x55d   :  { %4135 = vmatpush1.bf16.msra.mxu1 %v3199_v33  ;;  %4586 = vmatpush1.bf16.msra.mxu0 %v3073_v40  ;;  %v3243_v33 = vld [vmem:[#allocation2 + $0x8c0] sm:$0xff]  ;;  %v3117_v40 = vld [vmem:[#allocation2 + $0x4d0] sm:$0xff] }
 0x55e   :  { %4136 = vmatprep.subr.bf16.mxu1 %v3204_v38  ;;  %4587 = vmatprep.subr.bf16.mxu0 %v3078_v8  ;;  %v3248_v38 = vld [vmem:[#allocation2 + $0x8e8] sm:$0xff]  ;;  %v3122_v8 = vld [vmem:[#allocation2 + $0x4f8] sm:$0xff] }
 0x561   :  { %4137 = vmatpush1.bf16.msra.mxu1 %v3203_v5  ;;  %4588 = vmatpush1.bf16.msra.mxu0 %v3077_v37  ;;  %v3247_v5 = vld [vmem:[#allocation2 + $0x8e0] sm:$0xff]  ;;  %v3121_v37 = vld [vmem:[#allocation2 + $0x4f0] sm:$0xff] }
 0x562   :  { %4138 = vmatprep.subr.bf16.mxu1 %v3208_v35  ;;  %4589 = vmatprep.subr.bf16.mxu0 %v3082_v11  ;;  %v3252_v35 = vld [vmem:[#allocation2 + $0x908] sm:$0xff]  ;;  %v3126_v11 = vld [vmem:[#allocation2 + $0x518] sm:$0xff] }
 0x565   :  { %4139 = vmatpush1.bf16.msra.mxu1 %v3207_v12  ;;  %4590 = vmatpush1.bf16.msra.mxu0 %v3081_v14  ;;  %v3251_v12 = vld [vmem:[#allocation2 + $0x900] sm:$0xff]  ;;  %v3125_v14 = vld [vmem:[#allocation2 + $0x510] sm:$0xff] }
 0x566   :  { %4140 = vmatprep.subr.bf16.mxu1 %v3212_v15  ;;  %4591 = vmatprep.subr.bf16.mxu0 %v3086_v16  ;;  %v3256_v15 = vld [vmem:[#allocation2 + $0x928] sm:$0xff]  ;;  %v3130_v16 = vld [vmem:[#allocation2 + $0x538] sm:$0xff] }
 0x569   :  { %4141 = vmatpush1.bf16.msra.mxu1 %v3211_v19  ;;  %4592 = vmatpush1.bf16.msra.mxu0 %v3085_v10  ;;  %v3255_v19 = vld [vmem:[#allocation2 + $0x920] sm:$0xff]  ;;  %v3129_v10 = vld [vmem:[#allocation2 + $0x530] sm:$0xff] }
 0x56a   :  { %4142 = vmatprep.subr.bf16.mxu1 %v3216_v58  ;;  %4593 = vmatprep.subr.bf16.mxu0 %v3090_v17  ;;  %v3260_v58 = vld [vmem:[#allocation2 + $0x948] sm:$0xff]  ;;  %v3134_v17 = vld [vmem:[#allocation2 + $0x558] sm:$0xff] }
 0x56d   :  { %4143 = vmatpush1.bf16.msra.mxu1 %v3215_v39  ;;  %4594 = vmatpush1.bf16.msra.mxu0 %v3089_v7  ;;  %v3133_v39 = vld [vmem:[#allocation2 + $0x550] sm:$0xff]  ;;  %v3264_v7 = vld [vmem:[#allocation2 + $0x968] sm:$0xff] }
 0x56e   :  { %4153 = vmatprep.subr.bf16.mxu1 %v3220_v61  ;;  %4604 = vmatprep.subr.bf16.mxu0 %v3094_v24  ;;  %v3138_v61 = vld [vmem:[#allocation2 + $0x578] sm:$0xff]  ;;  %v3263_v24 = vld [vmem:[#allocation2 + $0x960] sm:$0xff] }
 0x570   :  { %4145 = vmatmul.mubr.bf16.vlgmr.msra.gmra.mrb[56].mxu1 %v9615_v20  ;;  %4596 = vmatmul.mubr.bf16.vlgmr.msra.gmra.mrb[64].mxu0 %v9580_v59  ;;  %v3106_v59 = vld [vmem:[#allocation2 + $0x478] sm:$0xff] }
 0x571   :  { %4154 = vmatpush1.bf16.msra.mxu1 %v3219_v54  ;;  %4605 = vmatpush1.bf16.msra.mxu0 %v3093_v23  ;;  %v3268_v54 = vld [vmem:[#allocation2 + $0x988] sm:$0xff]  ;;  %v3142_v23 = vld [vmem:[#allocation2 + $0x598] sm:$0xff] }
 0x572   :  { %4155 = vmatprep.subr.bf16.mxu1 %v3224_v25  ;;  %4606 = vmatprep.subr.bf16.mxu0 %v3098_v60  ;;  %v3267_v25 = vld [vmem:[#allocation2 + $0x980] sm:$0xff]  ;;  %v3141_v60 = vld [vmem:[#allocation2 + $0x590] sm:$0xff] }
 0x573   :  { %4185 = vmatprep.mubr.bf16.mxu1 %v9617_v26  ;;  %4636 = vmatprep.mubr.bf16.mxu0 %v9582_v27  ;;  %v3235_v27 = vld [vmem:[#allocation2 + $0x880] sm:$0xff] }
 0x575   :  { %4156 = vmatpush1.bf16.msra.mxu1 %v3223_v28  ;;  %4607 = vmatpush1.bf16.msra.mxu0 %v3097_v29  ;;  %v3272_v28 = vld [vmem:[#allocation2 + $0x9a8] sm:$0xff]  ;;  %v3146_v29 = vld [vmem:[#allocation2 + $0x5b8] sm:$0xff] }
 0x576   :  { %4157 = vmatprep.subr.bf16.mxu1 %v3228_v30  ;;  %4608 = vmatprep.subr.bf16.mxu0 %v3102_v32  ;;  %v3271_v30 = vld [vmem:[#allocation2 + $0x9a0] sm:$0xff]  ;;  %v3145_v32 = vld [vmem:[#allocation2 + $0x5b0] sm:$0xff] }
 0x579   :  { %4158 = vmatpush1.bf16.msra.mxu1 %v3227_v42  ;;  %4609 = vmatpush1.bf16.msra.mxu0 %v3101_v43  ;;  %v3276_v42 = vld [vmem:[#allocation2 + $0x9c8] sm:$0xff]  ;;  %v3150_v43 = vld [vmem:[#allocation2 + $0x5d8] sm:$0xff] }
 0x57a   :  { %4159 = vmatprep.subr.bf16.mxu1 %v3232_v44  ;;  %4610 = vmatprep.subr.bf16.mxu0 %v3106_v59  ;;  %v3275_v44 = vld [vmem:[#allocation2 + $0x9c0] sm:$0xff]  ;;  %v3149_v59 = vld [vmem:[#allocation2 + $0x5d0] sm:$0xff] }
 0x57d   :  { %4160 = vmatpush1.bf16.msra.mxu1 %v3231_v48  ;;  %4611 = vmatpush1.bf16.msra.mxu0 %v3105_v50  ;;  %v3280_v48 = vld [vmem:[#allocation2 + $0x9e8] sm:$0xff]  ;;  %v3154_v50 = vld [vmem:[#allocation2 + $0x5f8] sm:$0xff] }
 0x57e   :  { %4161 = vmatprep.subr.bf16.mxu1 %v3236_v51  ;;  %4612 = vmatprep.subr.bf16.mxu0 %v3110_v52  ;;  %v2848_v51 = vrot.slane %v9611_v22, %v9564_v36  ;;  %v3279_v52 = vld [vmem:[#allocation2 + $0x9e0] sm:$0xff] }
 0x581   :  { %4162 = vmatpush1.bf16.msra.mxu1 %v3235_v27  ;;  %4613 = vmatpush1.bf16.msra.mxu0 %v3109_v55  ;;  %v3153_v27 = vld [vmem:[#allocation2 + $0x5f0] sm:$0xff]  ;;  %v3284_v55 = vld [vmem:[#allocation2 + $0xa08] sm:$0xff] }
 0x582   :  { %4163 = vmatprep.subr.bf16.mxu1 %v3240_v56  ;;  %4614 = vmatprep.subr.bf16.mxu0 %v3114_v57  ;;  %v3158_v56 = vld [vmem:[#allocation2 + $0x618] sm:$0xff]  ;;  %v2860_v57 = vrot.slane %v9611_v22, %v9549_v47 }
 0x583   :  { %v9623_v3 = vpop.f32.mrb[52].mxu0  ;;  %v9625_v9 = vpop.f32.mrb[52].mxu1 }
 0x584   :  { %v9627_v53 = vpop.f32.mrb[53].mxu0  ;;  %v9629_v4 = vpop.f32.mrb[53].mxu1 }
 0x585   :  { %4164 = vmatpush1.bf16.msra.mxu1 %v3239_v62  ;;  %4615 = vmatpush1.bf16.msra.mxu0 %v3113_v1  ;;  %v9635_v62 = vpack.c.bf16 %v2848_v51, %v2848_v51  ;;  %v3283_v1 = vld [vmem:[#allocation2 + $0xa00] sm:$0xff] }
 0x586   :  { %4165 = vmatprep.subr.bf16.mxu1 %v3244_v34  ;;  %4616 = vmatprep.subr.bf16.mxu0 %v3118_v2  ;;  %v3157_v34 = vld [vmem:[#allocation2 + $0x610] sm:$0xff]  ;;  %v3288_v2 = vld [vmem:[#allocation2 + $0xa28] sm:$0xff]  ;;  %v3319_v51 = vld [vmem:[#allocation2 + $0xb20] sm:$0xff] }
 0x589   :  { %4166 = vmatpush1.bf16.msra.mxu1 %v3243_v33  ;;  %4617 = vmatpush1.bf16.msra.mxu0 %v3117_v40  ;;  %v3162_v33 = vld [vmem:[#allocation2 + $0x638] sm:$0xff]  ;;  %v9637_v40 = vpack.c.bf16 %v2860_v57, %v2860_v57  ;;  %v3197_v57 = vld [vmem:[#allocation2 + $0x750] sm:$0xff] }
 0x58a   :  { %4167 = vmatprep.subr.bf16.mxu1 %v3248_v38  ;;  %4618 = vmatprep.subr.bf16.mxu0 %v3122_v8  ;;  %v3287_v38 = vld [vmem:[#allocation2 + $0xa20] sm:$0xff]  ;;  %v3161_v8 = vld [vmem:[#allocation2 + $0x630] sm:$0xff] }
 0x58d   :  { %4168 = vmatpush1.bf16.msra.mxu1 %v3247_v5  ;;  %4619 = vmatpush1.bf16.msra.mxu0 %v3121_v37  ;;  %v3292_v5 = vld [vmem:[#allocation2 + $0xa48] sm:$0xff]  ;;  %v3166_v37 = vld [vmem:[#allocation2 + $0x658] sm:$0xff] }
 0x58e   :  { %4169 = vmatprep.subr.bf16.mxu1 %v3252_v35  ;;  %4620 = vmatprep.subr.bf16.mxu0 %v3126_v11  ;;  %v3291_v35 = vld [vmem:[#allocation2 + $0xa40] sm:$0xff]  ;;  %v3165_v11 = vld [vmem:[#allocation2 + $0x650] sm:$0xff] }
 0x591   :  { %4170 = vmatpush1.bf16.msra.mxu1 %v3251_v12  ;;  %4621 = vmatpush1.bf16.msra.mxu0 %v3125_v14  ;;  %v3296_v12 = vld [vmem:[#allocation2 + $0xa68] sm:$0xff]  ;;  %v3295_v14 = vld [vmem:[#allocation2 + $0xa60] sm:$0xff] }
 0x592   :  { %4171 = vmatprep.subr.bf16.mxu1 %v3256_v15  ;;  %4622 = vmatprep.subr.bf16.mxu0 %v3130_v16  ;;  %v3169_v15 = vld [vmem:[#allocation2 + $0x670] sm:$0xff]  ;;  %v3300_v16 = vld [vmem:[#allocation2 + $0xa88] sm:$0xff] }
 0x595   :  { %4172 = vmatpush1.bf16.msra.mxu1 %v3255_v19  ;;  %4623 = vmatpush1.bf16.msra.mxu0 %v3129_v10  ;;  %v3174_v19 = vld [vmem:[#allocation2 + $0x698] sm:$0xff]  ;;  %v3173_v10 = vld [vmem:[#allocation2 + $0x690] sm:$0xff] }
 0x596   :  { %4173 = vmatprep.subr.bf16.mxu1 %v3260_v58  ;;  %4624 = vmatprep.subr.bf16.mxu0 %v3134_v17  ;;  %v3304_v58 = vld [vmem:[#allocation2 + $0xaa8] sm:$0xff]  ;;  %v3178_v17 = vld [vmem:[#allocation2 + $0x6b8] sm:$0xff] }
 0x599   :  { %4174 = vmatpush1.bf16.msra.mxu1 %v3259_v21  ;;  %4625 = vmatpush1.bf16.msra.mxu0 %v3133_v39  ;;  %v3303_v21 = vld [vmem:[#allocation2 + $0xaa0] sm:$0xff]  ;;  %v3177_v39 = vld [vmem:[#allocation2 + $0x6b0] sm:$0xff] }
 0x59a   :  { %4175 = vmatprep.subr.bf16.mxu1 %v3264_v7  ;;  %4626 = vmatprep.subr.bf16.mxu0 %v3138_v61  ;;  %v3308_v61 = vld [vmem:[#allocation2 + $0xac8] sm:$0xff] }
 0x59d   :  { %4176 = vmatpush1.bf16.msra.mxu1 %v3263_v24  ;;  %4627 = vmatpush1.bf16.msra.mxu0 %v3137_v49  ;;  %v3182_v24 = vld [vmem:[#allocation2 + $0x6d8] sm:$0xff] }
 0x59e   :  { %4177 = vmatprep.subr.bf16.mxu1 %v3268_v54  ;;  %4628 = vmatprep.subr.bf16.mxu0 %v3142_v23 }
 0x5a1   :  { %4178 = vmatpush1.bf16.msra.mxu1 %v3267_v25  ;;  %4629 = vmatpush1.bf16.msra.mxu0 %v3141_v60 }
 0x5a2   :  { %4179 = vmatprep.subr.bf16.mxu1 %v3272_v28  ;;  %4630 = vmatprep.subr.bf16.mxu0 %v3146_v29  ;;  %v3307_v28 = vld [vmem:[#allocation2 + $0xac0] sm:$0xff]  ;;  %v3181_v29 = vld [vmem:[#allocation2 + $0x6d0] sm:$0xff] }
 0x5a5   :  { %4180 = vmatpush1.bf16.msra.mxu1 %v3271_v30  ;;  %4631 = vmatpush1.bf16.msra.mxu0 %v3145_v32  ;;  %v3312_v30 = vld [vmem:[#allocation2 + $0xae8] sm:$0xff]  ;;  %v3186_v32 = vld [vmem:[#allocation2 + $0x6f8] sm:$0xff] }
 0x5a6   :  { %4181 = vmatprep.subr.bf16.mxu1 %v3276_v42  ;;  %4632 = vmatprep.subr.bf16.mxu0 %v3150_v43  ;;  %v3185_v42 = vld [vmem:[#allocation2 + $0x6f0] sm:$0xff]  ;;  %v3316_v43 = vld [vmem:[#allocation2 + $0xb08] sm:$0xff] }
 0x5a9   :  { %4182 = vmatpush1.bf16.msra.mxu1 %v3275_v44  ;;  %4633 = vmatpush1.bf16.msra.mxu0 %v3149_v59  ;;  %v3190_v44 = vld [vmem:[#allocation2 + $0x718] sm:$0xff]  ;;  %v3189_v59 = vld [vmem:[#allocation2 + $0x710] sm:$0xff] }
 0x5aa   :  { %4183 = vmatprep.subr.bf16.mxu1 %v3280_v48  ;;  %4634 = vmatprep.subr.bf16.mxu0 %v3154_v50  ;;  %v3320_v48 = vld [vmem:[#allocation2 + $0xb28] sm:$0xff]  ;;  %v3194_v50 = vld [vmem:[#allocation2 + $0x738] sm:$0xff] }
 0x5ad   :  { %4184 = vmatpush1.bf16.msra.mxu1 %v3279_v52  ;;  %4635 = vmatpush1.bf16.msra.mxu0 %v3153_v27  ;;  %v3193_v52 = vld [vmem:[#allocation2 + $0x730] sm:$0xff]  ;;  %v3324_v27 = vld [vmem:[#allocation2 + $0xb48] sm:$0xff] }
 0x5ae   :  { %4194 = vmatprep.subr.bf16.mxu1 %v3284_v55  ;;  %4645 = vmatprep.subr.bf16.mxu0 %v3158_v56  ;;  %v3198_v55 = vld [vmem:[#allocation2 + $0x758] sm:$0xff]  ;;  %v3323_v56 = vld [vmem:[#allocation2 + $0xb40] sm:$0xff] }
 0x5b0   :  { %4186 = vmatmul.mubr.bf16.vlgmr.msra.gmra.mrb[56].mxu1 %v9635_v62  ;;  %4637 = vmatmul.mubr.bf16.vlgmr.msra.gmra.mrb[64].mxu0 %v9598_v63  ;;  %v3170_v63 = vld [vmem:[#allocation2 + $0x678] sm:$0xff] }
 0x5b1   :  { %4195 = vmatpush1.bf16.msra.mxu1 %v3283_v1  ;;  %4646 = vmatpush1.bf16.msra.mxu0 %v3157_v34  ;;  %v3328_v1 = vld [vmem:[#allocation2 + $0xb68] sm:$0xff]  ;;  %v3202_v34 = vld [vmem:[#allocation2 + $0x778] sm:$0xff] }
 0x5b2   :  { %4196 = vmatprep.subr.bf16.mxu1 %v3288_v2  ;;  %4647 = vmatprep.subr.bf16.mxu0 %v3162_v33  ;;  %v3327_v2 = vld [vmem:[#allocation2 + $0xb60] sm:$0xff]  ;;  %v3201_v33 = vld [vmem:[#allocation2 + $0x770] sm:$0xff] }
 0x5b3   :  { %4226 = vmatprep.mubr.bf16.mxu1 %v9637_v40  ;;  %4677 = vmatprep.mubr.bf16.mxu0 %v9600_v6  ;;  %v3299_v6 = vld [vmem:[#allocation2 + $0xa80] sm:$0xff] }
 0x5b5   :  { %4197 = vmatpush1.bf16.msra.mxu1 %v3287_v38  ;;  %4648 = vmatpush1.bf16.msra.mxu0 %v3161_v8  ;;  %v3332_v38 = vld [vmem:[#allocation2 + $0xb88] sm:$0xff]  ;;  %v3206_v8 = vld [vmem:[#allocation2 + $0x798] sm:$0xff] }
 0x5b6   :  { %4198 = vmatprep.subr.bf16.mxu1 %v3292_v5  ;;  %4649 = vmatprep.subr.bf16.mxu0 %v3166_v37  ;;  %v3331_v5 = vld [vmem:[#allocation2 + $0xb80] sm:$0xff]  ;;  %v3205_v37 = vld [vmem:[#allocation2 + $0x790] sm:$0xff] }
 0x5b9   :  { %4199 = vmatpush1.bf16.msra.mxu1 %v3291_v35  ;;  %4650 = vmatpush1.bf16.msra.mxu0 %v3165_v11  ;;  %v3336_v35 = vld [vmem:[#allocation2 + $0xba8] sm:$0xff]  ;;  %v3210_v11 = vld [vmem:[#allocation2 + $0x7b8] sm:$0xff] }
 0x5ba   :  { %4200 = vmatprep.subr.bf16.mxu1 %v3296_v12  ;;  %4651 = vmatprep.subr.bf16.mxu0 %v3170_v63  ;;  %v3335_v12 = vld [vmem:[#allocation2 + $0xba0] sm:$0xff]  ;;  %v3209_v63 = vld [vmem:[#allocation2 + $0x7b0] sm:$0xff] }
 0x5bd   :  { %4201 = vmatpush1.bf16.msra.mxu1 %v3295_v14  ;;  %4652 = vmatpush1.bf16.msra.mxu0 %v3169_v15  ;;  %v3340_v14 = vld [vmem:[#allocation2 + $0xbc8] sm:$0xff]  ;;  %v3214_v15 = vld [vmem:[#allocation2 + $0x7d8] sm:$0xff] }
 0x5be   :  { %4202 = vmatprep.subr.bf16.mxu1 %v3300_v16  ;;  %4653 = vmatprep.subr.bf16.mxu0 %v3174_v19  ;;  %v3339_v16 = vld [vmem:[#allocation2 + $0xbc0] sm:$0xff]  ;;  %v3213_v19 = vld [vmem:[#allocation2 + $0x7d0] sm:$0xff] }
 0x5c1   :  { %4203 = vmatpush1.bf16.msra.mxu1 %v3299_v6  ;;  %4654 = vmatpush1.bf16.msra.mxu0 %v3173_v10  ;;  %v3344_v6 = vld [vmem:[#allocation2 + $0xbe8] sm:$0xff]  ;;  %v3218_v10 = vld [vmem:[#allocation2 + $0x7f8] sm:$0xff] }
 0x5c2   :  { %4204 = vmatprep.subr.bf16.mxu1 %v3304_v58  ;;  %4655 = vmatprep.subr.bf16.mxu0 %v3178_v17  ;;  %v2856_v58 = vrot.slane %v9611_v22, %v9567_v41  ;;  %v3343_v17 = vld [vmem:[#allocation2 + $0xbe0] sm:$0xff] }
 0x5c3   :  { %v4023_v7 = vpop.f32.mrb[56].mxu0 }
 0x5c4   :  { %v9644_v49 = vadd.f32 %v4023_v7, %v9623_v3  ;;  %v4025_v54 = vpop.f32.mrb[57].mxu0  ;;  %v3311_v3 = vld [vmem:[#allocation2 + $0xae0] sm:$0xff]  ;;  %v3222_v7 = vld [vmem:[#allocation2 + $0x818] sm:$0xff] }
 0x5c5   :  { %v9647_v23 = vadd.f32 %v4025_v54, %v9627_v53  ;;  %v4027_v25 = vpop.f32.mrb[58].mxu0  ;;  %4205 = vmatpush1.bf16.msra.mxu1 %v3303_v21  ;;  %4656 = vmatpush1.bf16.msra.mxu0 %v3177_v39  ;;  %v3315_v53 = vld [vmem:[#allocation2 + $0xb00] sm:$0xff]  ;;  %v3217_v21 = vld [vmem:[#allocation2 + $0x7f0] sm:$0xff]  ;;  %v3348_v39 = vld [vmem:[#allocation2 + $0xc08] sm:$0xff] }
 0x5c6   :  { %v4028_v60 = vpop.f32.mrb[59].mxu0  ;;  %4206 = vmatprep.subr.bf16.mxu1 %v3308_v61  ;;  %4657 = vmatprep.subr.bf16.mxu0 %v3182_v24  ;;  %v2868_v61 = vrot.slane %v9611_v22, %v9570_v45  ;;  %v9653_v24 = vpack.c.bf16 %v2856_v58, %v2856_v58  ;;  %v3347_v54 = vld [vmem:[#allocation2 + $0xc00] sm:$0xff]  ;;  %v3221_v25 = vld [vmem:[#allocation2 + $0x810] sm:$0xff] }
 0x5c7   :  { %v3352_v60 = vld [vmem:[#allocation2 + $0xc28] sm:$0xff]  ;;  %v3383_v58 = vld [vmem:[#allocation2 + $0xd20] sm:$0xff] }
 0x5c9   :  { %4207 = vmatpush1.bf16.msra.mxu1 %v3307_v28  ;;  %4658 = vmatpush1.bf16.msra.mxu0 %v3181_v29  ;;  %v3226_v28 = vld [vmem:[#allocation2 + $0x838] sm:$0xff]  ;;  %v9655_v29 = vpack.c.bf16 %v2868_v61, %v2868_v61  ;;  %v3261_v61 = vld [vmem:[#allocation2 + $0x950] sm:$0xff] }
 0x5ca   :  { %4208 = vmatprep.subr.bf16.mxu1 %v3312_v30  ;;  %4659 = vmatprep.subr.bf16.mxu0 %v3186_v32  ;;  %v3351_v30 = vld [vmem:[#allocation2 + $0xc20] sm:$0xff]  ;;  %v3225_v32 = vld [vmem:[#allocation2 + $0x830] sm:$0xff] }
 0x5cd   :  { %4209 = vmatpush1.bf16.msra.mxu1 %v3311_v3  ;;  %4660 = vmatpush1.bf16.msra.mxu0 %v3185_v42  ;;  %v3356_v3 = vld [vmem:[#allocation2 + $0xc48] sm:$0xff]  ;;  %v3230_v42 = vld [vmem:[#allocation2 + $0x858] sm:$0xff] }
 0x5ce   :  { %4210 = vmatprep.subr.bf16.mxu1 %v3316_v43  ;;  %4661 = vmatprep.subr.bf16.mxu0 %v3190_v44  ;;  %v3355_v43 = vld [vmem:[#allocation2 + $0xc40] sm:$0xff]  ;;  %v3229_v44 = vld [vmem:[#allocation2 + $0x850] sm:$0xff] }
 0x5d1   :  { %4211 = vmatpush1.bf16.msra.mxu1 %v3315_v53  ;;  %4662 = vmatpush1.bf16.msra.mxu0 %v3189_v59  ;;  %v3360_v53 = vld [vmem:[#allocation2 + $0xc68] sm:$0xff]  ;;  %v3359_v59 = vld [vmem:[#allocation2 + $0xc60] sm:$0xff] }
 0x5d2   :  { %4212 = vmatprep.subr.bf16.mxu1 %v3320_v48  ;;  %4663 = vmatprep.subr.bf16.mxu0 %v3194_v50  ;;  %v3233_v48 = vld [vmem:[#allocation2 + $0x870] sm:$0xff]  ;;  %v3364_v50 = vld [vmem:[#allocation2 + $0xc88] sm:$0xff] }
 0x5d5   :  { %4213 = vmatpush1.bf16.msra.mxu1 %v3319_v51  ;;  %4664 = vmatpush1.bf16.msra.mxu0 %v3193_v52  ;;  %v3238_v51 = vld [vmem:[#allocation2 + $0x898] sm:$0xff]  ;;  %v3237_v52 = vld [vmem:[#allocation2 + $0x890] sm:$0xff] }
 0x5d6   :  { %4214 = vmatprep.subr.bf16.mxu1 %v3324_v27  ;;  %4665 = vmatprep.subr.bf16.mxu0 %v3198_v55  ;;  %v3368_v27 = vld [vmem:[#allocation2 + $0xca8] sm:$0xff]  ;;  %v3242_v55 = vld [vmem:[#allocation2 + $0x8b8] sm:$0xff] }
 0x5d9   :  { %4215 = vmatpush1.bf16.msra.mxu1 %v3323_v56  ;;  %4666 = vmatpush1.bf16.msra.mxu0 %v3197_v57  ;;  %v3367_v56 = vld [vmem:[#allocation2 + $0xca0] sm:$0xff]  ;;  %v3241_v57 = vld [vmem:[#allocation2 + $0x8b0] sm:$0xff] }
 0x5da   :  { %4216 = vmatprep.subr.bf16.mxu1 %v3328_v1  ;;  %4667 = vmatprep.subr.bf16.mxu0 %v3202_v34  ;;  %v3372_v34 = vld [vmem:[#allocation2 + $0xcc8] sm:$0xff] }
 0x5dd   :  { %4217 = vmatpush1.bf16.msra.mxu1 %v3327_v2  ;;  %4668 = vmatpush1.bf16.msra.mxu0 %v3201_v33  ;;  %v3246_v2 = vld [vmem:[#allocation2 + $0x8d8] sm:$0xff] }
 0x5de   :  { %4218 = vmatprep.subr.bf16.mxu1 %v3332_v38  ;;  %4669 = vmatprep.subr.bf16.mxu0 %v3206_v8 }
 0x5e1   :  { %4219 = vmatpush1.bf16.msra.mxu1 %v3331_v5  ;;  %4670 = vmatpush1.bf16.msra.mxu0 %v3205_v37 }
 0x5e2   :  { %4220 = vmatprep.subr.bf16.mxu1 %v3336_v35  ;;  %4671 = vmatprep.subr.bf16.mxu0 %v3210_v11  ;;  %v3371_v35 = vld [vmem:[#allocation2 + $0xcc0] sm:$0xff]  ;;  %v3245_v11 = vld [vmem:[#allocation2 + $0x8d0] sm:$0xff] }
 0x5e5   :  { %4221 = vmatpush1.bf16.msra.mxu1 %v3335_v12  ;;  %4672 = vmatpush1.bf16.msra.mxu0 %v3209_v63  ;;  %v3376_v12 = vld [vmem:[#allocation2 + $0xce8] sm:$0xff]  ;;  %v3250_v63 = vld [vmem:[#allocation2 + $0x8f8] sm:$0xff] }
 0x5e6   :  { %4222 = vmatprep.subr.bf16.mxu1 %v3340_v14  ;;  %4673 = vmatprep.subr.bf16.mxu0 %v3214_v15  ;;  %v3249_v14 = vld [vmem:[#allocation2 + $0x8f0] sm:$0xff]  ;;  %v3380_v15 = vld [vmem:[#allocation2 + $0xd08] sm:$0xff] }
 0x5e9   :  { %4223 = vmatpush1.bf16.msra.mxu1 %v3339_v16  ;;  %4674 = vmatpush1.bf16.msra.mxu0 %v3213_v19  ;;  %v3254_v16 = vld [vmem:[#allocation2 + $0x918] sm:$0xff]  ;;  %v3253_v19 = vld [vmem:[#allocation2 + $0x910] sm:$0xff] }
 0x5ea   :  { %4224 = vmatprep.subr.bf16.mxu1 %v3344_v6  ;;  %4675 = vmatprep.subr.bf16.mxu0 %v3218_v10  ;;  %v3384_v6 = vld [vmem:[#allocation2 + $0xd28] sm:$0xff]  ;;  %v3258_v10 = vld [vmem:[#allocation2 + $0x938] sm:$0xff] }
 0x5ed   :  { %4225 = vmatpush1.bf16.msra.mxu1 %v3343_v17  ;;  %4676 = vmatpush1.bf16.msra.mxu0 %v3217_v21  ;;  %v3257_v17 = vld [vmem:[#allocation2 + $0x930] sm:$0xff]  ;;  %v3388_v21 = vld [vmem:[#allocation2 + $0xd48] sm:$0xff] }
 0x5ee   :  { %4235 = vmatprep.subr.bf16.mxu1 %v3348_v39  ;;  %4686 = vmatprep.subr.bf16.mxu0 %v3222_v7  ;;  %v3262_v39 = vld [vmem:[#allocation2 + $0x958] sm:$0xff]  ;;  %v3387_v7 = vld [vmem:[#allocation2 + $0xd40] sm:$0xff] }
 0x5f0   :  { %4227 = vmatmul.mubr.bf16.vlgmr.msra.gmra.mrb[56].mxu1 %v9653_v24  ;;  %4678 = vmatmul.mubr.bf16.vlgmr.msra.gmra.mrb[64].mxu0 %v9615_v20  ;;  %v3234_v20 = vld [vmem:[#allocation2 + $0x878] sm:$0xff] }
 0x5f1   :  { %4236 = vmatpush1.bf16.msra.mxu1 %v3347_v54  ;;  %4687 = vmatpush1.bf16.msra.mxu0 %v3221_v25  ;;  %v3392_v54 = vld [vmem:[#allocation2 + $0xd68] sm:$0xff]  ;;  %v3266_v25 = vld [vmem:[#allocation2 + $0x978] sm:$0xff] }
 0x5f2   :  { %4237 = vmatprep.subr.bf16.mxu1 %v3352_v60  ;;  %4688 = vmatprep.subr.bf16.mxu0 %v3226_v28  ;;  %v3391_v60 = vld [vmem:[#allocation2 + $0xd60] sm:$0xff]  ;;  %v3265_v28 = vld [vmem:[#allocation2 + $0x970] sm:$0xff] }
 0x5f3   :  { %4267 = vmatprep.mubr.bf16.mxu1 %v9655_v29  ;;  %4718 = vmatprep.mubr.bf16.mxu0 %v9617_v26  ;;  %v3363_v26 = vld [vmem:[#allocation2 + $0xc80] sm:$0xff] }
 0x5f5   :  { %4238 = vmatpush1.bf16.msra.mxu1 %v3351_v30  ;;  %4689 = vmatpush1.bf16.msra.mxu0 %v3225_v32  ;;  %v3396_v30 = vld [vmem:[#allocation2 + $0xd88] sm:$0xff]  ;;  %v3270_v32 = vld [vmem:[#allocation2 + $0x998] sm:$0xff] }
 0x5f6   :  { %4239 = vmatprep.subr.bf16.mxu1 %v3356_v3  ;;  %4690 = vmatprep.subr.bf16.mxu0 %v3230_v42  ;;  %v3395_v3 = vld [vmem:[#allocation2 + $0xd80] sm:$0xff]  ;;  %v3269_v42 = vld [vmem:[#allocation2 + $0x990] sm:$0xff] }
 0x5f9   :  { %4240 = vmatpush1.bf16.msra.mxu1 %v3355_v43  ;;  %4691 = vmatpush1.bf16.msra.mxu0 %v3229_v44  ;;  %v3400_v43 = vld [vmem:[#allocation2 + $0xda8] sm:$0xff]  ;;  %v3274_v44 = vld [vmem:[#allocation2 + $0x9b8] sm:$0xff] }
 0x5fa   :  { %4241 = vmatprep.subr.bf16.mxu1 %v3360_v53  ;;  %4692 = vmatprep.subr.bf16.mxu0 %v3234_v20  ;;  %v3399_v53 = vld [vmem:[#allocation2 + $0xda0] sm:$0xff]  ;;  %v3273_v20 = vld [vmem:[#allocation2 + $0x9b0] sm:$0xff] }
 0x5fd   :  { %4242 = vmatpush1.bf16.msra.mxu1 %v3359_v59  ;;  %4693 = vmatpush1.bf16.msra.mxu0 %v3233_v48  ;;  %v3404_v59 = vld [vmem:[#allocation2 + $0xdc8] sm:$0xff]  ;;  %v3278_v48 = vld [vmem:[#allocation2 + $0x9d8] sm:$0xff] }
 0x5fe   :  { %4243 = vmatprep.subr.bf16.mxu1 %v3364_v50  ;;  %4694 = vmatprep.subr.bf16.mxu0 %v3238_v51  ;;  %v3403_v50 = vld [vmem:[#allocation2 + $0xdc0] sm:$0xff]  ;;  %v3277_v51 = vld [vmem:[#allocation2 + $0x9d0] sm:$0xff] }
 0x601   :  { %4244 = vmatpush1.bf16.msra.mxu1 %v3363_v26  ;;  %4695 = vmatpush1.bf16.msra.mxu0 %v3237_v52  ;;  %v3408_v26 = vld [vmem:[#allocation2 + $0xde8] sm:$0xff]  ;;  %v3282_v52 = vld [vmem:[#allocation2 + $0x9f8] sm:$0xff] }
 0x602   :  { %4245 = vmatprep.subr.bf16.mxu1 %v3368_v27  ;;  %4696 = vmatprep.subr.bf16.mxu0 %v3242_v55  ;;  %v2864_v27 = vrot.slane %v9611_v22, %v9589_v31  ;;  %v3407_v55 = vld [vmem:[#allocation2 + $0xde0] sm:$0xff] }
 0x603   :  { %v4556_v1 = vpop.f32.mrb[60].mxu0 }
 0x604   :  { %v9662_v33 = vadd.f32 %v4556_v1, %v9625_v9  ;;  %v4558_v38 = vpop.f32.mrb[61].mxu0  ;;  %v3375_v9 = vld [vmem:[#allocation2 + $0xce0] sm:$0xff]  ;;  %v3286_v1 = vld [vmem:[#allocation2 + $0xa18] sm:$0xff] }
 0x605   :  { %v9665_v8 = vadd.f32 %v4558_v38, %v9629_v4  ;;  %4246 = vmatpush1.bf16.msra.mxu1 %v3367_v56  ;;  %v4560_v5 = vpop.f32.mrb[62].mxu0  ;;  %4697 = vmatpush1.bf16.msra.mxu0 %v3241_v57  ;;  %v3379_v4 = vld [vmem:[#allocation2 + $0xd00] sm:$0xff]  ;;  %v3281_v56 = vld [vmem:[#allocation2 + $0x9f0] sm:$0xff]  ;;  %v3412_v57 = vld [vmem:[#allocation2 + $0xe08] sm:$0xff] }
 0x606   :  { %v4561_v37 = vpop.f32.mrb[63].mxu0  ;;  %4247 = vmatprep.subr.bf16.mxu1 %v3372_v34  ;;  %4698 = vmatprep.subr.bf16.mxu0 %v3246_v2  ;;  %v2876_v34 = vrot.slane %v9611_v22, %v9592_v13  ;;  %v9671_v2 = vpack.c.bf16 %v2864_v27, %v2864_v27  ;;  %v3411_v38 = vld [vmem:[#allocation2 + $0xe00] sm:$0xff]  ;;  %v3285_v5 = vld [vmem:[#allocation2 + $0xa10] sm:$0xff] }
 0x607   :  { %v3416_v37 = vld [vmem:[#allocation2 + $0xe28] sm:$0xff]  ;;  %v3415_v22 = vld [vmem:[#allocation2 + $0xe20] sm:$0xff]  ;;  %v3325_v27 = vld [vmem:[#allocation2 + $0xb50] sm:$0xff] }
 0x609   :  { %4248 = vmatpush1.bf16.msra.mxu1 %v3371_v35  ;;  %4699 = vmatpush1.bf16.msra.mxu0 %v3245_v11  ;;  %v3290_v35 = vld [vmem:[#allocation2 + $0xa38] sm:$0xff]  ;;  %v9673_v11 = vpack.c.bf16 %v2876_v34, %v2876_v34  ;;  %v3460_v34 = vld [vmem:[#allocation2 + $0xf88] sm:$0xff] }
 0x60a   :  { %4249 = vmatprep.subr.bf16.mxu1 %v3376_v12  ;;  %4700 = vmatprep.subr.bf16.mxu0 %v3250_v63  ;;  %v3289_v12 = vld [vmem:[#allocation2 + $0xa30] sm:$0xff]  ;;  %v3420_v63 = vld [vmem:[#allocation2 + $0xe48] sm:$0xff] }
 0x60d   :  { %4250 = vmatpush1.bf16.msra.mxu1 %v3375_v9  ;;  %4701 = vmatpush1.bf16.msra.mxu0 %v3249_v14  ;;  %v3294_v9 = vld [vmem:[#allocation2 + $0xa58] sm:$0xff]  ;;  %v3419_v14 = vld [vmem:[#allocation2 + $0xe40] sm:$0xff] }
 0x60e   :  { %4251 = vmatprep.subr.bf16.mxu1 %v3380_v15  ;;  %4702 = vmatprep.subr.bf16.mxu0 %v3254_v16  ;;  %v3293_v15 = vld [vmem:[#allocation2 + $0xa50] sm:$0xff]  ;;  %v3424_v16 = vld [vmem:[#allocation2 + $0xe68] sm:$0xff] }
 0x611   :  { %4252 = vmatpush1.bf16.msra.mxu1 %v3379_v4  ;;  %4703 = vmatpush1.bf16.msra.mxu0 %v3253_v19  ;;  %v3423_v4 = vld [vmem:[#allocation2 + $0xe60] sm:$0xff]  ;;  %v3297_v19 = vld [vmem:[#allocation2 + $0xa70] sm:$0xff] }
 0x612   :  { %4253 = vmatprep.subr.bf16.mxu1 %v3384_v6  ;;  %4704 = vmatprep.subr.bf16.mxu0 %v3258_v10  ;;  %v3428_v6 = vld [vmem:[#allocation2 + $0xe88] sm:$0xff]  ;;  %v3302_v10 = vld [vmem:[#allocation2 + $0xa98] sm:$0xff] }
 0x615   :  { %4254 = vmatpush1.bf16.msra.mxu1 %v3383_v58  ;;  %4705 = vmatpush1.bf16.msra.mxu0 %v3257_v17  ;;  %v3301_v58 = vld [vmem:[#allocation2 + $0xa90] sm:$0xff]  ;;  %v3432_v17 = vld [vmem:[#allocation2 + $0xea8] sm:$0xff] }
 0x616   :  { %4255 = vmatprep.subr.bf16.mxu1 %v3388_v21  ;;  %4706 = vmatprep.subr.bf16.mxu0 %v3262_v39  ;;  %v3306_v21 = vld [vmem:[#allocation2 + $0xab8] sm:$0xff]  ;;  %v3431_v39 = vld [vmem:[#allocation2 + $0xea0] sm:$0xff] }
 0x619   :  { %4256 = vmatpush1.bf16.msra.mxu1 %v3387_v7  ;;  %4707 = vmatpush1.bf16.msra.mxu0 %v3261_v61  ;;  %v3305_v7 = vld [vmem:[#allocation2 + $0xab0] sm:$0xff]  ;;  %v3436_v61 = vld [vmem:[#allocation2 + $0xec8] sm:$0xff] }
 0x61a   :  { %4257 = vmatprep.subr.bf16.mxu1 %v3392_v54  ;;  %4708 = vmatprep.subr.bf16.mxu0 %v3266_v25  ;;  %v3310_v54 = vld [vmem:[#allocation2 + $0xad8] sm:$0xff]  ;;  %v3435_v25 = vld [vmem:[#allocation2 + $0xec0] sm:$0xff] }
 0x61d   :  { %4258 = vmatpush1.bf16.msra.mxu1 %v3391_v60  ;;  %4709 = vmatpush1.bf16.msra.mxu0 %v3265_v28  ;;  %v3309_v60 = vld [vmem:[#allocation2 + $0xad0] sm:$0xff]  ;;  %v3440_v28 = vld [vmem:[#allocation2 + $0xee8] sm:$0xff] }
 0x61e   :  { %4259 = vmatprep.subr.bf16.mxu1 %v3396_v30  ;;  %4710 = vmatprep.subr.bf16.mxu0 %v3270_v32  ;;  %v3314_v30 = vld [vmem:[#allocation2 + $0xaf8] sm:$0xff]  ;;  %v3439_v32 = vld [vmem:[#allocation2 + $0xee0] sm:$0xff] }
 0x621   :  { %4260 = vmatpush1.bf16.msra.mxu1 %v3395_v3  ;;  %4711 = vmatpush1.bf16.msra.mxu0 %v3269_v42  ;;  %v3313_v3 = vld [vmem:[#allocation2 + $0xaf0] sm:$0xff]  ;;  %v3444_v42 = vld [vmem:[#allocation2 + $0xf08] sm:$0xff] }
 0x622   :  { %4261 = vmatprep.subr.bf16.mxu1 %v3400_v43  ;;  %4712 = vmatprep.subr.bf16.mxu0 %v3274_v44  ;;  %v3318_v43 = vld [vmem:[#allocation2 + $0xb18] sm:$0xff]  ;;  %v3443_v44 = vld [vmem:[#allocation2 + $0xf00] sm:$0xff] }
 0x625   :  { %4262 = vmatpush1.bf16.msra.mxu1 %v3399_v53  ;;  %4713 = vmatpush1.bf16.msra.mxu0 %v3273_v20  ;;  %v3317_v53 = vld [vmem:[#allocation2 + $0xb10] sm:$0xff]  ;;  %v3448_v20 = vld [vmem:[#allocation2 + $0xf28] sm:$0xff] }
 0x626   :  { %4263 = vmatprep.subr.bf16.mxu1 %v3404_v59  ;;  %4714 = vmatprep.subr.bf16.mxu0 %v3278_v48  ;;  %v3322_v59 = vld [vmem:[#allocation2 + $0xb38] sm:$0xff]  ;;  %v3447_v48 = vld [vmem:[#allocation2 + $0xf20] sm:$0xff] }
 0x629   :  { %4264 = vmatpush1.bf16.msra.mxu1 %v3403_v50  ;;  %4715 = vmatpush1.bf16.msra.mxu0 %v3277_v51  ;;  %v3321_v50 = vld [vmem:[#allocation2 + $0xb30] sm:$0xff]  ;;  %v3452_v51 = vld [vmem:[#allocation2 + $0xf48] sm:$0xff] }
 0x62a   :  { %4265 = vmatprep.subr.bf16.mxu1 %v3408_v26  ;;  %4716 = vmatprep.subr.bf16.mxu0 %v3282_v52  ;;  %v3326_v26 = vld [vmem:[#allocation2 + $0xb58] sm:$0xff]  ;;  %v3451_v52 = vld [vmem:[#allocation2 + $0xf40] sm:$0xff] }
 0x62d   :  { %4266 = vmatpush1.bf16.msra.mxu1 %v3407_v55  ;;  %4717 = vmatpush1.bf16.msra.mxu0 %v3281_v56  ;;  %v3456_v55 = vld [vmem:[#allocation2 + $0xf68] sm:$0xff]  ;;  %v3330_v56 = vld [vmem:[#allocation2 + $0xb78] sm:$0xff] }
 0x62e   :  { %4276 = vmatprep.subr.bf16.mxu1 %v3412_v57  ;;  %4727 = vmatprep.subr.bf16.mxu0 %v3286_v1  ;;  %v3455_v57 = vld [vmem:[#allocation2 + $0xf60] sm:$0xff]  ;;  %v3329_v1 = vld [vmem:[#allocation2 + $0xb70] sm:$0xff] }
 0x630   :  { %4268 = vmatmul.mubr.bf16.vlgmr.msra.gmra.mrb[56].mxu1 %v9671_v2  ;;  %4719 = vmatmul.mubr.bf16.vlgmr.msra.gmra.mrb[64].mxu0 %v9635_v62  ;;  %v3298_v62 = vld [vmem:[#allocation2 + $0xa78] sm:$0xff] }
 0x631   :  { %4277 = vmatpush1.bf16.msra.mxu1 %v3411_v38  ;;  %4728 = vmatpush1.bf16.msra.mxu0 %v3285_v5  ;;  %v3334_v38 = vld [vmem:[#allocation2 + $0xb98] sm:$0xff]  ;;  %v3459_v5 = vld [vmem:[#allocation2 + $0xf80] sm:$0xff] }
 0x632   :  { %4278 = vmatprep.subr.bf16.mxu1 %v3416_v37  ;;  %4729 = vmatprep.subr.bf16.mxu0 %v3290_v35  ;;  %v3333_v37 = vld [vmem:[#allocation2 + $0xb90] sm:$0xff]  ;;  %v3464_v35 = vld [vmem:[#allocation2 + $0xfa8] sm:$0xff] }
 0x633   :  { %4308 = vmatprep.mubr.bf16.mxu1 %v9673_v11  ;;  %4759 = vmatprep.mubr.bf16.mxu0 %v9637_v40  ;;  %v3427_v40 = vld [vmem:[#allocation2 + $0xe80] sm:$0xff] }
 0x635   :  { %4279 = vmatpush1.bf16.msra.mxu1 %v3415_v22  ;;  %4730 = vmatpush1.bf16.msra.mxu0 %v3289_v12  ;;  %v3338_v22 = vld [vmem:[#allocation2 + $0xbb8] sm:$0xff]  ;;  %v3463_v12 = vld [vmem:[#allocation2 + $0xfa0] sm:$0xff] }
 0x636   :  { %4280 = vmatprep.subr.bf16.mxu1 %v3420_v63  ;;  %4731 = vmatprep.subr.bf16.mxu0 %v3294_v9  ;;  %v3337_v63 = vld [vmem:[#allocation2 + $0xbb0] sm:$0xff]  ;;  %v3468_v9 = vld [vmem:[#allocation2 + $0xfc8] sm:$0xff] }
 0x639   :  { %4281 = vmatpush1.bf16.msra.mxu1 %v3419_v14  ;;  %4732 = vmatpush1.bf16.msra.mxu0 %v3293_v15  ;;  %v3342_v14 = vld [vmem:[#allocation2 + $0xbd8] sm:$0xff]  ;;  %v3467_v15 = vld [vmem:[#allocation2 + $0xfc0] sm:$0xff] }
 0x63a   :  { %4282 = vmatprep.subr.bf16.mxu1 %v3424_v16  ;;  %4733 = vmatprep.subr.bf16.mxu0 %v3298_v62  ;;  %v3341_v16 = vld [vmem:[#allocation2 + $0xbd0] sm:$0xff]  ;;  %v3472_v62 = vld [vmem:[#allocation2 + $0xfe8] sm:$0xff] }
 0x63d   :  { %4283 = vmatpush1.bf16.msra.mxu1 %v3423_v4  ;;  %4734 = vmatpush1.bf16.msra.mxu0 %v3297_v19  ;;  %v3346_v4 = vld [vmem:[#allocation2 + $0xbf8] sm:$0xff]  ;;  %v7284_v19 = vld [vmem:[#allocation3 + $0x8] sm:$0xff] }
 0x63e   :  { %4284 = vmatprep.subr.bf16.mxu1 %v3428_v6  ;;  %4735 = vmatprep.subr.bf16.mxu0 %v3302_v10  ;;  %v2872_v6 = vrot.slane %v7284_v19, %v9607_v18  ;;  %v9680_v10 = vld [vmem:[#allocation3 + $0x10] sm:$0xff]  ;;  %v3515_v19 = vld [vmem:[#allocation2 + $0x1140] sm:$0xff] }
 0x641   :  { %4285 = vmatpush1.bf16.msra.mxu1 %v3427_v40  ;;  %4736 = vmatpush1.bf16.msra.mxu0 %v3301_v58  ;;  %v3471_v40 = vld [vmem:[#allocation2 + $0xfe0] sm:$0xff]  ;;  %v3345_v58 = vld [vmem:[#allocation2 + $0xbf0] sm:$0xff] }
 0x642   :  { %4286 = vmatprep.subr.bf16.mxu1 %v3432_v17  ;;  %4737 = vmatprep.subr.bf16.mxu0 %v3306_v21  ;;  %v3476_v17 = vld [vmem:[#allocation2 + $0x1008] sm:$0xff]  ;;  %v3350_v21 = vld [vmem:[#allocation2 + $0xc18] sm:$0xff] }
 0x645   :  { %4287 = vmatpush1.bf16.msra.mxu1 %v3431_v39  ;;  %4738 = vmatpush1.bf16.msra.mxu0 %v3305_v7  ;;  %v2884_v39 = vrot.slane %v9680_v10, %v9546_v46  ;;  %v9684_v7 = vpack.c.bf16 %v2872_v6, %v2872_v6  ;;  %v3479_v46 = vld [vmem:[#allocation2 + $0x1020] sm:$0xff]  ;;  %v3389_v6 = vld [vmem:[#allocation2 + $0xd50] sm:$0xff] }
 0x646   :  { %4288 = vmatprep.subr.bf16.mxu1 %v3436_v61  ;;  %4739 = vmatprep.subr.bf16.mxu0 %v3310_v54  ;;  %v3475_v61 = vld [vmem:[#allocation2 + $0x1000] sm:$0xff]  ;;  %v3349_v54 = vld [vmem:[#allocation2 + $0xc10] sm:$0xff] }
 0x649   :  { %4289 = vmatpush1.bf16.msra.mxu1 %v3435_v25  ;;  %4740 = vmatpush1.bf16.msra.mxu0 %v3309_v60  ;;  %v3480_v25 = vld [vmem:[#allocation2 + $0x1028] sm:$0xff]  ;;  %v3354_v60 = vld [vmem:[#allocation2 + $0xc38] sm:$0xff] }
 0x64a   :  { %4290 = vmatprep.subr.bf16.mxu1 %v3440_v28  ;;  %4741 = vmatprep.subr.bf16.mxu0 %v3314_v30  ;;  %v9686_v28 = vpack.c.bf16 %v2884_v39, %v2884_v39  ;;  %v3353_v30 = vld [vmem:[#allocation2 + $0xc30] sm:$0xff]  ;;  %v3524_v39 = vld [vmem:[#allocation2 + $0x1188] sm:$0xff] }
 0x64d   :  { %4291 = vmatpush1.bf16.msra.mxu1 %v3439_v32  ;;  %4742 = vmatpush1.bf16.msra.mxu0 %v3313_v3  ;;  %v3484_v32 = vld [vmem:[#allocation2 + $0x1048] sm:$0xff]  ;;  %v3358_v3 = vld [vmem:[#allocation2 + $0xc58] sm:$0xff] }
 0x64e   :  { %4292 = vmatprep.subr.bf16.mxu1 %v3444_v42  ;;  %4743 = vmatprep.subr.bf16.mxu0 %v3318_v43  ;;  %v3483_v42 = vld [vmem:[#allocation2 + $0x1040] sm:$0xff]  ;;  %v3357_v43 = vld [vmem:[#allocation2 + $0xc50] sm:$0xff] }
 0x651   :  { %4293 = vmatpush1.bf16.msra.mxu1 %v3443_v44  ;;  %4744 = vmatpush1.bf16.msra.mxu0 %v3317_v53  ;;  %v3488_v44 = vld [vmem:[#allocation2 + $0x1068] sm:$0xff]  ;;  %v3487_v53 = vld [vmem:[#allocation2 + $0x1060] sm:$0xff] }
 0x652   :  { %4294 = vmatprep.subr.bf16.mxu1 %v3448_v20  ;;  %4745 = vmatprep.subr.bf16.mxu0 %v3322_v59  ;;  %v3361_v20 = vld [vmem:[#allocation2 + $0xc70] sm:$0xff]  ;;  %v3492_v59 = vld [vmem:[#allocation2 + $0x1088] sm:$0xff] }
 0x655   :  { %4295 = vmatpush1.bf16.msra.mxu1 %v3447_v48  ;;  %4746 = vmatpush1.bf16.msra.mxu0 %v3321_v50  ;;  %v3366_v48 = vld [vmem:[#allocation2 + $0xc98] sm:$0xff]  ;;  %v3365_v50 = vld [vmem:[#allocation2 + $0xc90] sm:$0xff] }
 0x656   :  { %4296 = vmatprep.subr.bf16.mxu1 %v3452_v51  ;;  %4747 = vmatprep.subr.bf16.mxu0 %v3326_v26  ;;  %v3496_v51 = vld [vmem:[#allocation2 + $0x10a8] sm:$0xff]  ;;  %v3370_v26 = vld [vmem:[#allocation2 + $0xcb8] sm:$0xff] }
 0x659   :  { %4297 = vmatpush1.bf16.msra.mxu1 %v3451_v52  ;;  %4748 = vmatpush1.bf16.msra.mxu0 %v3325_v27  ;;  %v3495_v52 = vld [vmem:[#allocation2 + $0x10a0] sm:$0xff]  ;;  %v3369_v27 = vld [vmem:[#allocation2 + $0xcb0] sm:$0xff] }
 0x65a   :  { %4298 = vmatprep.subr.bf16.mxu1 %v3456_v55  ;;  %4749 = vmatprep.subr.bf16.mxu0 %v3330_v56  ;;  %v3500_v55 = vld [vmem:[#allocation2 + $0x10c8] sm:$0xff]  ;;  %v3374_v56 = vld [vmem:[#allocation2 + $0xcd8] sm:$0xff] }
 0x65d   :  { %4299 = vmatpush1.bf16.msra.mxu1 %v3455_v57  ;;  %4750 = vmatpush1.bf16.msra.mxu0 %v3329_v1  ;;  %v3499_v57 = vld [vmem:[#allocation2 + $0x10c0] sm:$0xff]  ;;  %v3373_v1 = vld [vmem:[#allocation2 + $0xcd0] sm:$0xff] }
 0x65e   :  { %4300 = vmatprep.subr.bf16.mxu1 %v3460_v34  ;;  %4751 = vmatprep.subr.bf16.mxu0 %v3334_v38  ;;  %v3504_v34 = vld [vmem:[#allocation2 + $0x10e8] sm:$0xff]  ;;  %v3378_v38 = vld [vmem:[#allocation2 + $0xcf8] sm:$0xff] }
 0x661   :  { %4301 = vmatpush1.bf16.msra.mxu1 %v3459_v5  ;;  %4752 = vmatpush1.bf16.msra.mxu0 %v3333_v37  ;;  %v3503_v5 = vld [vmem:[#allocation2 + $0x10e0] sm:$0xff]  ;;  %v3377_v37 = vld [vmem:[#allocation2 + $0xcf0] sm:$0xff] }
 0x662   :  { %4302 = vmatprep.subr.bf16.mxu1 %v3464_v35  ;;  %4753 = vmatprep.subr.bf16.mxu0 %v3338_v22  ;;  %v3508_v35 = vld [vmem:[#allocation2 + $0x1108] sm:$0xff]  ;;  %v3382_v22 = vld [vmem:[#allocation2 + $0xd18] sm:$0xff] }
 0x665   :  { %4303 = vmatpush1.bf16.msra.mxu1 %v3463_v12  ;;  %4754 = vmatpush1.bf16.msra.mxu0 %v3337_v63  ;;  %v3507_v12 = vld [vmem:[#allocation2 + $0x1100] sm:$0xff]  ;;  %v3381_v63 = vld [vmem:[#allocation2 + $0xd10] sm:$0xff] }
 0x666   :  { %4304 = vmatprep.subr.bf16.mxu1 %v3468_v9  ;;  %4755 = vmatprep.subr.bf16.mxu0 %v3342_v14  ;;  %v3512_v9 = vld [vmem:[#allocation2 + $0x1128] sm:$0xff]  ;;  %v3386_v14 = vld [vmem:[#allocation2 + $0xd38] sm:$0xff] }
 0x669   :  { %4305 = vmatpush1.bf16.msra.mxu1 %v3467_v15  ;;  %4756 = vmatpush1.bf16.msra.mxu0 %v3341_v16  ;;  %v3511_v15 = vld [vmem:[#allocation2 + $0x1120] sm:$0xff]  ;;  %v3385_v16 = vld [vmem:[#allocation2 + $0xd30] sm:$0xff] }
 0x66a   :  { %4306 = vmatprep.subr.bf16.mxu1 %v3472_v62  ;;  %4757 = vmatprep.subr.bf16.mxu0 %v3346_v4  ;;  %v3516_v62 = vld [vmem:[#allocation2 + $0x1148] sm:$0xff]  ;;  %v3390_v4 = vld [vmem:[#allocation2 + $0xd58] sm:$0xff] }
 0x66d   :  { %4307 = vmatpush1.bf16.msra.mxu1 %v3471_v40  ;;  %4758 = vmatpush1.bf16.msra.mxu0 %v3345_v58  ;;  %v3520_v40 = vld [vmem:[#allocation2 + $0x1168] sm:$0xff]  ;;  %v3394_v58 = vld [vmem:[#allocation2 + $0xd78] sm:$0xff] }
 0x66e   :  { %4317 = vmatprep.subr.bf16.mxu1 %v3476_v17  ;;  %4768 = vmatprep.subr.bf16.mxu0 %v3350_v21  ;;  %v3519_v17 = vld [vmem:[#allocation2 + $0x1160] sm:$0xff]  ;;  %v3393_v21 = vld [vmem:[#allocation2 + $0xd70] sm:$0xff] }
 0x670   :  { %4309 = vmatmul.mubr.bf16.vlgmr.msra.gmra.mrb[56].mxu1 %v9684_v7  ;;  %4760 = vmatmul.mubr.bf16.vlgmr.msra.gmra.mrb[64].mxu0 %v9653_v24  ;;  %v3362_v24 = vld [vmem:[#allocation2 + $0xc78] sm:$0xff] }
 0x671   :  { %4318 = vmatpush1.bf16.msra.mxu1 %v3475_v61  ;;  %4769 = vmatpush1.bf16.msra.mxu0 %v3349_v54  ;;  %v3398_v61 = vld [vmem:[#allocation2 + $0xd98] sm:$0xff]  ;;  %v3523_v54 = vld [vmem:[#allocation2 + $0x1180] sm:$0xff] }
 0x672   :  { %4319 = vmatprep.subr.bf16.mxu1 %v3480_v25  ;;  %4770 = vmatprep.subr.bf16.mxu0 %v3354_v60  ;;  %v3397_v25 = vld [vmem:[#allocation2 + $0xd90] sm:$0xff]  ;;  %v3528_v60 = vld [vmem:[#allocation2 + $0x11a8] sm:$0xff] }
 0x673   :  { %4349 = vmatprep.mubr.bf16.mxu1 %v9686_v28  ;;  %4800 = vmatprep.mubr.bf16.mxu0 %v9655_v29  ;;  %v3491_v29 = vld [vmem:[#allocation2 + $0x1080] sm:$0xff] }
 0x675   :  { %4320 = vmatpush1.bf16.msra.mxu1 %v3479_v46  ;;  %4771 = vmatpush1.bf16.msra.mxu0 %v3353_v30  ;;  %v3402_v46 = vld [vmem:[#allocation2 + $0xdb8] sm:$0xff]  ;;  %v3527_v30 = vld [vmem:[#allocation2 + $0x11a0] sm:$0xff] }
 0x676   :  { %4321 = vmatprep.subr.bf16.mxu1 %v3484_v32  ;;  %4772 = vmatprep.subr.bf16.mxu0 %v3358_v3  ;;  %v3401_v32 = vld [vmem:[#allocation2 + $0xdb0] sm:$0xff]  ;;  %v3532_v3 = vld [vmem:[#allocation2 + $0x11c8] sm:$0xff] }
 0x679   :  { %4322 = vmatpush1.bf16.msra.mxu1 %v3483_v42  ;;  %4773 = vmatpush1.bf16.msra.mxu0 %v3357_v43  ;;  %v3406_v42 = vld [vmem:[#allocation2 + $0xdd8] sm:$0xff]  ;;  %v3531_v43 = vld [vmem:[#allocation2 + $0x11c0] sm:$0xff] }
 0x67a   :  { %4323 = vmatprep.subr.bf16.mxu1 %v3488_v44  ;;  %4774 = vmatprep.subr.bf16.mxu0 %v3362_v24  ;;  %v3405_v44 = vld [vmem:[#allocation2 + $0xdd0] sm:$0xff]  ;;  %v3536_v24 = vld [vmem:[#allocation2 + $0x11e8] sm:$0xff] }
 0x67d   :  { %4324 = vmatpush1.bf16.msra.mxu1 %v3487_v53  ;;  %4775 = vmatpush1.bf16.msra.mxu0 %v3361_v20  ;;  %v3410_v53 = vld [vmem:[#allocation2 + $0xdf8] sm:$0xff]  ;;  %v2880_v20 = vrot.slane %v9680_v10, %v9564_v36  ;;  %v3544_v36 = vld [vmem:[#allocation2 + $0x1228] sm:$0xff] }
 0x67e   :  { %4325 = vmatprep.subr.bf16.mxu1 %v3492_v59  ;;  %4776 = vmatprep.subr.bf16.mxu0 %v3366_v48  ;;  %v3535_v59 = vld [vmem:[#allocation2 + $0x11e0] sm:$0xff]  ;;  %v3409_v48 = vld [vmem:[#allocation2 + $0xdf0] sm:$0xff] }
 0x681   :  { %4326 = vmatpush1.bf16.msra.mxu1 %v3491_v29  ;;  %4777 = vmatpush1.bf16.msra.mxu0 %v3365_v50  ;;  %v3540_v29 = vld [vmem:[#allocation2 + $0x1208] sm:$0xff]  ;;  %v3414_v50 = vld [vmem:[#allocation2 + $0xe18] sm:$0xff] }
 0x682   :  { %4327 = vmatprep.subr.bf16.mxu1 %v3496_v51  ;;  %4778 = vmatprep.subr.bf16.mxu0 %v3370_v26  ;;  %v2892_v51 = vrot.slane %v9680_v10, %v9549_v47  ;;  %v9696_v26 = vpack.c.bf16 %v2880_v20, %v2880_v20  ;;  %v3543_v47 = vld [vmem:[#allocation2 + $0x1220] sm:$0xff]  ;;  %v3458_v20 = vld [vmem:[#allocation2 + $0xf78] sm:$0xff] }
 0x685   :  { %4328 = vmatpush1.bf16.msra.mxu1 %v3495_v52  ;;  %4779 = vmatpush1.bf16.msra.mxu0 %v3369_v27  ;;  %v3539_v52 = vld [vmem:[#allocation2 + $0x1200] sm:$0xff]  ;;  %v3413_v27 = vld [vmem:[#allocation2 + $0xe10] sm:$0xff] }
 0x686   :  { %4329 = vmatprep.subr.bf16.mxu1 %v3500_v55  ;;  %4780 = vmatprep.subr.bf16.mxu0 %v3374_v56  ;;  %v3418_v55 = vld [vmem:[#allocation2 + $0xe38] sm:$0xff]  ;;  %v9698_v56 = vpack.c.bf16 %v2892_v51, %v2892_v51  ;;  %v3587_v51 = vld [vmem:[#allocation2 + $0x1380] sm:$0xff] }
 0x689   :  { %4330 = vmatpush1.bf16.msra.mxu1 %v3499_v57  ;;  %4781 = vmatpush1.bf16.msra.mxu0 %v3373_v1  ;;  %v3417_v57 = vld [vmem:[#allocation2 + $0xe30] sm:$0xff]  ;;  %v3548_v1 = vld [vmem:[#allocation2 + $0x1248] sm:$0xff] }
 0x68a   :  { %4331 = vmatprep.subr.bf16.mxu1 %v3504_v34  ;;  %4782 = vmatprep.subr.bf16.mxu0 %v3378_v38  ;;  %v3422_v34 = vld [vmem:[#allocation2 + $0xe58] sm:$0xff]  ;;  %v3547_v38 = vld [vmem:[#allocation2 + $0x1240] sm:$0xff] }
 0x68d   :  { %4332 = vmatpush1.bf16.msra.mxu1 %v3503_v5  ;;  %4783 = vmatpush1.bf16.msra.mxu0 %v3377_v37  ;;  %v3421_v5 = vld [vmem:[#allocation2 + $0xe50] sm:$0xff]  ;;  %v3552_v37 = vld [vmem:[#allocation2 + $0x1268] sm:$0xff] }
 0x68e   :  { %4333 = vmatprep.subr.bf16.mxu1 %v3508_v35  ;;  %4784 = vmatprep.subr.bf16.mxu0 %v3382_v22  ;;  %v3551_v35 = vld [vmem:[#allocation2 + $0x1260] sm:$0xff]  ;;  %v3425_v22 = vld [vmem:[#allocation2 + $0xe70] sm:$0xff] }
 0x691   :  { %4334 = vmatpush1.bf16.msra.mxu1 %v3507_v12  ;;  %4785 = vmatpush1.bf16.msra.mxu0 %v3381_v63  ;;  %v3556_v12 = vld [vmem:[#allocation2 + $0x1288] sm:$0xff]  ;;  %v3430_v63 = vld [vmem:[#allocation2 + $0xe98] sm:$0xff] }
 0x692   :  { %4335 = vmatprep.subr.bf16.mxu1 %v3512_v9  ;;  %4786 = vmatprep.subr.bf16.mxu0 %v3386_v14  ;;  %v3429_v9 = vld [vmem:[#allocation2 + $0xe90] sm:$0xff]  ;;  %v3560_v14 = vld [vmem:[#allocation2 + $0x12a8] sm:$0xff] }
 0x695   :  { %4336 = vmatpush1.bf16.msra.mxu1 %v3511_v15  ;;  %4787 = vmatpush1.bf16.msra.mxu0 %v3385_v16  ;;  %v3434_v15 = vld [vmem:[#allocation2 + $0xeb8] sm:$0xff]  ;;  %v3559_v16 = vld [vmem:[#allocation2 + $0x12a0] sm:$0xff] }
 0x696   :  { %4337 = vmatprep.subr.bf16.mxu1 %v3516_v62  ;;  %4788 = vmatprep.subr.bf16.mxu0 %v3390_v4  ;;  %v3433_v62 = vld [vmem:[#allocation2 + $0xeb0] sm:$0xff]  ;;  %v3564_v4 = vld [vmem:[#allocation2 + $0x12c8] sm:$0xff] }
 0x699   :  { %4338 = vmatpush1.bf16.msra.mxu1 %v3515_v19  ;;  %4789 = vmatpush1.bf16.msra.mxu0 %v3389_v6  ;;  %v3438_v19 = vld [vmem:[#allocation2 + $0xed8] sm:$0xff]  ;;  %v3563_v6 = vld [vmem:[#allocation2 + $0x12c0] sm:$0xff] }
 0x69a   :  { %4339 = vmatprep.subr.bf16.mxu1 %v3520_v40  ;;  %4790 = vmatprep.subr.bf16.mxu0 %v3394_v58  ;;  %v3437_v40 = vld [vmem:[#allocation2 + $0xed0] sm:$0xff]  ;;  %v3568_v58 = vld [vmem:[#allocation2 + $0x12e8] sm:$0xff] }
 0x69d   :  { %4340 = vmatpush1.bf16.msra.mxu1 %v3519_v17  ;;  %4791 = vmatpush1.bf16.msra.mxu0 %v3393_v21  ;;  %v3442_v17 = vld [vmem:[#allocation2 + $0xef8] sm:$0xff]  ;;  %v3567_v21 = vld [vmem:[#allocation2 + $0x12e0] sm:$0xff] }
 0x69e   :  { %4341 = vmatprep.subr.bf16.mxu1 %v3524_v39  ;;  %4792 = vmatprep.subr.bf16.mxu0 %v3398_v61  ;;  %v3441_v39 = vld [vmem:[#allocation2 + $0xef0] sm:$0xff]  ;;  %v3572_v61 = vld [vmem:[#allocation2 + $0x1308] sm:$0xff] }
 0x6a1   :  { %4342 = vmatpush1.bf16.msra.mxu1 %v3523_v54  ;;  %4793 = vmatpush1.bf16.msra.mxu0 %v3397_v25  ;;  %v3446_v54 = vld [vmem:[#allocation2 + $0xf18] sm:$0xff]  ;;  %v3571_v25 = vld [vmem:[#allocation2 + $0x1300] sm:$0xff] }
 0x6a2   :  { %4343 = vmatprep.subr.bf16.mxu1 %v3528_v60  ;;  %4794 = vmatprep.subr.bf16.mxu0 %v3402_v46  ;;  %v3445_v60 = vld [vmem:[#allocation2 + $0xf10] sm:$0xff]  ;;  %v3576_v46 = vld [vmem:[#allocation2 + $0x1328] sm:$0xff] }
 0x6a5   :  { %4344 = vmatpush1.bf16.msra.mxu1 %v3527_v30  ;;  %4795 = vmatpush1.bf16.msra.mxu0 %v3401_v32  ;;  %v3450_v30 = vld [vmem:[#allocation2 + $0xf38] sm:$0xff]  ;;  %v3575_v32 = vld [vmem:[#allocation2 + $0x1320] sm:$0xff] }
 0x6a6   :  { %4345 = vmatprep.subr.bf16.mxu1 %v3532_v3  ;;  %4796 = vmatprep.subr.bf16.mxu0 %v3406_v42  ;;  %v3449_v3 = vld [vmem:[#allocation2 + $0xf30] sm:$0xff]  ;;  %v3580_v42 = vld [vmem:[#allocation2 + $0x1348] sm:$0xff] }
 0x6a9   :  { %4346 = vmatpush1.bf16.msra.mxu1 %v3531_v43  ;;  %4797 = vmatpush1.bf16.msra.mxu0 %v3405_v44  ;;  %v3454_v43 = vld [vmem:[#allocation2 + $0xf58] sm:$0xff]  ;;  %v3579_v44 = vld [vmem:[#allocation2 + $0x1340] sm:$0xff] }
 0x6aa   :  { %4347 = vmatprep.subr.bf16.mxu1 %v3536_v24  ;;  %4798 = vmatprep.subr.bf16.mxu0 %v3410_v53  ;;  %v3453_v24 = vld [vmem:[#allocation2 + $0xf50] sm:$0xff]  ;;  %v3584_v53 = vld [vmem:[#allocation2 + $0x1368] sm:$0xff] }
 0x6ad   :  { %4348 = vmatpush1.bf16.msra.mxu1 %v3535_v59  ;;  %4799 = vmatpush1.bf16.msra.mxu0 %v3409_v48  ;;  %v3583_v59 = vld [vmem:[#allocation2 + $0x1360] sm:$0xff]  ;;  %v3457_v48 = vld [vmem:[#allocation2 + $0xf70] sm:$0xff] }
 0x6ae   :  { %4358 = vmatprep.subr.bf16.mxu1 %v3540_v29  ;;  %4809 = vmatprep.subr.bf16.mxu0 %v3414_v50  ;;  %v3588_v29 = vld [vmem:[#allocation2 + $0x1388] sm:$0xff]  ;;  %v3462_v50 = vld [vmem:[#allocation2 + $0xf98] sm:$0xff] }
 0x6b0   :  { %4350 = vmatmul.mubr.bf16.vlgmr.msra.gmra.mrb[56].mxu1 %v9696_v26  ;;  %4801 = vmatmul.mubr.bf16.vlgmr.msra.gmra.mrb[64].mxu0 %v9671_v2  ;;  %v3426_v2 = vld [vmem:[#allocation2 + $0xe78] sm:$0xff] }
 0x6b1   :  { %4359 = vmatpush1.bf16.msra.mxu1 %v3539_v52  ;;  %4810 = vmatpush1.bf16.msra.mxu0 %v3413_v27  ;;  %v3461_v52 = vld [vmem:[#allocation2 + $0xf90] sm:$0xff]  ;;  %v3592_v27 = vld [vmem:[#allocation2 + $0x13a8] sm:$0xff] }
 0x6b2   :  { %4360 = vmatprep.subr.bf16.mxu1 %v3544_v36  ;;  %4811 = vmatprep.subr.bf16.mxu0 %v3418_v55  ;;  %v3466_v36 = vld [vmem:[#allocation2 + $0xfb8] sm:$0xff]  ;;  %v3591_v55 = vld [vmem:[#allocation2 + $0x13a0] sm:$0xff] }
 0x6b3   :  { %4390 = vmatprep.mubr.bf16.mxu1 %v9698_v56  ;;  %4841 = vmatprep.mubr.bf16.mxu0 %v9673_v11  ;;  %v3555_v11 = vld [vmem:[#allocation2 + $0x1280] sm:$0xff] }
 0x6b5   :  { %4361 = vmatpush1.bf16.msra.mxu1 %v3543_v47  ;;  %4812 = vmatpush1.bf16.msra.mxu0 %v3417_v57  ;;  %v3465_v47 = vld [vmem:[#allocation2 + $0xfb0] sm:$0xff]  ;;  %v3596_v57 = vld [vmem:[#allocation2 + $0x13c8] sm:$0xff] }
 0x6b6   :  { %4362 = vmatprep.subr.bf16.mxu1 %v3548_v1  ;;  %4813 = vmatprep.subr.bf16.mxu0 %v3422_v34  ;;  %v3470_v1 = vld [vmem:[#allocation2 + $0xfd8] sm:$0xff]  ;;  %v3595_v34 = vld [vmem:[#allocation2 + $0x13c0] sm:$0xff] }
 0x6b9   :  { %4363 = vmatpush1.bf16.msra.mxu1 %v3547_v38  ;;  %4814 = vmatpush1.bf16.msra.mxu0 %v3421_v5  ;;  %v3469_v38 = vld [vmem:[#allocation2 + $0xfd0] sm:$0xff]  ;;  %v3600_v5 = vld [vmem:[#allocation2 + $0x13e8] sm:$0xff] }
 0x6ba   :  { %4364 = vmatprep.subr.bf16.mxu1 %v3552_v37  ;;  %4815 = vmatprep.subr.bf16.mxu0 %v3426_v2  ;;  %v3474_v37 = vld [vmem:[#allocation2 + $0xff8] sm:$0xff]  ;;  %v2888_v2 = vrot.slane %v9680_v10, %v9567_v41  ;;  %v3608_v41 = vld [vmem:[#allocation2 + $0x1428] sm:$0xff] }
 0x6bd   :  { %4365 = vmatpush1.bf16.msra.mxu1 %v3551_v35  ;;  %4816 = vmatpush1.bf16.msra.mxu0 %v3425_v22  ;;  %v3599_v35 = vld [vmem:[#allocation2 + $0x13e0] sm:$0xff]  ;;  %v3473_v22 = vld [vmem:[#allocation2 + $0xff0] sm:$0xff] }
 0x6be   :  { %4366 = vmatprep.subr.bf16.mxu1 %v3556_v12  ;;  %4817 = vmatprep.subr.bf16.mxu0 %v3430_v63  ;;  %v3604_v12 = vld [vmem:[#allocation2 + $0x1408] sm:$0xff]  ;;  %v3478_v63 = vld [vmem:[#allocation2 + $0x1018] sm:$0xff] }
 0x6c1   :  { %4367 = vmatpush1.bf16.msra.mxu1 %v3555_v11  ;;  %4818 = vmatpush1.bf16.msra.mxu0 %v3429_v9  ;;  %v2900_v11 = vrot.slane %v9680_v10, %v9570_v45  ;;  %v9708_v9 = vpack.c.bf16 %v2888_v2, %v2888_v2  ;;  %v3607_v45 = vld [vmem:[#allocation2 + $0x1420] sm:$0xff]  ;;  %v3521_v2 = vld [vmem:[#allocation2 + $0x1170] sm:$0xff] }
 0x6c2   :  { %4368 = vmatprep.subr.bf16.mxu1 %v3560_v14  ;;  %4819 = vmatprep.subr.bf16.mxu0 %v3434_v15  ;;  %v3603_v14 = vld [vmem:[#allocation2 + $0x1400] sm:$0xff]  ;;  %v3477_v15 = vld [vmem:[#allocation2 + $0x1010] sm:$0xff] }
 0x6c5   :  { %4369 = vmatpush1.bf16.msra.mxu1 %v3559_v16  ;;  %4820 = vmatpush1.bf16.msra.mxu0 %v3433_v62  ;;  %v3482_v16 = vld [vmem:[#allocation2 + $0x1038] sm:$0xff]  ;;  %v9710_v62 = vpack.c.bf16 %v2900_v11, %v2900_v11  ;;  %v3656_v11 = vld [vmem:[#allocation2 + $0x15a8] sm:$0xff] }
 0x6c6   :  { %4370 = vmatprep.subr.bf16.mxu1 %v3564_v4  ;;  %4821 = vmatprep.subr.bf16.mxu0 %v3438_v19  ;;  %v3481_v4 = vld [vmem:[#allocation2 + $0x1030] sm:$0xff]  ;;  %v3612_v19 = vld [vmem:[#allocation2 + $0x1448] sm:$0xff] }
 0x6c9   :  { %4371 = vmatpush1.bf16.msra.mxu1 %v3563_v6  ;;  %4822 = vmatpush1.bf16.msra.mxu0 %v3437_v40  ;;  %v3486_v6 = vld [vmem:[#allocation2 + $0x1058] sm:$0xff]  ;;  %v3611_v40 = vld [vmem:[#allocation2 + $0x1440] sm:$0xff] }
 0x6ca   :  { %4372 = vmatprep.subr.bf16.mxu1 %v3568_v58  ;;  %4823 = vmatprep.subr.bf16.mxu0 %v3442_v17  ;;  %v3485_v58 = vld [vmem:[#allocation2 + $0x1050] sm:$0xff]  ;;  %v3616_v17 = vld [vmem:[#allocation2 + $0x1468] sm:$0xff] }
 0x6cd   :  { %4373 = vmatpush1.bf16.msra.mxu1 %v3567_v21  ;;  %4824 = vmatpush1.bf16.msra.mxu0 %v3441_v39  ;;  %v3615_v21 = vld [vmem:[#allocation2 + $0x1460] sm:$0xff]  ;;  %v3489_v39 = vld [vmem:[#allocation2 + $0x1070] sm:$0xff] }
 0x6ce   :  { %4374 = vmatprep.subr.bf16.mxu1 %v3572_v61  ;;  %4825 = vmatprep.subr.bf16.mxu0 %v3446_v54  ;;  %v3620_v61 = vld [vmem:[#allocation2 + $0x1488] sm:$0xff]  ;;  %v3494_v54 = vld [vmem:[#allocation2 + $0x1098] sm:$0xff] }
 0x6d1   :  { %4375 = vmatpush1.bf16.msra.mxu1 %v3571_v25  ;;  %4826 = vmatpush1.bf16.msra.mxu0 %v3445_v60  ;;  %v3493_v25 = vld [vmem:[#allocation2 + $0x1090] sm:$0xff]  ;;  %v3624_v60 = vld [vmem:[#allocation2 + $0x14a8] sm:$0xff] }
 0x6d2   :  { %4376 = vmatprep.subr.bf16.mxu1 %v3576_v46  ;;  %4827 = vmatprep.subr.bf16.mxu0 %v3450_v30  ;;  %v3498_v46 = vld [vmem:[#allocation2 + $0x10b8] sm:$0xff]  ;;  %v3623_v30 = vld [vmem:[#allocation2 + $0x14a0] sm:$0xff] }
 0x6d5   :  { %4377 = vmatpush1.bf16.msra.mxu1 %v3575_v32  ;;  %4828 = vmatpush1.bf16.msra.mxu0 %v3449_v3  ;;  %v3497_v32 = vld [vmem:[#allocation2 + $0x10b0] sm:$0xff]  ;;  %v3628_v3 = vld [vmem:[#allocation2 + $0x14c8] sm:$0xff] }
 0x6d6   :  { %4378 = vmatprep.subr.bf16.mxu1 %v3580_v42  ;;  %4829 = vmatprep.subr.bf16.mxu0 %v3454_v43  ;;  %v3502_v42 = vld [vmem:[#allocation2 + $0x10d8] sm:$0xff]  ;;  %v3627_v43 = vld [vmem:[#allocation2 + $0x14c0] sm:$0xff] }
 0x6d9   :  { %4379 = vmatpush1.bf16.msra.mxu1 %v3579_v44  ;;  %4830 = vmatpush1.bf16.msra.mxu0 %v3453_v24  ;;  %v3501_v44 = vld [vmem:[#allocation2 + $0x10d0] sm:$0xff]  ;;  %v3632_v24 = vld [vmem:[#allocation2 + $0x14e8] sm:$0xff] }
 0x6da   :  { %4380 = vmatprep.subr.bf16.mxu1 %v3584_v53  ;;  %4831 = vmatprep.subr.bf16.mxu0 %v3458_v20  ;;  %v3506_v53 = vld [vmem:[#allocation2 + $0x10f8] sm:$0xff]  ;;  %v3631_v20 = vld [vmem:[#allocation2 + $0x14e0] sm:$0xff] }
 0x6dd   :  { %4381 = vmatpush1.bf16.msra.mxu1 %v3583_v59  ;;  %4832 = vmatpush1.bf16.msra.mxu0 %v3457_v48  ;;  %v3505_v59 = vld [vmem:[#allocation2 + $0x10f0] sm:$0xff]  ;;  %v3636_v48 = vld [vmem:[#allocation2 + $0x1508] sm:$0xff] }
 0x6de   :  { %4382 = vmatprep.subr.bf16.mxu1 %v3588_v29  ;;  %4833 = vmatprep.subr.bf16.mxu0 %v3462_v50  ;;  %v3510_v29 = vld [vmem:[#allocation2 + $0x1118] sm:$0xff]  ;;  %v3635_v50 = vld [vmem:[#allocation2 + $0x1500] sm:$0xff] }
 0x6e1   :  { %4383 = vmatpush1.bf16.msra.mxu1 %v3587_v51  ;;  %4834 = vmatpush1.bf16.msra.mxu0 %v3461_v52  ;;  %v3509_v51 = vld [vmem:[#allocation2 + $0x1110] sm:$0xff]  ;;  %v3640_v52 = vld [vmem:[#allocation2 + $0x1528] sm:$0xff] }
 0x6e2   :  { %4384 = vmatprep.subr.bf16.mxu1 %v3592_v27  ;;  %4835 = vmatprep.subr.bf16.mxu0 %v3466_v36  ;;  %v3514_v27 = vld [vmem:[#allocation2 + $0x1138] sm:$0xff]  ;;  %v3639_v36 = vld [vmem:[#allocation2 + $0x1520] sm:$0xff] }
 0x6e5   :  { %4385 = vmatpush1.bf16.msra.mxu1 %v3591_v55  ;;  %4836 = vmatpush1.bf16.msra.mxu0 %v3465_v47  ;;  %v3513_v55 = vld [vmem:[#allocation2 + $0x1130] sm:$0xff]  ;;  %v3644_v47 = vld [vmem:[#allocation2 + $0x1548] sm:$0xff] }
 0x6e6   :  { %4386 = vmatprep.subr.bf16.mxu1 %v3596_v57  ;;  %4837 = vmatprep.subr.bf16.mxu0 %v3470_v1  ;;  %v3518_v57 = vld [vmem:[#allocation2 + $0x1158] sm:$0xff]  ;;  %v3643_v1 = vld [vmem:[#allocation2 + $0x1540] sm:$0xff] }
 0x6e9   :  { %4387 = vmatpush1.bf16.msra.mxu1 %v3595_v34  ;;  %4838 = vmatpush1.bf16.msra.mxu0 %v3469_v38  ;;  %v3517_v34 = vld [vmem:[#allocation2 + $0x1150] sm:$0xff]  ;;  %v3648_v38 = vld [vmem:[#allocation2 + $0x1568] sm:$0xff] }
 0x6ea   :  { %4388 = vmatprep.subr.bf16.mxu1 %v3600_v5  ;;  %4839 = vmatprep.subr.bf16.mxu0 %v3474_v37  ;;  %v3522_v5 = vld [vmem:[#allocation2 + $0x1178] sm:$0xff]  ;;  %v3647_v37 = vld [vmem:[#allocation2 + $0x1560] sm:$0xff] }
 0x6ed   :  { %4389 = vmatpush1.bf16.msra.mxu1 %v3599_v35  ;;  %4840 = vmatpush1.bf16.msra.mxu0 %v3473_v22  ;;  %v3652_v35 = vld [vmem:[#allocation2 + $0x1588] sm:$0xff]  ;;  %v3526_v22 = vld [vmem:[#allocation2 + $0x1198] sm:$0xff] }
 0x6ee   :  { %4399 = vmatprep.subr.bf16.mxu1 %v3604_v12  ;;  %4850 = vmatprep.subr.bf16.mxu0 %v3478_v63  ;;  %v3651_v12 = vld [vmem:[#allocation2 + $0x1580] sm:$0xff]  ;;  %v3525_v63 = vld [vmem:[#allocation2 + $0x1190] sm:$0xff] }
 0x6f0   :  { %4391 = vmatmul.mubr.bf16.vlgmr.msra.gmra.mrb[56].mxu1 %v9708_v9  ;;  %4842 = vmatmul.mubr.bf16.vlgmr.msra.gmra.mrb[64].mxu0 %v9684_v7  ;;  %v3490_v7 = vld [vmem:[#allocation2 + $0x1078] sm:$0xff] }
 0x6f1   :  { %4400 = vmatpush1.bf16.msra.mxu1 %v3603_v14  ;;  %4851 = vmatpush1.bf16.msra.mxu0 %v3477_v15  ;;  %v3530_v14 = vld [vmem:[#allocation2 + $0x11b8] sm:$0xff]  ;;  %v3655_v15 = vld [vmem:[#allocation2 + $0x15a0] sm:$0xff] }
 0x6f2   :  { %4401 = vmatprep.subr.bf16.mxu1 %v3608_v41  ;;  %4852 = vmatprep.subr.bf16.mxu0 %v3482_v16  ;;  %v3529_v41 = vld [vmem:[#allocation2 + $0x11b0] sm:$0xff]  ;;  %v3660_v16 = vld [vmem:[#allocation2 + $0x15c8] sm:$0xff] }
 0x6f3   :  { %4431 = vmatprep.mubr.bf16.mxu1 %v9710_v62  ;;  %4882 = vmatprep.mubr.bf16.mxu0 %v9686_v28  ;;  %v3619_v28 = vld [vmem:[#allocation2 + $0x1480] sm:$0xff] }
 0x6f5   :  { %4402 = vmatpush1.bf16.msra.mxu1 %v3607_v45  ;;  %4853 = vmatpush1.bf16.msra.mxu0 %v3481_v4  ;;  %v3534_v45 = vld [vmem:[#allocation2 + $0x11d8] sm:$0xff]  ;;  %v3659_v4 = vld [vmem:[#allocation2 + $0x15c0] sm:$0xff] }
 0x6f6   :  { %4403 = vmatprep.subr.bf16.mxu1 %v3612_v19  ;;  %4854 = vmatprep.subr.bf16.mxu0 %v3486_v6  ;;  %v3533_v19 = vld [vmem:[#allocation2 + $0x11d0] sm:$0xff]  ;;  %v3664_v6 = vld [vmem:[#allocation2 + $0x15e8] sm:$0xff] }
 0x6f9   :  { %4404 = vmatpush1.bf16.msra.mxu1 %v3611_v40  ;;  %4855 = vmatpush1.bf16.msra.mxu0 %v3485_v58  ;;  %v3538_v40 = vld [vmem:[#allocation2 + $0x11f8] sm:$0xff]  ;;  %v2896_v58 = vrot.slane %v9680_v10, %v9589_v31  ;;  %v3672_v31 = vld [vmem:[#allocation2 + $0x1628] sm:$0xff] }
 0x6fa   :  { %4405 = vmatprep.subr.bf16.mxu1 %v3616_v17  ;;  %4856 = vmatprep.subr.bf16.mxu0 %v3490_v7  ;;  %v3663_v17 = vld [vmem:[#allocation2 + $0x15e0] sm:$0xff]  ;;  %v3537_v7 = vld [vmem:[#allocation2 + $0x11f0] sm:$0xff] }
 0x6fd   :  { %4406 = vmatpush1.bf16.msra.mxu1 %v3615_v21  ;;  %4857 = vmatpush1.bf16.msra.mxu0 %v3489_v39  ;;  %v3668_v21 = vld [vmem:[#allocation2 + $0x1608] sm:$0xff]  ;;  %v3542_v39 = vld [vmem:[#allocation2 + $0x1218] sm:$0xff] }
 0x6fe   :  { %4407 = vmatprep.subr.bf16.mxu1 %v3620_v61  ;;  %4858 = vmatprep.subr.bf16.mxu0 %v3494_v54  ;;  %v2908_v61 = vrot.slane %v9680_v10, %v9592_v13  ;;  %v9720_v54 = vpack.c.bf16 %v2896_v58, %v2896_v58  ;;  %v3671_v13 = vld [vmem:[#allocation2 + $0x1620] sm:$0xff]  ;;  %v3545_v10 = vld [vmem:[#allocation2 + $0x1230] sm:$0xff] }
 0x6ff   :  { %v3715_v58 = vld [vmem:[#allocation2 + $0x1780] sm:$0xff] }
 0x701   :  { %4408 = vmatpush1.bf16.msra.mxu1 %v3619_v28  ;;  %4859 = vmatpush1.bf16.msra.mxu0 %v3493_v25  ;;  %v3667_v28 = vld [vmem:[#allocation2 + $0x1600] sm:$0xff]  ;;  %v3541_v25 = vld [vmem:[#allocation2 + $0x1210] sm:$0xff] }
 0x702   :  { %4409 = vmatprep.subr.bf16.mxu1 %v3624_v60  ;;  %4860 = vmatprep.subr.bf16.mxu0 %v3498_v46  ;;  %v3546_v60 = vld [vmem:[#allocation2 + $0x1238] sm:$0xff]  ;;  %v9722_v46 = vpack.c.bf16 %v2908_v61, %v2908_v61  ;;  %v3593_v61 = vld [vmem:[#allocation2 + $0x13b0] sm:$0xff] }
 0x705   :  { %4410 = vmatpush1.bf16.msra.mxu1 %v3623_v30  ;;  %4861 = vmatpush1.bf16.msra.mxu0 %v3497_v32  ;;  %v3676_v30 = vld [vmem:[#allocation2 + $0x1648] sm:$0xff]  ;;  %v3550_v32 = vld [vmem:[#allocation2 + $0x1258] sm:$0xff] }
 0x706   :  { %4411 = vmatprep.subr.bf16.mxu1 %v3628_v3  ;;  %4862 = vmatprep.subr.bf16.mxu0 %v3502_v42  ;;  %v3675_v3 = vld [vmem:[#allocation2 + $0x1640] sm:$0xff]  ;;  %v3549_v42 = vld [vmem:[#allocation2 + $0x1250] sm:$0xff] }
 0x709   :  { %4412 = vmatpush1.bf16.msra.mxu1 %v3627_v43  ;;  %4863 = vmatpush1.bf16.msra.mxu0 %v3501_v44  ;;  %v3680_v43 = vld [vmem:[#allocation2 + $0x1668] sm:$0xff]  ;;  %v3679_v44 = vld [vmem:[#allocation2 + $0x1660] sm:$0xff] }
 0x70a   :  { %4413 = vmatprep.subr.bf16.mxu1 %v3632_v24  ;;  %4864 = vmatprep.subr.bf16.mxu0 %v3506_v53  ;;  %v3553_v24 = vld [vmem:[#allocation2 + $0x1270] sm:$0xff]  ;;  %v3684_v53 = vld [vmem:[#allocation2 + $0x1688] sm:$0xff] }
 0x70d   :  { %4414 = vmatpush1.bf16.msra.mxu1 %v3631_v20  ;;  %4865 = vmatpush1.bf16.msra.mxu0 %v3505_v59  ;;  %v3558_v20 = vld [vmem:[#allocation2 + $0x1298] sm:$0xff]  ;;  %v3557_v59 = vld [vmem:[#allocation2 + $0x1290] sm:$0xff] }
 0x70e   :  { %4415 = vmatprep.subr.bf16.mxu1 %v3636_v48  ;;  %4866 = vmatprep.subr.bf16.mxu0 %v3510_v29  ;;  %v3688_v48 = vld [vmem:[#allocation2 + $0x16a8] sm:$0xff]  ;;  %v3562_v29 = vld [vmem:[#allocation2 + $0x12b8] sm:$0xff] }
 0x711   :  { %4416 = vmatpush1.bf16.msra.mxu1 %v3635_v50  ;;  %4867 = vmatpush1.bf16.msra.mxu0 %v3509_v51  ;;  %v3687_v50 = vld [vmem:[#allocation2 + $0x16a0] sm:$0xff]  ;;  %v3561_v51 = vld [vmem:[#allocation2 + $0x12b0] sm:$0xff] }
 0x712   :  { %4417 = vmatprep.subr.bf16.mxu1 %v3640_v52  ;;  %4868 = vmatprep.subr.bf16.mxu0 %v3514_v27  ;;  %v3692_v52 = vld [vmem:[#allocation2 + $0x16c8] sm:$0xff]  ;;  %v3566_v27 = vld [vmem:[#allocation2 + $0x12d8] sm:$0xff] }
 0x715   :  { %4418 = vmatpush1.bf16.msra.mxu1 %v3639_v36  ;;  %4869 = vmatpush1.bf16.msra.mxu0 %v3513_v55  ;;  %v3691_v36 = vld [vmem:[#allocation2 + $0x16c0] sm:$0xff]  ;;  %v3565_v55 = vld [vmem:[#allocation2 + $0x12d0] sm:$0xff] }
 0x716   :  { %4419 = vmatprep.subr.bf16.mxu1 %v3644_v47  ;;  %4870 = vmatprep.subr.bf16.mxu0 %v3518_v57  ;;  %v3696_v47 = vld [vmem:[#allocation2 + $0x16e8] sm:$0xff]  ;;  %v3570_v57 = vld [vmem:[#allocation2 + $0x12f8] sm:$0xff] }
 0x719   :  { %4420 = vmatpush1.bf16.msra.mxu1 %v3643_v1  ;;  %4871 = vmatpush1.bf16.msra.mxu0 %v3517_v34  ;;  %v3695_v1 = vld [vmem:[#allocation2 + $0x16e0] sm:$0xff]  ;;  %v3569_v34 = vld [vmem:[#allocation2 + $0x12f0] sm:$0xff] }
 0x71a   :  { %4421 = vmatprep.subr.bf16.mxu1 %v3648_v38  ;;  %4872 = vmatprep.subr.bf16.mxu0 %v3522_v5  ;;  %v3700_v38 = vld [vmem:[#allocation2 + $0x1708] sm:$0xff]  ;;  %v3574_v5 = vld [vmem:[#allocation2 + $0x1318] sm:$0xff] }
 0x71d   :  { %4422 = vmatpush1.bf16.msra.mxu1 %v3647_v37  ;;  %4873 = vmatpush1.bf16.msra.mxu0 %v3521_v2  ;;  %v3699_v37 = vld [vmem:[#allocation2 + $0x1700] sm:$0xff]  ;;  %v3573_v2 = vld [vmem:[#allocation2 + $0x1310] sm:$0xff] }
 0x71e   :  { %4423 = vmatprep.subr.bf16.mxu1 %v3652_v35  ;;  %4874 = vmatprep.subr.bf16.mxu0 %v3526_v22  ;;  %v3704_v35 = vld [vmem:[#allocation2 + $0x1728] sm:$0xff]  ;;  %v3578_v22 = vld [vmem:[#allocation2 + $0x1338] sm:$0xff] }
 0x721   :  { %4424 = vmatpush1.bf16.msra.mxu1 %v3651_v12  ;;  %4875 = vmatpush1.bf16.msra.mxu0 %v3525_v63  ;;  %v3703_v12 = vld [vmem:[#allocation2 + $0x1720] sm:$0xff]  ;;  %v3577_v63 = vld [vmem:[#allocation2 + $0x1330] sm:$0xff] }
 0x722   :  { %4425 = vmatprep.subr.bf16.mxu1 %v3656_v11  ;;  %4876 = vmatprep.subr.bf16.mxu0 %v3530_v14  ;;  %v3708_v11 = vld [vmem:[#allocation2 + $0x1748] sm:$0xff]  ;;  %v3582_v14 = vld [vmem:[#allocation2 + $0x1358] sm:$0xff] }
 0x725   :  { %4426 = vmatpush1.bf16.msra.mxu1 %v3655_v15  ;;  %4877 = vmatpush1.bf16.msra.mxu0 %v3529_v41  ;;  %v3707_v15 = vld [vmem:[#allocation2 + $0x1740] sm:$0xff]  ;;  %v3581_v41 = vld [vmem:[#allocation2 + $0x1350] sm:$0xff] }
 0x726   :  { %4427 = vmatprep.subr.bf16.mxu1 %v3660_v16  ;;  %4878 = vmatprep.subr.bf16.mxu0 %v3534_v45  ;;  %v3712_v16 = vld [vmem:[#allocation2 + $0x1768] sm:$0xff]  ;;  %v3586_v45 = vld [vmem:[#allocation2 + $0x1378] sm:$0xff] }
 0x729   :  { %4428 = vmatpush1.bf16.msra.mxu1 %v3659_v4  ;;  %4879 = vmatpush1.bf16.msra.mxu0 %v3533_v19  ;;  %v3711_v4 = vld [vmem:[#allocation2 + $0x1760] sm:$0xff]  ;;  %v3585_v19 = vld [vmem:[#allocation2 + $0x1370] sm:$0xff] }
 0x72a   :  { %4429 = vmatprep.subr.bf16.mxu1 %v3664_v6  ;;  %4880 = vmatprep.subr.bf16.mxu0 %v3538_v40  ;;  %v3716_v6 = vld [vmem:[#allocation2 + $0x1788] sm:$0xff]  ;;  %v3590_v40 = vld [vmem:[#allocation2 + $0x1398] sm:$0xff] }
 0x72d   :  { %4430 = vmatpush1.bf16.msra.mxu1 %v3663_v17  ;;  %4881 = vmatpush1.bf16.msra.mxu0 %v3537_v7  ;;  %v3589_v17 = vld [vmem:[#allocation2 + $0x1390] sm:$0xff]  ;;  %v3720_v7 = vld [vmem:[#allocation2 + $0x17a8] sm:$0xff] }
 0x72e   :  { %4440 = vmatprep.subr.bf16.mxu1 %v3668_v21  ;;  %4891 = vmatprep.subr.bf16.mxu0 %v3542_v39  ;;  %v3594_v21 = vld [vmem:[#allocation2 + $0x13b8] sm:$0xff]  ;;  %v3719_v39 = vld [vmem:[#allocation2 + $0x17a0] sm:$0xff] }
 0x730   :  { %4432 = vmatmul.mubr.bf16.vlgmr.msra.gmra.mrb[56].mxu1 %v9720_v54  ;;  %4883 = vmatmul.mubr.bf16.vlgmr.msra.gmra.mrb[64].mxu0 %v9696_v26  ;;  %v3554_v26 = vld [vmem:[#allocation2 + $0x1278] sm:$0xff] }
 0x731   :  { %4441 = vmatpush1.bf16.msra.mxu1 %v3667_v28  ;;  %4892 = vmatpush1.bf16.msra.mxu0 %v3541_v25  ;;  %v3724_v28 = vld [vmem:[#allocation2 + $0x17c8] sm:$0xff]  ;;  %v3598_v25 = vld [vmem:[#allocation2 + $0x13d8] sm:$0xff] }
 0x732   :  { %4442 = vmatprep.subr.bf16.mxu1 %v3672_v31  ;;  %4893 = vmatprep.subr.bf16.mxu0 %v3546_v60  ;;  %v3723_v31 = vld [vmem:[#allocation2 + $0x17c0] sm:$0xff]  ;;  %v3597_v60 = vld [vmem:[#allocation2 + $0x13d0] sm:$0xff] }
 0x733   :  { %4472 = vmatprep.mubr.bf16.mxu1 %v9722_v46  ;;  %4923 = vmatprep.mubr.bf16.mxu0 %v9698_v56  ;;  %v3683_v56 = vld [vmem:[#allocation2 + $0x1680] sm:$0xff] }
 0x735   :  { %4443 = vmatpush1.bf16.msra.mxu1 %v3671_v13  ;;  %4894 = vmatpush1.bf16.msra.mxu0 %v3545_v10  ;;  %v3728_v13 = vld [vmem:[#allocation2 + $0x17e8] sm:$0xff]  ;;  %v3602_v10 = vld [vmem:[#allocation2 + $0x13f8] sm:$0xff] }
 0x736   :  { %4444 = vmatprep.subr.bf16.mxu1 %v3676_v30  ;;  %4895 = vmatprep.subr.bf16.mxu0 %v3550_v32  ;;  %v7285_v30 = vld [vmem:[#allocation3 + $0x10] sm:$0xff] }
 0x737   :  { %v2904_v32 = vrot.slane %v7285_v30, %v9607_v18  ;;  %v3735_v18 = vld [vmem:[#allocation2 + $0x1820] sm:$0xff]  ;;  %v3685_v30 = vld [vmem:[#allocation2 + $0x1690] sm:$0xff] }
 0x739   :  { %4445 = vmatpush1.bf16.msra.mxu1 %v3675_v3  ;;  %4896 = vmatpush1.bf16.msra.mxu0 %v3549_v42  ;;  %v3727_v3 = vld [vmem:[#allocation2 + $0x17e0] sm:$0xff]  ;;  %v3601_v42 = vld [vmem:[#allocation2 + $0x13f0] sm:$0xff] }
 0x73a   :  { %4446 = vmatprep.subr.bf16.mxu1 %v3680_v43  ;;  %4897 = vmatprep.subr.bf16.mxu0 %v3554_v26  ;;  %v3732_v43 = vld [vmem:[#allocation2 + $0x1808] sm:$0xff]  ;;  %v3606_v26 = vld [vmem:[#allocation2 + $0x1418] sm:$0xff] }
 0x73d   :  { %4447 = vmatpush1.bf16.msra.mxu1 %v3679_v44  ;;  %4898 = vmatpush1.bf16.msra.mxu0 %v3553_v24  ;;  %v9729_v44 = vpack.c.bf16 %v2904_v32, %v2904_v32  ;;  %v3731_v24 = vld [vmem:[#allocation2 + $0x1800] sm:$0xff]  ;;  %v3690_v32 = vld [vmem:[#allocation2 + $0x16b8] sm:$0xff] }
 0x73e   :  { %4448 = vmatprep.subr.bf16.mxu1 %v3684_v53  ;;  %4899 = vmatprep.subr.bf16.mxu0 %v3558_v20  ;;  %v3605_v53 = vld [vmem:[#allocation2 + $0x1410] sm:$0xff]  ;;  %v3736_v20 = vld [vmem:[#allocation2 + $0x1828] sm:$0xff] }
 0x741   :  { %4449 = vmatpush1.bf16.msra.mxu1 %v3683_v56  ;;  %4900 = vmatpush1.bf16.msra.mxu0 %v3557_v59  ;;  %v3610_v56 = vld [vmem:[#allocation2 + $0x1438] sm:$0xff]  ;;  %v3609_v59 = vld [vmem:[#allocation2 + $0x1430] sm:$0xff] }
 0x742   :  { %4450 = vmatprep.subr.bf16.mxu1 %v3688_v48  ;;  %4901 = vmatprep.subr.bf16.mxu0 %v3562_v29  ;;  %v3740_v48 = vld [vmem:[#allocation2 + $0x1848] sm:$0xff]  ;;  %v3614_v29 = vld [vmem:[#allocation2 + $0x1458] sm:$0xff] }
 0x745   :  { %4451 = vmatpush1.bf16.msra.mxu1 %v3687_v50  ;;  %4902 = vmatpush1.bf16.msra.mxu0 %v3561_v51  ;;  %v3739_v50 = vld [vmem:[#allocation2 + $0x1840] sm:$0xff]  ;;  %v3613_v51 = vld [vmem:[#allocation2 + $0x1450] sm:$0xff] }
 0x746   :  { %4452 = vmatprep.subr.bf16.mxu1 %v3692_v52  ;;  %4903 = vmatprep.subr.bf16.mxu0 %v3566_v27  ;;  %v3744_v52 = vld [vmem:[#allocation2 + $0x1868] sm:$0xff]  ;;  %v5974_v27 = vld [vmem:[#allocation3 + $0x18] ss:$0 sm:$0xff] }
 0x749   :  { %4453 = vmatpush1.bf16.msra.mxu1 %v3691_v36  ;;  %4904 = vmatpush1.bf16.msra.mxu0 %v3565_v55  ;;  %v3743_v36 = vld [vmem:[#allocation2 + $0x1860] sm:$0xff]  ;;  %v3617_v55 = vld [vmem:[#allocation2 + $0x1470] sm:$0xff] }
 0x74a   :  { %4454 = vmatprep.subr.bf16.mxu1 %v3696_v47  ;;  %4905 = vmatprep.subr.bf16.mxu0 %v3570_v57  ;;  %v3622_v47 = vld [vmem:[#allocation2 + $0x1498] sm:$0xff]  ;;  %v9735_v57 = vpack.c.bf16 %v5974_v27, %v5974_v27  ;;  %v3725_v27 = vld [vmem:[#allocation2 + $0x17d0] sm:$0xff] }
 0x74d   :  { %4455 = vmatpush1.bf16.msra.mxu1 %v3695_v1  ;;  %4906 = vmatpush1.bf16.msra.mxu0 %v3569_v34  ;;  %v3626_v1 = vld [vmem:[#allocation2 + $0x14b8] sm:$0xff]  ;;  %v9742_v34 = vld [vmem:[%s9948_s25] sm:$0xff] }
 0x74e   :  { %4456 = vmatprep.subr.bf16.mxu1 %v3700_v38  ;;  %4907 = vmatprep.subr.bf16.mxu0 %v3574_v5  ;;  %v3625_v38 = vld [vmem:[#allocation2 + $0x14b0] sm:$0xff]  ;;  %v3630_v5 = vld [vmem:[#allocation2 + $0x14d8] sm:$0xff] }
 0x751   :  { %4457 = vmatpush1.bf16.msra.mxu1 %v3699_v37  ;;  %4908 = vmatpush1.bf16.msra.mxu0 %v3573_v2  ;;  %v3629_v37 = vld [vmem:[#allocation2 + $0x14d0] sm:$0xff]  ;;  %v3634_v2 = vld [vmem:[#allocation2 + $0x14f8] sm:$0xff] }
 0x752   :  { %4458 = vmatprep.subr.bf16.mxu1 %v3704_v35  ;;  %4909 = vmatprep.subr.bf16.mxu0 %v3578_v22  ;;  %v3633_v35 = vld [vmem:[#allocation2 + $0x14f0] sm:$0xff]  ;;  %v3638_v22 = vld [vmem:[#allocation2 + $0x1518] sm:$0xff] }
 0x755   :  { %4459 = vmatpush1.bf16.msra.mxu1 %v3703_v12  ;;  %4910 = vmatpush1.bf16.msra.mxu0 %v3577_v63  ;;  %v3637_v12 = vld [vmem:[#allocation2 + $0x1510] sm:$0xff]  ;;  %v3642_v63 = vld [vmem:[#allocation2 + $0x1538] sm:$0xff] }
 0x756   :  { %4460 = vmatprep.subr.bf16.mxu1 %v3708_v11  ;;  %4911 = vmatprep.subr.bf16.mxu0 %v3582_v14  ;;  %v3641_v11 = vld [vmem:[#allocation2 + $0x1530] sm:$0xff]  ;;  %v3646_v14 = vld [vmem:[#allocation2 + $0x1558] sm:$0xff] }
 0x759   :  { %4461 = vmatpush1.bf16.msra.mxu1 %v3707_v15  ;;  %4912 = vmatpush1.bf16.msra.mxu0 %v3581_v41  ;;  %v3645_v15 = vld [vmem:[#allocation2 + $0x1550] sm:$0xff]  ;;  %v3650_v41 = vld [vmem:[#allocation2 + $0x1578] sm:$0xff] }
 0x75a   :  { %4462 = vmatprep.subr.bf16.mxu1 %v3712_v16  ;;  %4913 = vmatprep.subr.bf16.mxu0 %v3586_v45  ;;  %v3649_v16 = vld [vmem:[#allocation2 + $0x1570] sm:$0xff]  ;;  %v3654_v45 = vld [vmem:[#allocation2 + $0x1598] sm:$0xff] }
 0x75d   :  { %4463 = vmatpush1.bf16.msra.mxu1 %v3711_v4  ;;  %4914 = vmatpush1.bf16.msra.mxu0 %v3585_v19  ;;  %v3653_v4 = vld [vmem:[#allocation2 + $0x1590] sm:$0xff]  ;;  %v3658_v19 = vld [vmem:[#allocation2 + $0x15b8] sm:$0xff] }
 0x75e   :  { %4464 = vmatprep.subr.bf16.mxu1 %v3716_v6  ;;  %4915 = vmatprep.subr.bf16.mxu0 %v3590_v40  ;;  %v3657_v6 = vld [vmem:[#allocation2 + $0x15b0] sm:$0xff]  ;;  %v3662_v40 = vld [vmem:[#allocation2 + $0x15d8] sm:$0xff] }
 0x761   :  { %4465 = vmatpush1.bf16.msra.mxu1 %v3715_v58  ;;  %4916 = vmatpush1.bf16.msra.mxu0 %v3589_v17  ;;  %v3661_v58 = vld [vmem:[#allocation2 + $0x15d0] sm:$0xff]  ;;  %v3666_v17 = vld [vmem:[#allocation2 + $0x15f8] sm:$0xff] }
 0x762   :  { %4466 = vmatprep.subr.bf16.mxu1 %v3720_v7  ;;  %4917 = vmatprep.subr.bf16.mxu0 %v3594_v21  ;;  %v3665_v7 = vld [vmem:[#allocation2 + $0x15f0] sm:$0xff]  ;;  %v3670_v21 = vld [vmem:[#allocation2 + $0x1618] sm:$0xff] }
 0x765   :  { %4467 = vmatpush1.bf16.msra.mxu1 %v3719_v39  ;;  %4918 = vmatpush1.bf16.msra.mxu0 %v3593_v61  ;;  %v3669_v39 = vld [vmem:[#allocation2 + $0x1610] sm:$0xff]  ;;  %v3674_v61 = vld [vmem:[#allocation2 + $0x1638] sm:$0xff] }
 0x766   :  { %4468 = vmatprep.subr.bf16.mxu1 %v3724_v28  ;;  %4919 = vmatprep.subr.bf16.mxu0 %v3598_v25  ;;  %v3673_v28 = vld [vmem:[#allocation2 + $0x1630] sm:$0xff]  ;;  %v3678_v25 = vld [vmem:[#allocation2 + $0x1658] sm:$0xff] }
 0x769   :  { %4469 = vmatpush1.bf16.msra.mxu1 %v3723_v31  ;;  %4920 = vmatpush1.bf16.msra.mxu0 %v3597_v60  ;;  %v3677_v31 = vld [vmem:[#allocation2 + $0x1650] sm:$0xff]  ;;  %v3682_v60 = vld [vmem:[#allocation2 + $0x1678] sm:$0xff] }
 0x76a   :  { %4470 = vmatprep.subr.bf16.mxu1 %v3728_v13  ;;  %4921 = vmatprep.subr.bf16.mxu0 %v3602_v10  ;;  %v3681_v13 = vld [vmem:[#allocation2 + $0x1670] sm:$0xff]  ;;  %v3686_v10 = vld [vmem:[#allocation2 + $0x1698] sm:$0xff] }
 0x76d   :  { %4471 = vmatpush1.bf16.msra.mxu1 %v3727_v3  ;;  %4922 = vmatpush1.bf16.msra.mxu0 %v3601_v42  ;;  %v3694_v3 = vld [vmem:[#allocation2 + $0x16d8] sm:$0xff] }
 0x76e   :  { %4481 = vmatprep.subr.bf16.mxu1 %v3732_v43  ;;  %4932 = vmatprep.subr.bf16.mxu0 %v3606_v26  ;;  %v3698_v42 = vld [vmem:[#allocation2 + $0x16f8] sm:$0xff]  ;;  %v3697_v43 = vld [vmem:[#allocation2 + $0x16f0] sm:$0xff] }
 0x76f   :  { %v3702_v26 = vld [vmem:[#allocation2 + $0x1718] sm:$0xff] }
 0x770   :  { %4473 = vmatmul.mubr.bf16.vlgmr.msra.gmra.mrb[56].mxu1 %v9729_v44  ;;  %4924 = vmatmul.mubr.bf16.vlgmr.msra.gmra.mrb[64].mxu0 %v9708_v9  ;;  %v3618_v9 = vld [vmem:[#allocation2 + $0x1478] sm:$0xff] }
 0x771   :  { %4482 = vmatpush1.bf16.msra.mxu1 %v3731_v24  ;;  %4933 = vmatpush1.bf16.msra.mxu0 %v3605_v53  ;;  %v3701_v24 = vld [vmem:[#allocation2 + $0x1710] sm:$0xff]  ;;  %v3706_v53 = vld [vmem:[#allocation2 + $0x1738] sm:$0xff] }
 0x772   :  { %4483 = vmatprep.subr.bf16.mxu1 %v3736_v20  ;;  %4934 = vmatprep.subr.bf16.mxu0 %v3610_v56  ;;  %v3705_v20 = vld [vmem:[#allocation2 + $0x1730] sm:$0xff]  ;;  %v3710_v56 = vld [vmem:[#allocation2 + $0x1758] sm:$0xff] }
 0x773   :  { %4513 = vmatprep.mubr.bf16.mxu1 %v7540_v0  ;;  %4964 = vmatprep.mubr.bf16.mxu0 %v9710_v62  ;;  %v3621_v62 = vld [vmem:[#allocation2 + $0x1490] sm:$0xff] }
 0x775   :  { %4484 = vmatpush1.bf16.msra.mxu1 %v3735_v18  ;;  %4935 = vmatpush1.bf16.msra.mxu0 %v3609_v59  ;;  %v3709_v18 = vld [vmem:[#allocation2 + $0x1750] sm:$0xff]  ;;  %v3714_v59 = vld [vmem:[#allocation2 + $0x1778] sm:$0xff] }
 0x776   :  { %4485 = vmatprep.subr.bf16.mxu1 %v3740_v48  ;;  %4936 = vmatprep.subr.bf16.mxu0 %v3614_v29  ;;  %v3713_v48 = vld [vmem:[#allocation2 + $0x1770] sm:$0xff]  ;;  %v3718_v29 = vld [vmem:[#allocation2 + $0x1798] sm:$0xff] }
 0x779   :  { %4486 = vmatpush1.bf16.msra.mxu1 %v3739_v50  ;;  %4937 = vmatpush1.bf16.msra.mxu0 %v3613_v51  ;;  %v3717_v50 = vld [vmem:[#allocation2 + $0x1790] sm:$0xff]  ;;  %v3722_v51 = vld [vmem:[#allocation2 + $0x17b8] sm:$0xff] }
 0x77a   :  { %4487 = vmatprep.subr.bf16.mxu1 %v3744_v52  ;;  %4938 = vmatprep.subr.bf16.mxu0 %v3618_v9  ;;  %v3721_v52 = vld [vmem:[#allocation2 + $0x17b0] sm:$0xff]  ;;  %v3726_v9 = vld [vmem:[#allocation2 + $0x17d8] sm:$0xff] }
 0x77d   :  { %4488 = vmatpush1.bf16.msra.mxu1 %v3743_v36  ;;  %4939 = vmatpush1.bf16.msra.mxu0 %v3617_v55  ;;  %v3730_v36 = vld [vmem:[#allocation2 + $0x17f8] sm:$0xff] }
 0x77e   :  { %4940 = vmatprep.subr.bf16.mxu0 %v3622_v47  ;;  %v7168_v55 = vld [vmem:[#allocation19 + $0x4] ss:$16 sps:$4 sm:$0xff]   ;;  %v7170_v47 = vld [vmem:[#allocation19] ss:$16 sps:$4 sm:$0xff]  }
 0x77f   :  { %6552 = vmatprep.subr.bf16.mxu1 %v7168_v55  ;;  %v7236_v55 = vld [vmem:[#allocation18 + $0xc0] ss:$16 sps:$4 sm:$0xff]  }
 0x780   :  { %5975 = vmatmul.mubr.msk.bf16.vlgmr.msra.gmra.mrb[56].mxu1 %vm10253_vm11, %v9735_v57 }
 0x781   :  { %4941 = vmatpush1.bf16.msra.mxu0 %v3621_v62  ;;  %5331 = vmatprep.mubr.f32.mxu1 %v9742_v34  ;;  %v7171_v62 = vld [vmem:[#allocation19 + $0x24] ss:$16 sps:$4 sm:$0xff]  }
 0x782   :  { %4942 = vmatprep.subr.bf16.mxu0 %v3626_v1  ;;  %v3729_v1 = vld [vmem:[#allocation2 + $0x17f0] sm:$0xff]  ;;  %6554 = vmatpush1.bf16.msra.mxu1 %v7170_v47  ;;  %v7237_v47 = vld [vmem:[#allocation18 + $0xe4] ss:$16 sps:$4 sm:$0xff]  }
 0x783   :  { %6556 = vmatprep.subr.bf16.mxu1 %v7171_v62  ;;  %v7239_v62 = vld [vmem:[#allocation18 + $0xe0] ss:$16 sps:$4 sm:$0xff]  }
 0x785   :  { %4943 = vmatpush1.bf16.msra.mxu0 %v3625_v38  ;;  %v3734_v38 = vld [vmem:[#allocation2 + $0x1818] sm:$0xff] }
 0x786   :  { %4944 = vmatprep.subr.bf16.mxu0 %v3630_v5  ;;  %v7173_v5 = vld [vmem:[#allocation19 + $0x20] ss:$16 sps:$4 sm:$0xff]  }
 0x787   :  { %6558 = vmatpush1.bf16.msra.mxu1 %v7173_v5 }
 0x789   :  { %4945 = vmatpush1.bf16.msra.mxu0 %v3629_v37  ;;  %v7174_v37 = vld [vmem:[#allocation19 + $0x44] ss:$16 sps:$4 sm:$0xff]  }
 0x78a   :  { %4946 = vmatprep.subr.bf16.mxu0 %v3634_v2  ;;  %v3733_v2 = vld [vmem:[#allocation2 + $0x1810] sm:$0xff]  ;;  %6560 = vmatprep.subr.bf16.mxu1 %v7174_v37 }
 0x78d   :  { %4947 = vmatpush1.bf16.msra.mxu0 %v3633_v35  ;;  %v3738_v35 = vld [vmem:[#allocation2 + $0x1838] sm:$0xff] }
 0x78e   :  { %4948 = vmatprep.subr.bf16.mxu0 %v3638_v22  ;;  %v7176_v22 = vld [vmem:[#allocation19 + $0x40] ss:$16 sps:$4 sm:$0xff]  }
 0x78f   :  { %6562 = vmatpush1.bf16.msra.mxu1 %v7176_v22 }
 0x791   :  { %4949 = vmatpush1.bf16.msra.mxu0 %v3637_v12  ;;  %v7177_v12 = vld [vmem:[#allocation19 + $0x64] ss:$16 sps:$4 sm:$0xff]  }
 0x792   :  { %4950 = vmatprep.subr.bf16.mxu0 %v3642_v63  ;;  %v3737_v63 = vld [vmem:[#allocation2 + $0x1830] sm:$0xff]  ;;  %6564 = vmatprep.subr.bf16.mxu1 %v7177_v12 }
 0x795   :  { %4951 = vmatpush1.bf16.msra.mxu0 %v3641_v11  ;;  %v3742_v11 = vld [vmem:[#allocation2 + $0x1858] sm:$0xff] }
 0x796   :  { %4952 = vmatprep.subr.bf16.mxu0 %v3646_v14  ;;  %v7179_v14 = vld [vmem:[#allocation19 + $0x60] ss:$16 sps:$4 sm:$0xff]  }
 0x797   :  { %6566 = vmatpush1.bf16.msra.mxu1 %v7179_v14 }
 0x799   :  { %4953 = vmatpush1.bf16.msra.mxu0 %v3645_v15  ;;  %v7180_v15 = vld [vmem:[#allocation19 + $0x84] ss:$16 sps:$4 sm:$0xff]  }
 0x79a   :  { %4954 = vmatprep.subr.bf16.mxu0 %v3650_v41  ;;  %v3741_v41 = vld [vmem:[#allocation2 + $0x1850] sm:$0xff]  ;;  %6568 = vmatprep.subr.bf16.mxu1 %v7180_v15 }
 0x79d   :  { %4955 = vmatpush1.bf16.msra.mxu0 %v3649_v16  ;;  %v3746_v16 = vld [vmem:[#allocation2 + $0x1878] sm:$0xff] }
 0x79e   :  { %4956 = vmatprep.subr.bf16.mxu0 %v3654_v45  ;;  %v7182_v45 = vld [vmem:[#allocation19 + $0x80] ss:$16 sps:$4 sm:$0xff]  }
 0x79f   :  { %6570 = vmatpush1.bf16.msra.mxu1 %v7182_v45 }
 0x7a1   :  { %4957 = vmatpush1.bf16.msra.mxu0 %v3653_v4  ;;  %v3745_v4 = vld [vmem:[#allocation2 + $0x1870] sm:$0xff] }
 0x7a2   :  { %4958 = vmatprep.subr.bf16.mxu0 %v3658_v19  ;;  %v7186_v19 = vld [vmem:[#allocation19 + $0xc4] ss:$16 sps:$4 sm:$0xff]  }
 0x7a5   :  { %4959 = vmatpush1.bf16.msra.mxu0 %v3657_v6  ;;  %v7188_v6 = vld [vmem:[#allocation19 + $0xc0] ss:$16 sps:$4 sm:$0xff]  }
 0x7a6   :  { %4960 = vmatprep.subr.bf16.mxu0 %v3662_v40  ;;  %v7189_v40 = vld [vmem:[#allocation19 + $0xe4] ss:$16 sps:$4 sm:$0xff]  }
 0x7a9   :  { %4961 = vmatpush1.bf16.msra.mxu0 %v3661_v58  ;;  %v7191_v58 = vld [vmem:[#allocation19 + $0xe0] ss:$16 sps:$4 sm:$0xff]  }
 0x7aa   :  { %4962 = vmatprep.subr.bf16.mxu0 %v3666_v17  ;;  %v7192_v17 = vld [vmem:[#allocation19 + $0xc] ss:$16 sps:$4 sm:$0xff]  }
 0x7ad   :  { %4963 = vmatpush1.bf16.msra.mxu0 %v3665_v7  ;;  %v7194_v7 = vld [vmem:[#allocation19 + $0x8] ss:$16 sps:$4 sm:$0xff]  }
 0x7ae   :  { %4973 = vmatprep.subr.bf16.mxu0 %v3670_v21  ;;  %v5170_v21 = vld [vmem:[#allocation5 + $0x1] sm:$0x1] }
 0x7b0   :  { %4965 = vmatmul.mubr.bf16.vlgmr.msra.gmra.mrb[64].mxu0 %v9720_v54  ;;  %v3689_v54 = vld [vmem:[#allocation2 + $0x16b0] sm:$0xff] }
 0x7b1   :  { %4974 = vmatpush1.bf16.msra.mxu0 %v3669_v39  ;;  %5005 = vmatprep.mubr.bf16.mxu0 %v9722_v46  ;;  %v3693_v46 = vld [vmem:[#allocation2 + $0x16d0] sm:$0xff] }
 0x7b2   :  { %4975 = vmatprep.subr.bf16.mxu0 %v3674_v61  ;;  %v7195_v39 = vld [vmem:[#allocation19 + $0x2c] ss:$16 sps:$4 sm:$0xff]   ;;  %v7197_v61 = vld [vmem:[#allocation19 + $0x28] ss:$16 sps:$4 sm:$0xff]  }
 0x7b5   :  { %4976 = vmatpush1.bf16.msra.mxu0 %v3673_v28  ;;  %v7200_v28 = vld [vmem:[#allocation19 + $0x48] ss:$16 sps:$4 sm:$0xff]  }
 0x7b6   :  { %4977 = vmatprep.subr.bf16.mxu0 %v3678_v25  ;;  %v7201_v25 = vld [vmem:[#allocation19 + $0x6c] ss:$16 sps:$4 sm:$0xff]  }
 0x7b9   :  { %4978 = vmatpush1.bf16.msra.mxu0 %v3677_v31  ;;  %v7203_v31 = vld [vmem:[#allocation19 + $0x68] ss:$16 sps:$4 sm:$0xff]  }
 0x7ba   :  { %4979 = vmatprep.subr.bf16.mxu0 %v3682_v60  ;;  %v7204_v60 = vld [vmem:[#allocation19 + $0x8c] ss:$16 sps:$4 sm:$0xff]  }
 0x7bd   :  { %4980 = vmatpush1.bf16.msra.mxu0 %v3681_v13  ;;  %v7206_v13 = vld [vmem:[#allocation19 + $0x88] ss:$16 sps:$4 sm:$0xff]  }
 0x7be   :  { %4981 = vmatprep.subr.bf16.mxu0 %v3686_v10  ;;  %v7207_v10 = vld [vmem:[#allocation19 + $0xac] ss:$16 sps:$4 sm:$0xff]  }
 0x7c1   :  { %4982 = vmatpush1.bf16.msra.mxu0 %v3685_v30  ;;  %v7209_v30 = vld [vmem:[#allocation19 + $0xa8] ss:$16 sps:$4 sm:$0xff]  }
 0x7c2   :  { %4983 = vmatprep.subr.bf16.mxu0 %v3690_v32  ;;  %v7210_v32 = vld [vmem:[#allocation19 + $0xcc] ss:$16 sps:$4 sm:$0xff]  }
 0x7c5   :  { %4984 = vmatpush1.bf16.msra.mxu0 %v3689_v54  ;;  %v7212_v54 = vld [vmem:[#allocation19 + $0xc8] ss:$16 sps:$4 sm:$0xff]  }
 0x7c6   :  { %4985 = vmatprep.subr.bf16.mxu0 %v3694_v3  ;;  %v7213_v3 = vld [vmem:[#allocation19 + $0xec] ss:$16 sps:$4 sm:$0xff]  }
 0x7c9   :  { %4986 = vmatpush1.bf16.msra.mxu0 %v3693_v46  ;;  %v7215_v46 = vld [vmem:[#allocation19 + $0xe8] ss:$16 sps:$4 sm:$0xff]  }
 0x7ca   :  { %4987 = vmatprep.subr.bf16.mxu0 %v3698_v42  ;;  %v7216_v42 = vld [vmem:[#allocation18 + $0x4] ss:$16 sps:$4 sm:$0xff]  }
 0x7cd   :  { %4988 = vmatpush1.bf16.msra.mxu0 %v3697_v43  ;;  %v7218_v43 = vld [vmem:[#allocation18] ss:$16 sps:$4 sm:$0xff]  }
 0x7ce   :  { %4989 = vmatprep.subr.bf16.mxu0 %v3702_v26 }
 0x7d1   :  { %4990 = vmatpush1.bf16.msra.mxu0 %v3701_v24  ;;  %v7219_v24 = vld [vmem:[#allocation18 + $0x24] ss:$16 sps:$4 sm:$0xff]  }
 0x7d2   :  { %4991 = vmatprep.subr.bf16.mxu0 %v3706_v53 }
 0x7d5   :  { %4992 = vmatpush1.bf16.msra.mxu0 %v3705_v20 }
 0x7d6   :  { %4993 = vmatprep.subr.bf16.mxu0 %v3710_v56  ;;  %v7221_v56 = vld [vmem:[#allocation18 + $0x20] ss:$16 sps:$4 sm:$0xff]  }
 0x7d9   :  { %4994 = vmatpush1.bf16.msra.mxu0 %v3709_v18 }
 0x7da   :  { %4995 = vmatprep.subr.bf16.mxu0 %v3714_v59 }
 0x7dd   :  { %4996 = vmatpush1.bf16.msra.mxu0 %v3713_v48 }
 0x7de   :  { %4997 = vmatprep.subr.bf16.mxu0 %v3718_v29  ;;  %v7222_v29 = vld [vmem:[#allocation18 + $0x44] ss:$16 sps:$4 sm:$0xff]  }
 0x7e1   :  { %4998 = vmatpush1.bf16.msra.mxu0 %v3717_v50  ;;  %v7224_v50 = vld [vmem:[#allocation18 + $0x40] ss:$16 sps:$4 sm:$0xff]  }
 0x7e2   :  { %4999 = vmatprep.subr.bf16.mxu0 %v3722_v51  ;;  %v7225_v51 = vld [vmem:[#allocation18 + $0x64] ss:$16 sps:$4 sm:$0xff]  }
 0x7e5   :  { %5000 = vmatpush1.bf16.msra.mxu0 %v3721_v52  ;;  %v7227_v52 = vld [vmem:[#allocation18 + $0x60] ss:$16 sps:$4 sm:$0xff]  }
 0x7e6   :  { %5001 = vmatprep.subr.bf16.mxu0 %v3726_v9  ;;  %v7228_v9 = vld [vmem:[#allocation18 + $0x84] ss:$16 sps:$4 sm:$0xff]  }
 0x7e9   :  { %5002 = vmatpush1.bf16.msra.mxu0 %v3725_v27  ;;  %v7230_v27 = vld [vmem:[#allocation18 + $0x80] ss:$16 sps:$4 sm:$0xff]  }
 0x7ea   :  { %5003 = vmatprep.subr.bf16.mxu0 %v3730_v36  ;;  %v7233_v36 = vld [vmem:[#allocation18 + $0xa0] ss:$16 sps:$4 sm:$0xff]  }
 0x7ed   :  { %5004 = vmatpush1.bf16.msra.mxu0 %v3729_v1  ;;  %v7240_v1 = vld [vmem:[#allocation18 + $0xc] ss:$16 sps:$4 sm:$0xff]  }
 0x7ee   :  { %5014 = vmatprep.subr.bf16.mxu0 %v3734_v38 }
 0x7f0   :  { %5006 = vmatmul.mubr.bf16.vlgmr.msra.gmra.mrb[64].mxu0 %v9729_v44  ;;  %v7183_v44 = vld [vmem:[#allocation19 + $0xa4] ss:$16 sps:$4 sm:$0xff]  }
 0x7f1   :  { %5015 = vmatpush1.bf16.msra.mxu0 %v3733_v2  ;;  %5046 = vmatprep.mubr.bf16.mxu0 %v7540_v0  ;;  %v7185_v0 = vld [vmem:[#allocation19 + $0xa0] ss:$16 sps:$4 sm:$0xff]  }
 0x7f2   :  { %5016 = vmatprep.subr.bf16.mxu0 %v3738_v35  ;;  %6572 = vmatprep.subr.bf16.mxu1 %v7183_v44  ;;  %v5068_v44 = vld [vmem:[#allocation7] sm:$0x1] }
 0x7f3   :  { %6574 = vmatpush1.bf16.msra.mxu1 %v7185_v0 }
 0x7f4   :  { %6576 = vmatprep.subr.bf16.mxu1 %v7186_v19 }
 0x7f5   :  { %5017 = vmatpush1.bf16.msra.mxu0 %v3737_v63 }
 0x7f6   :  { %5018 = vmatprep.subr.bf16.mxu0 %v3742_v11 }
 0x7f7   :  { %6578 = vmatpush1.bf16.msra.mxu1 %v7188_v6 }
 0x7f8   :  { %6580 = vmatprep.subr.bf16.mxu1 %v7189_v40 }
 0x7f9   :  { %5019 = vmatpush1.bf16.msra.mxu0 %v3741_v41 }
 0x7fa   :  { %5020 = vmatprep.subr.bf16.mxu0 %v3746_v16 }
 0x7fb   :  { %6582 = vmatpush1.bf16.msra.mxu1 %v7191_v58 }
 0x7fc   :  { %6584 = vmatprep.subr.bf16.mxu1 %v7192_v17 }
 0x7fd   :  { %5021 = vmatpush1.bf16.msra.mxu0 %v3745_v4 }
 0x7fe   :  { %5332 = vmatmul.mubr.f32.vlgmr.msra.gmra.mrb[54].mxu1 %v5170_v21 }
 0x7ff   :  { %6586 = vmatpush1.bf16.msra.mxu1 %v7194_v7  ;;  %5402 = vmatprep.mubr.f32.mxu1 %v9742_v34  ;;  %v7242_v7 = vld [vmem:[#allocation18 + $0x8] ss:$16 sps:$4 sm:$0xff]  }
 0x800   :  { %5976 = vmatmul.mubr.msk.bf16.vlgmr.msra.gmra.mrb[64].mxu0 %vm10254_vm9, %v9735_v57  ;;  %6588 = vmatprep.subr.bf16.mxu1 %v7195_v39  ;;  %v7198_v57 = vld [vmem:[#allocation19 + $0x4c] ss:$16 sps:$4 sm:$0xff]  }
 0x801   :  { %6384 = vmatprep.mubr.msk.f32.mxu0 %vm10255_vm7, %v9742_v34  ;;  %v7243_v39 = vld [vmem:[#allocation18 + $0x2c] ss:$16 sps:$4 sm:$0xff]  }
 0x803   :  { %6590 = vmatpush1.bf16.msra.mxu1 %v7197_v61  ;;  %v7245_v61 = vld [vmem:[#allocation18 + $0x28] ss:$16 sps:$4 sm:$0xff]  }
 0x804   :  { %6592 = vmatprep.subr.bf16.mxu1 %v7198_v57  ;;  %v7246_v57 = vld [vmem:[#allocation18 + $0x4c] ss:$16 sps:$4 sm:$0xff]  }
 0x807   :  { %6594 = vmatpush1.bf16.msra.mxu1 %v7200_v28  ;;  %v7248_v28 = vld [vmem:[#allocation18 + $0x48] ss:$16 sps:$4 sm:$0xff]  }
 0x808   :  { %6596 = vmatprep.subr.bf16.mxu1 %v7201_v25  ;;  %v7249_v25 = vld [vmem:[#allocation18 + $0x6c] ss:$16 sps:$4 sm:$0xff]  }
 0x80b   :  { %6598 = vmatpush1.bf16.msra.mxu1 %v7203_v31  ;;  %v7251_v31 = vld [vmem:[#allocation18 + $0x68] ss:$16 sps:$4 sm:$0xff]  }
 0x80c   :  { %6600 = vmatprep.subr.bf16.mxu1 %v7204_v60  ;;  %v7252_v60 = vld [vmem:[#allocation18 + $0x8c] ss:$16 sps:$4 sm:$0xff]  }
 0x80f   :  { %6602 = vmatpush1.bf16.msra.mxu1 %v7206_v13  ;;  %v7254_v13 = vld [vmem:[#allocation18 + $0x88] ss:$16 sps:$4 sm:$0xff]  }
 0x810   :  { %6604 = vmatprep.subr.bf16.mxu1 %v7207_v10  ;;  %v7255_v10 = vld [vmem:[#allocation18 + $0xac] ss:$16 sps:$4 sm:$0xff]  }
 0x813   :  { %6606 = vmatpush1.bf16.msra.mxu1 %v7209_v30  ;;  %v7257_v30 = vld [vmem:[#allocation18 + $0xa8] ss:$16 sps:$4 sm:$0xff]  }
 0x814   :  { %6608 = vmatprep.subr.bf16.mxu1 %v7210_v32  ;;  %v7258_v32 = vld [vmem:[#allocation18 + $0xcc] ss:$16 sps:$4 sm:$0xff]  }
 0x817   :  { %6610 = vmatpush1.bf16.msra.mxu1 %v7212_v54  ;;  %v7260_v54 = vld [vmem:[#allocation18 + $0xc8] ss:$16 sps:$4 sm:$0xff]  }
 0x818   :  { %6612 = vmatprep.subr.bf16.mxu1 %v7213_v3  ;;  %v7261_v3 = vld [vmem:[#allocation18 + $0xec] ss:$16 sps:$4 sm:$0xff]  }
 0x81b   :  { %6614 = vmatpush1.bf16.msra.mxu1 %v7215_v46  ;;  %v7263_v46 = vld [vmem:[#allocation18 + $0xe8] ss:$16 sps:$4 sm:$0xff]  }
 0x81c   :  { %6616 = vmatprep.subr.bf16.mxu1 %v7216_v42  ;;  %v5570_v42 = vld [vmem:[%s9944_s21] sm:$0xff] }
 0x81e   :  { %5403 = vmatmul.mubr.f32.vlgmr.msra.gmra.mrb[60].mxu1 %v5170_v21 }
 0x81f   :  { %6618 = vmatpush1.bf16.msra.mxu1 %v7218_v43  ;;  %5473 = vmatprep.mubr.f32.mxu1 %v9742_v34  ;;  %v5571_v43 = vld [vmem:[%s9944_s21 + $0x8] sm:$0xff] }
 0x820   :  { %6620 = vmatprep.subr.bf16.mxu1 %v7219_v24  ;;  %v7607_v24 = vmov 0.0|0.0  }
 0x821   :  { %6679 = vmatprep.subr.bf16.mxu0 %v7607_v24 }
 0x823   :  { %6622 = vmatpush1.bf16.msra.mxu1 %v7221_v56 }
 0x824   :  { %6624 = vmatprep.subr.bf16.mxu1 %v7222_v29 }
 0x827   :  { %6626 = vmatpush1.bf16.msra.mxu1 %v7224_v50  ;;  %v5659_v50 = vld [vmem:[%s9945_s22 + $0x18] sm:$0xff] }
 0x828   :  { %6628 = vmatprep.subr.bf16.mxu1 %v7225_v51 }
 0x82b   :  { %6630 = vmatpush1.bf16.msra.mxu1 %v7227_v52  ;;  %v5574_v52 = vld [vmem:[%s9944_s21 + $0x20] sm:$0xff] }
 0x82c   :  { %6632 = vmatprep.subr.bf16.mxu1 %v7228_v9  ;;  %v5575_v9 = vld [vmem:[%s9944_s21 + $0x28] sm:$0xff] }
 0x82f   :  { %6634 = vmatpush1.bf16.msra.mxu1 %v7230_v27  ;;  %v5660_v27 = vld [vmem:[%s9945_s22 + $0x20] sm:$0xff] }
 0x853   :  { %v4515_v26 = vpop.f32.mrb[56].mxu1 }
 0x854   :  { %v6739_v53 = vadd.f32 %v4515_v26, %v9644_v49  ;;  %v4517_v20 = vpop.f32.mrb[57].mxu1  ;;  %v7231_v49 = vld [vmem:[#allocation18 + $0xa4] ss:$16 sps:$4 sm:$0xff]   ;;  %v5656_v26 = vld [vmem:[%s9945_s22] sm:$0xff] }
 0x855   :  { %v6740_v18 = vadd.f32 %v4517_v20, %v9647_v23  ;;  %v4519_v59 = vpop.f32.mrb[58].mxu1  ;;  %6636 = vmatprep.subr.bf16.mxu1 %v7231_v49  ;;  %v7234_v23 = vld [vmem:[#allocation18 + $0xc4] ss:$16 sps:$4 sm:$0xff]   ;;  %v6686_v49 = vpack.c.bf16 %v5575_v9, %v5574_v52  ;;  %v5744_v52 = vld [vmem:[%s10256_s7 + $0x10] sm:$0xff] }
 0x856   :  { %v4520_v48 = vpop.f32.mrb[59].mxu1  ;;  %6638 = vmatpush1.bf16.msra.mxu1 %v7233_v36  ;;  %v5055_v5 = vmul.f32 0.5, %v6739_v53  ;;  %v6680_v53 = vpack.c.bf16 %v5571_v43, %v5570_v42  ;;  %v5657_v20 = vld [vmem:[%s9945_s22 + $0x8] sm:$0xff]  ;;  %v5573_v59 = vld [vmem:[%s9944_s21 + $0x18] sm:$0xff] }
 0x857   :  { %6640 = vmatprep.subr.bf16.mxu1 %v7234_v23  ;;  %v5059_v38 = vmul.f32 0.5, %v6740_v18  ;;  %v6704_v56 = vpack.c.bf16 %v5657_v20, %v5656_v26  ;;  %v5572_v18 = vld [vmem:[%s9944_s21 + $0x10] sm:$0xff]  ;;  %v5661_v36 = vld [vmem:[%s9945_s22 + $0x28] sm:$0xff]  ;;  %v5745_v9 = vld [vmem:[%s10256_s7 + $0x18] sm:$0xff] }
 0x858   :  { %6681 = vmatpush3.bf16.msra.mxu0 %v6680_v53  ;;  %v5658_v48 = vld [vmem:[%s9945_s22 + $0x10] sm:$0xff]  ;;  %v6683_v29 = vpack.c.bf16 %v5573_v59, %v5572_v18  ;;  %v6710_v23 = vpack.c.bf16 %v5661_v36, %v5660_v27  ;;  %v5742_v18 = vld [vmem:[%s10256_s7] sm:$0xff]  ;;  %v5743_v59 = vld [vmem:[%s10256_s7 + $0x8] sm:$0xff]  ;;  %v6731_v27 = vpack.c.bf16 %v5745_v9, %v5744_v52 }
 0x859   :  { %7264 = vtanh.f32 %v5059_v38  ;;  %6682 = vmatprep.subr.bf16.mxu0 %v7607_v24  ;;  %v6707_v51 = vpack.c.bf16 %v5659_v50, %v5658_v48  ;;  %v5663_v38 = vld [vmem:[%s9945_s22 + $0x38] sm:$0xff]  ;;  %v6728_v50 = vpack.c.bf16 %v5743_v59, %v5742_v18  ;;  %v5747_v36 = vld [vmem:[%s10256_s7 + $0x28] sm:$0xff] }
 0x85a   :  { %6642 = vmatpush1.bf16.msra.mxu1 %v7236_v55  ;;  %7266 = vtanh.f32 %v5055_v5  ;;  %v5576_v55 = vld [vmem:[%s9944_s21 + $0x30] sm:$0xff] }
 0x85b   :  { %6644 = vmatprep.subr.bf16.mxu1 %v7237_v47  ;;  %v5577_v47 = vld [vmem:[%s9944_s21 + $0x38] sm:$0xff] }
 0x85c   :  { %6684 = vmatpush3.bf16.msra.mxu0 %v6683_v29 }
 0x85d   :  { %6685 = vmatprep.subr.bf16.mxu0 %v7607_v24 }
 0x85e   :  { %6646 = vmatpush1.bf16.msra.mxu1 %v7239_v62  ;;  %v5662_v62 = vld [vmem:[%s9945_s22 + $0x30] sm:$0xff] }
 0x85f   :  { %6648 = vmatprep.subr.bf16.mxu1 %v7240_v1  ;;  %v6689_v1 = vpack.c.bf16 %v5577_v47, %v5576_v55  ;;  %v6713_v5 = vpack.c.bf16 %v5663_v38, %v5662_v62  ;;  %v5748_v55 = vld [vmem:[%s10256_s7 + $0x30] sm:$0xff] }
 0x860   :  { %6687 = vmatpush3.bf16.msra.mxu0 %v6686_v49  ;;  %v5746_v49 = vld [vmem:[%s10256_s7 + $0x20] sm:$0xff] }
 0x861   :  { %6688 = vmatprep.subr.bf16.mxu0 %v7607_v24 }
 0x863   :  { %v7265_v63 = vpop.eup %7264 }
 0x864   :  { %v7267_v14 = vpop.eup %7266  ;;  %v5061_v15 = vadd.f32 1.0, %v7265_v63  ;;  %6690 = vmatpush3.bf16.msra.mxu0 %v6689_v1 }
 0x865   :  { %v5057_v16 = vadd.f32 1.0, %v7267_v14  ;;  %6691 = vmatprep.subr.bf16.mxu0 %v7607_v24  ;;  %v5581_v14 = vld [vmem:[%s9944_s21 + $0x58] sm:$0xff] }
 0x866   :  { %v5062_v45 = vmul.f32 0.5, %v5061_v15  ;;  %v5666_v15 = vld [vmem:[%s9945_s22 + $0x50] sm:$0xff] }
 0x867   :  { %v5058_v4 = vmul.f32 0.5, %v5057_v16  ;;  %v5667_v16 = vld [vmem:[%s9945_s22 + $0x58] sm:$0xff] }
 0x868   :  { %v5069_v19 = vmul.f32 %v5068_v44, %v5062_v45  ;;  %v6719_v45 = vpack.c.bf16 %v5667_v16, %v5666_v15  ;;  %v5582_v44 = vld [vmem:[%s9944_s21 + $0x60] sm:$0xff] }
 0x8d3   :  { %v5048_v37 = vpop.f32.mrb[64].mxu0 }
 0x8d4   :  { %v6741_v2 = vadd.f32 %v5048_v37, %v9662_v33  ;;  %v5050_v35 = vpop.f32.mrb[65].mxu0  ;;  %v5578_v37 = vld [vmem:[%s9944_s21 + $0x40] sm:$0xff] }
 0x8d5   :  { %v6742_v22 = vadd.f32 %v5050_v35, %v9665_v8  ;;  %v5052_v12 = vpop.f32.mrb[66].mxu0  ;;  %v5664_v35 = vld [vmem:[%s9945_s22 + $0x40] sm:$0xff] }
 0x8d6   :  { %7268 = vtanh.f32 %v6741_v2  ;;  %v5053_v11 = vpop.f32.mrb[67].mxu0  ;;  %v5579_v2 = vld [vmem:[%s9944_s21 + $0x48] sm:$0xff] }
 0x8d7   :  { %v5064_v41 = vmul.f32 0.5, %v6742_v22  ;;  %v6692_v22 = vpack.c.bf16 %v5579_v2, %v5578_v37  ;;  %v5665_v12 = vld [vmem:[%s9945_s22 + $0x48] sm:$0xff]  ;;  %v5580_v11 = vld [vmem:[%s9944_s21 + $0x50] sm:$0xff] }
 0x8d8   :  { %v6716_v63 = vpack.c.bf16 %v5665_v12, %v5664_v35 }
 0x8d9   :  { %7270 = vtanh.f32 %v5064_v41  ;;  %6693 = vmatpush3.bf16.msra.mxu0 %v6692_v22  ;;  %v6695_v41 = vpack.c.bf16 %v5581_v14, %v5580_v11 }
 0x8da   :  { %6694 = vmatprep.subr.bf16.mxu0 %v7607_v24 }
 0x8dd   :  { %6696 = vmatpush3.bf16.msra.mxu0 %v6695_v41 }
 0x8de   :  { %6697 = vmatprep.subr.bf16.mxu0 %v7607_v24 }
 0x8e0   :  { %v7269_v0 = vpop.eup %7268 }
 0x8e1   :  { %v5070_v6 = vmul.f32 %v7269_v0, %v5058_v4  ;;  %v5583_v4 = vld [vmem:[%s9944_s21 + $0x68] sm:$0xff]  ;;  %v5668_v0 = vld [vmem:[%s9945_s22 + $0x60] sm:$0xff] }
 0x8e3   :  { %v5071_v40 = vadd.f32 %v5070_v6, %v5069_v19  ;;  %v7271_v33 = vpop.eup %7270  ;;  %v6698_v19 = vpack.c.bf16 %v5583_v4, %v5582_v44  ;;  %v5669_v6 = vld [vmem:[%s9945_s22 + $0x68] sm:$0xff] }
 0x8e4   :  { %v5066_v8 = vadd.f32 1.0, %v7271_v33  ;;  %v5584_v33 = vld [vmem:[%s9944_s21 + $0x70] sm:$0xff] }
 0x8e5   :  { %7272 = vtanh.f32 %v5071_v40  ;;  %5826 = vst [vmem:[%s9948_s25 + $0x2] sm:$0x1] %v5071_v40  ;;  %v6722_v40 = vpack.c.bf16 %v5669_v6, %v5668_v0  ;;  %6699 = vmatpush3.bf16.msra.mxu0 %v6698_v19 }
 0x8e6   :  { %v5067_v58 = vmul.f32 0.5, %v5066_v8  ;;  %6700 = vmatprep.subr.bf16.mxu0 %v7607_v24  ;;  %v5585_v8 = vld [vmem:[%s9944_s21 + $0x78] sm:$0xff] }
 0x8ef   :  { %v7273_v17 = vpop.eup %7272 }
 0x8f0   :  { %v5073_v21 = vmul.f32 %v7273_v17, %v5067_v58  ;;  %v5670_v58 = vld [vmem:[%s9945_s22 + $0x70] sm:$0xff]  ;;  %v6701_v17 = vpack.c.bf16 %v5585_v8, %v5584_v33 }
 0x8f2   :  { %5824 = vst [vmem:[%s9948_s25] sm:$0x1] %v5073_v21  ;;  %5474 = vmatmul.mubr.f32.vlgmr.msra.gmra.mrb[54].mxu1 %v5073_v21  ;;  %6702 = vmatpush3.bf16.msra.mxu0 %v6701_v17 }
 0x8f3   :  { %6650 = vmatpush1.bf16.msra.mxu1 %v7242_v7  ;;  %5544 = vmatprep.mubr.f32.mxu1 %v9742_v34  ;;  %v5671_v7 = vld [vmem:[%s9945_s22 + $0x78] sm:$0xff] }
 0x8f4   :  { %6652 = vmatprep.subr.bf16.mxu1 %v7243_v39  ;;  %6727 = vmatprep.subr.bf16.mxu0 %v7607_v24 }
 0x8f7   :  { %6654 = vmatpush1.bf16.msra.mxu1 %v7245_v61 }
 0x8f8   :  { %6656 = vmatprep.subr.bf16.mxu1 %v7246_v57 }
 0x8fb   :  { %6658 = vmatpush1.bf16.msra.mxu1 %v7248_v28 }
 0x8fc   :  { %6660 = vmatprep.subr.bf16.mxu1 %v7249_v25 }
 0x8ff   :  { %6662 = vmatpush1.bf16.msra.mxu1 %v7251_v31 }
 0x900   :  { %6664 = vmatprep.subr.bf16.mxu1 %v7252_v60 }
 0x903   :  { %6666 = vmatpush1.bf16.msra.mxu1 %v7254_v13 }
 0x904   :  { %6668 = vmatprep.subr.bf16.mxu1 %v7255_v10 }
 0x907   :  { %6670 = vmatpush1.bf16.msra.mxu1 %v7257_v30 }
 0x908   :  { %6672 = vmatprep.subr.bf16.mxu1 %v7258_v32 }
 0x90b   :  { %6674 = vmatpush1.bf16.msra.mxu1 %v7260_v54 }
 0x90c   :  { %6676 = vmatprep.subr.bf16.mxu1 %v7261_v3  ;;  %v5564_v3 = vld [vmem:[#allocation7 + $0x1] sm:$0x1] }
 0x90f   :  { %6678 = vmatpush1.bf16.msra.mxu1 %v7263_v46 }
 0x910   :  { %6703 = vmatprep.subr.bf16.mxu1 %v7607_v24 }
 0x912   :  { %5545 = vmatmul.mubr.f32.vlgmr.msra.gmra.mrb[60].mxu1 %v5073_v21  ;;  %v6725_v21 = vpack.c.bf16 %v5671_v7, %v5670_v58 }
 0x913   :  { %6419 = vmatprep.mubr.msk.f32.mxu1 %vm10255_vm7, %v9742_v34  ;;  %6705 = vmatpush3.bf16.msra.mxu1 %v6704_v56 }
 0x914   :  { %6706 = vmatprep.subr.bf16.mxu1 %v7607_v24 }
 0x917   :  { %6708 = vmatpush3.bf16.msra.mxu1 %v6707_v51 }
 0x918   :  { %6709 = vmatprep.subr.bf16.mxu1 %v7607_v24 }
 0x91b   :  { %6711 = vmatpush3.bf16.msra.mxu1 %v6710_v23  ;;  %v6734_v23 = vpack.c.bf16 %v5747_v36, %v5746_v49 }
 0x91c   :  { %6712 = vmatprep.subr.bf16.mxu1 %v7607_v24 }
 0x91f   :  { %6714 = vmatpush3.bf16.msra.mxu1 %v6713_v5 }
 0x920   :  { %6715 = vmatprep.subr.bf16.mxu1 %v7607_v24 }
 0x923   :  { %6717 = vmatpush3.bf16.msra.mxu1 %v6716_v63 }
 0x924   :  { %6718 = vmatprep.subr.bf16.mxu1 %v7607_v24 }
 0x927   :  { %6720 = vmatpush3.bf16.msra.mxu1 %v6719_v45 }
 0x928   :  { %6721 = vmatprep.subr.bf16.mxu1 %v7607_v24 }
 0x92b   :  { %6723 = vmatpush3.bf16.msra.mxu1 %v6722_v40 }
 0x92c   :  { %6724 = vmatprep.subr.bf16.mxu1 %v7607_v24 }
 0x92f   :  { %6726 = vmatpush3.bf16.msra.mxu1 %v6725_v21 }
 0x9c5   :  { %v5475_v39 = vpop.f32.mrb[54].mxu1 }
 0x9c6   :  { %v5477_v61 = vpop.f32.mrb[55].mxu1  ;;  %v5551_v28 = vmul.f32 0.5, %v5475_v39 }
 0x9c7   :  { %v5555_v57 = vmul.f32 0.5, %v5477_v61 }
 0x9c9   :  { %7274 = vtanh.f32 %v5555_v57 }
 0x9ca   :  { %7276 = vtanh.f32 %v5551_v28 }
 0x9d3   :  { %v7275_v31 = vpop.eup %7274 }
 0x9d4   :  { %v7277_v13 = vpop.eup %7276  ;;  %v5557_v10 = vadd.f32 1.0, %v7275_v31 }
 0x9d5   :  { %v5553_v32 = vadd.f32 1.0, %v7277_v13 }
 0x9d6   :  { %v5558_v54 = vmul.f32 0.5, %v5557_v10 }
 0x9d7   :  { %v5554_v46 = vmul.f32 0.5, %v5553_v32 }
 0x9d8   :  { %v5565_v43 = vmul.f32 %v5564_v3, %v5558_v54 }
 0x9e5   :  { %v5546_v25 = vpop.f32.mrb[60].mxu1 }
 0x9e6   :  { %7278 = vtanh.f32 %v5546_v25  ;;  %v5548_v60 = vpop.f32.mrb[61].mxu1 }
 0x9e7   :  { %v5560_v30 = vmul.f32 0.5, %v5548_v60 }
 0x9e9   :  { %7280 = vtanh.f32 %v5560_v30 }
 0x9f0   :  { %v7279_v42 = vpop.eup %7278 }
 0x9f1   :  { %v5566_v26 = vmul.f32 %v7279_v42, %v5554_v46 }
 0x9f3   :  { %v5567_v53 = vadd.f32 %v5566_v26, %v5565_v43  ;;  %v7281_v20 = vpop.eup %7280 }
 0x9f4   :  { %v5562_v56 = vadd.f32 1.0, %v7281_v20 }
 0x9f5   :  { %7282 = vtanh.f32 %v5567_v53  ;;  %5827 = vst [vmem:[%s9948_s25 + $0x3] sm:$0x1] %v5567_v53 }
 0x9f6   :  { %v5563_v48 = vmul.f32 0.5, %v5562_v56 }
 0x9ff   :  { %v7283_v29 = vpop.eup %7282 }
 0xa00   :  { %v5569_v51 = vmul.f32 %v7283_v29, %v5563_v48 }
 0xa02   :  { %5825 = vst [vmem:[%s9948_s25 + $0x1] sm:$0x1] %v5569_v51  ;;  %6385 = vmatmul.mubr.f32.vlgmr.msra.gmra.mrb[54].mxu0 %v5569_v51  ;;  %6420 = vmatmul.mubr.f32.vlgmr.msra.gmra.mrb[62].mxu1 %v5569_v51 }
 0xa03   :  { %6729 = vmatpush3.bf16.msra.mxu0 %v6728_v50  ;;  %6438 = vmatprep.mubr.msk.f32.mxu0 %vm10255_vm7, %v9742_v34  ;;  %v5749_v34 = vld [vmem:[%s10256_s7 + $0x38] sm:$0xff] }
 0xa04   :  { %6730 = vmatprep.subr.bf16.mxu0 %v7607_v24  ;;  %v6737_v47 = vpack.c.bf16 %v5749_v34, %v5748_v55 }
 0xa07   :  { %6732 = vmatpush3.bf16.msra.mxu0 %v6731_v27 }
 0xa08   :  { %6733 = vmatprep.subr.bf16.mxu0 %v7607_v24 }
 0xa0b   :  { %6735 = vmatpush3.bf16.msra.mxu0 %v6734_v23 }
 0xa0c   :  { %6736 = vmatprep.subr.bf16.mxu0 %v7607_v24 }
 0xa0f   :  { %6738 = vmatpush3.bf16.msra.mxu0 %v6737_v47 }
 0xad5   :  { %v5652_v62 = vpop.f32.mrb[54].mxu0  ;;  %v5738_v1 = vpop.f32.mrb[62].mxu1 }
 0xad6   :  { %5829 = vst.msk [vmem:[%s9948_s25 + $0x4] sm:$0x1] %vm5828_vm0, %v5652_v62  ;;  %v6386_v38 = vpop.f32.mrb[55].mxu0  ;;  %v6421_v5 = vpop.f32.mrb[63].mxu1  ;;  %6439 = vmatmul.mubr.msk.f32.vlgmr.msra.gmra.mrb[68].mxu0 %vm10257_vm12, %v5738_v1 }
 0xba9   :  { %v5819_v37 = vpop.f32.mrb[68].mxu0 }
 0xbaa   :  { %5831 = vst.msk [vmem:[%s9948_s25 + $0x5] sm:$0x1] %vm5830_vm2, %v5819_v37  ;;  %v6440_v2 = vpop.f32.mrb[69].mxu0 }
 0xbab   :  { %5840 = vsyncpa [#allocation6], 1 }
 0xbac   :  { %5841 = vsyncpa [#allocation8], 1 }
 0xbad   :  { %5842 = vsyncpa [#allocation11], 1 }
 0xbae   :  { %5843 = vsyncpa [#allocation14], 1 }
 0xbaf   :  { %5844 = vsyncpa [#allocation17], 1 }
 0xbb0   :  { %5845 = vsyncpa [#allocation20], 1 }
 0xbb1   :  { %5846 = vsyncmov [#allocation4] }
 0xbb4   :  { %s5847_s4 = vpop.sfrf %5846 }
 0xbb5   :  { %p5978_p10 = scmp.ne.s32.totalorder %s5847_s4, 0 }
 0xbb7   :  { %5851 = shalt.err (%p5978_p10)  }

</bundles_post_ra>
